<compile_context>
chip_gen: v7x
topology: tpu7x:2x2x1
jax: 0.10.0
libtpu: 0.0.40
codegen_flags: <defaults>
</compile_context>

<pallas_src>
import functools
import numpy as np
import jax
import jax.numpy as jnp
from jax.experimental import pallas as pl
from jax.experimental.pallas import tpu as pltpu

_VMEM = pltpu.MemorySpace.VMEM


def _vmem_specs(n):
    return [pl.BlockSpec(memory_space=_VMEM)] * n


def _lrelu(x, alpha):
    return jnp.where(x > 0, x, alpha * x)


def _dot(a, b):
    return jnp.dot(a, b, preferred_element_type=jnp.float32)


# ----------------------------------------------------------------------------
# Fused Pallas kernels
# ----------------------------------------------------------------------------

def _single_vbge_kernel(*refs, alpha):
    """Fused singleVBGE.forward (eval mode): DGCN + variational last layer.

    Only the mean heads are computed (logstd is discarded by eval-mode
    reparameterization, so it is dead code)."""
    (ufea_ref, vfea_ref, UV_ref, VU_ref,
     W1, b1, W2, b2, W3, b3, W4, b4,
     Wu_a, Wu_b, bu, Wi_a, Wi_b, bi,
     Wl1, bl1, Wl2, bl2, W3m, b3m, W4m, b4m,
     Wum_a, Wum_b, bum, Wim_a, Wim_b, bim,
     user_out, item_out) = refs

    uf = ufea_ref[...]
    vf = vfea_ref[...]
    uv = UV_ref[...]
    vu = VU_ref[...]

    # ---- DGCN ----
    user_ho = _lrelu(_dot(vu, _dot(uf, W1[...])) + b1[...], alpha)        # [n_item, H]
    item_ho = _lrelu(_dot(uv, _dot(vf, W2[...])) + b2[...], alpha)        # [n_user, H]
    user_ho = _lrelu(_dot(uv, _dot(user_ho, W3[...])) + b3[...], alpha)   # [n_user, F]
    item_ho = _lrelu(_dot(vu, _dot(item_ho, W4[...])) + b4[...], alpha)   # [n_item, F]
    # union linear: cat(user_ho, ufea) @ W.T  ==  user_ho @ Wu_a + ufea @ Wu_b
    user = jnp.maximum(_dot(user_ho, Wu_a[...]) + _dot(uf, Wu_b[...]) + bu[...], 0.0)
    item = jnp.maximum(_dot(item_ho, Wi_a[...]) + _dot(vf, Wi_b[...]) + bi[...], 0.0)

    # ---- variational last layer, user path (mean head only) ----
    uho = _lrelu(_dot(vu, _dot(user, Wl1[...])) + bl1[...], alpha)        # [n_item, H]
    umean_ho = _lrelu(_dot(_dot(uv, uho), W3m[...]) + b3m[...], alpha)    # [n_user, F]
    user_mean = _dot(umean_ho, Wum_a[...]) + _dot(user, Wum_b[...]) + bum[...]

    # ---- variational last layer, item path (mean head only) ----
    iho = _lrelu(_dot(uv, _dot(item, Wl2[...])) + bl2[...], alpha)        # [n_user, H]
    imean_ho = _lrelu(_dot(_dot(vu, iho), W4m[...]) + b4m[...], alpha)    # [n_item, F]
    item_mean = _dot(imean_ho, Wim_a[...]) + _dot(item, Wim_b[...]) + bim[...]

    user_out[...] = user_mean
    item_out[...] = item_mean


def _user_share_kernel(*refs, alpha):
    """Fused singleVBGE.forward_user_share: DGCN(user path) + last layer with
    both mean/logstd heads.  Output is lane-concatenated [mean | logstd]."""
    (ufea_ref, UV_ref, VU_ref,
     W1, b1, W3, b3, Wu_a, Wu_b, bu,
     Wl1, bl1, W3c, b3c, Wh, Wx, bc,
     out_ref) = refs

    uf = ufea_ref[...]
    uv = UV_ref[...]
    vu = VU_ref[...]

    user_ho = _lrelu(_dot(vu, _dot(uf, W1[...])) + b1[...], alpha)        # [n_item, H]
    user_ho = _lrelu(_dot(uv, _dot(user_ho, W3[...])) + b3[...], alpha)   # [n_user, F]
    user = jnp.maximum(_dot(user_ho, Wu_a[...]) + _dot(uf, Wu_b[...]) + bu[...], 0.0)

    uho = _lrelu(_dot(vu, _dot(user, Wl1[...])) + bl1[...], alpha)        # [n_item, H]
    # shared adjacency matmul for both heads; W3c = [W_mean | W_logstd]
    heads = _lrelu(_dot(_dot(uv, uho), W3c[...]) + b3c[...], alpha)       # [n_user, 2F]
    # fused union linears (block-diag head weights): out = [mean | logstd]
    out_ref[...] = _dot(heads, Wh[...]) + _dot(user, Wx[...]) + bc[...]


def _cross_vbge_kernel(*refs, alpha):
    """Fused crossVBGE forward.  Output is lane-concatenated [mean | logstd]."""
    (s_uf_ref, t_uf_ref, sUV_ref, sVU_ref, tUV_ref, tVU_ref,
     W1, b1, W3, b3, Wu_a, Wu_b, bu,
     Wl1, bl1, Wl2, bl2, W3c, b3c, W4c, b4c,
     Ws, Wt, bc,
     out_ref) = refs

    def dgcn_user(uf, uv, vu):
        ho = _lrelu(_dot(vu, _dot(uf, W1[...])) + b1[...], alpha)
        ho = _lrelu(_dot(uv, _dot(ho, W3[...])) + b3[...], alpha)
        return jnp.maximum(_dot(ho, Wu_a[...]) + _dot(uf, Wu_b[...]) + bu[...], 0.0)

    s_uf = s_uf_ref[...]
    t_uf = t_uf_ref[...]
    suv = sUV_ref[...]
    svu = sVU_ref[...]
    tuv = tUV_ref[...]
    tvu = tVU_ref[...]

    s_u = dgcn_user(s_uf, suv, svu)                                        # [n_user, F]
    t_u = dgcn_user(t_uf, tuv, tvu)                                        # [n_user, F]
    s_ho = _lrelu(_dot(svu, _dot(s_u, Wl1[...])) + bl1[...], alpha)        # [n_item_s, H]
    t_ho = _lrelu(_dot(tvu, _dot(t_u, Wl2[...])) + bl2[...], alpha)        # [n_item_t, H]
    # shared adjacency matmuls for mean/logstd heads
    s_heads = _lrelu(_dot(_dot(suv, s_ho), W3c[...]) + b3c[...], alpha)    # [n_user, 2F]
    t_heads = _lrelu(_dot(_dot(tuv, t_ho), W4c[...]) + b4c[...], alpha)    # [n_user, 2F]
    # fused share_mean/share_sigma linears: out = [mean | logstd]
    out_ref[...] = _dot(s_heads, Ws[...]) + _dot(t_heads, Wt[...]) + bc[...]


def _kld_add_kernel(share_ref, s_share_ref, t_share_ref, s_spec_ref, t_spec_ref,
                    kld_ref, s_user_ref, t_user_ref, *, F, n_rows, beta):
    """Fused: three KLD terms (prior folded to compile-time constants),
    beta-weighted scalar, and the two residual adds."""
    mean = share_ref[:, 0:F]
    lstd = share_ref[:, F:2 * F]
    s_mean = s_share_ref[:, 0:F]
    s_lstd = s_share_ref[:, F:2 * F]
    t_mean = t_share_ref[:, 0:F]
    t_lstd = t_share_ref[:, F:2 * F]

    # sigma_1 computed once (shared by all three KL terms)
    log_s1 = 0.1 + 0.9 * jax.nn.softplus(lstd)
    s1_sq = jnp.exp(2.0 * log_s1)

    # prior: mu2 = 0, logsigma2 = 1  ->  sigma2 = exp(0.1 + 0.9*softplus(1))
    log_sp = float(0.1 + 0.9 * np.log1p(np.e))
    inv_2sp_sq = float(0.5 * np.exp(-2.0 * log_sp))
    kl_prior = (log_sp - log_s1) + (s1_sq + mean * mean) * inv_2sp_sq - 0.5

    log_s2s = 0.1 + 0.9 * jax.nn.softplus(s_lstd)
    kl_s = (log_s2s - log_s1) + (s1_sq + (mean - s_mean) ** 2) * (
        0.5 * jnp.exp(-2.0 * log_s2s)) - 0.5

    log_s2t = 0.1 + 0.9 * jax.nn.softplus(t_lstd)
    kl_t = (log_s2t - log_s1) + (s1_sq + (mean - t_mean) ** 2) * (
        0.5 * jnp.exp(-2.0 * log_s2t)) - 0.5

    combo = (1.0 - beta) * kl_prior + beta * kl_s + beta * kl_t
    tot = jnp.sum(combo, axis=0, keepdims=True)
    tot = jnp.sum(tot, axis=1, keepdims=True)
    kld_ref[...] = tot / float(n_rows)          # each KL term is .mean(dim=0).sum()

    s_user_ref[...] = mean + s_spec_ref[...]
    t_user_ref[...] = mean + t_spec_ref[...]


# ----------------------------------------------------------------------------
# pallas_call wrappers (whole-array VMEM resident at these shapes)
# ----------------------------------------------------------------------------

def single_vbge_call(packed, ufea, vfea, UV, VU, alpha):
    n_user, F = ufea.shape
    n_item = vfea.shape[0]
    args = [ufea, vfea, UV, VU] + list(packed)
    return pl.pallas_call(
        functools.partial(_single_vbge_kernel, alpha=alpha),
        out_shape=(jax.ShapeDtypeStruct((n_user, F), jnp.float32),
                   jax.ShapeDtypeStruct((n_item, F), jnp.float32)),
        in_specs=_vmem_specs(len(args)),
        out_specs=(pl.BlockSpec(memory_space=_VMEM),
                   pl.BlockSpec(memory_space=_VMEM)),
    )(*args)


def user_share_call(packed, ufea, UV, VU, alpha):
    n_user, F = ufea.shape
    args = [ufea, UV, VU] + list(packed)
    return pl.pallas_call(
        functools.partial(_user_share_kernel, alpha=alpha),
        out_shape=jax.ShapeDtypeStruct((n_user, 2 * F), jnp.float32),
        in_specs=_vmem_specs(len(args)),
        out_specs=pl.BlockSpec(memory_space=_VMEM),
    )(*args)


def cross_vbge_call(packed, s_ufea, t_ufea, sUV, sVU, tUV, tVU, alpha):
    n_user, F = s_ufea.shape
    args = [s_ufea, t_ufea, sUV, sVU, tUV, tVU] + list(packed)
    return pl.pallas_call(
        functools.partial(_cross_vbge_kernel, alpha=alpha),
        out_shape=jax.ShapeDtypeStruct((n_user, 2 * F), jnp.float32),
        in_specs=_vmem_specs(len(args)),
        out_specs=pl.BlockSpec(memory_space=_VMEM),
    )(*args)


def kld_add_call(share, s_share, t_share, s_spec, t_spec, beta):
    n_user = share.shape[0]
    F = share.shape[1] // 2
    return pl.pallas_call(
        functools.partial(_kld_add_kernel, F=F, n_rows=n_user, beta=beta),
        out_shape=(jax.ShapeDtypeStruct((1, 1), jnp.float32),
                   jax.ShapeDtypeStruct((n_user, F), jnp.float32),
                   jax.ShapeDtypeStruct((n_user, F), jnp.float32)),
        in_specs=_vmem_specs(5),
        out_specs=(pl.BlockSpec(memory_space=_VMEM),
                   pl.BlockSpec(memory_space=_VMEM),
                   pl.BlockSpec(memory_space=_VMEM)),
    )(share, s_share, t_share, s_spec, t_spec)


# ----------------------------------------------------------------------------
# DisenCDR forward: exactly 6 fused pallas_calls
# ----------------------------------------------------------------------------

def disencdr_forward(packed, source_UV, source_VU, target_UV, target_VU,
                     alpha=0.1, beta=0.9):
    s_spec_user, s_spec_item = single_vbge_call(
        packed["source_specific"], packed["source_user_emb"],
        packed["source_item_emb"], source_UV, source_VU, alpha)
    t_spec_user, t_spec_item = single_vbge_call(
        packed["target_specific"], packed["target_user_emb"],
        packed["target_item_emb"], target_UV, target_VU, alpha)

    s_share = user_share_call(packed["source_share"], packed["source_user_emb"],
                              source_UV, source_VU, alpha)          # [mean|logstd]
    t_share = user_share_call(packed["target_share"], packed["target_user_emb"],
                              target_UV, target_VU, alpha)          # [mean|logstd]
    share = cross_vbge_call(packed["share"], packed["source_user_emb_share"],
                            packed["target_user_emb_share"],
                            source_UV, source_VU, target_UV, target_VU, alpha)

    kld, source_learn_user, target_learn_user = kld_add_call(
        share, s_share, t_share, s_spec_user, t_spec_user, beta)
    return source_learn_user, s_spec_item, target_learn_user, t_spec_item, kld


# ----------------------------------------------------------------------------
# Parameter init (raw, matching the PyTorch layer shapes) + one-time packing
# ----------------------------------------------------------------------------

def init_gc(key, fin, fout):
    k1, k2 = jax.random.split(key)
    stdv = 1.0 / np.sqrt(fout)
    W = jax.random.uniform(k1, (fin, fout), jnp.float32, -stdv, stdv)
    b = jax.random.uniform(k2, (1, fout), jnp.float32, -stdv, stdv)
    return {"W": W, "b": b}


def init_linear(key, fin, fout):
    k1, k2 = jax.random.split(key)
    bound = 1.0 / np.sqrt(fin)
    W = jax.random.uniform(k1, (fout, fin), jnp.float32, -bound, bound)
    b = jax.random.uniform(k2, (1, fout), jnp.float32, -bound, bound)
    return {"W": W, "b": b}


def init_dgcn(key, F, H):
    ks = jax.random.split(key, 6)
    return {"gc1": init_gc(ks[0], F, H), "gc2": init_gc(ks[1], F, H),
            "gc3": init_gc(ks[2], H, F), "gc4": init_gc(ks[3], H, F),
            "user_union": init_linear(ks[4], 2 * F, F),
            "item_union": init_linear(ks[5], 2 * F, F)}


def init_last(key, F, H):
    ks = jax.random.split(key, 10)
    return {"gc1": init_gc(ks[0], F, H), "gc2": init_gc(ks[1], F, H),
            "gc3_mean": init_gc(ks[2], H, F), "gc3_logstd": init_gc(ks[3], H, F),
            "gc4_mean": init_gc(ks[4], H, F), "gc4_logstd": init_gc(ks[5], H, F),
            "user_union_mean": init_linear(ks[6], 2 * F, F),
            "user_union_logstd": init_linear(ks[7], 2 * F, F),
            "item_union_mean": init_linear(ks[8], 2 * F, F),
            "item_union_logstd": init_linear(ks[9], 2 * F, F)}


def init_single_vbge(key, F, H):
    k1, k2 = jax.random.split(key)
    return {"dgcn": init_dgcn(k1, F, H), "last": init_last(k2, F, H)}


def init_cross_vbge(key, F, H):
    k1, k2 = jax.random.split(key)
    ks = jax.random.split(k2, 8)
    return {"dgcn": init_dgcn(k1, F, H),
            "last_share": {
                "gc1": init_gc(ks[0], F, H), "gc2": init_gc(ks[1], F, H),
                "gc3_mean": init_gc(ks[2], H, F), "gc3_logstd": init_gc(ks[3], H, F),
                "gc4_mean": init_gc(ks[4], H, F), "gc4_logstd": init_gc(ks[5], H, F),
                "user_union_mean": init_linear(ks[6], 2 * F, F),
                "user_union_logstd": init_linear(ks[7], 2 * F, F)}}


def init_params(key, n_user, n_item_s, n_item_t, F, H):
    ks = jax.random.split(key, 11)
    return {
        "source_user_emb": jax.random.normal(ks[0], (n_user, F), jnp.float32) * 0.1,
        "source_item_emb": jax.random.normal(ks[1], (n_item_s, F), jnp.float32) * 0.1,
        "target_user_emb": jax.random.normal(ks[2], (n_user, F), jnp.float32) * 0.1,
        "target_item_emb": jax.random.normal(ks[3], (n_item_t, F), jnp.float32) * 0.1,
        "source_user_emb_share": jax.random.normal(ks[4], (n_user, F), jnp.float32) * 0.1,
        "target_user_emb_share": jax.random.normal(ks[5], (n_user, F), jnp.float32) * 0.1,
        "source_specific": init_single_vbge(ks[6], F, H),
        "target_specific": init_single_vbge(ks[7], F, H),
        "source_share": init_single_vbge(ks[8], F, H),
        "target_share": init_single_vbge(ks[9], F, H),
        "share": init_cross_vbge(ks[10], F, H),
    }


# ---- one-time weight packing (transposes/concats/block-diags done ONCE) ----

def _split_linear_T(p, split):
    wt = p["W"].T                      # pre-transposed: y = x @ W.T
    return wt[:split], wt[split:], p["b"]


def _block_diag(a, b):
    za = jnp.zeros((a.shape[0], b.shape[1]), a.dtype)
    zb = jnp.zeros((b.shape[0], a.shape[1]), b.dtype)
    return jnp.concatenate(
        [jnp.concatenate([a, za], axis=1),
         jnp.concatenate([zb, b], axis=1)], axis=0)


def pack_single_vbge(p, F):
    d, l = p["dgcn"], p["last"]
    ua, ub, ubias = _split_linear_T(d["user_union"], F)
    ia, ib, ibias = _split_linear_T(d["item_union"], F)
    uma, umb, umbias = _split_linear_T(l["user_union_mean"], F)
    ima, imb, imbias = _split_linear_T(l["item_union_mean"], F)
    return [
        d["gc1"]["W"], d["gc1"]["b"], d["gc2"]["W"], d["gc2"]["b"],
        d["gc3"]["W"], d["gc3"]["b"], d["gc4"]["W"], d["gc4"]["b"],
        ua, ub, ubias, ia, ib, ibias,
        l["gc1"]["W"], l["gc1"]["b"], l["gc2"]["W"], l["gc2"]["b"],
        l["gc3_mean"]["W"], l["gc3_mean"]["b"],
        l["gc4_mean"]["W"], l["gc4_mean"]["b"],
        uma, umb, umbias, ima, imb, imbias,
    ]


def pack_user_share(p, F):
    d, l = p["dgcn"], p["last"]
    ua, ub, ubias = _split_linear_T(d["user_union"], F)
    W3c = jnp.concatenate([l["gc3_mean"]["W"], l["gc3_logstd"]["W"]], axis=1)
    b3c = jnp.concatenate([l["gc3_mean"]["b"], l["gc3_logstd"]["b"]], axis=1)
    wm_t = l["user_union_mean"]["W"].T       # [2F, F]
    ws_t = l["user_union_logstd"]["W"].T     # [2F, F]
    Wh = _block_diag(wm_t[:F], ws_t[:F])     # [2F, 2F] acts on [mean_ho | lstd_ho]
    Wx = jnp.concatenate([wm_t[F:], ws_t[F:]], axis=1)   # [F, 2F] acts on user
    bc = jnp.concatenate([l["user_union_mean"]["b"],
                          l["user_union_logstd"]["b"]], axis=1)
    return [d["gc1"]["W"], d["gc1"]["b"], d["gc3"]["W"], d["gc3"]["b"],
            ua, ub, ubias,
            l["gc1"]["W"], l["gc1"]["b"], W3c, b3c, Wh, Wx, bc]


def pack_cross(p, F):
    d, l = p["dgcn"], p["last_share"]
    ua, ub, ubias = _split_linear_T(d["user_union"], F)
    W3c = jnp.concatenate([l["gc3_mean"]["W"], l["gc3_logstd"]["W"]], axis=1)
    b3c = jnp.concatenate([l["gc3_mean"]["b"], l["gc3_logstd"]["b"]], axis=1)
    W4c = jnp.concatenate([l["gc4_mean"]["W"], l["gc4_logstd"]["W"]], axis=1)
    b4c = jnp.concatenate([l["gc4_mean"]["b"], l["gc4_logstd"]["b"]], axis=1)
    wm_t = l["user_union_mean"]["W"].T
    ws_t = l["user_union_logstd"]["W"].T
    Ws = _block_diag(wm_t[:F], ws_t[:F])     # acts on [s_mean | s_lstd]
    Wt = _block_diag(wm_t[F:], ws_t[F:])     # acts on [t_mean | t_lstd]
    bc = jnp.concatenate([l["user_union_mean"]["b"],
                          l["user_union_logstd"]["b"]], axis=1)
    return [d["gc1"]["W"], d["gc1"]["b"], d["gc3"]["W"], d["gc3"]["b"],
            ua, ub, ubias,
            l["gc1"]["W"], l["gc1"]["b"], l["gc2"]["W"], l["gc2"]["b"],
            W3c, b3c, W4c, b4c, Ws, Wt, bc]


def prepare_params(raw, F):
    return {
        "source_user_emb": raw["source_user_emb"],
        "source_item_emb": raw["source_item_emb"],
        "target_user_emb": raw["target_user_emb"],
        "target_item_emb": raw["target_item_emb"],
        "source_user_emb_share": raw["source_user_emb_share"],
        "target_user_emb_share": raw["target_user_emb_share"],
        "source_specific": pack_single_vbge(raw["source_specific"], F),
        "target_specific": pack_single_vbge(raw["target_specific"], F),
        "source_share": pack_user_share(raw["source_share"], F),
        "target_share": pack_user_share(raw["target_share"], F),
        "share": pack_cross(raw["share"], F),
    }


def make_adj(key, n_rows, n_cols):
    m = (jax.random.uniform(key, (n_rows, n_cols)) < 0.3).astype(jnp.float32)
    deg = jnp.maximum(m.sum(axis=1, keepdims=True), 1.0)
    return m / deg


# ----------------------------------------------------------------------------
if __name__ == "__main__":
    F = 32          # feature_dim == hidden_dim
    H = 32
    n_user = 32     # shared users (source_user_num == target_user_num)
    n_item_s = 16
    n_item_t = 48

    key = jax.random.PRNGKey(0)
    k_params, k_suv, k_tuv = jax.random.split(key, 3)

    raw_params = init_params(k_params, n_user, n_item_s, n_item_t, F, H)
    packed = prepare_params(raw_params, F)                 # one-time packing
    packed = jax.block_until_ready(packed)

    source_UV = make_adj(k_suv, n_user, n_item_s)                      # [n_user, n_item_s]
    source_VU = make_adj(jax.random.fold_in(k_suv, 1), n_item_s, n_user)
    target_UV = make_adj(k_tuv, n_user, n_item_t)                      # [n_user, n_item_t]
    target_VU = make_adj(jax.random.fold_in(k_tuv, 1), n_item_t, n_user)

    fwd = jax.jit(functools.partial(disencdr_forward, alpha=0.1, beta=0.9))
    outs = fwd(packed, source_UV, source_VU, target_UV, target_VU)
    outs = jax.block_until_ready(outs)

    s_user, s_item, t_user, t_item, kld = outs
    assert s_user.shape == (n_user, F)
    assert s_item.shape == (n_item_s, F)
    assert t_user.shape == (n_user, F)
    assert t_item.shape == (n_item_t, F)
    assert kld.shape == (1, 1)
    assert all(bool(jnp.all(jnp.isfinite(o))) for o in outs)

    print("KERNEL_OK")
</pallas_src>

<mosaic_0001>
module attributes {stable_mosaic.version = 11 : i64} {
  func.func @_cross_vbge_kernel(%arg0: memref<32x32xf32, #tpu.memory_space<vmem>>, %arg1: memref<32x32xf32, #tpu.memory_space<vmem>>, %arg2: memref<32x16xf32, #tpu.memory_space<vmem>>, %arg3: memref<16x32xf32, #tpu.memory_space<vmem>>, %arg4: memref<32x48xf32, #tpu.memory_space<vmem>>, %arg5: memref<48x32xf32, #tpu.memory_space<vmem>>, %arg6: memref<32x32xf32, #tpu.memory_space<vmem>>, %arg7: memref<1x32xf32, #tpu.memory_space<vmem>>, %arg8: memref<32x32xf32, #tpu.memory_space<vmem>>, %arg9: memref<1x32xf32, #tpu.memory_space<vmem>>, %arg10: memref<32x32xf32, #tpu.memory_space<vmem>>, %arg11: memref<32x32xf32, #tpu.memory_space<vmem>>, %arg12: memref<1x32xf32, #tpu.memory_space<vmem>>, %arg13: memref<32x32xf32, #tpu.memory_space<vmem>>, %arg14: memref<1x32xf32, #tpu.memory_space<vmem>>, %arg15: memref<32x32xf32, #tpu.memory_space<vmem>>, %arg16: memref<1x32xf32, #tpu.memory_space<vmem>>, %arg17: memref<32x64xf32, #tpu.memory_space<vmem>>, %arg18: memref<1x64xf32, #tpu.memory_space<vmem>>, %arg19: memref<32x64xf32, #tpu.memory_space<vmem>>, %arg20: memref<1x64xf32, #tpu.memory_space<vmem>>, %arg21: memref<64x64xf32, #tpu.memory_space<vmem>>, %arg22: memref<64x64xf32, #tpu.memory_space<vmem>>, %arg23: memref<1x64xf32, #tpu.memory_space<vmem>>, %arg24: memref<32x64xf32, #tpu.memory_space<vmem>>) attributes {dimension_semantics = [], scalar_prefetch = 0 : i64, scratch_operands = 0 : i64, tpu.core_type = #tpu.core_type<tc>} {
    %c0 = arith.constant 0 : index
    %c0_0 = arith.constant 0 : index
    %0 = vector.load %arg0[%c0, %c0_0] : memref<32x32xf32, #tpu.memory_space<vmem>>, vector<32x32xf32>
    %c0_1 = arith.constant 0 : index
    %c0_2 = arith.constant 0 : index
    %1 = vector.load %arg1[%c0_1, %c0_2] : memref<32x32xf32, #tpu.memory_space<vmem>>, vector<32x32xf32>
    %c0_3 = arith.constant 0 : index
    %c0_4 = arith.constant 0 : index
    %2 = vector.load %arg2[%c0_3, %c0_4] : memref<32x16xf32, #tpu.memory_space<vmem>>, vector<32x16xf32>
    %c0_5 = arith.constant 0 : index
    %c0_6 = arith.constant 0 : index
    %3 = vector.load %arg3[%c0_5, %c0_6] : memref<16x32xf32, #tpu.memory_space<vmem>>, vector<16x32xf32>
    %c0_7 = arith.constant 0 : index
    %c0_8 = arith.constant 0 : index
    %4 = vector.load %arg4[%c0_7, %c0_8] : memref<32x48xf32, #tpu.memory_space<vmem>>, vector<32x48xf32>
    %c0_9 = arith.constant 0 : index
    %c0_10 = arith.constant 0 : index
    %5 = vector.load %arg5[%c0_9, %c0_10] : memref<48x32xf32, #tpu.memory_space<vmem>>, vector<48x32xf32>
    %c0_11 = arith.constant 0 : index
    %c0_12 = arith.constant 0 : index
    %6 = vector.load %arg6[%c0_11, %c0_12] : memref<32x32xf32, #tpu.memory_space<vmem>>, vector<32x32xf32>
    %cst = arith.constant dense<0.000000e+00> : vector<32x32xf32>
    %7 = tpu.matmul %0, %6, %cst {dimension_numbers = #tpu.dot_dimension_numbers<[1], [0], [0], [1], [0, 0, 1, 1], [], []>} : vector<32x32xf32>, vector<32x32xf32>, vector<32x32xf32> -> vector<32x32xf32>
    %cst_13 = arith.constant dense<0.000000e+00> : vector<16x32xf32>
    %8 = tpu.matmul %3, %7, %cst_13 {dimension_numbers = #tpu.dot_dimension_numbers<[1], [0], [0], [1], [0, 0, 1, 1], [], []>} : vector<16x32xf32>, vector<32x32xf32>, vector<16x32xf32> -> vector<16x32xf32>
    %c0_14 = arith.constant 0 : index
    %c0_15 = arith.constant 0 : index
    %9 = vector.load %arg7[%c0_14, %c0_15] : memref<1x32xf32, #tpu.memory_space<vmem>>, vector<1x32xf32>
    %10 = vector.broadcast %9 : vector<1x32xf32> to vector<16x32xf32>
    %11 = arith.addf %8, %10 : vector<16x32xf32>
    %cst_16 = arith.constant 0.000000e+00 : f32
    %12 = vector.broadcast %cst_16 : f32 to vector<16x32xf32>
    %13 = arith.cmpf ogt, %11, %12 : vector<16x32xf32>
    %cst_17 = arith.constant 1.000000e-01 : f32
    %14 = vector.broadcast %cst_17 : f32 to vector<16x32xf32>
    %15 = arith.mulf %14, %11 : vector<16x32xf32>
    %16 = arith.select %13, %11, %15 : vector<16x32xi1>, vector<16x32xf32>
    %c0_18 = arith.constant 0 : index
    %c0_19 = arith.constant 0 : index
    %17 = vector.load %arg8[%c0_18, %c0_19] : memref<32x32xf32, #tpu.memory_space<vmem>>, vector<32x32xf32>
    %cst_20 = arith.constant dense<0.000000e+00> : vector<16x32xf32>
    %18 = tpu.matmul %16, %17, %cst_20 {dimension_numbers = #tpu.dot_dimension_numbers<[1], [0], [0], [1], [0, 0, 1, 1], [], []>} : vector<16x32xf32>, vector<32x32xf32>, vector<16x32xf32> -> vector<16x32xf32>
    %cst_21 = arith.constant dense<0.000000e+00> : vector<32x32xf32>
    %19 = tpu.matmul %2, %18, %cst_21 {dimension_numbers = #tpu.dot_dimension_numbers<[1], [0], [0], [1], [0, 0, 1, 1], [], []>} : vector<32x16xf32>, vector<16x32xf32>, vector<32x32xf32> -> vector<32x32xf32>
    %c0_22 = arith.constant 0 : index
    %c0_23 = arith.constant 0 : index
    %20 = vector.load %arg9[%c0_22, %c0_23] : memref<1x32xf32, #tpu.memory_space<vmem>>, vector<1x32xf32>
    %21 = vector.broadcast %20 : vector<1x32xf32> to vector<32x32xf32>
    %22 = arith.addf %19, %21 : vector<32x32xf32>
    %cst_24 = arith.constant 0.000000e+00 : f32
    %23 = vector.broadcast %cst_24 : f32 to vector<32x32xf32>
    %24 = arith.cmpf ogt, %22, %23 : vector<32x32xf32>
    %cst_25 = arith.constant 1.000000e-01 : f32
    %25 = vector.broadcast %cst_25 : f32 to vector<32x32xf32>
    %26 = arith.mulf %25, %22 : vector<32x32xf32>
    %27 = arith.select %24, %22, %26 : vector<32x32xi1>, vector<32x32xf32>
    %c0_26 = arith.constant 0 : index
    %c0_27 = arith.constant 0 : index
    %28 = vector.load %arg10[%c0_26, %c0_27] : memref<32x32xf32, #tpu.memory_space<vmem>>, vector<32x32xf32>
    %cst_28 = arith.constant dense<0.000000e+00> : vector<32x32xf32>
    %29 = tpu.matmul %27, %28, %cst_28 {dimension_numbers = #tpu.dot_dimension_numbers<[1], [0], [0], [1], [0, 0, 1, 1], [], []>} : vector<32x32xf32>, vector<32x32xf32>, vector<32x32xf32> -> vector<32x32xf32>
    %c0_29 = arith.constant 0 : index
    %c0_30 = arith.constant 0 : index
    %30 = vector.load %arg11[%c0_29, %c0_30] : memref<32x32xf32, #tpu.memory_space<vmem>>, vector<32x32xf32>
    %cst_31 = arith.constant dense<0.000000e+00> : vector<32x32xf32>
    %31 = tpu.matmul %0, %30, %cst_31 {dimension_numbers = #tpu.dot_dimension_numbers<[1], [0], [0], [1], [0, 0, 1, 1], [], []>} : vector<32x32xf32>, vector<32x32xf32>, vector<32x32xf32> -> vector<32x32xf32>
    %32 = arith.addf %29, %31 : vector<32x32xf32>
    %c0_32 = arith.constant 0 : index
    %c0_33 = arith.constant 0 : index
    %33 = vector.load %arg12[%c0_32, %c0_33] : memref<1x32xf32, #tpu.memory_space<vmem>>, vector<1x32xf32>
    %34 = vector.broadcast %33 : vector<1x32xf32> to vector<32x32xf32>
    %35 = arith.addf %32, %34 : vector<32x32xf32>
    %cst_34 = arith.constant 0.000000e+00 : f32
    %36 = vector.broadcast %cst_34 : f32 to vector<32x32xf32>
    %37 = arith.maximumf %35, %36 : vector<32x32xf32>
    %c0_35 = arith.constant 0 : index
    %c0_36 = arith.constant 0 : index
    %38 = vector.load %arg6[%c0_35, %c0_36] : memref<32x32xf32, #tpu.memory_space<vmem>>, vector<32x32xf32>
    %cst_37 = arith.constant dense<0.000000e+00> : vector<32x32xf32>
    %39 = tpu.matmul %1, %38, %cst_37 {dimension_numbers = #tpu.dot_dimension_numbers<[1], [0], [0], [1], [0, 0, 1, 1], [], []>} : vector<32x32xf32>, vector<32x32xf32>, vector<32x32xf32> -> vector<32x32xf32>
    %cst_38 = arith.constant dense<0.000000e+00> : vector<48x32xf32>
    %40 = tpu.matmul %5, %39, %cst_38 {dimension_numbers = #tpu.dot_dimension_numbers<[1], [0], [0], [1], [0, 0, 1, 1], [], []>} : vector<48x32xf32>, vector<32x32xf32>, vector<48x32xf32> -> vector<48x32xf32>
    %c0_39 = arith.constant 0 : index
    %c0_40 = arith.constant 0 : index
    %41 = vector.load %arg7[%c0_39, %c0_40] : memref<1x32xf32, #tpu.memory_space<vmem>>, vector<1x32xf32>
    %42 = vector.broadcast %41 : vector<1x32xf32> to vector<48x32xf32>
    %43 = arith.addf %40, %42 : vector<48x32xf32>
    %cst_41 = arith.constant 0.000000e+00 : f32
    %44 = vector.broadcast %cst_41 : f32 to vector<48x32xf32>
    %45 = arith.cmpf ogt, %43, %44 : vector<48x32xf32>
    %cst_42 = arith.constant 1.000000e-01 : f32
    %46 = vector.broadcast %cst_42 : f32 to vector<48x32xf32>
    %47 = arith.mulf %46, %43 : vector<48x32xf32>
    %48 = arith.select %45, %43, %47 : vector<48x32xi1>, vector<48x32xf32>
    %c0_43 = arith.constant 0 : index
    %c0_44 = arith.constant 0 : index
    %49 = vector.load %arg8[%c0_43, %c0_44] : memref<32x32xf32, #tpu.memory_space<vmem>>, vector<32x32xf32>
    %cst_45 = arith.constant dense<0.000000e+00> : vector<48x32xf32>
    %50 = tpu.matmul %48, %49, %cst_45 {dimension_numbers = #tpu.dot_dimension_numbers<[1], [0], [0], [1], [0, 0, 1, 1], [], []>} : vector<48x32xf32>, vector<32x32xf32>, vector<48x32xf32> -> vector<48x32xf32>
    %cst_46 = arith.constant dense<0.000000e+00> : vector<32x32xf32>
    %51 = tpu.matmul %4, %50, %cst_46 {dimension_numbers = #tpu.dot_dimension_numbers<[1], [0], [0], [1], [0, 0, 1, 1], [], []>} : vector<32x48xf32>, vector<48x32xf32>, vector<32x32xf32> -> vector<32x32xf32>
    %c0_47 = arith.constant 0 : index
    %c0_48 = arith.constant 0 : index
    %52 = vector.load %arg9[%c0_47, %c0_48] : memref<1x32xf32, #tpu.memory_space<vmem>>, vector<1x32xf32>
    %53 = vector.broadcast %52 : vector<1x32xf32> to vector<32x32xf32>
    %54 = arith.addf %51, %53 : vector<32x32xf32>
    %cst_49 = arith.constant 0.000000e+00 : f32
    %55 = vector.broadcast %cst_49 : f32 to vector<32x32xf32>
    %56 = arith.cmpf ogt, %54, %55 : vector<32x32xf32>
    %cst_50 = arith.constant 1.000000e-01 : f32
    %57 = vector.broadcast %cst_50 : f32 to vector<32x32xf32>
    %58 = arith.mulf %57, %54 : vector<32x32xf32>
    %59 = arith.select %56, %54, %58 : vector<32x32xi1>, vector<32x32xf32>
    %c0_51 = arith.constant 0 : index
    %c0_52 = arith.constant 0 : index
    %60 = vector.load %arg10[%c0_51, %c0_52] : memref<32x32xf32, #tpu.memory_space<vmem>>, vector<32x32xf32>
    %cst_53 = arith.constant dense<0.000000e+00> : vector<32x32xf32>
    %61 = tpu.matmul %59, %60, %cst_53 {dimension_numbers = #tpu.dot_dimension_numbers<[1], [0], [0], [1], [0, 0, 1, 1], [], []>} : vector<32x32xf32>, vector<32x32xf32>, vector<32x32xf32> -> vector<32x32xf32>
    %c0_54 = arith.constant 0 : index
    %c0_55 = arith.constant 0 : index
    %62 = vector.load %arg11[%c0_54, %c0_55] : memref<32x32xf32, #tpu.memory_space<vmem>>, vector<32x32xf32>
    %cst_56 = arith.constant dense<0.000000e+00> : vector<32x32xf32>
    %63 = tpu.matmul %1, %62, %cst_56 {dimension_numbers = #tpu.dot_dimension_numbers<[1], [0], [0], [1], [0, 0, 1, 1], [], []>} : vector<32x32xf32>, vector<32x32xf32>, vector<32x32xf32> -> vector<32x32xf32>
    %64 = arith.addf %61, %63 : vector<32x32xf32>
    %c0_57 = arith.constant 0 : index
    %c0_58 = arith.constant 0 : index
    %65 = vector.load %arg12[%c0_57, %c0_58] : memref<1x32xf32, #tpu.memory_space<vmem>>, vector<1x32xf32>
    %66 = vector.broadcast %65 : vector<1x32xf32> to vector<32x32xf32>
    %67 = arith.addf %64, %66 : vector<32x32xf32>
    %cst_59 = arith.constant 0.000000e+00 : f32
    %68 = vector.broadcast %cst_59 : f32 to vector<32x32xf32>
    %69 = arith.maximumf %67, %68 : vector<32x32xf32>
    %c0_60 = arith.constant 0 : index
    %c0_61 = arith.constant 0 : index
    %70 = vector.load %arg13[%c0_60, %c0_61] : memref<32x32xf32, #tpu.memory_space<vmem>>, vector<32x32xf32>
    %cst_62 = arith.constant dense<0.000000e+00> : vector<32x32xf32>
    %71 = tpu.matmul %37, %70, %cst_62 {dimension_numbers = #tpu.dot_dimension_numbers<[1], [0], [0], [1], [0, 0, 1, 1], [], []>} : vector<32x32xf32>, vector<32x32xf32>, vector<32x32xf32> -> vector<32x32xf32>
    %cst_63 = arith.constant dense<0.000000e+00> : vector<16x32xf32>
    %72 = tpu.matmul %3, %71, %cst_63 {dimension_numbers = #tpu.dot_dimension_numbers<[1], [0], [0], [1], [0, 0, 1, 1], [], []>} : vector<16x32xf32>, vector<32x32xf32>, vector<16x32xf32> -> vector<16x32xf32>
    %c0_64 = arith.constant 0 : index
    %c0_65 = arith.constant 0 : index
    %73 = vector.load %arg14[%c0_64, %c0_65] : memref<1x32xf32, #tpu.memory_space<vmem>>, vector<1x32xf32>
    %74 = vector.broadcast %73 : vector<1x32xf32> to vector<16x32xf32>
    %75 = arith.addf %72, %74 : vector<16x32xf32>
    %cst_66 = arith.constant 0.000000e+00 : f32
    %76 = vector.broadcast %cst_66 : f32 to vector<16x32xf32>
    %77 = arith.cmpf ogt, %75, %76 : vector<16x32xf32>
    %cst_67 = arith.constant 1.000000e-01 : f32
    %78 = vector.broadcast %cst_67 : f32 to vector<16x32xf32>
    %79 = arith.mulf %78, %75 : vector<16x32xf32>
    %80 = arith.select %77, %75, %79 : vector<16x32xi1>, vector<16x32xf32>
    %c0_68 = arith.constant 0 : index
    %c0_69 = arith.constant 0 : index
    %81 = vector.load %arg15[%c0_68, %c0_69] : memref<32x32xf32, #tpu.memory_space<vmem>>, vector<32x32xf32>
    %cst_70 = arith.constant dense<0.000000e+00> : vector<32x32xf32>
    %82 = tpu.matmul %69, %81, %cst_70 {dimension_numbers = #tpu.dot_dimension_numbers<[1], [0], [0], [1], [0, 0, 1, 1], [], []>} : vector<32x32xf32>, vector<32x32xf32>, vector<32x32xf32> -> vector<32x32xf32>
    %cst_71 = arith.constant dense<0.000000e+00> : vector<48x32xf32>
    %83 = tpu.matmul %5, %82, %cst_71 {dimension_numbers = #tpu.dot_dimension_numbers<[1], [0], [0], [1], [0, 0, 1, 1], [], []>} : vector<48x32xf32>, vector<32x32xf32>, vector<48x32xf32> -> vector<48x32xf32>
    %c0_72 = arith.constant 0 : index
    %c0_73 = arith.constant 0 : index
    %84 = vector.load %arg16[%c0_72, %c0_73] : memref<1x32xf32, #tpu.memory_space<vmem>>, vector<1x32xf32>
    %85 = vector.broadcast %84 : vector<1x32xf32> to vector<48x32xf32>
    %86 = arith.addf %83, %85 : vector<48x32xf32>
    %cst_74 = arith.constant 0.000000e+00 : f32
    %87 = vector.broadcast %cst_74 : f32 to vector<48x32xf32>
    %88 = arith.cmpf ogt, %86, %87 : vector<48x32xf32>
    %cst_75 = arith.constant 1.000000e-01 : f32
    %89 = vector.broadcast %cst_75 : f32 to vector<48x32xf32>
    %90 = arith.mulf %89, %86 : vector<48x32xf32>
    %91 = arith.select %88, %86, %90 : vector<48x32xi1>, vector<48x32xf32>
    %cst_76 = arith.constant dense<0.000000e+00> : vector<32x32xf32>
    %92 = tpu.matmul %2, %80, %cst_76 {dimension_numbers = #tpu.dot_dimension_numbers<[1], [0], [0], [1], [0, 0, 1, 1], [], []>} : vector<32x16xf32>, vector<16x32xf32>, vector<32x32xf32> -> vector<32x32xf32>
    %c0_77 = arith.constant 0 : index
    %c0_78 = arith.constant 0 : index
    %93 = vector.load %arg17[%c0_77, %c0_78] : memref<32x64xf32, #tpu.memory_space<vmem>>, vector<32x64xf32>
    %cst_79 = arith.constant dense<0.000000e+00> : vector<32x64xf32>
    %94 = tpu.matmul %92, %93, %cst_79 {dimension_numbers = #tpu.dot_dimension_numbers<[1], [0], [0], [1], [0, 0, 1, 1], [], []>} : vector<32x32xf32>, vector<32x64xf32>, vector<32x64xf32> -> vector<32x64xf32>
    %c0_80 = arith.constant 0 : index
    %c0_81 = arith.constant 0 : index
    %95 = vector.load %arg18[%c0_80, %c0_81] : memref<1x64xf32, #tpu.memory_space<vmem>>, vector<1x64xf32>
    %96 = vector.broadcast %95 : vector<1x64xf32> to vector<32x64xf32>
    %97 = arith.addf %94, %96 : vector<32x64xf32>
    %cst_82 = arith.constant 0.000000e+00 : f32
    %98 = vector.broadcast %cst_82 : f32 to vector<32x64xf32>
    %99 = arith.cmpf ogt, %97, %98 : vector<32x64xf32>
    %cst_83 = arith.constant 1.000000e-01 : f32
    %100 = vector.broadcast %cst_83 : f32 to vector<32x64xf32>
    %101 = arith.mulf %100, %97 : vector<32x64xf32>
    %102 = arith.select %99, %97, %101 : vector<32x64xi1>, vector<32x64xf32>
    %cst_84 = arith.constant dense<0.000000e+00> : vector<32x32xf32>
    %103 = tpu.matmul %4, %91, %cst_84 {dimension_numbers = #tpu.dot_dimension_numbers<[1], [0], [0], [1], [0, 0, 1, 1], [], []>} : vector<32x48xf32>, vector<48x32xf32>, vector<32x32xf32> -> vector<32x32xf32>
    %c0_85 = arith.constant 0 : index
    %c0_86 = arith.constant 0 : index
    %104 = vector.load %arg19[%c0_85, %c0_86] : memref<32x64xf32, #tpu.memory_space<vmem>>, vector<32x64xf32>
    %cst_87 = arith.constant dense<0.000000e+00> : vector<32x64xf32>
    %105 = tpu.matmul %103, %104, %cst_87 {dimension_numbers = #tpu.dot_dimension_numbers<[1], [0], [0], [1], [0, 0, 1, 1], [], []>} : vector<32x32xf32>, vector<32x64xf32>, vector<32x64xf32> -> vector<32x64xf32>
    %c0_88 = arith.constant 0 : index
    %c0_89 = arith.constant 0 : index
    %106 = vector.load %arg20[%c0_88, %c0_89] : memref<1x64xf32, #tpu.memory_space<vmem>>, vector<1x64xf32>
    %107 = vector.broadcast %106 : vector<1x64xf32> to vector<32x64xf32>
    %108 = arith.addf %105, %107 : vector<32x64xf32>
    %cst_90 = arith.constant 0.000000e+00 : f32
    %109 = vector.broadcast %cst_90 : f32 to vector<32x64xf32>
    %110 = arith.cmpf ogt, %108, %109 : vector<32x64xf32>
    %cst_91 = arith.constant 1.000000e-01 : f32
    %111 = vector.broadcast %cst_91 : f32 to vector<32x64xf32>
    %112 = arith.mulf %111, %108 : vector<32x64xf32>
    %113 = arith.select %110, %108, %112 : vector<32x64xi1>, vector<32x64xf32>
    %c0_92 = arith.constant 0 : index
    %c0_93 = arith.constant 0 : index
    %114 = vector.load %arg21[%c0_92, %c0_93] : memref<64x64xf32, #tpu.memory_space<vmem>>, vector<64x64xf32>
    %cst_94 = arith.constant dense<0.000000e+00> : vector<32x64xf32>
    %115 = tpu.matmul %102, %114, %cst_94 {dimension_numbers = #tpu.dot_dimension_numbers<[1], [0], [0], [1], [0, 0, 1, 1], [], []>} : vector<32x64xf32>, vector<64x64xf32>, vector<32x64xf32> -> vector<32x64xf32>
    %c0_95 = arith.constant 0 : index
    %c0_96 = arith.constant 0 : index
    %116 = vector.load %arg22[%c0_95, %c0_96] : memref<64x64xf32, #tpu.memory_space<vmem>>, vector<64x64xf32>
    %cst_97 = arith.constant dense<0.000000e+00> : vector<32x64xf32>
    %117 = tpu.matmul %113, %116, %cst_97 {dimension_numbers = #tpu.dot_dimension_numbers<[1], [0], [0], [1], [0, 0, 1, 1], [], []>} : vector<32x64xf32>, vector<64x64xf32>, vector<32x64xf32> -> vector<32x64xf32>
    %118 = arith.addf %115, %117 : vector<32x64xf32>
    %c0_98 = arith.constant 0 : index
    %c0_99 = arith.constant 0 : index
    %119 = vector.load %arg23[%c0_98, %c0_99] : memref<1x64xf32, #tpu.memory_space<vmem>>, vector<1x64xf32>
    %120 = vector.broadcast %119 : vector<1x64xf32> to vector<32x64xf32>
    %121 = arith.addf %118, %120 : vector<32x64xf32>
    %c0_100 = arith.constant 0 : index
    %c0_101 = arith.constant 0 : index
    %122 = vector.load %arg24[%c0_100, %c0_101] : memref<32x64xf32, #tpu.memory_space<vmem>>, vector<32x64xf32>
    tpu.vector_store %arg24[%c0_100, %c0_101], %121 {strides = array<i32>} : memref<32x64xf32, #tpu.memory_space<vmem>>, vector<32x64xf32>,
    return
  }
}

module attributes {stable_mosaic.version = 11 : i64} {
  func.func @_single_vbge_kernel(%arg0: memref<32x32xf32, #tpu.memory_space<vmem>>, %arg1: memref<48x32xf32, #tpu.memory_space<vmem>>, %arg2: memref<32x48xf32, #tpu.memory_space<vmem>>, %arg3: memref<48x32xf32, #tpu.memory_space<vmem>>, %arg4: memref<32x32xf32, #tpu.memory_space<vmem>>, %arg5: memref<1x32xf32, #tpu.memory_space<vmem>>, %arg6: memref<32x32xf32, #tpu.memory_space<vmem>>, %arg7: memref<1x32xf32, #tpu.memory_space<vmem>>, %arg8: memref<32x32xf32, #tpu.memory_space<vmem>>, %arg9: memref<1x32xf32, #tpu.memory_space<vmem>>, %arg10: memref<32x32xf32, #tpu.memory_space<vmem>>, %arg11: memref<1x32xf32, #tpu.memory_space<vmem>>, %arg12: memref<32x32xf32, #tpu.memory_space<vmem>>, %arg13: memref<32x32xf32, #tpu.memory_space<vmem>>, %arg14: memref<1x32xf32, #tpu.memory_space<vmem>>, %arg15: memref<32x32xf32, #tpu.memory_space<vmem>>, %arg16: memref<32x32xf32, #tpu.memory_space<vmem>>, %arg17: memref<1x32xf32, #tpu.memory_space<vmem>>, %arg18: memref<32x32xf32, #tpu.memory_space<vmem>>, %arg19: memref<1x32xf32, #tpu.memory_space<vmem>>, %arg20: memref<32x32xf32, #tpu.memory_space<vmem>>, %arg21: memref<1x32xf32, #tpu.memory_space<vmem>>, %arg22: memref<32x32xf32, #tpu.memory_space<vmem>>, %arg23: memref<1x32xf32, #tpu.memory_space<vmem>>, %arg24: memref<32x32xf32, #tpu.memory_space<vmem>>, %arg25: memref<1x32xf32, #tpu.memory_space<vmem>>, %arg26: memref<32x32xf32, #tpu.memory_space<vmem>>, %arg27: memref<32x32xf32, #tpu.memory_space<vmem>>, %arg28: memref<1x32xf32, #tpu.memory_space<vmem>>, %arg29: memref<32x32xf32, #tpu.memory_space<vmem>>, %arg30: memref<32x32xf32, #tpu.memory_space<vmem>>, %arg31: memref<1x32xf32, #tpu.memory_space<vmem>>, %arg32: memref<32x32xf32, #tpu.memory_space<vmem>>, %arg33: memref<48x32xf32, #tpu.memory_space<vmem>>) attributes {dimension_semantics = [], scalar_prefetch = 0 : i64, scratch_operands = 0 : i64, tpu.core_type = #tpu.core_type<tc>} {
    %c0 = arith.constant 0 : index
    %c0_0 = arith.constant 0 : index
    %0 = vector.load %arg0[%c0, %c0_0] : memref<32x32xf32, #tpu.memory_space<vmem>>, vector<32x32xf32>
    %c0_1 = arith.constant 0 : index
    %c0_2 = arith.constant 0 : index
    %1 = vector.load %arg1[%c0_1, %c0_2] : memref<48x32xf32, #tpu.memory_space<vmem>>, vector<48x32xf32>
    %c0_3 = arith.constant 0 : index
    %c0_4 = arith.constant 0 : index
    %2 = vector.load %arg2[%c0_3, %c0_4] : memref<32x48xf32, #tpu.memory_space<vmem>>, vector<32x48xf32>
    %c0_5 = arith.constant 0 : index
    %c0_6 = arith.constant 0 : index
    %3 = vector.load %arg3[%c0_5, %c0_6] : memref<48x32xf32, #tpu.memory_space<vmem>>, vector<48x32xf32>
    %c0_7 = arith.constant 0 : index
    %c0_8 = arith.constant 0 : index
    %4 = vector.load %arg4[%c0_7, %c0_8] : memref<32x32xf32, #tpu.memory_space<vmem>>, vector<32x32xf32>
    %cst = arith.constant dense<0.000000e+00> : vector<32x32xf32>
    %5 = tpu.matmul %0, %4, %cst {dimension_numbers = #tpu.dot_dimension_numbers<[1], [0], [0], [1], [0, 0, 1, 1], [], []>} : vector<32x32xf32>, vector<32x32xf32>, vector<32x32xf32> -> vector<32x32xf32>
    %cst_9 = arith.constant dense<0.000000e+00> : vector<48x32xf32>
    %6 = tpu.matmul %3, %5, %cst_9 {dimension_numbers = #tpu.dot_dimension_numbers<[1], [0], [0], [1], [0, 0, 1, 1], [], []>} : vector<48x32xf32>, vector<32x32xf32>, vector<48x32xf32> -> vector<48x32xf32>
    %c0_10 = arith.constant 0 : index
    %c0_11 = arith.constant 0 : index
    %7 = vector.load %arg5[%c0_10, %c0_11] : memref<1x32xf32, #tpu.memory_space<vmem>>, vector<1x32xf32>
    %8 = vector.broadcast %7 : vector<1x32xf32> to vector<48x32xf32>
    %9 = arith.addf %6, %8 : vector<48x32xf32>
    %cst_12 = arith.constant 0.000000e+00 : f32
    %10 = vector.broadcast %cst_12 : f32 to vector<48x32xf32>
    %11 = arith.cmpf ogt, %9, %10 : vector<48x32xf32>
    %cst_13 = arith.constant 1.000000e-01 : f32
    %12 = vector.broadcast %cst_13 : f32 to vector<48x32xf32>
    %13 = arith.mulf %12, %9 : vector<48x32xf32>
    %14 = arith.select %11, %9, %13 : vector<48x32xi1>, vector<48x32xf32>
    %c0_14 = arith.constant 0 : index
    %c0_15 = arith.constant 0 : index
    %15 = vector.load %arg6[%c0_14, %c0_15] : memref<32x32xf32, #tpu.memory_space<vmem>>, vector<32x32xf32>
    %cst_16 = arith.constant dense<0.000000e+00> : vector<48x32xf32>
    %16 = tpu.matmul %1, %15, %cst_16 {dimension_numbers = #tpu.dot_dimension_numbers<[1], [0], [0], [1], [0, 0, 1, 1], [], []>} : vector<48x32xf32>, vector<32x32xf32>, vector<48x32xf32> -> vector<48x32xf32>
    %cst_17 = arith.constant dense<0.000000e+00> : vector<32x32xf32>
    %17 = tpu.matmul %2, %16, %cst_17 {dimension_numbers = #tpu.dot_dimension_numbers<[1], [0], [0], [1], [0, 0, 1, 1], [], []>} : vector<32x48xf32>, vector<48x32xf32>, vector<32x32xf32> -> vector<32x32xf32>
    %c0_18 = arith.constant 0 : index
    %c0_19 = arith.constant 0 : index
    %18 = vector.load %arg7[%c0_18, %c0_19] : memref<1x32xf32, #tpu.memory_space<vmem>>, vector<1x32xf32>
    %19 = vector.broadcast %18 : vector<1x32xf32> to vector<32x32xf32>
    %20 = arith.addf %17, %19 : vector<32x32xf32>
    %cst_20 = arith.constant 0.000000e+00 : f32
    %21 = vector.broadcast %cst_20 : f32 to vector<32x32xf32>
    %22 = arith.cmpf ogt, %20, %21 : vector<32x32xf32>
    %cst_21 = arith.constant 1.000000e-01 : f32
    %23 = vector.broadcast %cst_21 : f32 to vector<32x32xf32>
    %24 = arith.mulf %23, %20 : vector<32x32xf32>
    %25 = arith.select %22, %20, %24 : vector<32x32xi1>, vector<32x32xf32>
    %c0_22 = arith.constant 0 : index
    %c0_23 = arith.constant 0 : index
    %26 = vector.load %arg8[%c0_22, %c0_23] : memref<32x32xf32, #tpu.memory_space<vmem>>, vector<32x32xf32>
    %cst_24 = arith.constant dense<0.000000e+00> : vector<48x32xf32>
    %27 = tpu.matmul %14, %26, %cst_24 {dimension_numbers = #tpu.dot_dimension_numbers<[1], [0], [0], [1], [0, 0, 1, 1], [], []>} : vector<48x32xf32>, vector<32x32xf32>, vector<48x32xf32> -> vector<48x32xf32>
    %cst_25 = arith.constant dense<0.000000e+00> : vector<32x32xf32>
    %28 = tpu.matmul %2, %27, %cst_25 {dimension_numbers = #tpu.dot_dimension_numbers<[1], [0], [0], [1], [0, 0, 1, 1], [], []>} : vector<32x48xf32>, vector<48x32xf32>, vector<32x32xf32> -> vector<32x32xf32>
    %c0_26 = arith.constant 0 : index
    %c0_27 = arith.constant 0 : index
    %29 = vector.load %arg9[%c0_26, %c0_27] : memref<1x32xf32, #tpu.memory_space<vmem>>, vector<1x32xf32>
    %30 = vector.broadcast %29 : vector<1x32xf32> to vector<32x32xf32>
    %31 = arith.addf %28, %30 : vector<32x32xf32>
    %cst_28 = arith.constant 0.000000e+00 : f32
    %32 = vector.broadcast %cst_28 : f32 to vector<32x32xf32>
    %33 = arith.cmpf ogt, %31, %32 : vector<32x32xf32>
    %cst_29 = arith.constant 1.000000e-01 : f32
    %34 = vector.broadcast %cst_29 : f32 to vector<32x32xf32>
    %35 = arith.mulf %34, %31 : vector<32x32xf32>
    %36 = arith.select %33, %31, %35 : vector<32x32xi1>, vector<32x32xf32>
    %c0_30 = arith.constant 0 : index
    %c0_31 = arith.constant 0 : index
    %37 = vector.load %arg10[%c0_30, %c0_31] : memref<32x32xf32, #tpu.memory_space<vmem>>, vector<32x32xf32>
    %cst_32 = arith.constant dense<0.000000e+00> : vector<32x32xf32>
    %38 = tpu.matmul %25, %37, %cst_32 {dimension_numbers = #tpu.dot_dimension_numbers<[1], [0], [0], [1], [0, 0, 1, 1], [], []>} : vector<32x32xf32>, vector<32x32xf32>, vector<32x32xf32> -> vector<32x32xf32>
    %cst_33 = arith.constant dense<0.000000e+00> : vector<48x32xf32>
    %39 = tpu.matmul %3, %38, %cst_33 {dimension_numbers = #tpu.dot_dimension_numbers<[1], [0], [0], [1], [0, 0, 1, 1], [], []>} : vector<48x32xf32>, vector<32x32xf32>, vector<48x32xf32> -> vector<48x32xf32>
    %c0_34 = arith.constant 0 : index
    %c0_35 = arith.constant 0 : index
    %40 = vector.load %arg11[%c0_34, %c0_35] : memref<1x32xf32, #tpu.memory_space<vmem>>, vector<1x32xf32>
    %41 = vector.broadcast %40 : vector<1x32xf32> to vector<48x32xf32>
    %42 = arith.addf %39, %41 : vector<48x32xf32>
    %cst_36 = arith.constant 0.000000e+00 : f32
    %43 = vector.broadcast %cst_36 : f32 to vector<48x32xf32>
    %44 = arith.cmpf ogt, %42, %43 : vector<48x32xf32>
    %cst_37 = arith.constant 1.000000e-01 : f32
    %45 = vector.broadcast %cst_37 : f32 to vector<48x32xf32>
    %46 = arith.mulf %45, %42 : vector<48x32xf32>
    %47 = arith.select %44, %42, %46 : vector<48x32xi1>, vector<48x32xf32>
    %c0_38 = arith.constant 0 : index
    %c0_39 = arith.constant 0 : index
    %48 = vector.load %arg12[%c0_38, %c0_39] : memref<32x32xf32, #tpu.memory_space<vmem>>, vector<32x32xf32>
    %cst_40 = arith.constant dense<0.000000e+00> : vector<32x32xf32>
    %49 = tpu.matmul %36, %48, %cst_40 {dimension_numbers = #tpu.dot_dimension_numbers<[1], [0], [0], [1], [0, 0, 1, 1], [], []>} : vector<32x32xf32>, vector<32x32xf32>, vector<32x32xf32> -> vector<32x32xf32>
    %c0_41 = arith.constant 0 : index
    %c0_42 = arith.constant 0 : index
    %50 = vector.load %arg13[%c0_41, %c0_42] : memref<32x32xf32, #tpu.memory_space<vmem>>, vector<32x32xf32>
    %cst_43 = arith.constant dense<0.000000e+00> : vector<32x32xf32>
    %51 = tpu.matmul %0, %50, %cst_43 {dimension_numbers = #tpu.dot_dimension_numbers<[1], [0], [0], [1], [0, 0, 1, 1], [], []>} : vector<32x32xf32>, vector<32x32xf32>, vector<32x32xf32> -> vector<32x32xf32>
    %52 = arith.addf %49, %51 : vector<32x32xf32>
    %c0_44 = arith.constant 0 : index
    %c0_45 = arith.constant 0 : index
    %53 = vector.load %arg14[%c0_44, %c0_45] : memref<1x32xf32, #tpu.memory_space<vmem>>, vector<1x32xf32>
    %54 = vector.broadcast %53 : vector<1x32xf32> to vector<32x32xf32>
    %55 = arith.addf %52, %54 : vector<32x32xf32>
    %cst_46 = arith.constant 0.000000e+00 : f32
    %56 = vector.broadcast %cst_46 : f32 to vector<32x32xf32>
    %57 = arith.maximumf %55, %56 : vector<32x32xf32>
    %c0_47 = arith.constant 0 : index
    %c0_48 = arith.constant 0 : index
    %58 = vector.load %arg15[%c0_47, %c0_48] : memref<32x32xf32, #tpu.memory_space<vmem>>, vector<32x32xf32>
    %cst_49 = arith.constant dense<0.000000e+00> : vector<48x32xf32>
    %59 = tpu.matmul %47, %58, %cst_49 {dimension_numbers = #tpu.dot_dimension_numbers<[1], [0], [0], [1], [0, 0, 1, 1], [], []>} : vector<48x32xf32>, vector<32x32xf32>, vector<48x32xf32> -> vector<48x32xf32>
    %c0_50 = arith.constant 0 : index
    %c0_51 = arith.constant 0 : index
    %60 = vector.load %arg16[%c0_50, %c0_51] : memref<32x32xf32, #tpu.memory_space<vmem>>, vector<32x32xf32>
    %cst_52 = arith.constant dense<0.000000e+00> : vector<48x32xf32>
    %61 = tpu.matmul %1, %60, %cst_52 {dimension_numbers = #tpu.dot_dimension_numbers<[1], [0], [0], [1], [0, 0, 1, 1], [], []>} : vector<48x32xf32>, vector<32x32xf32>, vector<48x32xf32> -> vector<48x32xf32>
    %62 = arith.addf %59, %61 : vector<48x32xf32>
    %c0_53 = arith.constant 0 : index
    %c0_54 = arith.constant 0 : index
    %63 = vector.load %arg17[%c0_53, %c0_54] : memref<1x32xf32, #tpu.memory_space<vmem>>, vector<1x32xf32>
    %64 = vector.broadcast %63 : vector<1x32xf32> to vector<48x32xf32>
    %65 = arith.addf %62, %64 : vector<48x32xf32>
    %cst_55 = arith.constant 0.000000e+00 : f32
    %66 = vector.broadcast %cst_55 : f32 to vector<48x32xf32>
    %67 = arith.maximumf %65, %66 : vector<48x32xf32>
    %c0_56 = arith.constant 0 : index
    %c0_57 = arith.constant 0 : index
    %68 = vector.load %arg18[%c0_56, %c0_57] : memref<32x32xf32, #tpu.memory_space<vmem>>, vector<32x32xf32>
    %cst_58 = arith.constant dense<0.000000e+00> : vector<32x32xf32>
    %69 = tpu.matmul %57, %68, %cst_58 {dimension_numbers = #tpu.dot_dimension_numbers<[1], [0], [0], [1], [0, 0, 1, 1], [], []>} : vector<32x32xf32>, vector<32x32xf32>, vector<32x32xf32> -> vector<32x32xf32>
    %cst_59 = arith.constant dense<0.000000e+00> : vector<48x32xf32>
    %70 = tpu.matmul %3, %69, %cst_59 {dimension_numbers = #tpu.dot_dimension_numbers<[1], [0], [0], [1], [0, 0, 1, 1], [], []>} : vector<48x32xf32>, vector<32x32xf32>, vector<48x32xf32> -> vector<48x32xf32>
    %c0_60 = arith.constant 0 : index
    %c0_61 = arith.constant 0 : index
    %71 = vector.load %arg19[%c0_60, %c0_61] : memref<1x32xf32, #tpu.memory_space<vmem>>, vector<1x32xf32>
    %72 = vector.broadcast %71 : vector<1x32xf32> to vector<48x32xf32>
    %73 = arith.addf %70, %72 : vector<48x32xf32>
    %cst_62 = arith.constant 0.000000e+00 : f32
    %74 = vector.broadcast %cst_62 : f32 to vector<48x32xf32>
    %75 = arith.cmpf ogt, %73, %74 : vector<48x32xf32>
    %cst_63 = arith.constant 1.000000e-01 : f32
    %76 = vector.broadcast %cst_63 : f32 to vector<48x32xf32>
    %77 = arith.mulf %76, %73 : vector<48x32xf32>
    %78 = arith.select %75, %73, %77 : vector<48x32xi1>, vector<48x32xf32>
    %cst_64 = arith.constant dense<0.000000e+00> : vector<32x32xf32>
    %79 = tpu.matmul %2, %78, %cst_64 {dimension_numbers = #tpu.dot_dimension_numbers<[1], [0], [0], [1], [0, 0, 1, 1], [], []>} : vector<32x48xf32>, vector<48x32xf32>, vector<32x32xf32> -> vector<32x32xf32>
    %c0_65 = arith.constant 0 : index
    %c0_66 = arith.constant 0 : index
    %80 = vector.load %arg22[%c0_65, %c0_66] : memref<32x32xf32, #tpu.memory_space<vmem>>, vector<32x32xf32>
    %cst_67 = arith.constant dense<0.000000e+00> : vector<32x32xf32>
    %81 = tpu.matmul %79, %80, %cst_67 {dimension_numbers = #tpu.dot_dimension_numbers<[1], [0], [0], [1], [0, 0, 1, 1], [], []>} : vector<32x32xf32>, vector<32x32xf32>, vector<32x32xf32> -> vector<32x32xf32>
    %c0_68 = arith.constant 0 : index
    %c0_69 = arith.constant 0 : index
    %82 = vector.load %arg23[%c0_68, %c0_69] : memref<1x32xf32, #tpu.memory_space<vmem>>, vector<1x32xf32>
    %83 = vector.broadcast %82 : vector<1x32xf32> to vector<32x32xf32>
    %84 = arith.addf %81, %83 : vector<32x32xf32>
    %cst_70 = arith.constant 0.000000e+00 : f32
    %85 = vector.broadcast %cst_70 : f32 to vector<32x32xf32>
    %86 = arith.cmpf ogt, %84, %85 : vector<32x32xf32>
    %cst_71 = arith.constant 1.000000e-01 : f32
    %87 = vector.broadcast %cst_71 : f32 to vector<32x32xf32>
    %88 = arith.mulf %87, %84 : vector<32x32xf32>
    %89 = arith.select %86, %84, %88 : vector<32x32xi1>, vector<32x32xf32>
    %c0_72 = arith.constant 0 : index
    %c0_73 = arith.constant 0 : index
    %90 = vector.load %arg26[%c0_72, %c0_73] : memref<32x32xf32, #tpu.memory_space<vmem>>, vector<32x32xf32>
    %cst_74 = arith.constant dense<0.000000e+00> : vector<32x32xf32>
    %91 = tpu.matmul %89, %90, %cst_74 {dimension_numbers = #tpu.dot_dimension_numbers<[1], [0], [0], [1], [0, 0, 1, 1], [], []>} : vector<32x32xf32>, vector<32x32xf32>, vector<32x32xf32> -> vector<32x32xf32>
    %c0_75 = arith.constant 0 : index
    %c0_76 = arith.constant 0 : index
    %92 = vector.load %arg27[%c0_75, %c0_76] : memref<32x32xf32, #tpu.memory_space<vmem>>, vector<32x32xf32>
    %cst_77 = arith.constant dense<0.000000e+00> : vector<32x32xf32>
    %93 = tpu.matmul %57, %92, %cst_77 {dimension_numbers = #tpu.dot_dimension_numbers<[1], [0], [0], [1], [0, 0, 1, 1], [], []>} : vector<32x32xf32>, vector<32x32xf32>, vector<32x32xf32> -> vector<32x32xf32>
    %94 = arith.addf %91, %93 : vector<32x32xf32>
    %c0_78 = arith.constant 0 : index
    %c0_79 = arith.constant 0 : index
    %95 = vector.load %arg28[%c0_78, %c0_79] : memref<1x32xf32, #tpu.memory_space<vmem>>, vector<1x32xf32>
    %96 = vector.broadcast %95 : vector<1x32xf32> to vector<32x32xf32>
    %97 = arith.addf %94, %96 : vector<32x32xf32>
    %c0_80 = arith.constant 0 : index
    %c0_81 = arith.constant 0 : index
    %98 = vector.load %arg20[%c0_80, %c0_81] : memref<32x32xf32, #tpu.memory_space<vmem>>, vector<32x32xf32>
    %cst_82 = arith.constant dense<0.000000e+00> : vector<48x32xf32>
    %99 = tpu.matmul %67, %98, %cst_82 {dimension_numbers = #tpu.dot_dimension_numbers<[1], [0], [0], [1], [0, 0, 1, 1], [], []>} : vector<48x32xf32>, vector<32x32xf32>, vector<48x32xf32> -> vector<48x32xf32>
    %cst_83 = arith.constant dense<0.000000e+00> : vector<32x32xf32>
    %100 = tpu.matmul %2, %99, %cst_83 {dimension_numbers = #tpu.dot_dimension_numbers<[1], [0], [0], [1], [0, 0, 1, 1], [], []>} : vector<32x48xf32>, vector<48x32xf32>, vector<32x32xf32> -> vector<32x32xf32>
    %c0_84 = arith.constant 0 : index
    %c0_85 = arith.constant 0 : index
    %101 = vector.load %arg21[%c0_84, %c0_85] : memref<1x32xf32, #tpu.memory_space<vmem>>, vector<1x32xf32>
    %102 = vector.broadcast %101 : vector<1x32xf32> to vector<32x32xf32>
    %103 = arith.addf %100, %102 : vector<32x32xf32>
    %cst_86 = arith.constant 0.000000e+00 : f32
    %104 = vector.broadcast %cst_86 : f32 to vector<32x32xf32>
    %105 = arith.cmpf ogt, %103, %104 : vector<32x32xf32>
    %cst_87 = arith.constant 1.000000e-01 : f32
    %106 = vector.broadcast %cst_87 : f32 to vector<32x32xf32>
    %107 = arith.mulf %106, %103 : vector<32x32xf32>
    %108 = arith.select %105, %103, %107 : vector<32x32xi1>, vector<32x32xf32>
    %cst_88 = arith.constant dense<0.000000e+00> : vector<48x32xf32>
    %109 = tpu.matmul %3, %108, %cst_88 {dimension_numbers = #tpu.dot_dimension_numbers<[1], [0], [0], [1], [0, 0, 1, 1], [], []>} : vector<48x32xf32>, vector<32x32xf32>, vector<48x32xf32> -> vector<48x32xf32>
    %c0_89 = arith.constant 0 : index
    %c0_90 = arith.constant 0 : index
    %110 = vector.load %arg24[%c0_89, %c0_90] : memref<32x32xf32, #tpu.memory_space<vmem>>, vector<32x32xf32>
    %cst_91 = arith.constant dense<0.000000e+00> : vector<48x32xf32>
    %111 = tpu.matmul %109, %110, %cst_91 {dimension_numbers = #tpu.dot_dimension_numbers<[1], [0], [0], [1], [0, 0, 1, 1], [], []>} : vector<48x32xf32>, vector<32x32xf32>, vector<48x32xf32> -> vector<48x32xf32>
    %c0_92 = arith.constant 0 : index
    %c0_93 = arith.constant 0 : index
    %112 = vector.load %arg25[%c0_92, %c0_93] : memref<1x32xf32, #tpu.memory_space<vmem>>, vector<1x32xf32>
    %113 = vector.broadcast %112 : vector<1x32xf32> to vector<48x32xf32>
    %114 = arith.addf %111, %113 : vector<48x32xf32>
    %cst_94 = arith.constant 0.000000e+00 : f32
    %115 = vector.broadcast %cst_94 : f32 to vector<48x32xf32>
    %116 = arith.cmpf ogt, %114, %115 : vector<48x32xf32>
    %cst_95 = arith.constant 1.000000e-01 : f32
    %117 = vector.broadcast %cst_95 : f32 to vector<48x32xf32>
    %118 = arith.mulf %117, %114 : vector<48x32xf32>
    %119 = arith.select %116, %114, %118 : vector<48x32xi1>, vector<48x32xf32>
    %c0_96 = arith.constant 0 : index
    %c0_97 = arith.constant 0 : index
    %120 = vector.load %arg29[%c0_96, %c0_97] : memref<32x32xf32, #tpu.memory_space<vmem>>, vector<32x32xf32>
    %cst_98 = arith.constant dense<0.000000e+00> : vector<48x32xf32>
    %121 = tpu.matmul %119, %120, %cst_98 {dimension_numbers = #tpu.dot_dimension_numbers<[1], [0], [0], [1], [0, 0, 1, 1], [], []>} : vector<48x32xf32>, vector<32x32xf32>, vector<48x32xf32> -> vector<48x32xf32>
    %c0_99 = arith.constant 0 : index
    %c0_100 = arith.constant 0 : index
    %122 = vector.load %arg30[%c0_99, %c0_100] : memref<32x32xf32, #tpu.memory_space<vmem>>, vector<32x32xf32>
    %cst_101 = arith.constant dense<0.000000e+00> : vector<48x32xf32>
    %123 = tpu.matmul %67, %122, %cst_101 {dimension_numbers = #tpu.dot_dimension_numbers<[1], [0], [0], [1], [0, 0, 1, 1], [], []>} : vector<48x32xf32>, vector<32x32xf32>, vector<48x32xf32> -> vector<48x32xf32>
    %124 = arith.addf %121, %123 : vector<48x32xf32>
    %c0_102 = arith.constant 0 : index
    %c0_103 = arith.constant 0 : index
    %125 = vector.load %arg31[%c0_102, %c0_103] : memref<1x32xf32, #tpu.memory_space<vmem>>, vector<1x32xf32>
    %126 = vector.broadcast %125 : vector<1x32xf32> to vector<48x32xf32>
    %127 = arith.addf %124, %126 : vector<48x32xf32>
    %c0_104 = arith.constant 0 : index
    %c0_105 = arith.constant 0 : index
    %128 = vector.load %arg32[%c0_104, %c0_105] : memref<32x32xf32, #tpu.memory_space<vmem>>, vector<32x32xf32>
    tpu.vector_store %arg32[%c0_104, %c0_105], %97 {strides = array<i32>} : memref<32x32xf32, #tpu.memory_space<vmem>>, vector<32x32xf32>,
    %c0_106 = arith.constant 0 : index
    %c0_107 = arith.constant 0 : index
    %129 = vector.load %arg33[%c0_106, %c0_107] : memref<48x32xf32, #tpu.memory_space<vmem>>, vector<48x32xf32>
    tpu.vector_store %arg33[%c0_106, %c0_107], %127 {strides = array<i32>} : memref<48x32xf32, #tpu.memory_space<vmem>>, vector<48x32xf32>,
    return
  }
}

module attributes {stable_mosaic.version = 11 : i64} {
  func.func @_user_share_kernel(%arg0: memref<32x32xf32, #tpu.memory_space<vmem>>, %arg1: memref<32x48xf32, #tpu.memory_space<vmem>>, %arg2: memref<48x32xf32, #tpu.memory_space<vmem>>, %arg3: memref<32x32xf32, #tpu.memory_space<vmem>>, %arg4: memref<1x32xf32, #tpu.memory_space<vmem>>, %arg5: memref<32x32xf32, #tpu.memory_space<vmem>>, %arg6: memref<1x32xf32, #tpu.memory_space<vmem>>, %arg7: memref<32x32xf32, #tpu.memory_space<vmem>>, %arg8: memref<32x32xf32, #tpu.memory_space<vmem>>, %arg9: memref<1x32xf32, #tpu.memory_space<vmem>>, %arg10: memref<32x32xf32, #tpu.memory_space<vmem>>, %arg11: memref<1x32xf32, #tpu.memory_space<vmem>>, %arg12: memref<32x64xf32, #tpu.memory_space<vmem>>, %arg13: memref<1x64xf32, #tpu.memory_space<vmem>>, %arg14: memref<64x64xf32, #tpu.memory_space<vmem>>, %arg15: memref<32x64xf32, #tpu.memory_space<vmem>>, %arg16: memref<1x64xf32, #tpu.memory_space<vmem>>, %arg17: memref<32x64xf32, #tpu.memory_space<vmem>>) attributes {dimension_semantics = [], scalar_prefetch = 0 : i64, scratch_operands = 0 : i64, tpu.core_type = #tpu.core_type<tc>} {
    %c0 = arith.constant 0 : index
    %c0_0 = arith.constant 0 : index
    %0 = vector.load %arg0[%c0, %c0_0] : memref<32x32xf32, #tpu.memory_space<vmem>>, vector<32x32xf32>
    %c0_1 = arith.constant 0 : index
    %c0_2 = arith.constant 0 : index
    %1 = vector.load %arg1[%c0_1, %c0_2] : memref<32x48xf32, #tpu.memory_space<vmem>>, vector<32x48xf32>
    %c0_3 = arith.constant 0 : index
    %c0_4 = arith.constant 0 : index
    %2 = vector.load %arg2[%c0_3, %c0_4] : memref<48x32xf32, #tpu.memory_space<vmem>>, vector<48x32xf32>
    %c0_5 = arith.constant 0 : index
    %c0_6 = arith.constant 0 : index
    %3 = vector.load %arg3[%c0_5, %c0_6] : memref<32x32xf32, #tpu.memory_space<vmem>>, vector<32x32xf32>
    %cst = arith.constant dense<0.000000e+00> : vector<32x32xf32>
    %4 = tpu.matmul %0, %3, %cst {dimension_numbers = #tpu.dot_dimension_numbers<[1], [0], [0], [1], [0, 0, 1, 1], [], []>} : vector<32x32xf32>, vector<32x32xf32>, vector<32x32xf32> -> vector<32x32xf32>
    %cst_7 = arith.constant dense<0.000000e+00> : vector<48x32xf32>
    %5 = tpu.matmul %2, %4, %cst_7 {dimension_numbers = #tpu.dot_dimension_numbers<[1], [0], [0], [1], [0, 0, 1, 1], [], []>} : vector<48x32xf32>, vector<32x32xf32>, vector<48x32xf32> -> vector<48x32xf32>
    %c0_8 = arith.constant 0 : index
    %c0_9 = arith.constant 0 : index
    %6 = vector.load %arg4[%c0_8, %c0_9] : memref<1x32xf32, #tpu.memory_space<vmem>>, vector<1x32xf32>
    %7 = vector.broadcast %6 : vector<1x32xf32> to vector<48x32xf32>
    %8 = arith.addf %5, %7 : vector<48x32xf32>
    %cst_10 = arith.constant 0.000000e+00 : f32
    %9 = vector.broadcast %cst_10 : f32 to vector<48x32xf32>
    %10 = arith.cmpf ogt, %8, %9 : vector<48x32xf32>
    %cst_11 = arith.constant 1.000000e-01 : f32
    %11 = vector.broadcast %cst_11 : f32 to vector<48x32xf32>
    %12 = arith.mulf %11, %8 : vector<48x32xf32>
    %13 = arith.select %10, %8, %12 : vector<48x32xi1>, vector<48x32xf32>
    %c0_12 = arith.constant 0 : index
    %c0_13 = arith.constant 0 : index
    %14 = vector.load %arg5[%c0_12, %c0_13] : memref<32x32xf32, #tpu.memory_space<vmem>>, vector<32x32xf32>
    %cst_14 = arith.constant dense<0.000000e+00> : vector<48x32xf32>
    %15 = tpu.matmul %13, %14, %cst_14 {dimension_numbers = #tpu.dot_dimension_numbers<[1], [0], [0], [1], [0, 0, 1, 1], [], []>} : vector<48x32xf32>, vector<32x32xf32>, vector<48x32xf32> -> vector<48x32xf32>
    %cst_15 = arith.constant dense<0.000000e+00> : vector<32x32xf32>
    %16 = tpu.matmul %1, %15, %cst_15 {dimension_numbers = #tpu.dot_dimension_numbers<[1], [0], [0], [1], [0, 0, 1, 1], [], []>} : vector<32x48xf32>, vector<48x32xf32>, vector<32x32xf32> -> vector<32x32xf32>
    %c0_16 = arith.constant 0 : index
    %c0_17 = arith.constant 0 : index
    %17 = vector.load %arg6[%c0_16, %c0_17] : memref<1x32xf32, #tpu.memory_space<vmem>>, vector<1x32xf32>
    %18 = vector.broadcast %17 : vector<1x32xf32> to vector<32x32xf32>
    %19 = arith.addf %16, %18 : vector<32x32xf32>
    %cst_18 = arith.constant 0.000000e+00 : f32
    %20 = vector.broadcast %cst_18 : f32 to vector<32x32xf32>
    %21 = arith.cmpf ogt, %19, %20 : vector<32x32xf32>
    %cst_19 = arith.constant 1.000000e-01 : f32
    %22 = vector.broadcast %cst_19 : f32 to vector<32x32xf32>
    %23 = arith.mulf %22, %19 : vector<32x32xf32>
    %24 = arith.select %21, %19, %23 : vector<32x32xi1>, vector<32x32xf32>
    %c0_20 = arith.constant 0 : index
    %c0_21 = arith.constant 0 : index
    %25 = vector.load %arg7[%c0_20, %c0_21] : memref<32x32xf32, #tpu.memory_space<vmem>>, vector<32x32xf32>
    %cst_22 = arith.constant dense<0.000000e+00> : vector<32x32xf32>
    %26 = tpu.matmul %24, %25, %cst_22 {dimension_numbers = #tpu.dot_dimension_numbers<[1], [0], [0], [1], [0, 0, 1, 1], [], []>} : vector<32x32xf32>, vector<32x32xf32>, vector<32x32xf32> -> vector<32x32xf32>
    %c0_23 = arith.constant 0 : index
    %c0_24 = arith.constant 0 : index
    %27 = vector.load %arg8[%c0_23, %c0_24] : memref<32x32xf32, #tpu.memory_space<vmem>>, vector<32x32xf32>
    %cst_25 = arith.constant dense<0.000000e+00> : vector<32x32xf32>
    %28 = tpu.matmul %0, %27, %cst_25 {dimension_numbers = #tpu.dot_dimension_numbers<[1], [0], [0], [1], [0, 0, 1, 1], [], []>} : vector<32x32xf32>, vector<32x32xf32>, vector<32x32xf32> -> vector<32x32xf32>
    %29 = arith.addf %26, %28 : vector<32x32xf32>
    %c0_26 = arith.constant 0 : index
    %c0_27 = arith.constant 0 : index
    %30 = vector.load %arg9[%c0_26, %c0_27] : memref<1x32xf32, #tpu.memory_space<vmem>>, vector<1x32xf32>
    %31 = vector.broadcast %30 : vector<1x32xf32> to vector<32x32xf32>
    %32 = arith.addf %29, %31 : vector<32x32xf32>
    %cst_28 = arith.constant 0.000000e+00 : f32
    %33 = vector.broadcast %cst_28 : f32 to vector<32x32xf32>
    %34 = arith.maximumf %32, %33 : vector<32x32xf32>
    %c0_29 = arith.constant 0 : index
    %c0_30 = arith.constant 0 : index
    %35 = vector.load %arg10[%c0_29, %c0_30] : memref<32x32xf32, #tpu.memory_space<vmem>>, vector<32x32xf32>
    %cst_31 = arith.constant dense<0.000000e+00> : vector<32x32xf32>
    %36 = tpu.matmul %34, %35, %cst_31 {dimension_numbers = #tpu.dot_dimension_numbers<[1], [0], [0], [1], [0, 0, 1, 1], [], []>} : vector<32x32xf32>, vector<32x32xf32>, vector<32x32xf32> -> vector<32x32xf32>
    %cst_32 = arith.constant dense<0.000000e+00> : vector<48x32xf32>
    %37 = tpu.matmul %2, %36, %cst_32 {dimension_numbers = #tpu.dot_dimension_numbers<[1], [0], [0], [1], [0, 0, 1, 1], [], []>} : vector<48x32xf32>, vector<32x32xf32>, vector<48x32xf32> -> vector<48x32xf32>
    %c0_33 = arith.constant 0 : index
    %c0_34 = arith.constant 0 : index
    %38 = vector.load %arg11[%c0_33, %c0_34] : memref<1x32xf32, #tpu.memory_space<vmem>>, vector<1x32xf32>
    %39 = vector.broadcast %38 : vector<1x32xf32> to vector<48x32xf32>
    %40 = arith.addf %37, %39 : vector<48x32xf32>
    %cst_35 = arith.constant 0.000000e+00 : f32
    %41 = vector.broadcast %cst_35 : f32 to vector<48x32xf32>
    %42 = arith.cmpf ogt, %40, %41 : vector<48x32xf32>
    %cst_36 = arith.constant 1.000000e-01 : f32
    %43 = vector.broadcast %cst_36 : f32 to vector<48x32xf32>
    %44 = arith.mulf %43, %40 : vector<48x32xf32>
    %45 = arith.select %42, %40, %44 : vector<48x32xi1>, vector<48x32xf32>
    %cst_37 = arith.constant dense<0.000000e+00> : vector<32x32xf32>
    %46 = tpu.matmul %1, %45, %cst_37 {dimension_numbers = #tpu.dot_dimension_numbers<[1], [0], [0], [1], [0, 0, 1, 1], [], []>} : vector<32x48xf32>, vector<48x32xf32>, vector<32x32xf32> -> vector<32x32xf32>
    %c0_38 = arith.constant 0 : index
    %c0_39 = arith.constant 0 : index
    %47 = vector.load %arg12[%c0_38, %c0_39] : memref<32x64xf32, #tpu.memory_space<vmem>>, vector<32x64xf32>
    %cst_40 = arith.constant dense<0.000000e+00> : vector<32x64xf32>
    %48 = tpu.matmul %46, %47, %cst_40 {dimension_numbers = #tpu.dot_dimension_numbers<[1], [0], [0], [1], [0, 0, 1, 1], [], []>} : vector<32x32xf32>, vector<32x64xf32>, vector<32x64xf32> -> vector<32x64xf32>
    %c0_41 = arith.constant 0 : index
    %c0_42 = arith.constant 0 : index
    %49 = vector.load %arg13[%c0_41, %c0_42] : memref<1x64xf32, #tpu.memory_space<vmem>>, vector<1x64xf32>
    %50 = vector.broadcast %49 : vector<1x64xf32> to vector<32x64xf32>
    %51 = arith.addf %48, %50 : vector<32x64xf32>
    %cst_43 = arith.constant 0.000000e+00 : f32
    %52 = vector.broadcast %cst_43 : f32 to vector<32x64xf32>
    %53 = arith.cmpf ogt, %51, %52 : vector<32x64xf32>
    %cst_44 = arith.constant 1.000000e-01 : f32
    %54 = vector.broadcast %cst_44 : f32 to vector<32x64xf32>
    %55 = arith.mulf %54, %51 : vector<32x64xf32>
    %56 = arith.select %53, %51, %55 : vector<32x64xi1>, vector<32x64xf32>
    %c0_45 = arith.constant 0 : index
    %c0_46 = arith.constant 0 : index
    %57 = vector.load %arg14[%c0_45, %c0_46] : memref<64x64xf32, #tpu.memory_space<vmem>>, vector<64x64xf32>
    %cst_47 = arith.constant dense<0.000000e+00> : vector<32x64xf32>
    %58 = tpu.matmul %56, %57, %cst_47 {dimension_numbers = #tpu.dot_dimension_numbers<[1], [0], [0], [1], [0, 0, 1, 1], [], []>} : vector<32x64xf32>, vector<64x64xf32>, vector<32x64xf32> -> vector<32x64xf32>
    %c0_48 = arith.constant 0 : index
    %c0_49 = arith.constant 0 : index
    %59 = vector.load %arg15[%c0_48, %c0_49] : memref<32x64xf32, #tpu.memory_space<vmem>>, vector<32x64xf32>
    %cst_50 = arith.constant dense<0.000000e+00> : vector<32x64xf32>
    %60 = tpu.matmul %34, %59, %cst_50 {dimension_numbers = #tpu.dot_dimension_numbers<[1], [0], [0], [1], [0, 0, 1, 1], [], []>} : vector<32x32xf32>, vector<32x64xf32>, vector<32x64xf32> -> vector<32x64xf32>
    %61 = arith.addf %58, %60 : vector<32x64xf32>
    %c0_51 = arith.constant 0 : index
    %c0_52 = arith.constant 0 : index
    %62 = vector.load %arg16[%c0_51, %c0_52] : memref<1x64xf32, #tpu.memory_space<vmem>>, vector<1x64xf32>
    %63 = vector.broadcast %62 : vector<1x64xf32> to vector<32x64xf32>
    %64 = arith.addf %61, %63 : vector<32x64xf32>
    %c0_53 = arith.constant 0 : index
    %c0_54 = arith.constant 0 : index
    %65 = vector.load %arg17[%c0_53, %c0_54] : memref<32x64xf32, #tpu.memory_space<vmem>>, vector<32x64xf32>
    tpu.vector_store %arg17[%c0_53, %c0_54], %64 {strides = array<i32>} : memref<32x64xf32, #tpu.memory_space<vmem>>, vector<32x64xf32>,
    return
  }
}

module attributes {stable_mosaic.version = 11 : i64} {
  func.func @_single_vbge_kernel(%arg0: memref<32x32xf32, #tpu.memory_space<vmem>>, %arg1: memref<16x32xf32, #tpu.memory_space<vmem>>, %arg2: memref<32x16xf32, #tpu.memory_space<vmem>>, %arg3: memref<16x32xf32, #tpu.memory_space<vmem>>, %arg4: memref<32x32xf32, #tpu.memory_space<vmem>>, %arg5: memref<1x32xf32, #tpu.memory_space<vmem>>, %arg6: memref<32x32xf32, #tpu.memory_space<vmem>>, %arg7: memref<1x32xf32, #tpu.memory_space<vmem>>, %arg8: memref<32x32xf32, #tpu.memory_space<vmem>>, %arg9: memref<1x32xf32, #tpu.memory_space<vmem>>, %arg10: memref<32x32xf32, #tpu.memory_space<vmem>>, %arg11: memref<1x32xf32, #tpu.memory_space<vmem>>, %arg12: memref<32x32xf32, #tpu.memory_space<vmem>>, %arg13: memref<32x32xf32, #tpu.memory_space<vmem>>, %arg14: memref<1x32xf32, #tpu.memory_space<vmem>>, %arg15: memref<32x32xf32, #tpu.memory_space<vmem>>, %arg16: memref<32x32xf32, #tpu.memory_space<vmem>>, %arg17: memref<1x32xf32, #tpu.memory_space<vmem>>, %arg18: memref<32x32xf32, #tpu.memory_space<vmem>>, %arg19: memref<1x32xf32, #tpu.memory_space<vmem>>, %arg20: memref<32x32xf32, #tpu.memory_space<vmem>>, %arg21: memref<1x32xf32, #tpu.memory_space<vmem>>, %arg22: memref<32x32xf32, #tpu.memory_space<vmem>>, %arg23: memref<1x32xf32, #tpu.memory_space<vmem>>, %arg24: memref<32x32xf32, #tpu.memory_space<vmem>>, %arg25: memref<1x32xf32, #tpu.memory_space<vmem>>, %arg26: memref<32x32xf32, #tpu.memory_space<vmem>>, %arg27: memref<32x32xf32, #tpu.memory_space<vmem>>, %arg28: memref<1x32xf32, #tpu.memory_space<vmem>>, %arg29: memref<32x32xf32, #tpu.memory_space<vmem>>, %arg30: memref<32x32xf32, #tpu.memory_space<vmem>>, %arg31: memref<1x32xf32, #tpu.memory_space<vmem>>, %arg32: memref<32x32xf32, #tpu.memory_space<vmem>>, %arg33: memref<16x32xf32, #tpu.memory_space<vmem>>) attributes {dimension_semantics = [], scalar_prefetch = 0 : i64, scratch_operands = 0 : i64, tpu.core_type = #tpu.core_type<tc>} {
    %c0 = arith.constant 0 : index
    %c0_0 = arith.constant 0 : index
    %0 = vector.load %arg0[%c0, %c0_0] : memref<32x32xf32, #tpu.memory_space<vmem>>, vector<32x32xf32>
    %c0_1 = arith.constant 0 : index
    %c0_2 = arith.constant 0 : index
    %1 = vector.load %arg1[%c0_1, %c0_2] : memref<16x32xf32, #tpu.memory_space<vmem>>, vector<16x32xf32>
    %c0_3 = arith.constant 0 : index
    %c0_4 = arith.constant 0 : index
    %2 = vector.load %arg2[%c0_3, %c0_4] : memref<32x16xf32, #tpu.memory_space<vmem>>, vector<32x16xf32>
    %c0_5 = arith.constant 0 : index
    %c0_6 = arith.constant 0 : index
    %3 = vector.load %arg3[%c0_5, %c0_6] : memref<16x32xf32, #tpu.memory_space<vmem>>, vector<16x32xf32>
    %c0_7 = arith.constant 0 : index
    %c0_8 = arith.constant 0 : index
    %4 = vector.load %arg4[%c0_7, %c0_8] : memref<32x32xf32, #tpu.memory_space<vmem>>, vector<32x32xf32>
    %cst = arith.constant dense<0.000000e+00> : vector<32x32xf32>
    %5 = tpu.matmul %0, %4, %cst {dimension_numbers = #tpu.dot_dimension_numbers<[1], [0], [0], [1], [0, 0, 1, 1], [], []>} : vector<32x32xf32>, vector<32x32xf32>, vector<32x32xf32> -> vector<32x32xf32>
    %cst_9 = arith.constant dense<0.000000e+00> : vector<16x32xf32>
    %6 = tpu.matmul %3, %5, %cst_9 {dimension_numbers = #tpu.dot_dimension_numbers<[1], [0], [0], [1], [0, 0, 1, 1], [], []>} : vector<16x32xf32>, vector<32x32xf32>, vector<16x32xf32> -> vector<16x32xf32>
    %c0_10 = arith.constant 0 : index
    %c0_11 = arith.constant 0 : index
    %7 = vector.load %arg5[%c0_10, %c0_11] : memref<1x32xf32, #tpu.memory_space<vmem>>, vector<1x32xf32>
    %8 = vector.broadcast %7 : vector<1x32xf32> to vector<16x32xf32>
    %9 = arith.addf %6, %8 : vector<16x32xf32>
    %cst_12 = arith.constant 0.000000e+00 : f32
    %10 = vector.broadcast %cst_12 : f32 to vector<16x32xf32>
    %11 = arith.cmpf ogt, %9, %10 : vector<16x32xf32>
    %cst_13 = arith.constant 1.000000e-01 : f32
    %12 = vector.broadcast %cst_13 : f32 to vector<16x32xf32>
    %13 = arith.mulf %12, %9 : vector<16x32xf32>
    %14 = arith.select %11, %9, %13 : vector<16x32xi1>, vector<16x32xf32>
    %c0_14 = arith.constant 0 : index
    %c0_15 = arith.constant 0 : index
    %15 = vector.load %arg6[%c0_14, %c0_15] : memref<32x32xf32, #tpu.memory_space<vmem>>, vector<32x32xf32>
    %cst_16 = arith.constant dense<0.000000e+00> : vector<16x32xf32>
    %16 = tpu.matmul %1, %15, %cst_16 {dimension_numbers = #tpu.dot_dimension_numbers<[1], [0], [0], [1], [0, 0, 1, 1], [], []>} : vector<16x32xf32>, vector<32x32xf32>, vector<16x32xf32> -> vector<16x32xf32>
    %cst_17 = arith.constant dense<0.000000e+00> : vector<32x32xf32>
    %17 = tpu.matmul %2, %16, %cst_17 {dimension_numbers = #tpu.dot_dimension_numbers<[1], [0], [0], [1], [0, 0, 1, 1], [], []>} : vector<32x16xf32>, vector<16x32xf32>, vector<32x32xf32> -> vector<32x32xf32>
    %c0_18 = arith.constant 0 : index
    %c0_19 = arith.constant 0 : index
    %18 = vector.load %arg7[%c0_18, %c0_19] : memref<1x32xf32, #tpu.memory_space<vmem>>, vector<1x32xf32>
    %19 = vector.broadcast %18 : vector<1x32xf32> to vector<32x32xf32>
    %20 = arith.addf %17, %19 : vector<32x32xf32>
    %cst_20 = arith.constant 0.000000e+00 : f32
    %21 = vector.broadcast %cst_20 : f32 to vector<32x32xf32>
    %22 = arith.cmpf ogt, %20, %21 : vector<32x32xf32>
    %cst_21 = arith.constant 1.000000e-01 : f32
    %23 = vector.broadcast %cst_21 : f32 to vector<32x32xf32>
    %24 = arith.mulf %23, %20 : vector<32x32xf32>
    %25 = arith.select %22, %20, %24 : vector<32x32xi1>, vector<32x32xf32>
    %c0_22 = arith.constant 0 : index
    %c0_23 = arith.constant 0 : index
    %26 = vector.load %arg8[%c0_22, %c0_23] : memref<32x32xf32, #tpu.memory_space<vmem>>, vector<32x32xf32>
    %cst_24 = arith.constant dense<0.000000e+00> : vector<16x32xf32>
    %27 = tpu.matmul %14, %26, %cst_24 {dimension_numbers = #tpu.dot_dimension_numbers<[1], [0], [0], [1], [0, 0, 1, 1], [], []>} : vector<16x32xf32>, vector<32x32xf32>, vector<16x32xf32> -> vector<16x32xf32>
    %cst_25 = arith.constant dense<0.000000e+00> : vector<32x32xf32>
    %28 = tpu.matmul %2, %27, %cst_25 {dimension_numbers = #tpu.dot_dimension_numbers<[1], [0], [0], [1], [0, 0, 1, 1], [], []>} : vector<32x16xf32>, vector<16x32xf32>, vector<32x32xf32> -> vector<32x32xf32>
    %c0_26 = arith.constant 0 : index
    %c0_27 = arith.constant 0 : index
    %29 = vector.load %arg9[%c0_26, %c0_27] : memref<1x32xf32, #tpu.memory_space<vmem>>, vector<1x32xf32>
    %30 = vector.broadcast %29 : vector<1x32xf32> to vector<32x32xf32>
    %31 = arith.addf %28, %30 : vector<32x32xf32>
    %cst_28 = arith.constant 0.000000e+00 : f32
    %32 = vector.broadcast %cst_28 : f32 to vector<32x32xf32>
    %33 = arith.cmpf ogt, %31, %32 : vector<32x32xf32>
    %cst_29 = arith.constant 1.000000e-01 : f32
    %34 = vector.broadcast %cst_29 : f32 to vector<32x32xf32>
    %35 = arith.mulf %34, %31 : vector<32x32xf32>
    %36 = arith.select %33, %31, %35 : vector<32x32xi1>, vector<32x32xf32>
    %c0_30 = arith.constant 0 : index
    %c0_31 = arith.constant 0 : index
    %37 = vector.load %arg10[%c0_30, %c0_31] : memref<32x32xf32, #tpu.memory_space<vmem>>, vector<32x32xf32>
    %cst_32 = arith.constant dense<0.000000e+00> : vector<32x32xf32>
    %38 = tpu.matmul %25, %37, %cst_32 {dimension_numbers = #tpu.dot_dimension_numbers<[1], [0], [0], [1], [0, 0, 1, 1], [], []>} : vector<32x32xf32>, vector<32x32xf32>, vector<32x32xf32> -> vector<32x32xf32>
    %cst_33 = arith.constant dense<0.000000e+00> : vector<16x32xf32>
    %39 = tpu.matmul %3, %38, %cst_33 {dimension_numbers = #tpu.dot_dimension_numbers<[1], [0], [0], [1], [0, 0, 1, 1], [], []>} : vector<16x32xf32>, vector<32x32xf32>, vector<16x32xf32> -> vector<16x32xf32>
    %c0_34 = arith.constant 0 : index
    %c0_35 = arith.constant 0 : index
    %40 = vector.load %arg11[%c0_34, %c0_35] : memref<1x32xf32, #tpu.memory_space<vmem>>, vector<1x32xf32>
    %41 = vector.broadcast %40 : vector<1x32xf32> to vector<16x32xf32>
    %42 = arith.addf %39, %41 : vector<16x32xf32>
    %cst_36 = arith.constant 0.000000e+00 : f32
    %43 = vector.broadcast %cst_36 : f32 to vector<16x32xf32>
    %44 = arith.cmpf ogt, %42, %43 : vector<16x32xf32>
    %cst_37 = arith.constant 1.000000e-01 : f32
    %45 = vector.broadcast %cst_37 : f32 to vector<16x32xf32>
    %46 = arith.mulf %45, %42 : vector<16x32xf32>
    %47 = arith.select %44, %42, %46 : vector<16x32xi1>, vector<16x32xf32>
    %c0_38 = arith.constant 0 : index
    %c0_39 = arith.constant 0 : index
    %48 = vector.load %arg12[%c0_38, %c0_39] : memref<32x32xf32, #tpu.memory_space<vmem>>, vector<32x32xf32>
    %cst_40 = arith.constant dense<0.000000e+00> : vector<32x32xf32>
    %49 = tpu.matmul %36, %48, %cst_40 {dimension_numbers = #tpu.dot_dimension_numbers<[1], [0], [0], [1], [0, 0, 1, 1], [], []>} : vector<32x32xf32>, vector<32x32xf32>, vector<32x32xf32> -> vector<32x32xf32>
    %c0_41 = arith.constant 0 : index
    %c0_42 = arith.constant 0 : index
    %50 = vector.load %arg13[%c0_41, %c0_42] : memref<32x32xf32, #tpu.memory_space<vmem>>, vector<32x32xf32>
    %cst_43 = arith.constant dense<0.000000e+00> : vector<32x32xf32>
    %51 = tpu.matmul %0, %50, %cst_43 {dimension_numbers = #tpu.dot_dimension_numbers<[1], [0], [0], [1], [0, 0, 1, 1], [], []>} : vector<32x32xf32>, vector<32x32xf32>, vector<32x32xf32> -> vector<32x32xf32>
    %52 = arith.addf %49, %51 : vector<32x32xf32>
    %c0_44 = arith.constant 0 : index
    %c0_45 = arith.constant 0 : index
    %53 = vector.load %arg14[%c0_44, %c0_45] : memref<1x32xf32, #tpu.memory_space<vmem>>, vector<1x32xf32>
    %54 = vector.broadcast %53 : vector<1x32xf32> to vector<32x32xf32>
    %55 = arith.addf %52, %54 : vector<32x32xf32>
    %cst_46 = arith.constant 0.000000e+00 : f32
    %56 = vector.broadcast %cst_46 : f32 to vector<32x32xf32>
    %57 = arith.maximumf %55, %56 : vector<32x32xf32>
    %c0_47 = arith.constant 0 : index
    %c0_48 = arith.constant 0 : index
    %58 = vector.load %arg15[%c0_47, %c0_48] : memref<32x32xf32, #tpu.memory_space<vmem>>, vector<32x32xf32>
    %cst_49 = arith.constant dense<0.000000e+00> : vector<16x32xf32>
    %59 = tpu.matmul %47, %58, %cst_49 {dimension_numbers = #tpu.dot_dimension_numbers<[1], [0], [0], [1], [0, 0, 1, 1], [], []>} : vector<16x32xf32>, vector<32x32xf32>, vector<16x32xf32> -> vector<16x32xf32>
    %c0_50 = arith.constant 0 : index
    %c0_51 = arith.constant 0 : index
    %60 = vector.load %arg16[%c0_50, %c0_51] : memref<32x32xf32, #tpu.memory_space<vmem>>, vector<32x32xf32>
    %cst_52 = arith.constant dense<0.000000e+00> : vector<16x32xf32>
    %61 = tpu.matmul %1, %60, %cst_52 {dimension_numbers = #tpu.dot_dimension_numbers<[1], [0], [0], [1], [0, 0, 1, 1], [], []>} : vector<16x32xf32>, vector<32x32xf32>, vector<16x32xf32> -> vector<16x32xf32>
    %62 = arith.addf %59, %61 : vector<16x32xf32>
    %c0_53 = arith.constant 0 : index
    %c0_54 = arith.constant 0 : index
    %63 = vector.load %arg17[%c0_53, %c0_54] : memref<1x32xf32, #tpu.memory_space<vmem>>, vector<1x32xf32>
    %64 = vector.broadcast %63 : vector<1x32xf32> to vector<16x32xf32>
    %65 = arith.addf %62, %64 : vector<16x32xf32>
    %cst_55 = arith.constant 0.000000e+00 : f32
    %66 = vector.broadcast %cst_55 : f32 to vector<16x32xf32>
    %67 = arith.maximumf %65, %66 : vector<16x32xf32>
    %c0_56 = arith.constant 0 : index
    %c0_57 = arith.constant 0 : index
    %68 = vector.load %arg18[%c0_56, %c0_57] : memref<32x32xf32, #tpu.memory_space<vmem>>, vector<32x32xf32>
    %cst_58 = arith.constant dense<0.000000e+00> : vector<32x32xf32>
    %69 = tpu.matmul %57, %68, %cst_58 {dimension_numbers = #tpu.dot_dimension_numbers<[1], [0], [0], [1], [0, 0, 1, 1], [], []>} : vector<32x32xf32>, vector<32x32xf32>, vector<32x32xf32> -> vector<32x32xf32>
    %cst_59 = arith.constant dense<0.000000e+00> : vector<16x32xf32>
    %70 = tpu.matmul %3, %69, %cst_59 {dimension_numbers = #tpu.dot_dimension_numbers<[1], [0], [0], [1], [0, 0, 1, 1], [], []>} : vector<16x32xf32>, vector<32x32xf32>, vector<16x32xf32> -> vector<16x32xf32>
    %c0_60 = arith.constant 0 : index
    %c0_61 = arith.constant 0 : index
    %71 = vector.load %arg19[%c0_60, %c0_61] : memref<1x32xf32, #tpu.memory_space<vmem>>, vector<1x32xf32>
    %72 = vector.broadcast %71 : vector<1x32xf32> to vector<16x32xf32>
    %73 = arith.addf %70, %72 : vector<16x32xf32>
    %cst_62 = arith.constant 0.000000e+00 : f32
    %74 = vector.broadcast %cst_62 : f32 to vector<16x32xf32>
    %75 = arith.cmpf ogt, %73, %74 : vector<16x32xf32>
    %cst_63 = arith.constant 1.000000e-01 : f32
    %76 = vector.broadcast %cst_63 : f32 to vector<16x32xf32>
    %77 = arith.mulf %76, %73 : vector<16x32xf32>
    %78 = arith.select %75, %73, %77 : vector<16x32xi1>, vector<16x32xf32>
    %cst_64 = arith.constant dense<0.000000e+00> : vector<32x32xf32>
    %79 = tpu.matmul %2, %78, %cst_64 {dimension_numbers = #tpu.dot_dimension_numbers<[1], [0], [0], [1], [0, 0, 1, 1], [], []>} : vector<32x16xf32>, vector<16x32xf32>, vector<32x32xf32> -> vector<32x32xf32>
    %c0_65 = arith.constant 0 : index
    %c0_66 = arith.constant 0 : index
    %80 = vector.load %arg22[%c0_65, %c0_66] : memref<32x32xf32, #tpu.memory_space<vmem>>, vector<32x32xf32>
    %cst_67 = arith.constant dense<0.000000e+00> : vector<32x32xf32>
    %81 = tpu.matmul %79, %80, %cst_67 {dimension_numbers = #tpu.dot_dimension_numbers<[1], [0], [0], [1], [0, 0, 1, 1], [], []>} : vector<32x32xf32>, vector<32x32xf32>, vector<32x32xf32> -> vector<32x32xf32>
    %c0_68 = arith.constant 0 : index
    %c0_69 = arith.constant 0 : index
    %82 = vector.load %arg23[%c0_68, %c0_69] : memref<1x32xf32, #tpu.memory_space<vmem>>, vector<1x32xf32>
    %83 = vector.broadcast %82 : vector<1x32xf32> to vector<32x32xf32>
    %84 = arith.addf %81, %83 : vector<32x32xf32>
    %cst_70 = arith.constant 0.000000e+00 : f32
    %85 = vector.broadcast %cst_70 : f32 to vector<32x32xf32>
    %86 = arith.cmpf ogt, %84, %85 : vector<32x32xf32>
    %cst_71 = arith.constant 1.000000e-01 : f32
    %87 = vector.broadcast %cst_71 : f32 to vector<32x32xf32>
    %88 = arith.mulf %87, %84 : vector<32x32xf32>
    %89 = arith.select %86, %84, %88 : vector<32x32xi1>, vector<32x32xf32>
    %c0_72 = arith.constant 0 : index
    %c0_73 = arith.constant 0 : index
    %90 = vector.load %arg26[%c0_72, %c0_73] : memref<32x32xf32, #tpu.memory_space<vmem>>, vector<32x32xf32>
    %cst_74 = arith.constant dense<0.000000e+00> : vector<32x32xf32>
    %91 = tpu.matmul %89, %90, %cst_74 {dimension_numbers = #tpu.dot_dimension_numbers<[1], [0], [0], [1], [0, 0, 1, 1], [], []>} : vector<32x32xf32>, vector<32x32xf32>, vector<32x32xf32> -> vector<32x32xf32>
    %c0_75 = arith.constant 0 : index
    %c0_76 = arith.constant 0 : index
    %92 = vector.load %arg27[%c0_75, %c0_76] : memref<32x32xf32, #tpu.memory_space<vmem>>, vector<32x32xf32>
    %cst_77 = arith.constant dense<0.000000e+00> : vector<32x32xf32>
    %93 = tpu.matmul %57, %92, %cst_77 {dimension_numbers = #tpu.dot_dimension_numbers<[1], [0], [0], [1], [0, 0, 1, 1], [], []>} : vector<32x32xf32>, vector<32x32xf32>, vector<32x32xf32> -> vector<32x32xf32>
    %94 = arith.addf %91, %93 : vector<32x32xf32>
    %c0_78 = arith.constant 0 : index
    %c0_79 = arith.constant 0 : index
    %95 = vector.load %arg28[%c0_78, %c0_79] : memref<1x32xf32, #tpu.memory_space<vmem>>, vector<1x32xf32>
    %96 = vector.broadcast %95 : vector<1x32xf32> to vector<32x32xf32>
    %97 = arith.addf %94, %96 : vector<32x32xf32>
    %c0_80 = arith.constant 0 : index
    %c0_81 = arith.constant 0 : index
    %98 = vector.load %arg20[%c0_80, %c0_81] : memref<32x32xf32, #tpu.memory_space<vmem>>, vector<32x32xf32>
    %cst_82 = arith.constant dense<0.000000e+00> : vector<16x32xf32>
    %99 = tpu.matmul %67, %98, %cst_82 {dimension_numbers = #tpu.dot_dimension_numbers<[1], [0], [0], [1], [0, 0, 1, 1], [], []>} : vector<16x32xf32>, vector<32x32xf32>, vector<16x32xf32> -> vector<16x32xf32>
    %cst_83 = arith.constant dense<0.000000e+00> : vector<32x32xf32>
    %100 = tpu.matmul %2, %99, %cst_83 {dimension_numbers = #tpu.dot_dimension_numbers<[1], [0], [0], [1], [0, 0, 1, 1], [], []>} : vector<32x16xf32>, vector<16x32xf32>, vector<32x32xf32> -> vector<32x32xf32>
    %c0_84 = arith.constant 0 : index
    %c0_85 = arith.constant 0 : index
    %101 = vector.load %arg21[%c0_84, %c0_85] : memref<1x32xf32, #tpu.memory_space<vmem>>, vector<1x32xf32>
    %102 = vector.broadcast %101 : vector<1x32xf32> to vector<32x32xf32>
    %103 = arith.addf %100, %102 : vector<32x32xf32>
    %cst_86 = arith.constant 0.000000e+00 : f32
    %104 = vector.broadcast %cst_86 : f32 to vector<32x32xf32>
    %105 = arith.cmpf ogt, %103, %104 : vector<32x32xf32>
    %cst_87 = arith.constant 1.000000e-01 : f32
    %106 = vector.broadcast %cst_87 : f32 to vector<32x32xf32>
    %107 = arith.mulf %106, %103 : vector<32x32xf32>
    %108 = arith.select %105, %103, %107 : vector<32x32xi1>, vector<32x32xf32>
    %cst_88 = arith.constant dense<0.000000e+00> : vector<16x32xf32>
    %109 = tpu.matmul %3, %108, %cst_88 {dimension_numbers = #tpu.dot_dimension_numbers<[1], [0], [0], [1], [0, 0, 1, 1], [], []>} : vector<16x32xf32>, vector<32x32xf32>, vector<16x32xf32> -> vector<16x32xf32>
    %c0_89 = arith.constant 0 : index
    %c0_90 = arith.constant 0 : index
    %110 = vector.load %arg24[%c0_89, %c0_90] : memref<32x32xf32, #tpu.memory_space<vmem>>, vector<32x32xf32>
    %cst_91 = arith.constant dense<0.000000e+00> : vector<16x32xf32>
    %111 = tpu.matmul %109, %110, %cst_91 {dimension_numbers = #tpu.dot_dimension_numbers<[1], [0], [0], [1], [0, 0, 1, 1], [], []>} : vector<16x32xf32>, vector<32x32xf32>, vector<16x32xf32> -> vector<16x32xf32>
    %c0_92 = arith.constant 0 : index
    %c0_93 = arith.constant 0 : index
    %112 = vector.load %arg25[%c0_92, %c0_93] : memref<1x32xf32, #tpu.memory_space<vmem>>, vector<1x32xf32>
    %113 = vector.broadcast %112 : vector<1x32xf32> to vector<16x32xf32>
    %114 = arith.addf %111, %113 : vector<16x32xf32>
    %cst_94 = arith.constant 0.000000e+00 : f32
    %115 = vector.broadcast %cst_94 : f32 to vector<16x32xf32>
    %116 = arith.cmpf ogt, %114, %115 : vector<16x32xf32>
    %cst_95 = arith.constant 1.000000e-01 : f32
    %117 = vector.broadcast %cst_95 : f32 to vector<16x32xf32>
    %118 = arith.mulf %117, %114 : vector<16x32xf32>
    %119 = arith.select %116, %114, %118 : vector<16x32xi1>, vector<16x32xf32>
    %c0_96 = arith.constant 0 : index
    %c0_97 = arith.constant 0 : index
    %120 = vector.load %arg29[%c0_96, %c0_97] : memref<32x32xf32, #tpu.memory_space<vmem>>, vector<32x32xf32>
    %cst_98 = arith.constant dense<0.000000e+00> : vector<16x32xf32>
    %121 = tpu.matmul %119, %120, %cst_98 {dimension_numbers = #tpu.dot_dimension_numbers<[1], [0], [0], [1], [0, 0, 1, 1], [], []>} : vector<16x32xf32>, vector<32x32xf32>, vector<16x32xf32> -> vector<16x32xf32>
    %c0_99 = arith.constant 0 : index
    %c0_100 = arith.constant 0 : index
    %122 = vector.load %arg30[%c0_99, %c0_100] : memref<32x32xf32, #tpu.memory_space<vmem>>, vector<32x32xf32>
    %cst_101 = arith.constant dense<0.000000e+00> : vector<16x32xf32>
    %123 = tpu.matmul %67, %122, %cst_101 {dimension_numbers = #tpu.dot_dimension_numbers<[1], [0], [0], [1], [0, 0, 1, 1], [], []>} : vector<16x32xf32>, vector<32x32xf32>, vector<16x32xf32> -> vector<16x32xf32>
    %124 = arith.addf %121, %123 : vector<16x32xf32>
    %c0_102 = arith.constant 0 : index
    %c0_103 = arith.constant 0 : index
    %125 = vector.load %arg31[%c0_102, %c0_103] : memref<1x32xf32, #tpu.memory_space<vmem>>, vector<1x32xf32>
    %126 = vector.broadcast %125 : vector<1x32xf32> to vector<16x32xf32>
    %127 = arith.addf %124, %126 : vector<16x32xf32>
    %c0_104 = arith.constant 0 : index
    %c0_105 = arith.constant 0 : index
    %128 = vector.load %arg32[%c0_104, %c0_105] : memref<32x32xf32, #tpu.memory_space<vmem>>, vector<32x32xf32>
    tpu.vector_store %arg32[%c0_104, %c0_105], %97 {strides = array<i32>} : memref<32x32xf32, #tpu.memory_space<vmem>>, vector<32x32xf32>,
    %c0_106 = arith.constant 0 : index
    %c0_107 = arith.constant 0 : index
    %129 = vector.load %arg33[%c0_106, %c0_107] : memref<16x32xf32, #tpu.memory_space<vmem>>, vector<16x32xf32>
    tpu.vector_store %arg33[%c0_106, %c0_107], %127 {strides = array<i32>} : memref<16x32xf32, #tpu.memory_space<vmem>>, vector<16x32xf32>,
    return
  }
}

module attributes {stable_mosaic.version = 11 : i64} {
  func.func @_user_share_kernel(%arg0: memref<32x32xf32, #tpu.memory_space<vmem>>, %arg1: memref<32x16xf32, #tpu.memory_space<vmem>>, %arg2: memref<16x32xf32, #tpu.memory_space<vmem>>, %arg3: memref<32x32xf32, #tpu.memory_space<vmem>>, %arg4: memref<1x32xf32, #tpu.memory_space<vmem>>, %arg5: memref<32x32xf32, #tpu.memory_space<vmem>>, %arg6: memref<1x32xf32, #tpu.memory_space<vmem>>, %arg7: memref<32x32xf32, #tpu.memory_space<vmem>>, %arg8: memref<32x32xf32, #tpu.memory_space<vmem>>, %arg9: memref<1x32xf32, #tpu.memory_space<vmem>>, %arg10: memref<32x32xf32, #tpu.memory_space<vmem>>, %arg11: memref<1x32xf32, #tpu.memory_space<vmem>>, %arg12: memref<32x64xf32, #tpu.memory_space<vmem>>, %arg13: memref<1x64xf32, #tpu.memory_space<vmem>>, %arg14: memref<64x64xf32, #tpu.memory_space<vmem>>, %arg15: memref<32x64xf32, #tpu.memory_space<vmem>>, %arg16: memref<1x64xf32, #tpu.memory_space<vmem>>, %arg17: memref<32x64xf32, #tpu.memory_space<vmem>>) attributes {dimension_semantics = [], scalar_prefetch = 0 : i64, scratch_operands = 0 : i64, tpu.core_type = #tpu.core_type<tc>} {
    %c0 = arith.constant 0 : index
    %c0_0 = arith.constant 0 : index
    %0 = vector.load %arg0[%c0, %c0_0] : memref<32x32xf32, #tpu.memory_space<vmem>>, vector<32x32xf32>
    %c0_1 = arith.constant 0 : index
    %c0_2 = arith.constant 0 : index
    %1 = vector.load %arg1[%c0_1, %c0_2] : memref<32x16xf32, #tpu.memory_space<vmem>>, vector<32x16xf32>
    %c0_3 = arith.constant 0 : index
    %c0_4 = arith.constant 0 : index
    %2 = vector.load %arg2[%c0_3, %c0_4] : memref<16x32xf32, #tpu.memory_space<vmem>>, vector<16x32xf32>
    %c0_5 = arith.constant 0 : index
    %c0_6 = arith.constant 0 : index
    %3 = vector.load %arg3[%c0_5, %c0_6] : memref<32x32xf32, #tpu.memory_space<vmem>>, vector<32x32xf32>
    %cst = arith.constant dense<0.000000e+00> : vector<32x32xf32>
    %4 = tpu.matmul %0, %3, %cst {dimension_numbers = #tpu.dot_dimension_numbers<[1], [0], [0], [1], [0, 0, 1, 1], [], []>} : vector<32x32xf32>, vector<32x32xf32>, vector<32x32xf32> -> vector<32x32xf32>
    %cst_7 = arith.constant dense<0.000000e+00> : vector<16x32xf32>
    %5 = tpu.matmul %2, %4, %cst_7 {dimension_numbers = #tpu.dot_dimension_numbers<[1], [0], [0], [1], [0, 0, 1, 1], [], []>} : vector<16x32xf32>, vector<32x32xf32>, vector<16x32xf32> -> vector<16x32xf32>
    %c0_8 = arith.constant 0 : index
    %c0_9 = arith.constant 0 : index
    %6 = vector.load %arg4[%c0_8, %c0_9] : memref<1x32xf32, #tpu.memory_space<vmem>>, vector<1x32xf32>
    %7 = vector.broadcast %6 : vector<1x32xf32> to vector<16x32xf32>
    %8 = arith.addf %5, %7 : vector<16x32xf32>
    %cst_10 = arith.constant 0.000000e+00 : f32
    %9 = vector.broadcast %cst_10 : f32 to vector<16x32xf32>
    %10 = arith.cmpf ogt, %8, %9 : vector<16x32xf32>
    %cst_11 = arith.constant 1.000000e-01 : f32
    %11 = vector.broadcast %cst_11 : f32 to vector<16x32xf32>
    %12 = arith.mulf %11, %8 : vector<16x32xf32>
    %13 = arith.select %10, %8, %12 : vector<16x32xi1>, vector<16x32xf32>
    %c0_12 = arith.constant 0 : index
    %c0_13 = arith.constant 0 : index
    %14 = vector.load %arg5[%c0_12, %c0_13] : memref<32x32xf32, #tpu.memory_space<vmem>>, vector<32x32xf32>
    %cst_14 = arith.constant dense<0.000000e+00> : vector<16x32xf32>
    %15 = tpu.matmul %13, %14, %cst_14 {dimension_numbers = #tpu.dot_dimension_numbers<[1], [0], [0], [1], [0, 0, 1, 1], [], []>} : vector<16x32xf32>, vector<32x32xf32>, vector<16x32xf32> -> vector<16x32xf32>
    %cst_15 = arith.constant dense<0.000000e+00> : vector<32x32xf32>
    %16 = tpu.matmul %1, %15, %cst_15 {dimension_numbers = #tpu.dot_dimension_numbers<[1], [0], [0], [1], [0, 0, 1, 1], [], []>} : vector<32x16xf32>, vector<16x32xf32>, vector<32x32xf32> -> vector<32x32xf32>
    %c0_16 = arith.constant 0 : index
    %c0_17 = arith.constant 0 : index
    %17 = vector.load %arg6[%c0_16, %c0_17] : memref<1x32xf32, #tpu.memory_space<vmem>>, vector<1x32xf32>
    %18 = vector.broadcast %17 : vector<1x32xf32> to vector<32x32xf32>
    %19 = arith.addf %16, %18 : vector<32x32xf32>
    %cst_18 = arith.constant 0.000000e+00 : f32
    %20 = vector.broadcast %cst_18 : f32 to vector<32x32xf32>
    %21 = arith.cmpf ogt, %19, %20 : vector<32x32xf32>
    %cst_19 = arith.constant 1.000000e-01 : f32
    %22 = vector.broadcast %cst_19 : f32 to vector<32x32xf32>
    %23 = arith.mulf %22, %19 : vector<32x32xf32>
    %24 = arith.select %21, %19, %23 : vector<32x32xi1>, vector<32x32xf32>
    %c0_20 = arith.constant 0 : index
    %c0_21 = arith.constant 0 : index
    %25 = vector.load %arg7[%c0_20, %c0_21] : memref<32x32xf32, #tpu.memory_space<vmem>>, vector<32x32xf32>
    %cst_22 = arith.constant dense<0.000000e+00> : vector<32x32xf32>
    %26 = tpu.matmul %24, %25, %cst_22 {dimension_numbers = #tpu.dot_dimension_numbers<[1], [0], [0], [1], [0, 0, 1, 1], [], []>} : vector<32x32xf32>, vector<32x32xf32>, vector<32x32xf32> -> vector<32x32xf32>
    %c0_23 = arith.constant 0 : index
    %c0_24 = arith.constant 0 : index
    %27 = vector.load %arg8[%c0_23, %c0_24] : memref<32x32xf32, #tpu.memory_space<vmem>>, vector<32x32xf32>
    %cst_25 = arith.constant dense<0.000000e+00> : vector<32x32xf32>
    %28 = tpu.matmul %0, %27, %cst_25 {dimension_numbers = #tpu.dot_dimension_numbers<[1], [0], [0], [1], [0, 0, 1, 1], [], []>} : vector<32x32xf32>, vector<32x32xf32>, vector<32x32xf32> -> vector<32x32xf32>
    %29 = arith.addf %26, %28 : vector<32x32xf32>
    %c0_26 = arith.constant 0 : index
    %c0_27 = arith.constant 0 : index
    %30 = vector.load %arg9[%c0_26, %c0_27] : memref<1x32xf32, #tpu.memory_space<vmem>>, vector<1x32xf32>
    %31 = vector.broadcast %30 : vector<1x32xf32> to vector<32x32xf32>
    %32 = arith.addf %29, %31 : vector<32x32xf32>
    %cst_28 = arith.constant 0.000000e+00 : f32
    %33 = vector.broadcast %cst_28 : f32 to vector<32x32xf32>
    %34 = arith.maximumf %32, %33 : vector<32x32xf32>
    %c0_29 = arith.constant 0 : index
    %c0_30 = arith.constant 0 : index
    %35 = vector.load %arg10[%c0_29, %c0_30] : memref<32x32xf32, #tpu.memory_space<vmem>>, vector<32x32xf32>
    %cst_31 = arith.constant dense<0.000000e+00> : vector<32x32xf32>
    %36 = tpu.matmul %34, %35, %cst_31 {dimension_numbers = #tpu.dot_dimension_numbers<[1], [0], [0], [1], [0, 0, 1, 1], [], []>} : vector<32x32xf32>, vector<32x32xf32>, vector<32x32xf32> -> vector<32x32xf32>
    %cst_32 = arith.constant dense<0.000000e+00> : vector<16x32xf32>
    %37 = tpu.matmul %2, %36, %cst_32 {dimension_numbers = #tpu.dot_dimension_numbers<[1], [0], [0], [1], [0, 0, 1, 1], [], []>} : vector<16x32xf32>, vector<32x32xf32>, vector<16x32xf32> -> vector<16x32xf32>
    %c0_33 = arith.constant 0 : index
    %c0_34 = arith.constant 0 : index
    %38 = vector.load %arg11[%c0_33, %c0_34] : memref<1x32xf32, #tpu.memory_space<vmem>>, vector<1x32xf32>
    %39 = vector.broadcast %38 : vector<1x32xf32> to vector<16x32xf32>
    %40 = arith.addf %37, %39 : vector<16x32xf32>
    %cst_35 = arith.constant 0.000000e+00 : f32
    %41 = vector.broadcast %cst_35 : f32 to vector<16x32xf32>
    %42 = arith.cmpf ogt, %40, %41 : vector<16x32xf32>
    %cst_36 = arith.constant 1.000000e-01 : f32
    %43 = vector.broadcast %cst_36 : f32 to vector<16x32xf32>
    %44 = arith.mulf %43, %40 : vector<16x32xf32>
    %45 = arith.select %42, %40, %44 : vector<16x32xi1>, vector<16x32xf32>
    %cst_37 = arith.constant dense<0.000000e+00> : vector<32x32xf32>
    %46 = tpu.matmul %1, %45, %cst_37 {dimension_numbers = #tpu.dot_dimension_numbers<[1], [0], [0], [1], [0, 0, 1, 1], [], []>} : vector<32x16xf32>, vector<16x32xf32>, vector<32x32xf32> -> vector<32x32xf32>
    %c0_38 = arith.constant 0 : index
    %c0_39 = arith.constant 0 : index
    %47 = vector.load %arg12[%c0_38, %c0_39] : memref<32x64xf32, #tpu.memory_space<vmem>>, vector<32x64xf32>
    %cst_40 = arith.constant dense<0.000000e+00> : vector<32x64xf32>
    %48 = tpu.matmul %46, %47, %cst_40 {dimension_numbers = #tpu.dot_dimension_numbers<[1], [0], [0], [1], [0, 0, 1, 1], [], []>} : vector<32x32xf32>, vector<32x64xf32>, vector<32x64xf32> -> vector<32x64xf32>
    %c0_41 = arith.constant 0 : index
    %c0_42 = arith.constant 0 : index
    %49 = vector.load %arg13[%c0_41, %c0_42] : memref<1x64xf32, #tpu.memory_space<vmem>>, vector<1x64xf32>
    %50 = vector.broadcast %49 : vector<1x64xf32> to vector<32x64xf32>
    %51 = arith.addf %48, %50 : vector<32x64xf32>
    %cst_43 = arith.constant 0.000000e+00 : f32
    %52 = vector.broadcast %cst_43 : f32 to vector<32x64xf32>
    %53 = arith.cmpf ogt, %51, %52 : vector<32x64xf32>
    %cst_44 = arith.constant 1.000000e-01 : f32
    %54 = vector.broadcast %cst_44 : f32 to vector<32x64xf32>
    %55 = arith.mulf %54, %51 : vector<32x64xf32>
    %56 = arith.select %53, %51, %55 : vector<32x64xi1>, vector<32x64xf32>
    %c0_45 = arith.constant 0 : index
    %c0_46 = arith.constant 0 : index
    %57 = vector.load %arg14[%c0_45, %c0_46] : memref<64x64xf32, #tpu.memory_space<vmem>>, vector<64x64xf32>
    %cst_47 = arith.constant dense<0.000000e+00> : vector<32x64xf32>
    %58 = tpu.matmul %56, %57, %cst_47 {dimension_numbers = #tpu.dot_dimension_numbers<[1], [0], [0], [1], [0, 0, 1, 1], [], []>} : vector<32x64xf32>, vector<64x64xf32>, vector<32x64xf32> -> vector<32x64xf32>
    %c0_48 = arith.constant 0 : index
    %c0_49 = arith.constant 0 : index
    %59 = vector.load %arg15[%c0_48, %c0_49] : memref<32x64xf32, #tpu.memory_space<vmem>>, vector<32x64xf32>
    %cst_50 = arith.constant dense<0.000000e+00> : vector<32x64xf32>
    %60 = tpu.matmul %34, %59, %cst_50 {dimension_numbers = #tpu.dot_dimension_numbers<[1], [0], [0], [1], [0, 0, 1, 1], [], []>} : vector<32x32xf32>, vector<32x64xf32>, vector<32x64xf32> -> vector<32x64xf32>
    %61 = arith.addf %58, %60 : vector<32x64xf32>
    %c0_51 = arith.constant 0 : index
    %c0_52 = arith.constant 0 : index
    %62 = vector.load %arg16[%c0_51, %c0_52] : memref<1x64xf32, #tpu.memory_space<vmem>>, vector<1x64xf32>
    %63 = vector.broadcast %62 : vector<1x64xf32> to vector<32x64xf32>
    %64 = arith.addf %61, %63 : vector<32x64xf32>
    %c0_53 = arith.constant 0 : index
    %c0_54 = arith.constant 0 : index
    %65 = vector.load %arg17[%c0_53, %c0_54] : memref<32x64xf32, #tpu.memory_space<vmem>>, vector<32x64xf32>
    tpu.vector_store %arg17[%c0_53, %c0_54], %64 {strides = array<i32>} : memref<32x64xf32, #tpu.memory_space<vmem>>, vector<32x64xf32>,
    return
  }
}

module attributes {stable_mosaic.version = 11 : i64} {
  func.func @_kld_add_kernel(%arg0: memref<32x64xf32, #tpu.memory_space<vmem>>, %arg1: memref<32x64xf32, #tpu.memory_space<vmem>>, %arg2: memref<32x64xf32, #tpu.memory_space<vmem>>, %arg3: memref<32x32xf32, #tpu.memory_space<vmem>>, %arg4: memref<32x32xf32, #tpu.memory_space<vmem>>, %arg5: memref<1x1xf32, #tpu.memory_space<vmem>>, %arg6: memref<32x32xf32, #tpu.memory_space<vmem>>, %arg7: memref<32x32xf32, #tpu.memory_space<vmem>>) attributes {dimension_semantics = [], scalar_prefetch = 0 : i64, scratch_operands = 0 : i64, tpu.core_type = #tpu.core_type<tc>} {
    %c0 = arith.constant 0 : index
    %c0_0 = arith.constant 0 : index
    %0 = vector.load %arg0[%c0, %c0_0] : memref<32x64xf32, #tpu.memory_space<vmem>>, vector<32x32xf32>
    %c0_1 = arith.constant 0 : index
    %c32 = arith.constant 32 : index
    %1 = vector.load %arg0[%c0_1, %c32] : memref<32x64xf32, #tpu.memory_space<vmem>>, vector<32x32xf32>
    %c0_2 = arith.constant 0 : index
    %c0_3 = arith.constant 0 : index
    %2 = vector.load %arg1[%c0_2, %c0_3] : memref<32x64xf32, #tpu.memory_space<vmem>>, vector<32x32xf32>
    %c0_4 = arith.constant 0 : index
    %c32_5 = arith.constant 32 : index
    %3 = vector.load %arg1[%c0_4, %c32_5] : memref<32x64xf32, #tpu.memory_space<vmem>>, vector<32x32xf32>
    %c0_6 = arith.constant 0 : index
    %c0_7 = arith.constant 0 : index
    %4 = vector.load %arg2[%c0_6, %c0_7] : memref<32x64xf32, #tpu.memory_space<vmem>>, vector<32x32xf32>
    %c0_8 = arith.constant 0 : index
    %c32_9 = arith.constant 32 : index
    %5 = vector.load %arg2[%c0_8, %c32_9] : memref<32x64xf32, #tpu.memory_space<vmem>>, vector<32x32xf32>
    %cst = arith.constant 0.000000e+00 : f32
    %6 = vector.broadcast %cst : f32 to vector<32x32xf32>
    %7 = arith.maximumf %1, %6 : vector<32x32xf32>
    %8 = vector.broadcast %cst : f32 to vector<32x32xf32>
    %9 = arith.subf %1, %8 : vector<32x32xf32>
    %10 = arith.cmpf one, %9, %9 : vector<32x32xf32>
    %11 = vector.broadcast %cst : f32 to vector<32x32xf32>
    %12 = arith.addf %1, %11 : vector<32x32xf32>
    %13 = math.absf %9 : vector<32x32xf32>
    %cst_10 = arith.constant 0.000000e+00 : f32
    %14 = vector.broadcast %cst_10 : f32 to vector<32x32xf32>
    %15 = arith.subf %14, %13 : vector<32x32xf32>
    %16 = math.exp %15 : vector<32x32xf32>
    %17 = math.log1p %16 : vector<32x32xf32>
    %18 = arith.addf %7, %17 : vector<32x32xf32>
    %19 = arith.select %10, %12, %18 : vector<32x32xi1>, vector<32x32xf32>
    %cst_11 = arith.constant 0.899999976 : f32
    %20 = vector.broadcast %cst_11 : f32 to vector<32x32xf32>
    %21 = arith.mulf %20, %19 : vector<32x32xf32>
    %cst_12 = arith.constant 1.000000e-01 : f32
    %22 = vector.broadcast %cst_12 : f32 to vector<32x32xf32>
    %23 = arith.addf %22, %21 : vector<32x32xf32>
    %cst_13 = arith.constant 2.000000e+00 : f32
    %24 = vector.broadcast %cst_13 : f32 to vector<32x32xf32>
    %25 = arith.mulf %24, %23 : vector<32x32xf32>
    %26 = math.exp %25 : vector<32x32xf32>
    %cst_14 = arith.constant 1.28193557 : f32
    %27 = vector.broadcast %cst_14 : f32 to vector<32x32xf32>
    %28 = arith.subf %27, %23 : vector<32x32xf32>
    %29 = arith.mulf %0, %0 : vector<32x32xf32>
    %30 = arith.addf %26, %29 : vector<32x32xf32>
    %cst_15 = arith.constant 0.0385030359 : f32
    %31 = vector.broadcast %cst_15 : f32 to vector<32x32xf32>
    %32 = arith.mulf %30, %31 : vector<32x32xf32>
    %33 = arith.addf %28, %32 : vector<32x32xf32>
    %cst_16 = arith.constant 5.000000e-01 : f32
    %34 = vector.broadcast %cst_16 : f32 to vector<32x32xf32>
    %35 = arith.subf %33, %34 : vector<32x32xf32>
    %cst_17 = arith.constant 0.000000e+00 : f32
    %36 = vector.broadcast %cst_17 : f32 to vector<32x32xf32>
    %37 = arith.maximumf %3, %36 : vector<32x32xf32>
    %38 = vector.broadcast %cst_17 : f32 to vector<32x32xf32>
    %39 = arith.subf %3, %38 : vector<32x32xf32>
    %40 = arith.cmpf one, %39, %39 : vector<32x32xf32>
    %41 = vector.broadcast %cst_17 : f32 to vector<32x32xf32>
    %42 = arith.addf %3, %41 : vector<32x32xf32>
    %43 = math.absf %39 : vector<32x32xf32>
    %cst_18 = arith.constant 0.000000e+00 : f32
    %44 = vector.broadcast %cst_18 : f32 to vector<32x32xf32>
    %45 = arith.subf %44, %43 : vector<32x32xf32>
    %46 = math.exp %45 : vector<32x32xf32>
    %47 = math.log1p %46 : vector<32x32xf32>
    %48 = arith.addf %37, %47 : vector<32x32xf32>
    %49 = arith.select %40, %42, %48 : vector<32x32xi1>, vector<32x32xf32>
    %cst_19 = arith.constant 0.899999976 : f32
    %50 = vector.broadcast %cst_19 : f32 to vector<32x32xf32>
    %51 = arith.mulf %50, %49 : vector<32x32xf32>
    %cst_20 = arith.constant 1.000000e-01 : f32
    %52 = vector.broadcast %cst_20 : f32 to vector<32x32xf32>
    %53 = arith.addf %52, %51 : vector<32x32xf32>
    %54 = arith.subf %53, %23 : vector<32x32xf32>
    %55 = arith.subf %0, %2 : vector<32x32xf32>
    %56 = arith.mulf %55, %55 : vector<32x32xf32>
    %57 = arith.addf %26, %56 : vector<32x32xf32>
    %cst_21 = arith.constant -2.000000e+00 : f32
    %58 = vector.broadcast %cst_21 : f32 to vector<32x32xf32>
    %59 = arith.mulf %58, %53 : vector<32x32xf32>
    %60 = math.exp %59 : vector<32x32xf32>
    %cst_22 = arith.constant 5.000000e-01 : f32
    %61 = vector.broadcast %cst_22 : f32 to vector<32x32xf32>
    %62 = arith.mulf %61, %60 : vector<32x32xf32>
    %63 = arith.mulf %57, %62 : vector<32x32xf32>
    %64 = arith.addf %54, %63 : vector<32x32xf32>
    %cst_23 = arith.constant 5.000000e-01 : f32
    %65 = vector.broadcast %cst_23 : f32 to vector<32x32xf32>
    %66 = arith.subf %64, %65 : vector<32x32xf32>
    %cst_24 = arith.constant 0.000000e+00 : f32
    %67 = vector.broadcast %cst_24 : f32 to vector<32x32xf32>
    %68 = arith.maximumf %5, %67 : vector<32x32xf32>
    %69 = vector.broadcast %cst_24 : f32 to vector<32x32xf32>
    %70 = arith.subf %5, %69 : vector<32x32xf32>
    %71 = arith.cmpf one, %70, %70 : vector<32x32xf32>
    %72 = vector.broadcast %cst_24 : f32 to vector<32x32xf32>
    %73 = arith.addf %5, %72 : vector<32x32xf32>
    %74 = math.absf %70 : vector<32x32xf32>
    %cst_25 = arith.constant 0.000000e+00 : f32
    %75 = vector.broadcast %cst_25 : f32 to vector<32x32xf32>
    %76 = arith.subf %75, %74 : vector<32x32xf32>
    %77 = math.exp %76 : vector<32x32xf32>
    %78 = math.log1p %77 : vector<32x32xf32>
    %79 = arith.addf %68, %78 : vector<32x32xf32>
    %80 = arith.select %71, %73, %79 : vector<32x32xi1>, vector<32x32xf32>
    %cst_26 = arith.constant 0.899999976 : f32
    %81 = vector.broadcast %cst_26 : f32 to vector<32x32xf32>
    %82 = arith.mulf %81, %80 : vector<32x32xf32>
    %cst_27 = arith.constant 1.000000e-01 : f32
    %83 = vector.broadcast %cst_27 : f32 to vector<32x32xf32>
    %84 = arith.addf %83, %82 : vector<32x32xf32>
    %85 = arith.subf %84, %23 : vector<32x32xf32>
    %86 = arith.subf %0, %4 : vector<32x32xf32>
    %87 = arith.mulf %86, %86 : vector<32x32xf32>
    %88 = arith.addf %26, %87 : vector<32x32xf32>
    %cst_28 = arith.constant -2.000000e+00 : f32
    %89 = vector.broadcast %cst_28 : f32 to vector<32x32xf32>
    %90 = arith.mulf %89, %84 : vector<32x32xf32>
    %91 = math.exp %90 : vector<32x32xf32>
    %cst_29 = arith.constant 5.000000e-01 : f32
    %92 = vector.broadcast %cst_29 : f32 to vector<32x32xf32>
    %93 = arith.mulf %92, %91 : vector<32x32xf32>
    %94 = arith.mulf %88, %93 : vector<32x32xf32>
    %95 = arith.addf %85, %94 : vector<32x32xf32>
    %cst_30 = arith.constant 5.000000e-01 : f32
    %96 = vector.broadcast %cst_30 : f32 to vector<32x32xf32>
    %97 = arith.subf %95, %96 : vector<32x32xf32>
    %cst_31 = arith.constant 1.000000e-01 : f32
    %98 = vector.broadcast %cst_31 : f32 to vector<32x32xf32>
    %99 = arith.mulf %98, %35 : vector<32x32xf32>
    %cst_32 = arith.constant 0.899999976 : f32
    %100 = vector.broadcast %cst_32 : f32 to vector<32x32xf32>
    %101 = arith.mulf %100, %66 : vector<32x32xf32>
    %102 = arith.addf %99, %101 : vector<32x32xf32>
    %cst_33 = arith.constant 0.899999976 : f32
    %103 = vector.broadcast %cst_33 : f32 to vector<32x32xf32>
    %104 = arith.mulf %103, %97 : vector<32x32xf32>
    %105 = arith.addf %102, %104 : vector<32x32xf32>
    %cst_34 = arith.constant dense<0.000000e+00> : vector<32xf32>
    %106 = vector.multi_reduction <add>, %105, %cst_34 [0] : vector<32x32xf32> to vector<32xf32>
    %107 = vector.shape_cast %106 : vector<32xf32> to vector<1x32xf32>
    %cst_35 = arith.constant dense<0.000000e+00> : vector<1xf32>
    %108 = vector.multi_reduction <add>, %107, %cst_35 [1] : vector<1x32xf32> to vector<1xf32>
    %109 = vector.shape_cast %108 : vector<1xf32> to vector<1x1xf32>
    %cst_36 = arith.constant 3.200000e+01 : f32
    %110 = vector.broadcast %cst_36 : f32 to vector<1x1xf32>
    %111 = arith.divf %109, %110 : vector<1x1xf32>
    %c0_37 = arith.constant 0 : index
    %c0_38 = arith.constant 0 : index
    %112 = vector.load %arg5[%c0_37, %c0_38] : memref<1x1xf32, #tpu.memory_space<vmem>>, vector<1x1xf32>
    tpu.vector_store %arg5[%c0_37, %c0_38], %111 {strides = array<i32>} : memref<1x1xf32, #tpu.memory_space<vmem>>, vector<1x1xf32>,
    %c0_39 = arith.constant 0 : index
    %c0_40 = arith.constant 0 : index
    %113 = vector.load %arg3[%c0_39, %c0_40] : memref<32x32xf32, #tpu.memory_space<vmem>>, vector<32x32xf32>
    %114 = arith.addf %0, %113 : vector<32x32xf32>
    %c0_41 = arith.constant 0 : index
    %c0_42 = arith.constant 0 : index
    %115 = vector.load %arg6[%c0_41, %c0_42] : memref<32x32xf32, #tpu.memory_space<vmem>>, vector<32x32xf32>
    tpu.vector_store %arg6[%c0_41, %c0_42], %114 {strides = array<i32>} : memref<32x32xf32, #tpu.memory_space<vmem>>, vector<32x32xf32>,
    %c0_43 = arith.constant 0 : index
    %c0_44 = arith.constant 0 : index
    %116 = vector.load %arg4[%c0_43, %c0_44] : memref<32x32xf32, #tpu.memory_space<vmem>>, vector<32x32xf32>
    %117 = arith.addf %0, %116 : vector<32x32xf32>
    %c0_45 = arith.constant 0 : index
    %c0_46 = arith.constant 0 : index
    %118 = vector.load %arg7[%c0_45, %c0_46] : memref<32x32xf32, #tpu.memory_space<vmem>>, vector<32x32xf32>
    tpu.vector_store %arg7[%c0_45, %c0_46], %117 {strides = array<i32>} : memref<32x32xf32, #tpu.memory_space<vmem>>, vector<32x32xf32>,
    return
  }
}

</mosaic_0001>

<bundles_post_ra>
// kernel: disencdr_forward.9
= control target key start
LH: loop header
LB: loop body
LE: loop exit
PB: predicated region body
PF: predicated region fallthrough
CT: control target
= control target key end

     0   :  { %vm74_vm0 = vcmask 261120   ;;  %vm434_vm7 = vcmask 392192   ;;  %s2280_s3 = inlined_call_operand.vmem [shape: f32[32,32], index: 3, kind: input, shape index: {}]   ;;  %s2281_s0 = inlined_call_operand.vmem [shape: f32[32,32], index: 0, kind: input, shape index: {}]   ;;  %s2282_s2 = inlined_call_operand.vmem [shape: f32[48,32], index: 2, kind: input, shape index: {}]   ;;  %s2283_s5 = inlined_call_operand.vmem [shape: f32[32,32], index: 5, kind: input, shape index: {}]   ;;  %s2284_s4 = inlined_call_operand.vmem [shape: f32[1,32], index: 4, kind: input, shape index: {}]   ;;  %s2285_s1 = inlined_call_operand.vmem [shape: f32[32,48], index: 1, kind: input, shape index: {}]   ;;  %s2286_s8 = inlined_call_operand.vmem [shape: f32[32,32], index: 8, kind: input, shape index: {}]   ;;  %s2287_s7 = inlined_call_operand.vmem [shape: f32[32,32], index: 7, kind: input, shape index: {}]   ;;  %s2288_s10 = inlined_call_operand.vmem [shape: f32[32,32], index: 10, kind: input, shape index: {}]   ;;  %s2289_s6 = inlined_call_operand.vmem [shape: f32[1,32], index: 6, kind: input, shape index: {}]   ;;  %s2290_s9 = inlined_call_operand.vmem [shape: f32[1,32], index: 9, kind: input, shape index: {}]   ;;  %s2291_s12 = inlined_call_operand.vmem [shape: f32[32,64], index: 12, kind: input, shape index: {}]   ;;  %s2292_s11 = inlined_call_operand.vmem [shape: f32[1,32], index: 11, kind: input, shape index: {}]   ;;  %s2293_s15 = inlined_call_operand.vmem [shape: f32[32,64], index: 15, kind: input, shape index: {}]   ;;  %s2294_s14 = inlined_call_operand.vmem [shape: f32[64,64], index: 14, kind: input, shape index: {}]   ;;  %s2295_s13 = inlined_call_operand.vmem [shape: f32[1,64], index: 13, kind: input, shape index: {}]   ;;  %s2296_s16 = inlined_call_operand.vmem [shape: f32[1,64], index: 16, kind: input, shape index: {}]   ;;  %s2297_s17 = inlined_call_operand.vmem [shape: f32[32,64], index: 17, kind: output, shape index: {}]  }
   0x1   :  { %2300 = sst [smem:[#allocation2_spill]] %s2280_s3  ;;  %v2003_v10 = vld [vmem:[%s2282_s2] sm:$0xff]  ;;  %v311_v15 = vld [vmem:[%s2283_s5 + $0x8] sm:$0xff]  ;;  %v2021_v21 = vld [vmem:[%s2282_s2 + $0x10] sm:$0xff] }
   0x2   :  { %2301 = sst [smem:[#allocation3_spill]] %s2281_s0  ;;  %s2302_s26 = sld [smem:[#allocation2_spill]]  ;;  %1581 = vmatprep.mubr.msk.f32.mxu1 %vm74_vm0, %v2003_v10  ;;  %v310_v14 = vld [vmem:[%s2283_s5] sm:$0xff]  ;;  %v2016_v20 = vld [vmem:[%s2282_s2 + $0x8] sm:$0xff]  ;;  %v2030_v22 = vld [vmem:[%s2282_s2 + $0x18] sm:$0xff] }
   0x3   :  { %s2303_s20 = sld [smem:[#allocation3_spill]]  ;;  %v1768_v19 = vpack.c.bf16 %v311_v15, %v310_v14  ;;  %v2035_v23 = vld [vmem:[%s2282_s2 + $0x20] sm:$0xff]  ;;  %v2044_v24 = vld [vmem:[%s2282_s2 + $0x28] sm:$0xff]  ;;  %v312_v25 = vld [vmem:[%s2283_s5 + $0x10] sm:$0xff] }
   0x4   :  { %v313_v26 = vld [vmem:[%s2283_s5 + $0x18] sm:$0xff]  ;;  %v1393_v28 = vld [vmem:[%s2284_s4] ss:$0 sm:$0xff]  ;;  %v549_v55 = vld [vmem:[%s2286_s8 + $0x8] sm:$0xff] }
   0x5   :  { %v1772_v27 = vpack.c.bf16 %v313_v26, %v312_v25  ;;  %v2066_v53 = vld [vmem:[%s2285_s1] sm:$0xff]  ;;  %v550_v56 = vld [vmem:[%s2286_s8 + $0x10] sm:$0xff]  ;;  %v551_v58 = vld [vmem:[%s2286_s8 + $0x18] sm:$0xff] }
   0x6   :  { %v548_v54 = vld [vmem:[%s2286_s8] sm:$0xff]  ;;  %v1792_v59 = vpack.c.bf16 %v551_v58, %v550_v56 }
   0x7   :  { %v1788_v57 = vpack.c.bf16 %v549_v55, %v548_v54  ;;  %v749_v15 = vld [vmem:[%s2288_s10] sm:$0xff] }
   0x8   :  { %v70_v0 = vld [vmem:[%s2302_s26] sm:$0xff]  ;;  %v71_v1 = vld [vmem:[%s2302_s26 + $0x8] sm:$0xff]  ;;  %v72_v2 = vld [vmem:[%s2302_s26 + $0x10] sm:$0xff] }
   0x9   :  { %v1752_v3 = vpack.c.bf16 %v71_v1, %v70_v0  ;;  %v73_v4 = vld [vmem:[%s2302_s26 + $0x18] sm:$0xff]  ;;  %v56_v5 = vld [vmem:[%s2303_s20] sm:$0xff]  ;;  %v1981_v7 = vld [vmem:[%s2303_s20 + $0x8] sm:$0xff] }
   0xa   :  { %v1756_v6 = vpack.c.bf16 %v73_v4, %v72_v2  ;;  %1567 = vmatprep.mubr.msk.f32.mxu0 %vm74_vm0, %v56_v5  ;;  %v1986_v8 = vld [vmem:[%s2303_s20 + $0x10] sm:$0xff]  ;;  %v1995_v9 = vld [vmem:[%s2303_s20 + $0x18] sm:$0xff] }
   0xb   :  { %1753 = vmatprep.subr.bf16.mxu0 %v1752_v3 }
   0xc   :  { %1755 = vmatpush3.bf16.msra.mxu0 %v1752_v3 }
   0xd   :  { %1757 = vmatprep.subr.bf16.mxu0 %v1756_v6 }
  0x10   :  { %1759 = vmatpush3.bf16.msra.mxu0 %v1756_v6  ;;  %v2096_v6 = vld [vmem:[%s2285_s1 + $0x10] sm:$0xff] }
  0x11   :  { %1789 = vmatprep.subr.bf16.mxu0 %v1788_v57 }
  0x13   :  { %1568 = vmatmul.mubr.msk.f32.vlgmr.msra.gmra.mrb[0].mxu0 %vm74_vm0, %v1981_v7 }
  0x14   :  { %1570 = vmatprep.mubr.msk.f32.mxu0 %vm74_vm0, %v1986_v8  ;;  %1791 = vmatpush3.bf16.msra.mxu0 %v1788_v57 }
  0x15   :  { %1793 = vmatprep.subr.bf16.mxu0 %v1792_v59 }
  0x17   :  { %1571 = vmatmul.mubr.msk.f32.gmra.mrb[2].mxu0 %vm74_vm0, %v1995_v9 }
  0x18   :  { %1633 = vmatprep.mubr.msk.f32.mxu0 %vm74_vm0, %v56_v5  ;;  %1795 = vmatpush3.bf16.msra.mxu0 %v1792_v59  ;;  %v2091_v5 = vld [vmem:[%s2285_s1 + $0x8] sm:$0xff] }
  0x1b   :  { %1634 = vmatmul.mubr.msk.f32.vlgmr.msra.gmra.mrb[4].mxu0 %vm74_vm0, %v1981_v7  ;;  %v2105_v7 = vld [vmem:[%s2285_s1 + $0x18] sm:$0xff] }
  0x1c   :  { %1636 = vmatprep.mubr.msk.f32.mxu0 %vm74_vm0, %v1986_v8  ;;  %v544_v8 = vld [vmem:[%s2287_s7] sm:$0xff] }
  0x1f   :  { %1637 = vmatmul.mubr.msk.f32.gmra.mrb[6].mxu0 %vm74_vm0, %v1995_v9  ;;  %v545_v9 = vld [vmem:[%s2287_s7 + $0x8] sm:$0xff] }
  0xe6   :  { %v1569_v11 = vpop.f32.mrb[0].mxu0 }
  0xe7   :  { %v153_v12 = vpop.f32.mrb[1].mxu0 }
  0xe8   :  { %v1760_v13 = vpack.c.bf16 %v1569_v11, %v153_v12  ;;  %v1796_v11 = vpack.c.bf16 %v545_v9, %v544_v8  ;;  %v546_v12 = vld [vmem:[%s2287_s7 + $0x10] sm:$0xff] }
  0xea   :  { %v1572_v16 = vpop.f32.mrb[2].mxu0  ;;  %1761 = vmatprep.subr.bf16.mxu1 %v1760_v13  ;;  %1797 = vmatprep.subr.bf16.mxu0 %v1796_v11 }
  0xeb   :  { %v163_v17 = vpop.f32.mrb[3].mxu0  ;;  %1763 = vmatpush3.bf16.msra.mxu1 %v1760_v13  ;;  %1799 = vmatpush3.bf16.msra.mxu0 %v1796_v11  ;;  %v547_v13 = vld [vmem:[%s2287_s7 + $0x18] sm:$0xff] }
  0xec   :  { %v1764_v18 = vpack.c.bf16 %v1572_v16, %v163_v17  ;;  %v1800_v14 = vpack.c.bf16 %v547_v13, %v546_v12  ;;  %v750_v16 = vld [vmem:[%s2288_s10 + $0x8] sm:$0xff] }
  0xed   :  { %v1804_v17 = vpack.c.bf16 %v750_v16, %v749_v15 }
  0xee   :  { %1765 = vmatprep.subr.bf16.mxu1 %v1764_v18  ;;  %1801 = vmatprep.subr.bf16.mxu0 %v1800_v14 }
  0xef   :  { %1767 = vmatpush3.bf16.msra.mxu1 %v1764_v18  ;;  %1803 = vmatpush3.bf16.msra.mxu0 %v1800_v14  ;;  %v1406_v18 = vld [vmem:[%s2289_s6] ss:$0 sm:$0xff] }
  0xf0   :  { %1769 = vmatprep.subr.bf16.mxu1 %v1768_v19 }
  0xf2   :  { %1582 = vmatmul.mubr.msk.f32.vlgmr.msra.gmra.mrb[0].mxu1 %vm74_vm0, %v2016_v20 }
  0xf3   :  { %1584 = vmatprep.mubr.msk.f32.mxu1 %vm74_vm0, %v2021_v21  ;;  %1771 = vmatpush3.bf16.msra.mxu1 %v1768_v19 }
  0xf4   :  { %1773 = vmatprep.subr.bf16.mxu1 %v1772_v27 }
  0xf6   :  { %1585 = vmatmul.mubr.msk.f32.gmra.mrb[2].mxu1 %vm74_vm0, %v2030_v22 }
  0xf7   :  { %1587 = vmatprep.mubr.msk.f32.mxu1 %vm74_vm0, %v2035_v23  ;;  %1775 = vmatpush3.bf16.msra.mxu1 %v1772_v27 }
  0xfa   :  { %1588 = vmatmul.mubr.msk.f32.gmra.mrb[4].mxu1 %vm74_vm0, %v2044_v24 }
 0x1c5   :  { %v1583_v29 = vpop.f32.mrb[0].mxu1 }
 0x1c6   :  { %v269_v30 = vadd.f32 %v1583_v29, %v1393_v28  ;;  %v263_v31 = vpop.f32.mrb[1].mxu1 }
 0x1c7   :  { %v264_v32 = vadd.f32 %v1393_v28, %v263_v31 }
 0x1c8   :  { %v299_v33 = vmul.f32 0.1, %v269_v30  ;;  %vm293_vm1 = vcmp.gt.f32.partialorder %v269_v30, 0.0 }
 0x1c9   :  { %vm292_vm2 = vcmp.gt.f32.partialorder %v264_v32, 0.0  ;;  %v298_v34 = vmul.f32 0.1, %v264_v32  ;;  %v1586_v35 = vpop.f32.mrb[2].mxu1 }
 0x1ca   :  { %v279_v36 = vadd.f32 %v1586_v35, %v1393_v28  ;;  %v273_v37 = vpop.f32.mrb[3].mxu1  ;;  %v305_v40 = vsel %vm293_vm1, %v269_v30, %v299_v33 }
 0x1cb   :  { %v274_v38 = vadd.f32 %v1393_v28, %v273_v37  ;;  %v304_v39 = vsel %vm292_vm2, %v264_v32, %v298_v34 }
 0x1cc   :  { %v301_v41 = vmul.f32 0.1, %v279_v36  ;;  %1598 = vmatprep.mubr.msk.f32.mxu1 %vm74_vm0, %v304_v39  ;;  %vm295_vm3 = vcmp.gt.f32.partialorder %v279_v36, 0.0 }
 0x1cd   :  { %vm294_vm4 = vcmp.gt.f32.partialorder %v274_v38, 0.0  ;;  %v300_v42 = vmul.f32 0.1, %v274_v38  ;;  %v1589_v43 = vpop.f32.mrb[4].mxu1  ;;  %1599 = vmatmul.mubr.msk.f32.vlgmr.msra.gmra.mrb[6].mxu1 %vm74_vm0, %v305_v40  ;;  %v751_v40 = vld [vmem:[%s2288_s10 + $0x10] sm:$0xff] }
 0x1ce   :  { %v289_v44 = vadd.f32 %v1589_v43, %v1393_v28  ;;  %v283_v45 = vpop.f32.mrb[5].mxu1  ;;  %v307_v49 = vsel %vm295_vm3, %v279_v36, %v301_v41  ;;  %v752_v41 = vld [vmem:[%s2288_s10 + $0x18] sm:$0xff]  ;;  %v1419_v43 = vld [vmem:[%s2290_s9] ss:$0 sm:$0xff] }
 0x1cf   :  { %v284_v46 = vadd.f32 %v1393_v28, %v283_v45  ;;  %v306_v47 = vsel %vm294_vm4, %v274_v38, %v300_v42  ;;  %v1808_v42 = vpack.c.bf16 %v752_v41, %v751_v40  ;;  %vm1272_vm4 = vcmask 523264  }
 0x1d0   :  { %v303_v48 = vmul.f32 0.1, %v289_v44  ;;  %1601 = vmatprep.mubr.msk.f32.mxu1 %vm74_vm0, %v306_v47  ;;  %vm297_vm5 = vcmp.gt.f32.partialorder %v289_v44, 0.0 }
 0x1d1   :  { %vm296_vm6 = vcmp.gt.f32.partialorder %v284_v46, 0.0  ;;  %v302_v50 = vmul.f32 0.1, %v284_v46  ;;  %1602 = vmatmul.mubr.msk.f32.gmra.mrb[8].mxu1 %vm74_vm0, %v307_v49 }
 0x1d2   :  { %v309_v52 = vsel %vm297_vm5, %v289_v44, %v303_v48 }
 0x1d3   :  { %v308_v51 = vsel %vm296_vm6, %v284_v46, %v302_v50 }
 0x1d4   :  { %1604 = vmatprep.mubr.msk.f32.mxu1 %vm74_vm0, %v308_v51 }
 0x1d5   :  { %1605 = vmatmul.mubr.msk.f32.gmra.mrb[10].mxu1 %vm74_vm0, %v309_v52 }
 0x1d6   :  { %1619 = vmatprep.mubr.msk.f32.mxu1 %vm434_vm7, %v2066_v53 }
 0x2a0   :  { %v1600_v60 = vpop.f32.mrb[6].mxu1 }
 0x2a1   :  { %v398_v61 = vpop.f32.mrb[7].mxu1 }
 0x2a2   :  { %v1776_v62 = vpack.c.bf16 %v1600_v60, %v398_v61 }
 0x2a4   :  { %v1603_v63 = vpop.f32.mrb[8].mxu1  ;;  %1777 = vmatprep.subr.bf16.mxu1 %v1776_v62 }
 0x2a5   :  { %v408_v0 = vpop.f32.mrb[9].mxu1  ;;  %1779 = vmatpush3.bf16.msra.mxu1 %v1776_v62 }
 0x2a6   :  { %v1780_v1 = vpack.c.bf16 %v1603_v63, %v408_v0 }
 0x2a8   :  { %v1606_v2 = vpop.f32.mrb[10].mxu1  ;;  %1781 = vmatprep.subr.bf16.mxu1 %v1780_v1 }
 0x2a9   :  { %v418_v3 = vpop.f32.mrb[11].mxu1  ;;  %1783 = vmatpush3.bf16.msra.mxu1 %v1780_v1 }
 0x2aa   :  { %v1784_v4 = vpack.c.bf16 %v1606_v2, %v418_v3 }
 0x2ac   :  { %1785 = vmatprep.subr.bf16.mxu1 %v1784_v4 }
 0x2ad   :  { %1787 = vmatpush3.bf16.msra.mxu1 %v1784_v4 }
 0x2ae   :  { %1805 = vmatprep.subr.bf16.mxu1 %v1804_v17 }
 0x2b0   :  { %1620 = vmatmul.mubr.msk.f32.vlgmr.msra.gmra.mrb[12].mxu1 %vm434_vm7, %v2091_v5 }
 0x2b1   :  { %1622 = vmatprep.mubr.msk.f32.mxu1 %vm434_vm7, %v2096_v6  ;;  %1807 = vmatpush3.bf16.msra.mxu1 %v1804_v17 }
 0x2b2   :  { %1809 = vmatprep.subr.bf16.mxu1 %v1808_v42 }
 0x2b4   :  { %1623 = vmatmul.mubr.msk.f32.gmra.mrb[14].mxu1 %vm434_vm7, %v2105_v7 }
 0x2b5   :  { %1811 = vmatpush3.bf16.msra.mxu1 %v1808_v42  ;;  %v1178_v42 = vld [vmem:[%s2294_s14 + $0x18] sm:$0xff] }
 0x383   :  { %v1621_v19 = vpop.f32.mrb[12].mxu1 }
 0x384   :  { %v519_v25 = vadd.f32 %v1621_v19, %v1406_v18  ;;  %v513_v26 = vpop.f32.mrb[13].mxu1 }
 0x385   :  { %v514_v27 = vadd.f32 %v1406_v18, %v513_v26 }
 0x386   :  { %v537_v28 = vmul.f32 0.1, %v519_v25  ;;  %vm533_vm8 = vcmp.gt.f32.partialorder %v519_v25, 0.0 }
 0x387   :  { %vm532_vm9 = vcmp.gt.f32.partialorder %v514_v27, 0.0  ;;  %v536_v29 = vmul.f32 0.1, %v514_v27  ;;  %v1624_v30 = vpop.f32.mrb[14].mxu1 }
 0x388   :  { %v529_v31 = vadd.f32 %v1624_v30, %v1406_v18  ;;  %v523_v32 = vpop.f32.mrb[15].mxu1  ;;  %v541_v35 = vsel %vm533_vm8, %v519_v25, %v537_v28 }
 0x389   :  { %v524_v33 = vadd.f32 %v1406_v18, %v523_v32  ;;  %v540_v34 = vsel %vm532_vm9, %v514_v27, %v536_v29  ;;  %v1183_v32 = vld [vmem:[%s2293_s15] sm:$0xff] }
 0x38a   :  { %v539_v36 = vmul.f32 0.1, %v529_v31  ;;  %1647 = vmatprep.mubr.msk.f32.mxu0 %vm74_vm0, %v540_v34  ;;  %vm535_vm10 = vcmp.gt.f32.partialorder %v529_v31, 0.0 }
 0x38b   :  { %vm534_vm11 = vcmp.gt.f32.partialorder %v524_v33, 0.0  ;;  %v538_v37 = vmul.f32 0.1, %v524_v33  ;;  %1648 = vmatmul.mubr.msk.f32.vlgmr.msra.gmra.mrb[4].mxu0 %vm74_vm0, %v541_v35 }
 0x38c   :  { %v543_v39 = vsel %vm535_vm10, %v529_v31, %v539_v36 }
 0x38d   :  { %v542_v38 = vsel %vm534_vm11, %v524_v33, %v538_v37  ;;  %v1184_v33 = vld [vmem:[%s2293_s15 + $0x8] sm:$0xff] }
 0x38e   :  { %1650 = vmatprep.mubr.msk.f32.mxu0 %vm74_vm0, %v542_v38  ;;  %v1840_v37 = vpack.c.bf16 %v1184_v33, %v1183_v32  ;;  %v1185_v38 = vld [vmem:[%s2293_s15 + $0x10] sm:$0xff] }
 0x38f   :  { %1651 = vmatmul.mubr.msk.f32.gmra.mrb[6].mxu0 %vm74_vm0, %v543_v39  ;;  %v1186_v39 = vld [vmem:[%s2293_s15 + $0x18] sm:$0xff] }
 0x390   :  { %1696 = vmatprep.mubr.msk.f32.mxu0 %vm434_vm7, %v2066_v53  ;;  %v1844_v40 = vpack.c.bf16 %v1186_v39, %v1185_v38 }
 0x45e   :  { %v1649_v44 = vpop.f32.mrb[4].mxu0 }
 0x45f   :  { %v2145_v45 = vadd.f32 %v1649_v44, %v1419_v43  ;;  %v715_v46 = vpop.f32.mrb[5].mxu0 }
 0x460   :  { %v2147_v47 = vadd.f32 %v1419_v43, %v715_v46 }
 0x461   :  { %v746_v50 = vmax.f32 %v2145_v45, 0.0 }
 0x462   :  { %v745_v48 = vmax.f32 %v2147_v47, 0.0  ;;  %v1652_v49 = vpop.f32.mrb[6].mxu0 }
 0x463   :  { %v2151_v51 = vadd.f32 %v1652_v49, %v1419_v43  ;;  %v725_v52 = vpop.f32.mrb[7].mxu0  ;;  %v1180_v49 = vld [vmem:[%s2294_s14 + $0x28] sm:$0xff] }
 0x464   :  { %v2153_v53 = vadd.f32 %v1419_v43, %v725_v52  ;;  %1661 = vmatprep.mubr.msk.f32.mxu1 %vm74_vm0, %v745_v48  ;;  %v1182_v52 = vld [vmem:[%s2294_s14 + $0x38] sm:$0xff] }
 0x465   :  { %1662 = vmatmul.mubr.msk.f32.vlgmr.msra.gmra.mrb[16].mxu1 %vm74_vm0, %v746_v50  ;;  %v748_v55 = vmax.f32 %v2151_v51, 0.0  ;;  %v1181_v51 = vld [vmem:[%s2294_s14 + $0x30] sm:$0xff] }
 0x466   :  { %v747_v54 = vmax.f32 %v2153_v53, 0.0  ;;  %v1860_v53 = vpack.c.bf16 %v1182_v52, %v1181_v51 }
 0x468   :  { %1664 = vmatprep.mubr.msk.f32.mxu1 %vm74_vm0, %v747_v54 }
 0x469   :  { %1665 = vmatmul.mubr.msk.f32.gmra.mrb[18].mxu1 %vm74_vm0, %v748_v55 }
 0x46a   :  { %1675 = vmatprep.mubr.msk.f32.mxu1 %vm74_vm0, %v2003_v10  ;;  %v1055_v10 = vld [vmem:[%s2291_s12] sm:$0xff] }
 0x538   :  { %v1663_v56 = vpop.f32.mrb[16].mxu1 }
 0x539   :  { %v831_v57 = vpop.f32.mrb[17].mxu1 }
 0x53a   :  { %v1812_v58 = vpack.c.bf16 %v1663_v56, %v831_v57 }
 0x53c   :  { %v1666_v59 = vpop.f32.mrb[18].mxu1  ;;  %1813 = vmatprep.subr.bf16.mxu1 %v1812_v58 }
 0x53d   :  { %v841_v60 = vpop.f32.mrb[19].mxu1  ;;  %1815 = vmatpush3.bf16.msra.mxu1 %v1812_v58 }
 0x53e   :  { %v1816_v61 = vpack.c.bf16 %v1666_v59, %v841_v60 }
 0x540   :  { %1817 = vmatprep.subr.bf16.mxu1 %v1816_v61 }
 0x541   :  { %1819 = vmatpush3.bf16.msra.mxu1 %v1816_v61 }
 0x544   :  { %1676 = vmatmul.mubr.msk.f32.vlgmr.msra.gmra.mrb[20].mxu1 %vm74_vm0, %v2016_v20  ;;  %v1056_v20 = vld [vmem:[%s2291_s12 + $0x8] sm:$0xff] }
 0x545   :  { %1678 = vmatprep.mubr.msk.f32.mxu1 %vm74_vm0, %v2021_v21  ;;  %v1057_v21 = vld [vmem:[%s2291_s12 + $0x10] sm:$0xff]  ;;  %v1832_v62 = vpack.c.bf16 %v1056_v20, %v1055_v10 }
 0x547   :  { %1833 = vmatprep.subr.bf16.mxu1 %v1832_v62 }
 0x548   :  { %1679 = vmatmul.mubr.msk.f32.gmra.mrb[22].mxu1 %vm74_vm0, %v2030_v22  ;;  %v1058_v22 = vld [vmem:[%s2291_s12 + $0x18] sm:$0xff] }
 0x549   :  { %1681 = vmatprep.mubr.msk.f32.mxu1 %vm74_vm0, %v2035_v23  ;;  %v1836_v23 = vpack.c.bf16 %v1058_v22, %v1057_v21  ;;  %1835 = vmatpush3.bf16.msra.mxu1 %v1832_v62 }
 0x54b   :  { %1837 = vmatprep.subr.bf16.mxu1 %v1836_v23 }
 0x54c   :  { %1682 = vmatmul.mubr.msk.f32.gmra.mrb[24].mxu1 %vm74_vm0, %v2044_v24  ;;  %v1424_v24 = vld [vmem:[%s2292_s11] ss:$0 sm:$0xff] }
 0x54d   :  { %1839 = vmatpush3.bf16.msra.mxu1 %v1836_v23 }
 0x617   :  { %v1677_v63 = vpop.f32.mrb[20].mxu1 }
 0x618   :  { %v929_v0 = vadd.f32 %v1677_v63, %v1424_v24  ;;  %v923_v1 = vpop.f32.mrb[21].mxu1 }
 0x619   :  { %v924_v2 = vadd.f32 %v1424_v24, %v923_v1  ;;  %v1448_v1 = vld [vmem:[%s2296_s16] ss:$0 sm:$0xff] }
 0x61a   :  { %vm953_vm12 = vcmp.gt.f32.partialorder %v929_v0, 0.0  ;;  %v959_v3 = vmul.f32 0.1, %v929_v0 }
 0x61b   :  { %vm952_vm13 = vcmp.gt.f32.partialorder %v924_v2, 0.0  ;;  %v958_v4 = vmul.f32 0.1, %v924_v2  ;;  %v1680_v8 = vpop.f32.mrb[22].mxu1 }
 0x61c   :  { %v939_v9 = vadd.f32 %v1680_v8, %v1424_v24  ;;  %v933_v11 = vpop.f32.mrb[23].mxu1  ;;  %v965_v12 = vsel %vm953_vm12, %v929_v0, %v959_v3 }
 0x61d   :  { %v934_v13 = vadd.f32 %v1424_v24, %v933_v11  ;;  %v964_v14 = vsel %vm952_vm13, %v924_v2, %v958_v4 }
 0x61e   :  { %vm955_vm14 = vcmp.gt.f32.partialorder %v939_v9, 0.0  ;;  %v961_v15 = vmul.f32 0.1, %v939_v9  ;;  %v1820_v16 = vpack.c.bf16 %v965_v12, %v964_v14 }
 0x61f   :  { %vm954_vm15 = vcmp.gt.f32.partialorder %v934_v13, 0.0  ;;  %v960_v17 = vmul.f32 0.1, %v934_v13  ;;  %v1683_v18 = vpop.f32.mrb[24].mxu1 }
 0x620   :  { %v949_v19 = vadd.f32 %v1683_v18, %v1424_v24  ;;  %v943_v25 = vpop.f32.mrb[25].mxu1  ;;  %1821 = vmatprep.subr.bf16.mxu0 %v1820_v16  ;;  %v967_v26 = vsel %vm955_vm14, %v939_v9, %v961_v15 }
 0x621   :  { %v944_v27 = vadd.f32 %v1424_v24, %v943_v25  ;;  %1823 = vmatpush3.bf16.msra.mxu0 %v1820_v16  ;;  %v966_v28 = vsel %vm954_vm15, %v934_v13, %v960_v17 }
 0x622   :  { %vm957_vm1 = vcmp.gt.f32.partialorder %v949_v19, 0.0  ;;  %v963_v29 = vmul.f32 0.1, %v949_v19  ;;  %v1824_v30 = vpack.c.bf16 %v967_v26, %v966_v28 }
 0x623   :  { %vm956_vm2 = vcmp.gt.f32.partialorder %v944_v27, 0.0  ;;  %v962_v31 = vmul.f32 0.1, %v944_v27 }
 0x624   :  { %1825 = vmatprep.subr.bf16.mxu0 %v1824_v30  ;;  %v969_v34 = vsel %vm957_vm1, %v949_v19, %v963_v29 }
 0x625   :  { %1827 = vmatpush3.bf16.msra.mxu0 %v1824_v30  ;;  %v968_v35 = vsel %vm956_vm2, %v944_v27, %v962_v31 }
 0x626   :  { %v1828_v36 = vpack.c.bf16 %v969_v34, %v968_v35 }
 0x628   :  { %1829 = vmatprep.subr.bf16.mxu0 %v1828_v36 }
 0x629   :  { %1831 = vmatpush3.bf16.msra.mxu0 %v1828_v36 }
 0x62a   :  { %1841 = vmatprep.subr.bf16.mxu0 %v1840_v37 }
 0x62c   :  { %1697 = vmatmul.mubr.msk.f32.vlgmr.msra.gmra.mrb[8].mxu0 %vm434_vm7, %v2091_v5  ;;  %v1175_v5 = vld [vmem:[%s2294_s14] sm:$0xff] }
 0x62d   :  { %1843 = vmatpush3.bf16.msra.mxu0 %v1840_v37  ;;  %1699 = vmatprep.mubr.msk.f32.mxu0 %vm434_vm7, %v2096_v6  ;;  %v1176_v6 = vld [vmem:[%s2294_s14 + $0x8] sm:$0xff] }
 0x62e   :  { %1845 = vmatprep.subr.bf16.mxu0 %v1844_v40  ;;  %v1848_v41 = vpack.c.bf16 %v1176_v6, %v1175_v5 }
 0x630   :  { %1700 = vmatmul.mubr.msk.f32.gmra.mrb[10].mxu0 %vm434_vm7, %v2105_v7  ;;  %v1177_v7 = vld [vmem:[%s2294_s14 + $0x10] sm:$0xff] }
 0x631   :  { %1847 = vmatpush3.bf16.msra.mxu0 %v1844_v40  ;;  %1724 = vmatprep.mubr.msk.f32.mxu0 %vm74_vm0, %v745_v48  ;;  %v1852_v43 = vpack.c.bf16 %v1178_v42, %v1177_v7  ;;  %v1179_v48 = vld [vmem:[%s2294_s14 + $0x20] sm:$0xff] }
 0x632   :  { %1849 = vmatprep.subr.bf16.mxu0 %v1848_v41 }
 0x634   :  { %1725 = vmatmul.mubr.msk.f32.vlgmr.msra.gmra.mrb[12].mxu0 %vm74_vm0, %v746_v50  ;;  %v1856_v50 = vpack.c.bf16 %v1180_v49, %v1179_v48 }
 0x635   :  { %1727 = vmatprep.mubr.msk.f32.mxu0 %vm74_vm0, %v747_v54  ;;  %1851 = vmatpush3.bf16.msra.mxu0 %v1848_v41  ;;  %v1435_v54 = vld [vmem:[%s2295_s13] ss:$0 sm:$0xff] }
 0x636   :  { %1853 = vmatprep.subr.bf16.mxu0 %v1852_v43 }
 0x638   :  { %1728 = vmatmul.mubr.msk.f32.gmra.mrb[14].mxu0 %vm74_vm0, %v748_v55 }
 0x639   :  { %1855 = vmatpush3.bf16.msra.mxu0 %v1852_v43 }
 0x63a   :  { %1857 = vmatprep.subr.bf16.mxu0 %v1856_v50 }
 0x63d   :  { %1859 = vmatpush3.bf16.msra.mxu0 %v1856_v50 }
 0x63e   :  { %1861 = vmatprep.subr.bf16.mxu0 %v1860_v53 }
 0x641   :  { %1863 = vmatpush3.bf16.msra.mxu0 %v1860_v53 }
 0x6ff   :  { %v1698_v44 = vpop.f32.mrb[8].mxu0 }
 0x700   :  { %v1036_v45 = vpop.f32.mrb[9].mxu0 }
 0x701   :  { %1710 = vmatprep.mubr.msk.f32.mxu1 %vm74_vm0, %v1036_v45 }
 0x702   :  { %1711 = vmatmul.mubr.msk.f32.vlgmr.msra.gmra.mrb[26].mxu1 %vm74_vm0, %v1698_v44 }
 0x703   :  { %v1701_v46 = vpop.f32.mrb[10].mxu0 }
 0x704   :  { %v1046_v47 = vpop.f32.mrb[11].mxu0 }
 0x705   :  { %1713 = vmatprep.mubr.msk.f32.mxu1 %vm74_vm0, %v1046_v47 }
 0x706   :  { %1714 = vmatmul.mubr.msk.f32.gmra.mrb[28].mxu1 %vm74_vm0, %v1701_v46 }
 0x7d5   :  { %v1712_v55 = vpop.f32.mrb[26].mxu1 }
 0x7d6   :  { %v1150_v56 = vadd.f32 %v1712_v55, %v1435_v54  ;;  %v1144_v57 = vpop.f32.mrb[27].mxu1 }
 0x7d7   :  { %v1145_v58 = vadd.f32 %v1435_v54, %v1144_v57 }
 0x7d8   :  { %v1168_v59 = vmul.f32 0.1, %v1150_v56  ;;  %vm1164_vm0 = vcmp.gt.f32.partialorder %v1150_v56, 0.0 }
 0x7d9   :  { %vm1163_vm3 = vcmp.gt.f32.partialorder %v1145_v58, 0.0  ;;  %v1167_v60 = vmul.f32 0.1, %v1145_v58  ;;  %v1715_v61 = vpop.f32.mrb[28].mxu1 }
 0x7da   :  { %v1160_v10 = vadd.f32 %v1715_v61, %v1435_v54  ;;  %v1154_v20 = vpop.f32.mrb[29].mxu1  ;;  %v1172_v22 = vsel %vm1164_vm0, %v1150_v56, %v1168_v59 }
 0x7db   :  { %v1155_v21 = vadd.f32 %v1435_v54, %v1154_v20  ;;  %v1171_v62 = vsel %vm1163_vm3, %v1145_v58, %v1167_v60 }
 0x7dc   :  { %v1170_v23 = vmul.f32 0.1, %v1160_v10  ;;  %1746 = vmatprep.mubr.msk.f32.mxu0 %vm1272_vm4, %v1171_v62  ;;  %vm1166_vm5 = vcmp.gt.f32.partialorder %v1160_v10, 0.0 }
 0x7dd   :  { %vm1165_vm6 = vcmp.gt.f32.partialorder %v1155_v21, 0.0  ;;  %v1169_v24 = vmul.f32 0.1, %v1155_v21  ;;  %1747 = vmatmul.mubr.msk.f32.vlgmr.msra.gmra.mrb[12].mxu0 %vm1272_vm4, %v1172_v22 }
 0x7de   :  { %v1174_v0 = vsel %vm1166_vm5, %v1160_v10, %v1170_v23 }
 0x7df   :  { %v1173_v63 = vsel %vm1165_vm6, %v1155_v21, %v1169_v24 }
 0x7e0   :  { %1749 = vmatprep.mubr.msk.f32.mxu0 %vm1272_vm4, %v1173_v63 }
 0x7e1   :  { %1750 = vmatmul.mubr.msk.f32.gmra.mrb[14].mxu0 %vm1272_vm4, %v1174_v0 }
 0x8b0   :  { %v1748_v2 = vpop.f32.mrb[12].mxu0 }
 0x8b1   :  { %v1378_v3 = vadd.f32 %v1748_v2, %v1448_v1  ;;  %v1351_v4 = vpop.f32.mrb[13].mxu0 }
 0x8b2   :  { %v1377_v8 = vadd.f32 %v1448_v1, %v1351_v4 }
 0x8b3   :  { %1382 = vst.msk [vmem:[%s2297_s17 + $0x8] sm:$0xff] %vm1272_vm4, %v1378_v3 }
 0x8b4   :  { %1381 = vst.msk [vmem:[%s2297_s17] sm:$0xff] %vm1272_vm4, %v1377_v8  ;;  %v1751_v9 = vpop.f32.mrb[14].mxu0 }
 0x8b5   :  { %v1380_v11 = vadd.f32 %v1751_v9, %v1448_v1  ;;  %v1361_v12 = vpop.f32.mrb[15].mxu0 }
 0x8b6   :  { %v1379_v13 = vadd.f32 %v1448_v1, %v1361_v12 }
 0x8b7   :  { %1384 = vst.msk [vmem:[%s2297_s17 + $0x18] sm:$0xff] %vm1272_vm4, %v1380_v11 }
 0x8b8   :  { %1383 = vst.msk [vmem:[%s2297_s17 + $0x10] sm:$0xff] %vm1272_vm4, %v1379_v13 }

// kernel: disencdr_forward.10
= control target key start
LH: loop header
LB: loop body
LE: loop exit
PB: predicated region body
PF: predicated region fallthrough
CT: control target
= control target key end

     0   :  { %s4185_s0 = inlined_call_operand.vmem [shape: f32[32,32], index: 0, kind: input, shape index: {}]   ;;  %s4186_s1 = inlined_call_operand.vmem [shape: f32[32,32], index: 1, kind: input, shape index: {}]   ;;  %s4187_s2 = inlined_call_operand.vmem [shape: f32[32,16], index: 2, kind: input, shape index: {}]   ;;  %s4188_s3 = inlined_call_operand.vmem [shape: f32[16,32], index: 3, kind: input, shape index: {}]   ;;  %s4189_s4 = inlined_call_operand.vmem [shape: f32[32,48], index: 4, kind: input, shape index: {}]   ;;  %s4190_s5 = inlined_call_operand.vmem [shape: f32[48,32], index: 5, kind: input, shape index: {}]   ;;  %s4191_s6 = inlined_call_operand.vmem [shape: f32[32,32], index: 6, kind: input, shape index: {}]   ;;  %s4192_s7 = inlined_call_operand.hbm [shape: f32[1,32], index: 7, kind: input, shape index: {}]   ;;  %s4193_s8 = inlined_call_operand.vmem [shape: f32[32,32], index: 8, kind: input, shape index: {}]   ;;  %s4194_s9 = inlined_call_operand.hbm [shape: f32[1,32], index: 9, kind: input, shape index: {}]   ;;  %s4195_s10 = inlined_call_operand.vmem [shape: f32[32,32], index: 10, kind: input, shape index: {}]   ;;  %s4196_s11 = inlined_call_operand.vmem [shape: f32[32,32], index: 11, kind: input, shape index: {}]   ;;  %s4197_s12 = inlined_call_operand.hbm [shape: f32[1,32], index: 12, kind: input, shape index: {}]   ;;  %s4198_s13 = inlined_call_operand.vmem [shape: f32[32,32], index: 13, kind: input, shape index: {}]   ;;  %s4199_s14 = inlined_call_operand.hbm [shape: f32[1,32], index: 14, kind: input, shape index: {}]   ;;  %s4200_s15 = inlined_call_operand.vmem [shape: f32[32,32], index: 15, kind: input, shape index: {}]   ;;  %s4201_s16 = inlined_call_operand.hbm [shape: f32[1,32], index: 16, kind: input, shape index: {}]   ;;  %s4202_s17 = inlined_call_operand.vmem [shape: f32[32,64], index: 17, kind: input, shape index: {}]   ;;  %s4203_s18 = inlined_call_operand.hbm [shape: f32[1,64], index: 18, kind: input, shape index: {}]   ;;  %s4204_s19 = inlined_call_operand.vmem [shape: f32[32,64], index: 19, kind: input, shape index: {}]   ;;  %s4205_s20 = inlined_call_operand.hbm [shape: f32[1,64], index: 20, kind: input, shape index: {}]   ;;  %s4206_s21 = inlined_call_operand.vmem [shape: f32[64,64], index: 21, kind: input, shape index: {}]   ;;  %s4207_s22 = inlined_call_operand.vmem [shape: f32[64,64], index: 22, kind: input, shape index: {}]   ;;  %s4208_s23 = inlined_call_operand.hbm [shape: f32[1,64], index: 23, kind: input, shape index: {}]   ;;  %s4209_s24 = inlined_call_operand.vmem [shape: f32[32,64], index: 24, kind: output, shape index: {}]  }
   0x1   :  { %4219 = sst [smem:[#allocation20_spill]] %s4185_s0 }
   0x2   :  { %4220 = sst [smem:[#allocation21_spill]] %s4186_s1 }
   0x3   :  { %4221 = sst [smem:[#allocation22_spill]] %s4187_s2 }
   0x4   :  { %4222 = sst [smem:[#allocation23_spill]] %s4188_s3 }
   0x5   :  { %4223 = sst [smem:[#allocation24_spill]] %s4189_s4 }
   0x6   :  { %4224 = sst [smem:[#allocation25_spill]] %s4190_s5 }
   0x7   :  { %4225 = sst [smem:[#allocation26_spill]] %s4191_s6 }
   0x8   :  { %4226 = sst [smem:[#allocation27_spill]] %s4192_s7 }
   0x9   :  { %4227 = sst [smem:[#allocation28_spill]] %s4193_s8 }
   0xa   :  { %29 = vsyncpa [#allocation3], 0 }
   0xb   :  { %30 = vsyncpa [#allocation5], 0 }
   0xc   :  { %31 = vsyncpa [#allocation8], 0 }
   0xd   :  { %32 = vsyncpa [#allocation11], 0 }
   0xe   :  { %33 = vsyncpa [#allocation14], 0  ;;  %s3495_s5 = smov [#allocation4]   ;;  %s3496_s27 = smov [#allocation7]  }
   0xf   :  { %s66_s26 = sshll.u32 %s3495_s5, 4  ;;  %s92_s28 = sshll.u32 %s3496_s27, 4  ;;  %s67_s26 = int_to_ptr.vmem [resolvable:$true] %s66_s26  ;;  %s93_s28 = int_to_ptr.vmem [resolvable:$true] %s92_s28 }
  0x10   :  { %s3309_s29 = scalar_lea.hbm %s4194_s9, 16 }
  0x11   :  { %p3310_p0 = scmp.ne.s32.totalorder %s4194_s9, %s3309_s29  ;;  %p3313_p1 = scmp.lt.u32.totalorder %s3309_s29, %s4194_s9 }
  0x13   :  { %p3315_p2 = pnand %p3313_p1, %p3310_p0 }
  0x15   :  { %3318 = shalt.err (!%p3315_p2)
}
  0x16   :  { %s3319_s25 = scalar_lea.vmem %s67_s26, 16  ;;  %s3323_s8 = scalar_lea.vmem %s67_s26, 32 }
  0x17   :  { %p3320_p3 = scmp.ne.s32.totalorder %s67_s26, %s3319_s25  ;;  %p3324_p4 = scmp.lt.s32.totalorder %s67_s26, %s67_s26 }
  0x18   :  { %p3325_p5 = scmp.lt.s32.totalorder %s3323_s8, %s3319_s25 }
  0x1a   :  { %p3326_p6 = por %p3325_p5, %p3324_p4 }
  0x1c   :  { %p3327_p7 = pnand %p3326_p6, %p3320_p3 }
  0x1e   :  { %3330 = shalt.err (!%p3327_p7)
}
  0x1f   :  { %69 = dma.hbm_to_vmem [thread:$0]  %s4194_s9, 16, %s67_s26, [#allocation5]  }
  0x20   :  { %s3331_s6 = scalar_lea.hbm %s4199_s14, 16 }
  0x21   :  { %p3332_p8 = scmp.ne.s32.totalorder %s4199_s14, %s3331_s6  ;;  %p3335_p9 = scmp.lt.u32.totalorder %s3331_s6, %s4199_s14 }
  0x23   :  { %p3337_p10 = pnand %p3335_p9, %p3332_p8 }
  0x25   :  { %3340 = shalt.err (!%p3337_p10)
}
  0x26   :  { %s3341_s30 = scalar_lea.vmem %s93_s28, 16  ;;  %s3345_s3 = scalar_lea.vmem %s93_s28, 32 }
  0x27   :  { %p3342_p11 = scmp.ne.s32.totalorder %s93_s28, %s3341_s30  ;;  %p3346_p12 = scmp.lt.s32.totalorder %s93_s28, %s93_s28 }
  0x28   :  { %p3347_p13 = scmp.lt.s32.totalorder %s3345_s3, %s3341_s30 }
  0x2a   :  { %p3348_p0 = por %p3347_p13, %p3346_p12 }
  0x2c   :  { %p3349_p1 = pnand %p3348_p0, %p3342_p11 }
  0x2e   :  { %3352 = shalt.err (!%p3349_p1)
}
  0x2f   :  { %95 = dma.hbm_to_vmem [thread:$0]  %s4199_s14, 16, %s93_s28, [#allocation8]  }
  0x30   :  { %s3497_s25 = smov [#allocation10]   ;;  %s3498_s4 = smov [#allocation2]  }
  0x31   :  { %s116_s8 = sshll.u32 %s3497_s25, 4  ;;  %s54_s1 = sshll.u32 %s3498_s4, 4  ;;  %s117_s8 = int_to_ptr.vmem [resolvable:$true] %s116_s8  ;;  %s55_s1 = int_to_ptr.vmem [resolvable:$true] %s54_s1 }
  0x32   :  { %s3353_s6 = scalar_lea.hbm %s4203_s18, 16 }
  0x33   :  { %p3354_p2 = scmp.ne.s32.totalorder %s4203_s18, %s3353_s6  ;;  %p3357_p3 = scmp.lt.u32.totalorder %s3353_s6, %s4203_s18 }
  0x35   :  { %p3359_p4 = pnand %p3357_p3, %p3354_p2 }
  0x37   :  { %3362 = shalt.err (!%p3359_p4)
}
  0x38   :  { %s3363_s14 = scalar_lea.vmem %s117_s8, 16  ;;  %s3367_s28 = scalar_lea.vmem %s117_s8, 32 }
  0x39   :  { %p3364_p5 = scmp.ne.s32.totalorder %s117_s8, %s3363_s14  ;;  %p3368_p6 = scmp.lt.s32.totalorder %s117_s8, %s117_s8 }
  0x3a   :  { %p3369_p7 = scmp.lt.s32.totalorder %s3367_s28, %s3363_s14 }
  0x3c   :  { %p3370_p8 = por %p3369_p7, %p3368_p6 }
  0x3e   :  { %p3371_p9 = pnand %p3370_p8, %p3364_p5 }
  0x40   :  { %3374 = shalt.err (!%p3371_p9)
}
  0x41   :  { %119 = dma.hbm_to_vmem [thread:$0]  %s4203_s18, 16, %s117_s8, [#allocation11]  }
  0x42   :  { %s4228_s25 = sld [smem:[#allocation27_spill]] }
  0x48   :  { %s3375_s4 = scalar_lea.hbm %s4228_s25, 16 }
  0x49   :  { %p3376_p10 = scmp.ne.s32.totalorder %s4228_s25, %s3375_s4  ;;  %p3379_p11 = scmp.lt.u32.totalorder %s3375_s4, %s4228_s25 }
  0x4b   :  { %p3381_p12 = pnand %p3379_p11, %p3376_p10 }
  0x4d   :  { %3384 = shalt.err (!%p3381_p12)
}
  0x4e   :  { %s3385_s29 = scalar_lea.vmem %s55_s1, 16  ;;  %s3389_s0 = scalar_lea.vmem %s55_s1, 32 }
  0x4f   :  { %p3386_p13 = scmp.ne.s32.totalorder %s55_s1, %s3385_s29  ;;  %p3390_p0 = scmp.lt.s32.totalorder %s55_s1, %s55_s1 }
  0x50   :  { %p3391_p1 = scmp.lt.s32.totalorder %s3389_s0, %s3385_s29 }
  0x52   :  { %p3392_p2 = por %p3391_p1, %p3390_p0 }
  0x54   :  { %p3393_p3 = pnand %p3392_p2, %p3386_p13 }
  0x56   :  { %3396 = shalt.err (!%p3393_p3)
}
  0x57   :  { %57 = dma.hbm_to_vmem [thread:$0]  %s4228_s25, 16, %s55_s1, [#allocation3]  }
  0x58   :  { %s3499_s7 = smov [#allocation6]   ;;  %s3500_s28 = smov [#allocation9]  }
  0x59   :  { %s80_s14 = sshll.u32 %s3499_s7, 4  ;;  %s104_s30 = sshll.u32 %s3500_s28, 4  ;;  %s81_s14 = int_to_ptr.vmem [resolvable:$true] %s80_s14  ;;  %s105_s30 = int_to_ptr.vmem [resolvable:$true] %s104_s30 }
  0x5a   :  { %s3397_s26 = scalar_lea.hbm %s4197_s12, 16 }
  0x5b   :  { %p3398_p4 = scmp.ne.s32.totalorder %s4197_s12, %s3397_s26  ;;  %p3401_p5 = scmp.lt.u32.totalorder %s3397_s26, %s4197_s12 }
  0x5d   :  { %p3403_p6 = pnand %p3401_p5, %p3398_p4 }
  0x5f   :  { %3406 = shalt.err (!%p3403_p6)
}
  0x60   :  { %s3407_s1 = scalar_lea.vmem %s81_s14, 16  ;;  %s3411_s25 = scalar_lea.vmem %s81_s14, 32 }
  0x61   :  { %p3408_p7 = scmp.ne.s32.totalorder %s81_s14, %s3407_s1  ;;  %p3412_p8 = scmp.lt.s32.totalorder %s81_s14, %s81_s14 }
  0x62   :  { %p3413_p9 = scmp.lt.s32.totalorder %s3411_s25, %s3407_s1 }
  0x64   :  { %p3414_p10 = por %p3413_p9, %p3412_p8 }
  0x66   :  { %p3415_p11 = pnand %p3414_p10, %p3408_p7 }
  0x68   :  { %3418 = shalt.err (!%p3415_p11)
}
  0x69   :  { %83 = dma.hbm_to_vmem [thread:$0]  %s4197_s12, 16, %s81_s14, [#allocation5]  }
  0x6a   :  { %s3419_s8 = scalar_lea.hbm %s4201_s16, 16 }
  0x6b   :  { %p3420_p12 = scmp.ne.s32.totalorder %s4201_s16, %s3419_s8  ;;  %p3423_p13 = scmp.lt.u32.totalorder %s3419_s8, %s4201_s16 }
  0x6d   :  { %p3425_p0 = pnand %p3423_p13, %p3420_p12 }
  0x6f   :  { %3428 = shalt.err (!%p3425_p0)
}
  0x70   :  { %s3429_s26 = scalar_lea.vmem %s105_s30, 16  ;;  %s3433_s4 = scalar_lea.vmem %s105_s30, 32 }
  0x71   :  { %p3430_p1 = scmp.ne.s32.totalorder %s105_s30, %s3429_s26  ;;  %p3434_p2 = scmp.lt.s32.totalorder %s105_s30, %s105_s30 }
  0x72   :  { %p3435_p3 = scmp.lt.s32.totalorder %s3433_s4, %s3429_s26 }
  0x74   :  { %p3436_p4 = por %p3435_p3, %p3434_p2 }
  0x76   :  { %p3437_p5 = pnand %p3436_p4, %p3430_p1 }
  0x78   :  { %3440 = shalt.err (!%p3437_p5)
}
  0x79   :  { %107 = dma.hbm_to_vmem [thread:$0]  %s4201_s16, 16, %s105_s30, [#allocation8]  }
  0x7a   :  { %s3501_s5 = smov [#allocation12]   ;;  %s3502_s6 = smov [#allocation13]  }
  0x7b   :  { %s128_s27 = sshll.u32 %s3501_s5, 4  ;;  %s142_s1 = sshll.u32 %s3502_s6, 4  ;;  %s129_s27 = int_to_ptr.vmem [resolvable:$true] %s128_s27  ;;  %s143_s1 = int_to_ptr.vmem [resolvable:$true] %s142_s1 }
  0x7c   :  { %s3441_s29 = scalar_lea.hbm %s4205_s20, 16 }
  0x7d   :  { %p3442_p6 = scmp.ne.s32.totalorder %s4205_s20, %s3441_s29  ;;  %p3445_p7 = scmp.lt.u32.totalorder %s3441_s29, %s4205_s20 }
  0x7f   :  { %p3447_p8 = pnand %p3445_p7, %p3442_p6 }
  0x81   :  { %3450 = shalt.err (!%p3447_p8)
}
  0x82   :  { %s3451_s16 = scalar_lea.vmem %s129_s27, 16  ;;  %s3455_s30 = scalar_lea.vmem %s129_s27, 32 }
  0x83   :  { %p3452_p9 = scmp.ne.s32.totalorder %s129_s27, %s3451_s16  ;;  %p3456_p10 = scmp.lt.s32.totalorder %s129_s27, %s129_s27 }
  0x84   :  { %p3457_p11 = scmp.lt.s32.totalorder %s3455_s30, %s3451_s16 }
  0x86   :  { %p3458_p12 = por %p3457_p11, %p3456_p10 }
  0x88   :  { %p3459_p13 = pnand %p3458_p12, %p3452_p9 }
  0x8a   :  { %3462 = shalt.err (!%p3459_p13)
}
  0x8b   :  { %131 = dma.hbm_to_vmem [thread:$0]  %s4205_s20, 16, %s129_s27, [#allocation11]  }
  0x8c   :  { %s3463_s4 = scalar_lea.hbm %s4208_s23, 16 }
  0x8d   :  { %p3464_p0 = scmp.ne.s32.totalorder %s4208_s23, %s3463_s4  ;;  %p3467_p1 = scmp.lt.u32.totalorder %s3463_s4, %s4208_s23 }
  0x8f   :  { %p3469_p2 = pnand %p3467_p1, %p3464_p0 }
  0x91   :  { %3472 = shalt.err (!%p3469_p2)
}
  0x92   :  { %s3473_s25 = scalar_lea.vmem %s143_s1, 16  ;;  %s3477_s2 = scalar_lea.vmem %s143_s1, 32 }
  0x93   :  { %p3474_p3 = scmp.ne.s32.totalorder %s143_s1, %s3473_s25  ;;  %p3478_p4 = scmp.lt.s32.totalorder %s143_s1, %s143_s1 }
  0x94   :  { %p3479_p5 = scmp.lt.s32.totalorder %s3477_s2, %s3473_s25 }
  0x96   :  { %p3480_p6 = por %p3479_p5, %p3478_p4 }
  0x98   :  { %p3481_p7 = pnand %p3480_p6, %p3474_p3 }
  0x9a   :  { %3484 = shalt.err (!%p3481_p7)
}
  0x9b   :  { %145 = dma.hbm_to_vmem [thread:$0]  %s4208_s23, 16, %s143_s1, [#allocation14]  }
  0x9c   :  { %3485 = dma.done.wait [#allocation3], 16  }
  0x9d   :  { %3486 = vsyncadd [#allocation3], 4294967280 }
  0x9e   :  { %3487 = dma.done.wait [#allocation5], 32  }
  0x9f   :  { %3488 = vsyncadd [#allocation5], 4294967264 }
  0xa0   :  { %3489 = dma.done.wait [#allocation8], 32  }
  0xa1   :  { %3490 = vsyncadd [#allocation8], 4294967264 }
  0xa2   :  { %3491 = dma.done.wait [#allocation11], 32  }
  0xa3   :  { %3492 = vsyncadd [#allocation11], 4294967264 }
  0xa4   :  { %3493 = dma.done.wait [#allocation14], 16  }
  0xa5   :  { %3494 = vsyncadd [#allocation14], 4294967280  ;;  %vm198_vm0 = vcmask 261120   ;;  %s4229_s18 = sld [smem:[#allocation26_spill]]  ;;  %s4230_s9 = sld [smem:[#allocation20_spill]]  ;;  %vm482_vm3 = vcmask 130048  }
  0xa6   :  { %s4231_s20 = sld [smem:[#allocation23_spill]]  ;;  %s4232_s0 = sld [smem:[#allocation28_spill]]  ;;  %v3794_v24 = vld [vmem:[#allocation2] ss:$0 sm:$0xff]  ;;  %vm1138_vm10 = vcmask 392192  }
  0xa7   :  { %s4233_s26 = sld [smem:[#allocation21_spill]]  ;;  %s4234_s27 = sld [smem:[#allocation25_spill]] }
  0xab   :  { %v194_v0 = vld [vmem:[%s4229_s18] sm:$0xff]  ;;  %v195_v1 = vld [vmem:[%s4229_s18 + $0x8] sm:$0xff]  ;;  %v196_v2 = vld [vmem:[%s4229_s18 + $0x10] sm:$0xff] }
  0xac   :  { %v3097_v3 = vpack.c.bf16 %v195_v1, %v194_v0  ;;  %v197_v4 = vld [vmem:[%s4229_s18 + $0x18] sm:$0xff]  ;;  %v3739_v5 = vld [vmem:[%s4230_s9] sm:$0xff]  ;;  %v3746_v7 = vld [vmem:[%s4230_s9 + $0x8] sm:$0xff] }
  0xad   :  { %v3101_v6 = vpack.c.bf16 %v197_v4, %v196_v2  ;;  %2781 = vmatprep.mubr.msk.f32.mxu0 %vm198_vm0, %v3739_v5  ;;  %v3751_v8 = vld [vmem:[%s4230_s9 + $0x10] sm:$0xff]  ;;  %v3760_v9 = vld [vmem:[%s4230_s9 + $0x18] sm:$0xff]  ;;  %v3767_v10 = vld [vmem:[%s4231_s20] sm:$0xff] }
  0xae   :  { %3098 = vmatprep.subr.bf16.mxu0 %v3097_v3  ;;  %2795 = vmatprep.mubr.msk.f32.mxu1 %vm198_vm0, %v3767_v10  ;;  %v390_v11 = vld [vmem:[%s4232_s0] sm:$0xff]  ;;  %v391_v12 = vld [vmem:[%s4232_s0 + $0x8] sm:$0xff]  ;;  %v392_v21 = vld [vmem:[%s4232_s0 + $0x10] sm:$0xff] }
  0xaf   :  { %3100 = vmatpush3.bf16.msra.mxu0 %v3097_v3  ;;  %v3777_v13 = vpack.c.bf16 %v391_v12, %v390_v11  ;;  %v3784_v20 = vld [vmem:[%s4231_s20 + $0x8] sm:$0xff]  ;;  %v393_v22 = vld [vmem:[%s4232_s0 + $0x18] sm:$0xff]  ;;  %v3801_v32 = vld [vmem:[%s4233_s26] sm:$0xff] }
  0xb0   :  { %3102 = vmatprep.subr.bf16.mxu0 %v3101_v6  ;;  %v3117_v23 = vpack.c.bf16 %v393_v22, %v392_v21  ;;  %v3810_v34 = vld [vmem:[%s4233_s26 + $0x8] sm:$0xff]  ;;  %v3815_v35 = vld [vmem:[%s4233_s26 + $0x10] sm:$0xff]  ;;  %v3824_v36 = vld [vmem:[%s4233_s26 + $0x18] sm:$0xff]  ;;  %s4235_s26 = sld [smem:[#allocation22_spill]] }
  0xb1   :  { %v3831_v37 = vld [vmem:[%s4234_s27] sm:$0xff]  ;;  %v3838_v47 = vld [vmem:[%s4234_s27 + $0x8] sm:$0xff]  ;;  %v3843_v48 = vld [vmem:[%s4234_s27 + $0x10] sm:$0xff] }
  0xb2   :  { %v3853_v49 = vld [vmem:[%s4234_s27 + $0x18] sm:$0xff]  ;;  %v3859_v50 = vld [vmem:[%s4234_s27 + $0x20] sm:$0xff]  ;;  %v3868_v51 = vld [vmem:[%s4234_s27 + $0x28] sm:$0xff]  ;;  %s4236_s27 = sld [smem:[#allocation24_spill]] }
  0xb3   :  { %3104 = vmatpush3.bf16.msra.mxu0 %v3101_v6  ;;  %v596_v22 = vld [vmem:[%s4196_s11] sm:$0xff] }
  0xb4   :  { %3114 = vmatprep.subr.bf16.mxu0 %v3777_v13 }
  0xb6   :  { %2782 = vmatmul.mubr.msk.f32.vlgmr.msra.gmra.mrb[0].mxu0 %vm198_vm0, %v3746_v7  ;;  %v3875_v52 = vld [vmem:[%s4235_s26] sm:$0xff]  ;;  %v3880_v53 = vld [vmem:[%s4235_s26 + $0x8] sm:$0xff]  ;;  %v3885_v54 = vld [vmem:[%s4235_s26 + $0x10] sm:$0xff] }
  0xb7   :  { %2784 = vmatprep.mubr.msk.f32.mxu0 %vm198_vm0, %v3751_v8  ;;  %3116 = vmatpush3.bf16.msra.mxu0 %v3777_v13  ;;  %v3896_v55 = vld [vmem:[%s4235_s26 + $0x18] sm:$0xff] }
  0xb8   :  { %3118 = vmatprep.subr.bf16.mxu0 %v3117_v23  ;;  %v3917_v21 = vld [vmem:[%s4236_s27] sm:$0xff] }
  0xba   :  { %2785 = vmatmul.mubr.msk.f32.gmra.mrb[2].mxu0 %vm198_vm0, %v3760_v9 }
  0xbb   :  { %3120 = vmatpush3.bf16.msra.mxu0 %v3117_v23 }
  0xbc   :  { %3142 = vmatprep.subr.bf16.mxu0 %v3097_v3 }
 0x189   :  { %v2783_v14 = vpop.f32.mrb[0].mxu0 }
 0x18a   :  { %v277_v15 = vpop.f32.mrb[1].mxu0 }
 0x18b   :  { %v3105_v16 = vpack.c.bf16 %v2783_v14, %v277_v15 }
 0x18d   :  { %v2786_v17 = vpop.f32.mrb[2].mxu0  ;;  %3106 = vmatprep.subr.bf16.mxu1 %v3105_v16 }
 0x18e   :  { %v287_v18 = vpop.f32.mrb[3].mxu0  ;;  %3108 = vmatpush3.bf16.msra.mxu1 %v3105_v16 }
 0x18f   :  { %v3109_v19 = vpack.c.bf16 %v2786_v17, %v287_v18 }
 0x191   :  { %3110 = vmatprep.subr.bf16.mxu1 %v3109_v19 }
 0x192   :  { %3112 = vmatpush3.bf16.msra.mxu1 %v3109_v19 }
 0x195   :  { %2796 = vmatmul.mubr.msk.f32.vlgmr.msra.gmra.mrb[0].mxu1 %vm198_vm0, %v3784_v20 }
 0x196   :  { %2813 = vmatprep.mubr.msk.f32.mxu1 %vm482_vm3, %v3875_v52 }
 0x268   :  { %v2797_v25 = vpop.f32.mrb[0].mxu1 }
 0x269   :  { %v381_v26 = vadd.f32 %v2797_v25, %v3794_v24  ;;  %v375_v27 = vpop.f32.mrb[1].mxu1 }
 0x26a   :  { %v376_v28 = vadd.f32 %v3794_v24, %v375_v27  ;;  %v599_v27 = vld [vmem:[%s4196_s11 + $0x18] sm:$0xff] }
 0x26b   :  { %v387_v29 = vmul.f32 0.1, %v381_v26  ;;  %vm385_vm1 = vcmp.gt.f32.partialorder %v381_v26, 0.0 }
 0x26c   :  { %vm384_vm2 = vcmp.gt.f32.partialorder %v376_v28, 0.0  ;;  %v386_v30 = vmul.f32 0.1, %v376_v28 }
 0x26d   :  { %v389_v33 = vsel %vm385_vm1, %v381_v26, %v387_v29 }
 0x26e   :  { %v388_v31 = vsel %vm384_vm2, %v376_v28, %v386_v30  ;;  %v3933_v30 = vld [vmem:[#allocation4] ss:$0 sm:$0xff] }
 0x26f   :  { %2806 = vmatprep.mubr.msk.f32.mxu0 %vm198_vm0, %v388_v31  ;;  %v592_v31 = vld [vmem:[%s4195_s10] sm:$0xff] }
 0x270   :  { %2807 = vmatmul.mubr.msk.f32.vlgmr.msra.gmra.mrb[4].mxu0 %vm198_vm0, %v389_v33  ;;  %v593_v33 = vld [vmem:[%s4195_s10 + $0x8] sm:$0xff] }
 0x271   :  { %3144 = vmatpush3.bf16.msra.mxu0 %v3097_v3  ;;  %2855 = vmatprep.mubr.msk.f32.mxu0 %vm198_vm0, %v3801_v32 }
 0x272   :  { %3146 = vmatprep.subr.bf16.mxu0 %v3101_v6 }
 0x275   :  { %3148 = vmatpush3.bf16.msra.mxu0 %v3101_v6 }
 0x278   :  { %2856 = vmatmul.mubr.msk.f32.vlgmr.msra.gmra.mrb[6].mxu0 %vm198_vm0, %v3810_v34 }
 0x279   :  { %2858 = vmatprep.mubr.msk.f32.mxu0 %vm198_vm0, %v3815_v35 }
 0x27c   :  { %2859 = vmatmul.mubr.msk.f32.gmra.mrb[8].mxu0 %vm198_vm0, %v3824_v36 }
 0x27d   :  { %2869 = vmatprep.mubr.msk.f32.mxu0 %vm198_vm0, %v3831_v37 }
 0x343   :  { %v2808_v38 = vpop.f32.mrb[4].mxu0 }
 0x344   :  { %v466_v39 = vpop.f32.mrb[5].mxu0 }
 0x345   :  { %v3121_v40 = vpack.c.bf16 %v2808_v38, %v466_v39 }
 0x347   :  { %3122 = vmatprep.subr.bf16.mxu1 %v3121_v40 }
 0x348   :  { %3124 = vmatpush3.bf16.msra.mxu1 %v3121_v40  ;;  %v3133_v40 = vpack.c.bf16 %v593_v33, %v592_v31 }
 0x34b   :  { %v2857_v41 = vpop.f32.mrb[6].mxu0  ;;  %2814 = vmatmul.mubr.msk.f32.vlgmr.msra.gmra.mrb[2].mxu1 %vm482_vm3, %v3880_v53 }
 0x34c   :  { %v875_v42 = vpop.f32.mrb[7].mxu0  ;;  %2816 = vmatprep.mubr.msk.f32.mxu1 %vm482_vm3, %v3885_v54 }
 0x34d   :  { %v3149_v43 = vpack.c.bf16 %v2857_v41, %v875_v42  ;;  %v594_v42 = vld [vmem:[%s4195_s10 + $0x10] sm:$0xff] }
 0x34f   :  { %v2860_v44 = vpop.f32.mrb[8].mxu0  ;;  %3150 = vmatprep.subr.bf16.mxu0 %v3149_v43  ;;  %2817 = vmatmul.mubr.msk.f32.gmra.mrb[4].mxu1 %vm482_vm3, %v3896_v55 }
 0x350   :  { %v885_v45 = vpop.f32.mrb[9].mxu0  ;;  %3152 = vmatpush3.bf16.msra.mxu0 %v3149_v43  ;;  %2827 = vmatprep.mubr.msk.f32.mxu1 %vm198_vm0, %v3739_v5  ;;  %v595_v43 = vld [vmem:[%s4195_s10 + $0x18] sm:$0xff] }
 0x351   :  { %v3153_v46 = vpack.c.bf16 %v2860_v44, %v885_v45 }
 0x353   :  { %3154 = vmatprep.subr.bf16.mxu0 %v3153_v46 }
 0x354   :  { %3156 = vmatpush3.bf16.msra.mxu0 %v3153_v46  ;;  %v3137_v46 = vpack.c.bf16 %v595_v43, %v594_v42 }
 0x355   :  { %3158 = vmatprep.subr.bf16.mxu0 %v3777_v13 }
 0x357   :  { %2870 = vmatmul.mubr.msk.f32.vlgmr.msra.gmra.mrb[10].mxu0 %vm198_vm0, %v3838_v47 }
 0x358   :  { %2872 = vmatprep.mubr.msk.f32.mxu0 %vm198_vm0, %v3843_v48  ;;  %3160 = vmatpush3.bf16.msra.mxu0 %v3777_v13 }
 0x359   :  { %3162 = vmatprep.subr.bf16.mxu0 %v3117_v23 }
 0x35b   :  { %2873 = vmatmul.mubr.msk.f32.gmra.mrb[12].mxu0 %vm198_vm0, %v3853_v49 }
 0x35c   :  { %2875 = vmatprep.mubr.msk.f32.mxu0 %vm198_vm0, %v3859_v50  ;;  %3164 = vmatpush3.bf16.msra.mxu0 %v3117_v23  ;;  %v597_v23 = vld [vmem:[%s4196_s11 + $0x8] sm:$0xff] }
 0x35d   :  { %v3125_v26 = vpack.c.bf16 %v597_v23, %v596_v22 }
 0x35f   :  { %2876 = vmatmul.mubr.msk.f32.gmra.mrb[14].mxu0 %vm198_vm0, %v3868_v51  ;;  %3126 = vmatprep.subr.bf16.mxu1 %v3125_v26 }
 0x360   :  { %3128 = vmatpush3.bf16.msra.mxu1 %v3125_v26 }
 0x41e   :  { %v2815_v25 = vpop.f32.mrb[2].mxu1 }
 0x41f   :  { %v561_v28 = vpop.f32.mrb[3].mxu1  ;;  %v567_v44 = vadd.f32 %v2815_v25, %v3933_v30 }
 0x420   :  { %v562_v41 = vadd.f32 %v3933_v30, %v561_v28 }
 0x421   :  { %vm581_vm12 = vcmp.gt.f32.partialorder %v567_v44, 0.0 }
 0x422   :  { %v2818_v38 = vpop.f32.mrb[4].mxu1  ;;  %v584_v45 = vmul.f32 0.1, %v562_v41  ;;  %vm580_vm11 = vcmp.gt.f32.partialorder %v562_v41, 0.0 }
 0x423   :  { %v571_v39 = vpop.f32.mrb[5].mxu1 }
 0x42a   :  { %v2871_v56 = vpop.f32.mrb[10].mxu0 }
 0x42b   :  { %v984_v57 = vadd.f32 %v2871_v56, %v3794_v24  ;;  %v978_v58 = vpop.f32.mrb[11].mxu0  ;;  %v572_v56 = vadd.f32 %v3933_v30, %v571_v39 }
 0x42c   :  { %v979_v59 = vadd.f32 %v3794_v24, %v978_v58  ;;  %v577_v58 = vadd.f32 %v2818_v38, %v3933_v30 }
 0x42d   :  { %v1014_v60 = vmul.f32 0.1, %v984_v57  ;;  %vm1008_vm4 = vcmp.gt.f32.partialorder %v984_v57, 0.0  ;;  %vm582_vm13 = vcmp.gt.f32.partialorder %v572_v56, 0.0 }
 0x42e   :  { %vm1007_vm5 = vcmp.gt.f32.partialorder %v979_v59, 0.0  ;;  %v1013_v61 = vmul.f32 0.1, %v979_v59  ;;  %v2874_v62 = vpop.f32.mrb[12].mxu0  ;;  %vm583_vm14 = vcmp.gt.f32.partialorder %v577_v58, 0.0 }
 0x42f   :  { %v994_v63 = vadd.f32 %v2874_v62, %v3794_v24  ;;  %v988_v0 = vpop.f32.mrb[13].mxu0  ;;  %v1020_v3 = vsel %vm1008_vm4, %v984_v57, %v1014_v60  ;;  %v585_v57 = vmul.f32 0.1, %v567_v44  ;;  %v588_v60 = vsel %vm580_vm11, %v562_v41, %v584_v45 }
 0x430   :  { %v989_v1 = vadd.f32 %v3794_v24, %v988_v0  ;;  %v1019_v2 = vsel %vm1007_vm5, %v979_v59, %v1013_v61  ;;  %v586_v59 = vmul.f32 0.1, %v572_v56  ;;  %v587_v62 = vmul.f32 0.1, %v577_v58 }
 0x431   :  { %v1016_v4 = vmul.f32 0.1, %v994_v63  ;;  %2886 = vmatprep.mubr.msk.f32.mxu0 %vm198_vm0, %v1019_v2  ;;  %vm1010_vm6 = vcmp.gt.f32.partialorder %v994_v63, 0.0  ;;  %v589_v61 = vsel %vm581_vm12, %v567_v44, %v585_v57 }
 0x432   :  { %vm1009_vm7 = vcmp.gt.f32.partialorder %v989_v1, 0.0  ;;  %v1015_v5 = vmul.f32 0.1, %v989_v1  ;;  %v2877_v6 = vpop.f32.mrb[14].mxu0  ;;  %2887 = vmatmul.mubr.msk.f32.vlgmr.msra.gmra.mrb[16].mxu0 %vm198_vm0, %v1020_v3 }
 0x433   :  { %v1004_v11 = vadd.f32 %v2877_v6, %v3794_v24  ;;  %v998_v12 = vpop.f32.mrb[15].mxu0  ;;  %v1022_v16 = vsel %vm1010_vm6, %v994_v63, %v1016_v4  ;;  %v1438_v6 = vld [vmem:[%s4198_s13] sm:$0xff] }
 0x434   :  { %v999_v13 = vadd.f32 %v3794_v24, %v998_v12  ;;  %v1021_v14 = vsel %vm1009_vm7, %v989_v1, %v1015_v5  ;;  %v598_v24 = vld [vmem:[%s4196_s11 + $0x10] sm:$0xff]  ;;  %v3986_v5 = vld [vmem:[%s4236_s27 + $0x18] sm:$0xff] }
 0x435   :  { %v1018_v15 = vmul.f32 0.1, %v1004_v11  ;;  %2889 = vmatprep.mubr.msk.f32.mxu0 %vm198_vm0, %v1021_v14  ;;  %vm1012_vm8 = vcmp.gt.f32.partialorder %v1004_v11, 0.0  ;;  %v3129_v29 = vpack.c.bf16 %v599_v27, %v598_v24  ;;  %v1441_v14 = vld [vmem:[%s4198_s13 + $0x18] sm:$0xff] }
 0x436   :  { %vm1011_vm9 = vcmp.gt.f32.partialorder %v999_v13, 0.0  ;;  %v1017_v17 = vmul.f32 0.1, %v999_v13  ;;  %2890 = vmatmul.mubr.msk.f32.gmra.mrb[18].mxu0 %vm198_vm0, %v1022_v16 }
 0x437   :  { %v1024_v19 = vsel %vm1012_vm8, %v1004_v11, %v1018_v15  ;;  %3130 = vmatprep.subr.bf16.mxu1 %v3129_v29  ;;  %v1439_v11 = vld [vmem:[%s4198_s13 + $0x8] sm:$0xff]  ;;  %v1627_v15 = vld [vmem:[%s4200_s15] sm:$0xff] }
 0x438   :  { %v1023_v18 = vsel %vm1011_vm9, %v999_v13, %v1017_v17  ;;  %3132 = vmatpush3.bf16.msra.mxu1 %v3129_v29  ;;  %v3193_v12 = vpack.c.bf16 %v1439_v11, %v1438_v6  ;;  %v1440_v13 = vld [vmem:[%s4198_s13 + $0x10] sm:$0xff]  ;;  %v1628_v17 = vld [vmem:[%s4200_s15 + $0x8] sm:$0xff] }
 0x439   :  { %2892 = vmatprep.mubr.msk.f32.mxu0 %vm198_vm0, %v1023_v18  ;;  %3134 = vmatprep.subr.bf16.mxu1 %v3133_v40  ;;  %v3197_v16 = vpack.c.bf16 %v1441_v14, %v1440_v13  ;;  %v3209_v18 = vpack.c.bf16 %v1628_v17, %v1627_v15 }
 0x43a   :  { %2893 = vmatmul.mubr.msk.f32.gmra.mrb[20].mxu0 %vm198_vm0, %v1024_v19  ;;  %v4008_v19 = vld [vmem:[#allocation6] ss:$0 sm:$0xff] }
 0x43b   :  { %2907 = vmatprep.mubr.msk.f32.mxu0 %vm1138_vm10, %v3917_v21  ;;  %2828 = vmatmul.mubr.msk.f32.vlgmr.msra.gmra.mrb[6].mxu1 %vm198_vm0, %v3746_v7  ;;  %v590_v7 = vsel %vm582_vm13, %v572_v56, %v586_v59  ;;  %vm2274_vm13 = vcmask 523264  }
 0x43c   :  { %3136 = vmatpush3.bf16.msra.mxu1 %v3133_v40  ;;  %2830 = vmatprep.mubr.msk.f32.mxu1 %vm198_vm0, %v3751_v8  ;;  %v591_v8 = vsel %vm583_vm14, %v577_v58, %v587_v62 }
 0x43d   :  { %3138 = vmatprep.subr.bf16.mxu1 %v3137_v46 }
 0x43f   :  { %2831 = vmatmul.mubr.msk.f32.gmra.mrb[8].mxu1 %vm198_vm0, %v3760_v9 }
 0x440   :  { %3140 = vmatpush3.bf16.msra.mxu1 %v3137_v46  ;;  %2841 = vmatprep.mubr.msk.f32.mxu1 %vm198_vm0, %v588_v60 }
 0x441   :  { %3178 = vmatprep.subr.bf16.mxu1 %v3125_v26 }
 0x443   :  { %2842 = vmatmul.mubr.msk.f32.vlgmr.msra.gmra.mrb[6].mxu1 %vm198_vm0, %v589_v61 }
 0x444   :  { %2844 = vmatprep.mubr.msk.f32.mxu1 %vm198_vm0, %v590_v7  ;;  %3180 = vmatpush3.bf16.msra.mxu1 %v3125_v26 }
 0x445   :  { %3182 = vmatprep.subr.bf16.mxu1 %v3129_v29 }
 0x447   :  { %2845 = vmatmul.mubr.msk.f32.gmra.mrb[8].mxu1 %vm198_vm0, %v591_v8  ;;  %v1630_v8 = vld [vmem:[%s4200_s15 + $0x18] sm:$0xff] }
 0x448   :  { %3184 = vmatpush3.bf16.msra.mxu1 %v3129_v29  ;;  %2921 = vmatprep.mubr.msk.f32.mxu1 %vm198_vm0, %v3801_v32 }
 0x449   :  { %3186 = vmatprep.subr.bf16.mxu1 %v3133_v40 }
 0x44b   :  { %2922 = vmatmul.mubr.msk.f32.vlgmr.msra.gmra.mrb[10].mxu1 %vm198_vm0, %v3810_v34 }
 0x44c   :  { %3188 = vmatpush3.bf16.msra.mxu1 %v3133_v40  ;;  %2924 = vmatprep.mubr.msk.f32.mxu1 %vm198_vm0, %v3815_v35  ;;  %v3972_v35 = vld [vmem:[%s4236_s27 + $0x8] sm:$0xff] }
 0x44d   :  { %3190 = vmatprep.subr.bf16.mxu1 %v3137_v46 }
 0x44f   :  { %2925 = vmatmul.mubr.msk.f32.gmra.mrb[12].mxu1 %vm198_vm0, %v3824_v36  ;;  %v3977_v36 = vld [vmem:[%s4236_s27 + $0x10] sm:$0xff] }
 0x450   :  { %3192 = vmatpush3.bf16.msra.mxu1 %v3137_v46 }
 0x451   :  { %3210 = vmatprep.subr.bf16.mxu1 %v3209_v18 }
 0x505   :  { %v2888_v9 = vpop.f32.mrb[16].mxu0 }
 0x506   :  { %v1109_v63 = vpop.f32.mrb[17].mxu0 }
 0x507   :  { %v3165_v0 = vpack.c.bf16 %v2888_v9, %v1109_v63 }
 0x509   :  { %v2891_v1 = vpop.f32.mrb[18].mxu0  ;;  %3166 = vmatprep.subr.bf16.mxu0 %v3165_v0 }
 0x50a   :  { %v1119_v2 = vpop.f32.mrb[19].mxu0  ;;  %3168 = vmatpush3.bf16.msra.mxu0 %v3165_v0 }
 0x50b   :  { %v3169_v32 = vpack.c.bf16 %v2891_v1, %v1119_v2 }
 0x50d   :  { %v2894_v3 = vpop.f32.mrb[20].mxu0  ;;  %3170 = vmatprep.subr.bf16.mxu0 %v3169_v32 }
 0x50e   :  { %v1129_v34 = vpop.f32.mrb[21].mxu0  ;;  %3172 = vmatpush3.bf16.msra.mxu0 %v3169_v32 }
 0x50f   :  { %v3173_v4 = vpack.c.bf16 %v2894_v3, %v1129_v34 }
 0x511   :  { %3174 = vmatprep.subr.bf16.mxu0 %v3173_v4 }
 0x512   :  { %3176 = vmatpush3.bf16.msra.mxu0 %v3173_v4 }
 0x513   :  { %3194 = vmatprep.subr.bf16.mxu0 %v3193_v12 }
 0x515   :  { %2908 = vmatmul.mubr.msk.f32.vlgmr.msra.gmra.mrb[22].mxu0 %vm1138_vm10, %v3972_v35 }
 0x516   :  { %2910 = vmatprep.mubr.msk.f32.mxu0 %vm1138_vm10, %v3977_v36  ;;  %3196 = vmatpush3.bf16.msra.mxu0 %v3193_v12  ;;  %v2843_v22 = vpop.f32.mrb[6].mxu1 }
 0x517   :  { %3198 = vmatprep.subr.bf16.mxu0 %v3197_v16  ;;  %v790_v23 = vadd.f32 %v2843_v22, %v4008_v19  ;;  %v763_v24 = vpop.f32.mrb[7].mxu1 }
 0x518   :  { %v789_v25 = vadd.f32 %v4008_v19, %v763_v24 }
 0x519   :  { %2911 = vmatmul.mubr.msk.f32.gmra.mrb[24].mxu0 %vm1138_vm10, %v3986_v5  ;;  %v794_v26 = vmax.f32 %v790_v23, 0.0 }
 0x51a   :  { %3200 = vmatpush3.bf16.msra.mxu0 %v3197_v16  ;;  %v793_v27 = vmax.f32 %v789_v25, 0.0  ;;  %v2846_v28 = vpop.f32.mrb[8].mxu1 }
 0x51b   :  { %v792_v29 = vadd.f32 %v2846_v28, %v4008_v19  ;;  %v773_v31 = vpop.f32.mrb[9].mxu1 }
 0x51c   :  { %v791_v33 = vadd.f32 %v4008_v19, %v773_v31  ;;  %2949 = vmatprep.mubr.msk.f32.mxu0 %vm198_vm0, %v793_v27 }
 0x51d   :  { %v796_v38 = vmax.f32 %v792_v29, 0.0  ;;  %2950 = vmatmul.mubr.msk.f32.vlgmr.msra.gmra.mrb[26].mxu0 %vm198_vm0, %v794_v26 }
 0x51e   :  { %v795_v39 = vmax.f32 %v791_v33, 0.0 }
 0x520   :  { %2952 = vmatprep.mubr.msk.f32.mxu0 %vm198_vm0, %v795_v39 }
 0x521   :  { %2953 = vmatmul.mubr.msk.f32.gmra.mrb[28].mxu0 %vm198_vm0, %v796_v38 }
 0x522   :  { %2963 = vmatprep.mubr.msk.f32.mxu0 %vm198_vm0, %v3767_v10 }
 0x5e8   :  { %v2909_v40 = vpop.f32.mrb[22].mxu0 }
 0x5e9   :  { %v1223_v41 = vadd.f32 %v2909_v40, %v3933_v30  ;;  %v1217_v42 = vpop.f32.mrb[23].mxu0 }
 0x5ea   :  { %v1218_v43 = vadd.f32 %v3933_v30, %v1217_v42 }
 0x5eb   :  { %v1241_v44 = vmul.f32 0.1, %v1223_v41  ;;  %vm1237_vm15 = vcmp.gt.f32.partialorder %v1223_v41, 0.0 }
 0x5ec   :  { %vm1236_vm1 = vcmp.gt.f32.partialorder %v1218_v43, 0.0  ;;  %v1240_v45 = vmul.f32 0.1, %v1218_v43  ;;  %v2912_v46 = vpop.f32.mrb[24].mxu0 }
 0x5ed   :  { %v1233_v56 = vadd.f32 %v2912_v46, %v3933_v30  ;;  %v1227_v57 = vpop.f32.mrb[25].mxu0  ;;  %v1245_v60 = vsel %vm1237_vm15, %v1223_v41, %v1241_v44  ;;  %v2141_v44 = vld [vmem:[%s4204_s19 + $0x18] sm:$0xff] }
 0x5ee   :  { %v1228_v58 = vadd.f32 %v3933_v30, %v1227_v57  ;;  %v1244_v59 = vsel %vm1236_vm1, %v1218_v43, %v1240_v45  ;;  %v1629_v30 = vld [vmem:[%s4200_s15 + $0x10] sm:$0xff]  ;;  %v2555_v57 = vld [vmem:[#allocation9] ss:$0 sm:$0xff] }
 0x5ef   :  { %v1243_v61 = vmul.f32 0.1, %v1233_v56  ;;  %2935 = vmatprep.mubr.msk.f32.mxu1 %vm198_vm0, %v1244_v59  ;;  %vm1239_vm2 = vcmp.gt.f32.partialorder %v1233_v56, 0.0  ;;  %v3213_v9 = vpack.c.bf16 %v1630_v8, %v1629_v30  ;;  %v2140_v43 = vld [vmem:[%s4204_s19 + $0x10] sm:$0xff] }
 0x5f0   :  { %vm1238_vm4 = vcmp.gt.f32.partialorder %v1228_v58, 0.0  ;;  %v1242_v10 = vmul.f32 0.1, %v1228_v58  ;;  %2936 = vmatmul.mubr.msk.f32.vlgmr.msra.gmra.mrb[10].mxu1 %vm198_vm0, %v1245_v60  ;;  %v2951_v63 = vpop.f32.mrb[26].mxu0 }
 0x5f1   :  { %3212 = vmatpush3.bf16.msra.mxu1 %v3209_v18  ;;  %v1247_v7 = vsel %vm1239_vm2, %v1233_v56, %v1243_v61  ;;  %v1520_v0 = vpop.f32.mrb[27].mxu0  ;;  %v2548_v18 = vld [vmem:[#allocation7] ss:$0 sm:$0xff]  ;;  %v3253_v56 = vpack.c.bf16 %v2141_v44, %v2140_v43  ;;  %v2260_v43 = vld [vmem:[%s4206_s21 + $0x10] sm:$0xff]  ;;  %v2261_v44 = vld [vmem:[%s4206_s21 + $0x18] sm:$0xff] }
 0x5f2   :  { %v1246_v62 = vsel %vm1238_vm4, %v1228_v58, %v1242_v10  ;;  %3214 = vmatprep.subr.bf16.mxu1 %v3213_v9  ;;  %v3201_v1 = vpack.c.bf16 %v2951_v63, %v1520_v0 }
 0x5f3   :  { %2938 = vmatprep.mubr.msk.f32.mxu1 %vm198_vm0, %v1246_v62 }
 0x5f4   :  { %2939 = vmatmul.mubr.msk.f32.gmra.mrb[12].mxu1 %vm198_vm0, %v1247_v7  ;;  %v2954_v2 = vpop.f32.mrb[28].mxu0  ;;  %3202 = vmatprep.subr.bf16.mxu0 %v3201_v1 }
 0x5f5   :  { %3216 = vmatpush3.bf16.msra.mxu1 %v3213_v9  ;;  %v1530_v32 = vpop.f32.mrb[29].mxu0  ;;  %3204 = vmatpush3.bf16.msra.mxu0 %v3201_v1 }
 0x5f6   :  { %v3205_v3 = vpack.c.bf16 %v2954_v2, %v1530_v32 }
 0x5f8   :  { %3206 = vmatprep.subr.bf16.mxu0 %v3205_v3 }
 0x5f9   :  { %3208 = vmatpush3.bf16.msra.mxu0 %v3205_v3 }
 0x5fc   :  { %2964 = vmatmul.mubr.msk.f32.vlgmr.msra.gmra.mrb[30].mxu0 %vm198_vm0, %v3784_v20 }
 0x5fd   :  { %2988 = vmatprep.mubr.msk.f32.mxu0 %vm198_vm0, %v3831_v37 }
 0x6c3   :  { %v2937_v34 = vpop.f32.mrb[10].mxu1 }
 0x6c4   :  { %v1431_v4 = vadd.f32 %v2937_v34, %v4008_v19  ;;  %v1411_v6 = vpop.f32.mrb[11].mxu1 }
 0x6c5   :  { %v1430_v11 = vadd.f32 %v4008_v19, %v1411_v6 }
 0x6c6   :  { %v1435_v14 = vmax.f32 %v1431_v4, 0.0 }
 0x6c7   :  { %v1434_v12 = vmax.f32 %v1430_v11, 0.0  ;;  %v2940_v13 = vpop.f32.mrb[12].mxu1 }
 0x6c8   :  { %v1433_v15 = vadd.f32 %v2940_v13, %v4008_v19  ;;  %v1421_v16 = vpop.f32.mrb[13].mxu1 }
 0x6c9   :  { %v1432_v17 = vadd.f32 %v4008_v19, %v1421_v16  ;;  %2974 = vmatprep.mubr.msk.f32.mxu1 %vm198_vm0, %v1434_v12 }
 0x6ca   :  { %2975 = vmatmul.mubr.msk.f32.vlgmr.msra.gmra.mrb[14].mxu1 %vm198_vm0, %v1435_v14  ;;  %v1437_v37 = vmax.f32 %v1433_v15, 0.0 }
 0x6cb   :  { %v1436_v20 = vmax.f32 %v1432_v17, 0.0 }
 0x6cd   :  { %2977 = vmatprep.mubr.msk.f32.mxu1 %vm198_vm0, %v1436_v20 }
 0x6ce   :  { %2978 = vmatmul.mubr.msk.f32.gmra.mrb[16].mxu1 %vm198_vm0, %v1437_v37  ;;  %v2266_v37 = vld [vmem:[%s4207_s22] sm:$0xff] }
 0x6cf   :  { %3001 = vmatprep.mubr.msk.f32.mxu1 %vm482_vm3, %v3875_v52  ;;  %v2965_v22 = vpop.f32.mrb[30].mxu0 }
 0x6d0   :  { %v1618_v23 = vadd.f32 %v2965_v22, %v2548_v18  ;;  %v1612_v24 = vpop.f32.mrb[31].mxu0 }
 0x6d1   :  { %v1613_v25 = vadd.f32 %v2548_v18, %v1612_v24  ;;  %v2267_v18 = vld [vmem:[%s4207_s22 + $0x8] sm:$0xff] }
 0x6d2   :  { %vm1622_vm5 = vcmp.gt.f32.partialorder %v1618_v23, 0.0  ;;  %v1624_v19 = vmul.f32 0.1, %v1618_v23  ;;  %v3257_v22 = vpack.c.bf16 %v2267_v18, %v2266_v37  ;;  %v2271_v24 = vld [vmem:[%s4207_s22 + $0x28] sm:$0xff] }
 0x6d3   :  { %vm1621_vm6 = vcmp.gt.f32.partialorder %v1613_v25, 0.0  ;;  %v1623_v26 = vmul.f32 0.1, %v1613_v25 }
 0x6d4   :  { %v1626_v27 = vsel %vm1622_vm5, %v1618_v23, %v1624_v19  ;;  %v2268_v23 = vld [vmem:[%s4207_s22 + $0x10] sm:$0xff] }
 0x6d5   :  { %v1625_v28 = vsel %vm1621_vm6, %v1613_v25, %v1623_v26 }
 0x6d6   :  { %v3225_v29 = vpack.c.bf16 %v1626_v27, %v1625_v28 }
 0x6d8   :  { %3226 = vmatprep.subr.bf16.mxu1 %v3225_v29 }
 0x6d9   :  { %3228 = vmatpush3.bf16.msra.mxu1 %v3225_v29 }
 0x6dc   :  { %3002 = vmatmul.mubr.msk.f32.vlgmr.msra.gmra.mrb[18].mxu1 %vm482_vm3, %v3880_v53  ;;  %v1933_v53 = vld [vmem:[%s4202_s17] sm:$0xff] }
 0x6dd   :  { %3004 = vmatprep.mubr.msk.f32.mxu1 %vm482_vm3, %v3885_v54 }
 0x6e0   :  { %3005 = vmatmul.mubr.msk.f32.gmra.mrb[20].mxu1 %vm482_vm3, %v3896_v55  ;;  %v2139_v55 = vld [vmem:[%s4204_s19 + $0x8] sm:$0xff] }
 0x6e1   :  { %3033 = vmatprep.mubr.msk.f32.mxu1 %vm1138_vm10, %v3917_v21 }
 0x79d   :  { %v2976_v52 = vpop.f32.mrb[14].mxu1 }
 0x79e   :  { %v1709_v31 = vpop.f32.mrb[15].mxu1 }
 0x79f   :  { %v3217_v33 = vpack.c.bf16 %v2976_v52, %v1709_v31 }
 0x7a1   :  { %v2979_v38 = vpop.f32.mrb[16].mxu1  ;;  %3218 = vmatprep.subr.bf16.mxu0 %v3217_v33 }
 0x7a2   :  { %v1719_v39 = vpop.f32.mrb[17].mxu1  ;;  %3220 = vmatpush3.bf16.msra.mxu0 %v3217_v33 }
 0x7a3   :  { %v3221_v40 = vpack.c.bf16 %v2979_v38, %v1719_v39  ;;  %v2272_v38 = vld [vmem:[%s4207_s22 + $0x30] sm:$0xff]  ;;  %v2273_v39 = vld [vmem:[%s4207_s22 + $0x38] sm:$0xff] }
 0x7a5   :  { %3222 = vmatprep.subr.bf16.mxu0 %v3221_v40 }
 0x7a6   :  { %3224 = vmatpush3.bf16.msra.mxu0 %v3221_v40  ;;  %v3269_v40 = vpack.c.bf16 %v2273_v39, %v2272_v38 }
 0x7a9   :  { %2989 = vmatmul.mubr.msk.f32.vlgmr.msra.gmra.mrb[32].mxu0 %vm198_vm0, %v3838_v47  ;;  %v1934_v47 = vld [vmem:[%s4202_s17 + $0x8] sm:$0xff] }
 0x7aa   :  { %2991 = vmatprep.mubr.msk.f32.mxu0 %vm198_vm0, %v3843_v48  ;;  %v1935_v48 = vld [vmem:[%s4202_s17 + $0x10] sm:$0xff]  ;;  %v3229_v54 = vpack.c.bf16 %v1934_v47, %v1933_v53  ;;  %v2258_v53 = vld [vmem:[%s4206_s21] sm:$0xff]  ;;  %v2259_v47 = vld [vmem:[%s4206_s21 + $0x8] sm:$0xff] }
 0x7ac   :  { %3230 = vmatprep.subr.bf16.mxu0 %v3229_v54 }
 0x7ad   :  { %2992 = vmatmul.mubr.msk.f32.gmra.mrb[34].mxu0 %vm198_vm0, %v3853_v49  ;;  %v1936_v49 = vld [vmem:[%s4202_s17 + $0x18] sm:$0xff] }
 0x7ae   :  { %2994 = vmatprep.mubr.msk.f32.mxu0 %vm198_vm0, %v3859_v50  ;;  %v3233_v50 = vpack.c.bf16 %v1936_v49, %v1935_v48  ;;  %3232 = vmatpush3.bf16.msra.mxu0 %v3229_v54  ;;  %v3273_v48 = vpack.c.bf16 %v2259_v47, %v2258_v53  ;;  %v2575_v54 = vld [vmem:[#allocation12] ss:$0 sm:$0xff]  ;;  %v2566_v49 = vld [vmem:[#allocation10] ss:$0 sm:$0xff] }
 0x7af   :  { %v3003_v21 = vpop.f32.mrb[18].mxu1 }
 0x7b0   :  { %v1914_v41 = vpop.f32.mrb[19].mxu1  ;;  %3234 = vmatprep.subr.bf16.mxu0 %v3233_v50 }
 0x7b1   :  { %2995 = vmatmul.mubr.msk.f32.gmra.mrb[36].mxu0 %vm198_vm0, %v3868_v51  ;;  %v2138_v51 = vld [vmem:[%s4204_s19] sm:$0xff] }
 0x7b2   :  { %3015 = vmatprep.mubr.msk.f32.mxu0 %vm198_vm0, %v1914_v41  ;;  %v3249_v42 = vpack.c.bf16 %v2139_v55, %v2138_v51  ;;  %3236 = vmatpush3.bf16.msra.mxu0 %v3233_v50 }
 0x7b3   :  { %v3006_v45 = vpop.f32.mrb[20].mxu1 }
 0x7b4   :  { %v1924_v46 = vpop.f32.mrb[21].mxu1  ;;  %3250 = vmatprep.subr.bf16.mxu0 %v3249_v42 }
 0x7b5   :  { %3016 = vmatmul.mubr.msk.f32.vlgmr.msra.gmra.mrb[38].mxu0 %vm198_vm0, %v3003_v21 }
 0x7b6   :  { %3018 = vmatprep.mubr.msk.f32.mxu0 %vm198_vm0, %v1924_v46  ;;  %3252 = vmatpush3.bf16.msra.mxu0 %v3249_v42 }
 0x7b7   :  { %3254 = vmatprep.subr.bf16.mxu0 %v3253_v56 }
 0x7b9   :  { %3019 = vmatmul.mubr.msk.f32.gmra.mrb[40].mxu0 %vm198_vm0, %v3006_v45 }
 0x7ba   :  { %3256 = vmatpush3.bf16.msra.mxu0 %v3253_v56 }
 0x87c   :  { %v2990_v58 = vpop.f32.mrb[32].mxu0 }
 0x87d   :  { %v1807_v59 = vadd.f32 %v2990_v58, %v2555_v57  ;;  %v1801_v60 = vpop.f32.mrb[33].mxu0 }
 0x87e   :  { %v1802_v61 = vadd.f32 %v2555_v57, %v1801_v60  ;;  %v3277_v60 = vpack.c.bf16 %v2261_v44, %v2260_v43 }
 0x87f   :  { %vm1831_vm3 = vcmp.gt.f32.partialorder %v1807_v59, 0.0  ;;  %v1837_v10 = vmul.f32 0.1, %v1807_v59 }
 0x880   :  { %vm1830_vm7 = vcmp.gt.f32.partialorder %v1802_v61, 0.0  ;;  %v1836_v62 = vmul.f32 0.1, %v1802_v61  ;;  %v2993_v7 = vpop.f32.mrb[34].mxu0 }
 0x881   :  { %v1817_v30 = vadd.f32 %v2993_v7, %v2555_v57  ;;  %v1811_v8 = vpop.f32.mrb[35].mxu0  ;;  %v1843_v9 = vsel %vm1831_vm3, %v1807_v59, %v1837_v10  ;;  %v2263_v7 = vld [vmem:[%s4206_s21 + $0x28] sm:$0xff] }
 0x882   :  { %v1812_v63 = vadd.f32 %v2555_v57, %v1811_v8  ;;  %v1842_v0 = vsel %vm1830_vm7, %v1802_v61, %v1836_v62  ;;  %v2262_v62 = vld [vmem:[%s4206_s21 + $0x20] sm:$0xff] }
 0x883   :  { %vm1833_vm8 = vcmp.gt.f32.partialorder %v1817_v30, 0.0  ;;  %v1839_v1 = vmul.f32 0.1, %v1817_v30  ;;  %v3237_v2 = vpack.c.bf16 %v1843_v9, %v1842_v0  ;;  %v3281_v0 = vpack.c.bf16 %v2263_v7, %v2262_v62 }
 0x884   :  { %vm1832_vm9 = vcmp.gt.f32.partialorder %v1812_v63, 0.0  ;;  %v1838_v32 = vmul.f32 0.1, %v1812_v63  ;;  %v2996_v3 = vpop.f32.mrb[36].mxu0 }
 0x885   :  { %v1827_v34 = vadd.f32 %v2996_v3, %v2555_v57  ;;  %v1821_v4 = vpop.f32.mrb[37].mxu0  ;;  %3238 = vmatprep.subr.bf16.mxu1 %v3237_v2  ;;  %v1845_v6 = vsel %vm1833_vm8, %v1817_v30, %v1839_v1  ;;  %v2264_v1 = vld [vmem:[%s4206_s21 + $0x30] sm:$0xff] }
 0x886   :  { %v1822_v11 = vadd.f32 %v2555_v57, %v1821_v4  ;;  %3240 = vmatpush3.bf16.msra.mxu1 %v3237_v2  ;;  %v1844_v12 = vsel %vm1832_vm9, %v1812_v63, %v1838_v32  ;;  %v2265_v2 = vld [vmem:[%s4206_s21 + $0x38] sm:$0xff] }
 0x887   :  { %vm1835_vm11 = vcmp.gt.f32.partialorder %v1827_v34, 0.0  ;;  %v1841_v13 = vmul.f32 0.1, %v1827_v34  ;;  %v3241_v14 = vpack.c.bf16 %v1845_v6, %v1844_v12  ;;  %v3285_v3 = vpack.c.bf16 %v2265_v2, %v2264_v1 }
 0x888   :  { %vm1834_vm12 = vcmp.gt.f32.partialorder %v1822_v11, 0.0  ;;  %v1840_v15 = vmul.f32 0.1, %v1822_v11  ;;  %v4118_v19 = vpop.f32.mrb[38].mxu0 }
 0x889   :  { %3242 = vmatprep.subr.bf16.mxu1 %v3241_v14  ;;  %v1847_v16 = vsel %vm1835_vm11, %v1827_v34, %v1841_v13  ;;  %v2022_v26 = vpop.f32.mrb[39].mxu0  ;;  %v2028_v34 = vadd.f32 %v4118_v19, %v2566_v49 }
 0x88a   :  { %3244 = vmatpush3.bf16.msra.mxu1 %v3241_v14  ;;  %v1846_v17 = vsel %vm1834_vm12, %v1822_v11, %v1840_v15  ;;  %v2023_v41 = vadd.f32 %v2566_v49, %v2022_v26 }
 0x88b   :  { %v3245_v20 = vpack.c.bf16 %v1847_v16, %v1846_v17  ;;  %v2046_v6 = vmul.f32 0.1, %v2028_v34  ;;  %vm2042_vm2 = vcmp.gt.f32.partialorder %v2028_v34, 0.0  ;;  %v2588_v17 = vld [vmem:[#allocation13] ss:$0 sm:$0xff] }
 0x88c   :  { %v4120_v27 = vpop.f32.mrb[40].mxu0  ;;  %v2045_v30 = vmul.f32 0.1, %v2023_v41  ;;  %vm2041_vm1 = vcmp.gt.f32.partialorder %v2023_v41, 0.0 }
 0x88d   :  { %3246 = vmatprep.subr.bf16.mxu1 %v3245_v20  ;;  %v4122_v28 = vpop.f32.mrb[41].mxu0  ;;  %v2038_v11 = vadd.f32 %v4120_v27, %v2566_v49  ;;  %v2050_v13 = vsel %vm2042_vm2, %v2028_v34, %v2046_v6 }
 0x88e   :  { %3248 = vmatpush3.bf16.msra.mxu1 %v3245_v20  ;;  %v2049_v32 = vsel %vm2041_vm1, %v2023_v41, %v2045_v30  ;;  %v2033_v4 = vadd.f32 %v2566_v49, %v4122_v28 }
 0x88f   :  { %3258 = vmatprep.subr.bf16.mxu1 %v3257_v22  ;;  %v2048_v14 = vmul.f32 0.1, %v2038_v11  ;;  %vm2044_vm5 = vcmp.gt.f32.partialorder %v2038_v11, 0.0 }
 0x890   :  { %v2047_v12 = vmul.f32 0.1, %v2033_v4  ;;  %vm2043_vm4 = vcmp.gt.f32.partialorder %v2033_v4, 0.0 }
 0x891   :  { %3034 = vmatmul.mubr.msk.f32.vlgmr.msra.gmra.mrb[22].mxu1 %vm1138_vm10, %v3972_v35  ;;  %v2269_v35 = vld [vmem:[%s4207_s22 + $0x18] sm:$0xff]  ;;  %v2052_v16 = vsel %vm2044_vm5, %v2038_v11, %v2048_v14 }
 0x892   :  { %3036 = vmatprep.mubr.msk.f32.mxu1 %vm1138_vm10, %v3977_v36  ;;  %v3261_v36 = vpack.c.bf16 %v2269_v35, %v2268_v23  ;;  %3260 = vmatpush3.bf16.msra.mxu1 %v3257_v22  ;;  %v2051_v15 = vsel %vm2043_vm4, %v2033_v4, %v2047_v12 }
 0x894   :  { %3262 = vmatprep.subr.bf16.mxu1 %v3261_v36 }
 0x895   :  { %3037 = vmatmul.mubr.msk.f32.gmra.mrb[24].mxu1 %vm1138_vm10, %v3986_v5  ;;  %v2270_v5 = vld [vmem:[%s4207_s22 + $0x20] sm:$0xff] }
 0x896   :  { %v3265_v25 = vpack.c.bf16 %v2271_v24, %v2270_v5  ;;  %3264 = vmatpush3.bf16.msra.mxu1 %v3261_v36 }
 0x898   :  { %3266 = vmatprep.subr.bf16.mxu1 %v3265_v25 }
 0x89a   :  { %3268 = vmatpush3.bf16.msra.mxu1 %v3265_v25 }
 0x89b   :  { %3270 = vmatprep.subr.bf16.mxu1 %v3269_v40 }
 0x89e   :  { %3272 = vmatpush3.bf16.msra.mxu1 %v3269_v40 }
 0x89f   :  { %3274 = vmatprep.subr.bf16.mxu1 %v3273_v48 }
 0x964   :  { %v3035_v29 = vpop.f32.mrb[22].mxu1 }
 0x965   :  { %v2119_v52 = vpop.f32.mrb[23].mxu1 }
 0x966   :  { %3047 = vmatprep.mubr.msk.f32.mxu0 %vm198_vm0, %v2119_v52 }
 0x967   :  { %3048 = vmatmul.mubr.msk.f32.vlgmr.msra.gmra.mrb[42].mxu0 %vm198_vm0, %v3035_v29 }
 0x968   :  { %v3038_v31 = vpop.f32.mrb[24].mxu1 }
 0x969   :  { %v2129_v33 = vpop.f32.mrb[25].mxu1 }
 0x96a   :  { %3050 = vmatprep.mubr.msk.f32.mxu0 %vm198_vm0, %v2129_v33 }
 0x96b   :  { %3051 = vmatmul.mubr.msk.f32.gmra.mrb[44].mxu0 %vm198_vm0, %v3038_v31 }
 0xa3a   :  { %v3049_v50 = vpop.f32.mrb[42].mxu0 }
 0xa3b   :  { %v2233_v51 = vadd.f32 %v3049_v50, %v2575_v54  ;;  %v2227_v55 = vpop.f32.mrb[43].mxu0 }
 0xa3c   :  { %v2228_v21 = vadd.f32 %v2575_v54, %v2227_v55 }
 0xa3d   :  { %v2251_v42 = vmul.f32 0.1, %v2233_v51  ;;  %vm2247_vm0 = vcmp.gt.f32.partialorder %v2233_v51, 0.0 }
 0xa3e   :  { %vm2246_vm10 = vcmp.gt.f32.partialorder %v2228_v21, 0.0  ;;  %v2250_v45 = vmul.f32 0.1, %v2228_v21  ;;  %v3052_v46 = vpop.f32.mrb[44].mxu0 }
 0xa3f   :  { %v2243_v56 = vadd.f32 %v3052_v46, %v2575_v54  ;;  %v2237_v57 = vpop.f32.mrb[45].mxu0  ;;  %v2255_v61 = vsel %vm2247_vm0, %v2233_v51, %v2251_v42 }
 0xa40   :  { %v2238_v58 = vadd.f32 %v2575_v54, %v2237_v57  ;;  %v2254_v59 = vsel %vm2246_vm10, %v2228_v21, %v2250_v45 }
 0xa41   :  { %vm2249_vm14 = vcmp.gt.f32.partialorder %v2243_v56, 0.0  ;;  %v2253_v10 = vmul.f32 0.1, %v2243_v56  ;;  %3069 = vmatprep.mubr.msk.f32.mxu1 %vm2274_vm13, %v2254_v59 }
 0xa42   :  { %vm2248_vm15 = vcmp.gt.f32.partialorder %v2238_v58, 0.0  ;;  %v2252_v8 = vmul.f32 0.1, %v2238_v58  ;;  %3070 = vmatmul.mubr.msk.f32.vlgmr.msra.gmra.mrb[26].mxu1 %vm2274_vm13, %v2255_v61 }
 0xa43   :  { %3276 = vmatpush3.bf16.msra.mxu1 %v3273_v48  ;;  %v2257_v9 = vsel %vm2249_vm14, %v2243_v56, %v2253_v10 }
 0xa44   :  { %v2256_v63 = vsel %vm2248_vm15, %v2238_v58, %v2252_v8  ;;  %3278 = vmatprep.subr.bf16.mxu1 %v3277_v60 }
 0xa45   :  { %3072 = vmatprep.mubr.msk.f32.mxu1 %vm2274_vm13, %v2256_v63 }
 0xa46   :  { %3073 = vmatmul.mubr.msk.f32.gmra.mrb[28].mxu1 %vm2274_vm13, %v2257_v9 }
 0xa47   :  { %3280 = vmatpush3.bf16.msra.mxu1 %v3277_v60  ;;  %3091 = vmatprep.mubr.msk.f32.mxu1 %vm2274_vm13, %v2049_v32 }
 0xa48   :  { %3282 = vmatprep.subr.bf16.mxu1 %v3281_v0 }
 0xa4b   :  { %3284 = vmatpush3.bf16.msra.mxu1 %v3281_v0 }
 0xa4c   :  { %3286 = vmatprep.subr.bf16.mxu1 %v3285_v3 }
 0xa4f   :  { %3288 = vmatpush3.bf16.msra.mxu1 %v3285_v3 }
 0xa52   :  { %3092 = vmatmul.mubr.msk.f32.vlgmr.msra.gmra.mrb[26].mxu1 %vm2274_vm13, %v2050_v13 }
 0xa53   :  { %3094 = vmatprep.mubr.msk.f32.mxu1 %vm2274_vm13, %v2051_v15 }
 0xa56   :  { %3095 = vmatmul.mubr.msk.f32.gmra.mrb[28].mxu1 %vm2274_vm13, %v2052_v16 }
 0xb25   :  { %v3093_v20 = vpop.f32.mrb[26].mxu1 }
 0xb26   :  { %v2477_v37 = vadd.f32 %v3093_v20, %v2588_v17  ;;  %v2450_v18 = vpop.f32.mrb[27].mxu1 }
 0xb27   :  { %v2476_v22 = vadd.f32 %v2588_v17, %v2450_v18 }
 0xb28   :  { %2481 = vst.msk [vmem:[%s4209_s24 + $0x8] sm:$0xff] %vm2274_vm13, %v2477_v37 }
 0xb29   :  { %2480 = vst.msk [vmem:[%s4209_s24] sm:$0xff] %vm2274_vm13, %v2476_v22  ;;  %v3096_v23 = vpop.f32.mrb[28].mxu1 }
 0xb2a   :  { %v2479_v35 = vadd.f32 %v3096_v23, %v2588_v17  ;;  %v2460_v36 = vpop.f32.mrb[29].mxu1 }
 0xb2b   :  { %v2478_v5 = vadd.f32 %v2588_v17, %v2460_v36 }
 0xb2c   :  { %2483 = vst.msk [vmem:[%s4209_s24 + $0x18] sm:$0xff] %vm2274_vm13, %v2479_v35 }
 0xb2d   :  { %2482 = vst.msk [vmem:[%s4209_s24 + $0x10] sm:$0xff] %vm2274_vm13, %v2478_v5 }
 0xb2e   :  { %2488 = vsyncpa [#allocation3], 1 }
 0xb2f   :  { %2489 = vsyncpa [#allocation5], 1 }
 0xb30   :  { %2490 = vsyncpa [#allocation8], 1 }
 0xb31   :  { %2491 = vsyncpa [#allocation11], 1 }
 0xb32   :  { %2492 = vsyncpa [#allocation14], 1 }

// kernel: disencdr_forward.7
= control target key start
LH: loop header
LB: loop body
LE: loop exit
PB: predicated region body
PF: predicated region fallthrough
CT: control target
= control target key end

     0   :  { %s4324_s6 = smov 1   ;;  %s4325_s10 = smov 2   ;;  %s4998_s0 = inlined_call_operand.smem [shape: u32[34], index: -1, kind: input, shape index: {}] }
   0x1   :  { %s4377_s5 = sld [smem:[%s4998_s0]]   ;;  %s4326_s14 = smov 3  }
   0x2   :  { %s4382_s9 = sld [smem:[%s4998_s0 + %s4324_s6]]   ;;  %s4327_s18 = smov 4  }
   0x3   :  { %s4387_s13 = sld [smem:[%s4998_s0 + %s4325_s10]]   ;;  %s4328_s22 = smov 5  }
   0x4   :  { %s4392_s17 = sld [smem:[%s4998_s0 + %s4326_s14]]   ;;  %s4329_s26 = smov 6  }
   0x5   :  { %s4397_s21 = sld [smem:[%s4998_s0 + %s4327_s18]]   ;;  %s4330_s30 = smov 7  }
   0x6   :  { %s4402_s25 = sld [smem:[%s4998_s0 + %s4328_s22]]   ;;  %s4331_s4 = smov 8  }
   0x7   :  { %s4407_s29 = sld [smem:[%s4998_s0 + %s4329_s26]]   ;;  %s4332_s10 = smov 9  }
   0x8   :  { %5015 = sst [smem:[#allocation28_spill]] %s4382_s9  ;;  %s4333_s15 = smov 10  }
   0x9   :  { %5016 = sst [smem:[#allocation29_spill]] %s4387_s13  ;;  %s4334_s20 = smov 11  }
   0xa   :  { %5017 = sst [smem:[#allocation30_spill]] %s4392_s17  ;;  %s4335_s26 = smov 12  }
   0xb   :  { %s4412_s3 = sld [smem:[%s4998_s0 + %s4330_s30]]   ;;  %s4336_s1 = smov 13  }
   0xc   :  { %s4417_s8 = sld [smem:[%s4998_s0 + %s4331_s4]]   ;;  %s4337_s7 = smov 14  }
   0xd   :  { %s4422_s14 = sld [smem:[%s4998_s0 + %s4332_s10]]   ;;  %s4339_s22 = smov 16  }
   0xe   :  { %s4427_s19 = sld [smem:[%s4998_s0 + %s4333_s15]]   ;;  %s4338_s15 = smov 15  }
   0xf   :  { %s4432_s24 = sld [smem:[%s4998_s0 + %s4334_s20]]   ;;  %s4340_s28 = smov 17  }
  0x10   :  { %s4437_s30 = sld [smem:[%s4998_s0 + %s4335_s26]]  }
  0x11   :  { %s4442_s6 = sld [smem:[%s4998_s0 + %s4336_s1]]  }
  0x12   :  { %5018 = sst [smem:[#allocation31_spill]] %s4417_s8 }
  0x13   :  { %s4447_s12 = sld [smem:[%s4998_s0 + %s4337_s7]]   ;;  %s4341_s7 = smov 18  }
  0x14   :  { %5019 = sst [smem:[#allocation32_spill]] %s4427_s19 }
  0x15   :  { %s4452_s20 = sld [smem:[%s4998_s0 + %s4338_s15]]   ;;  %s4342_s15 = smov 19  }
  0x16   :  { %5020 = sst [smem:[#allocation33_spill]] %s4437_s30 }
  0x17   :  { %5021 = sst [smem:[#allocation34_spill]] %s4442_s6 }
  0x18   :  { %s4457_s27 = sld [smem:[%s4998_s0 + %s4339_s22]]   ;;  %s4343_s22 = smov 20  }
  0x19   :  { %s4462_s4 = sld [smem:[%s4998_s0 + %s4340_s28]]   ;;  %s4344_s28 = smov 21  }
  0x1a   :  { %s4467_s30 = sld [smem:[%s4998_s0 + %s4341_s7]]   ;;  %s4345_s7 = smov 22  }
  0x1b   :  { %5022 = sst [smem:[#allocation35_spill]] %s4452_s20 }
  0x1c   :  { %s4472_s20 = sld [smem:[%s4998_s0 + %s4342_s15]]   ;;  %s4346_s15 = smov 23  }
  0x1d   :  { %s4482_s6 = sld [smem:[%s4998_s0 + %s4344_s28]]   ;;  %s4348_s28 = smov 25  }
  0x1e   :  { %5023 = sst [smem:[#allocation36_spill]] %s4457_s27 }
  0x1f   :  { %s4477_s27 = sld [smem:[%s4998_s0 + %s4343_s22]]   ;;  %s4347_s22 = smov 24  }
  0x20   :  { %5024 = sst [smem:[#allocation37_spill]] %s4467_s30 }
  0x21   :  { %s4487_s30 = sld [smem:[%s4998_s0 + %s4345_s7]]   ;;  %s4349_s7 = smov 26  }
  0x22   :  { %s4492_s19 = sld [smem:[%s4998_s0 + %s4346_s15]]   ;;  %s4350_s15 = smov 27  }
  0x23   :  { %s4502_s8 = sld [smem:[%s4998_s0 + %s4348_s28]]   ;;  %s4352_s28 = smov 29  }
  0x24   :  { %s4512_s13 = sld [smem:[%s4998_s0 + %s4350_s15]]   ;;  %s4354_s15 = smov 31  }
  0x25   :  { %5025 = sst [smem:[#allocation38_spill]] %s4477_s27 }
  0x26   :  { %s4497_s27 = sld [smem:[%s4998_s0 + %s4347_s22]]   ;;  %s4351_s22 = smov 28  }
  0x27   :  { %5026 = sst [smem:[#allocation39_spill]] %s4487_s30 }
  0x28   :  { %s4507_s30 = sld [smem:[%s4998_s0 + %s4349_s7]]   ;;  %s4353_s7 = smov 30  }
  0x29   :  { %s4522_s17 = sld [smem:[%s4998_s0 + %s4352_s28]]   ;;  %s4356_s28 = smov 33  }
  0x2a   :  { %5029 = sst [smem:[#allocation42_spill]] %s4512_s13 }
  0x2b   :  { %s4532_s13 = sld [smem:[%s4998_s0 + %s4354_s15]]  }
  0x2c   :  { %5027 = sst [smem:[#allocation40_spill]] %s4497_s27 }
  0x2d   :  { %s4517_s27 = sld [smem:[%s4998_s0 + %s4351_s22]]   ;;  %s4355_s22 = smov 32  }
  0x2e   :  { %5028 = sst [smem:[#allocation41_spill]] %s4507_s30 }
  0x2f   :  { %5030 = sst [smem:[#allocation43_spill]] %s4522_s17 }
  0x30   :  { %s4527_s30 = sld [smem:[%s4998_s0 + %s4353_s7]]  }
  0x31   :  { %s4537_s9 = sld [smem:[%s4998_s0 + %s4355_s22]]  }
  0x32   :  { %s4542_s17 = sld [smem:[%s4998_s0 + %s4356_s28]]  }
  0x33   :  { %73 = vsyncpa [#allocation3], 0 }
  0x34   :  { %74 = vsyncpa [#allocation5], 0 }
  0x35   :  { %75 = vsyncpa [#allocation8], 0 }
  0x36   :  { %76 = vsyncpa [#allocation11], 0 }
  0x37   :  { %77 = vsyncpa [#allocation14], 0 }
  0x38   :  { %78 = vsyncpa [#allocation17], 0 }
  0x39   :  { %79 = vsyncpa [#allocation20], 0  ;;  %s4357_s7 = smov [#allocation4]   ;;  %s4358_s11 = smov [#allocation7]  }
  0x3a   :  { %s108_s10 = sshll.u32 %s4357_s7, 4  ;;  %s132_s15 = sshll.u32 %s4358_s11, 4  ;;  %s109_s10 = int_to_ptr.vmem [resolvable:$true] %s108_s10  ;;  %s133_s15 = int_to_ptr.vmem [resolvable:$true] %s132_s15 }
  0x3b   :  { %s4046_s16 = scalar_lea.hbm %s4412_s3, 16 }
  0x3c   :  { %p4047_p0 = scmp.ne.s32.totalorder %s4412_s3, %s4046_s16  ;;  %p4050_p1 = scmp.lt.u32.totalorder %s4046_s16, %s4412_s3 }
  0x3e   :  { %p4052_p2 = pnand %p4050_p1, %p4047_p0 }
  0x40   :  { %4055 = shalt.err (!%p4052_p2)
}
  0x41   :  { %s4056_s0 = scalar_lea.vmem %s109_s10, 16  ;;  %s4060_s18 = scalar_lea.vmem %s109_s10, 32 }
  0x42   :  { %p4057_p3 = scmp.ne.s32.totalorder %s109_s10, %s4056_s0  ;;  %p4061_p4 = scmp.lt.s32.totalorder %s109_s10, %s109_s10 }
  0x43   :  { %p4062_p5 = scmp.lt.s32.totalorder %s4060_s18, %s4056_s0 }
  0x45   :  { %p4063_p6 = por %p4062_p5, %p4061_p4 }
  0x47   :  { %p4064_p7 = pnand %p4063_p6, %p4057_p3 }
  0x49   :  { %4067 = shalt.err (!%p4064_p7)
}
  0x4a   :  { %111 = dma.hbm_to_vmem [thread:$0]  %s4412_s3, 16, %s109_s10, [#allocation5]  }
  0x4b   :  { %s4068_s22 = scalar_lea.hbm %s4432_s24, 16 }
  0x4c   :  { %p4069_p8 = scmp.ne.s32.totalorder %s4432_s24, %s4068_s22  ;;  %p4072_p9 = scmp.lt.u32.totalorder %s4068_s22, %s4432_s24 }
  0x4e   :  { %p4074_p10 = pnand %p4072_p9, %p4069_p8 }
  0x50   :  { %4077 = shalt.err (!%p4074_p10)
}
  0x51   :  { %s4078_s23 = scalar_lea.vmem %s133_s15, 16  ;;  %s4082_s26 = scalar_lea.vmem %s133_s15, 32 }
  0x52   :  { %p4079_p11 = scmp.ne.s32.totalorder %s133_s15, %s4078_s23  ;;  %p4083_p12 = scmp.lt.s32.totalorder %s133_s15, %s133_s15 }
  0x53   :  { %p4084_p13 = scmp.lt.s32.totalorder %s4082_s26, %s4078_s23 }
  0x55   :  { %p4085_p0 = por %p4084_p13, %p4083_p12 }
  0x57   :  { %p4086_p1 = pnand %p4085_p0, %p4079_p11 }
  0x59   :  { %4089 = shalt.err (!%p4086_p1)
}
  0x5a   :  { %135 = dma.hbm_to_vmem [thread:$0]  %s4432_s24, 16, %s133_s15, [#allocation8]  }
  0x5b   :  { %s4359_s28 = smov [#allocation10]   ;;  %s4360_s1 = smov [#allocation13]  }
  0x5c   :  { %s160_s3 = sshll.u32 %s4359_s28, 4  ;;  %s184_s2 = sshll.u32 %s4360_s1, 4  ;;  %s161_s3 = int_to_ptr.vmem [resolvable:$true] %s160_s3  ;;  %s185_s2 = int_to_ptr.vmem [resolvable:$true] %s184_s2 }
  0x5d   :  { %s4090_s7 = scalar_lea.hbm %s4462_s4, 16 }
  0x5e   :  { %p4091_p2 = scmp.ne.s32.totalorder %s4462_s4, %s4090_s7  ;;  %p4094_p3 = scmp.lt.u32.totalorder %s4090_s7, %s4462_s4 }
  0x60   :  { %p4096_p4 = pnand %p4094_p3, %p4091_p2 }
  0x62   :  { %4099 = shalt.err (!%p4096_p4)
}
  0x63   :  { %s4100_s10 = scalar_lea.vmem %s161_s3, 16  ;;  %s4104_s11 = scalar_lea.vmem %s161_s3, 32 }
  0x64   :  { %p4101_p5 = scmp.ne.s32.totalorder %s161_s3, %s4100_s10  ;;  %p4105_p6 = scmp.lt.s32.totalorder %s161_s3, %s161_s3 }
  0x65   :  { %p4106_p7 = scmp.lt.s32.totalorder %s4104_s11, %s4100_s10 }
  0x67   :  { %p4107_p8 = por %p4106_p7, %p4105_p6 }
  0x69   :  { %p4108_p9 = pnand %p4107_p8, %p4101_p5 }
  0x6b   :  { %4111 = shalt.err (!%p4108_p9)
}
  0x6c   :  { %163 = dma.hbm_to_vmem [thread:$0]  %s4462_s4, 16, %s161_s3, [#allocation11]  }
  0x6d   :  { %s4112_s24 = scalar_lea.hbm %s4482_s6, 16 }
  0x6e   :  { %p4113_p10 = scmp.ne.s32.totalorder %s4482_s6, %s4112_s24  ;;  %p4116_p11 = scmp.lt.u32.totalorder %s4112_s24, %s4482_s6 }
  0x70   :  { %p4118_p12 = pnand %p4116_p11, %p4113_p10 }
  0x72   :  { %4121 = shalt.err (!%p4118_p12)
}
  0x73   :  { %s4122_s15 = scalar_lea.vmem %s185_s2, 16  ;;  %s4126_s16 = scalar_lea.vmem %s185_s2, 32 }
  0x74   :  { %p4123_p13 = scmp.ne.s32.totalorder %s185_s2, %s4122_s15  ;;  %p4127_p0 = scmp.lt.s32.totalorder %s185_s2, %s185_s2 }
  0x75   :  { %p4128_p1 = scmp.lt.s32.totalorder %s4126_s16, %s4122_s15 }
  0x77   :  { %p4129_p2 = por %p4128_p1, %p4127_p0 }
  0x79   :  { %p4130_p3 = pnand %p4129_p2, %p4123_p13 }
  0x7b   :  { %4133 = shalt.err (!%p4130_p3)
}
  0x7c   :  { %187 = dma.hbm_to_vmem [thread:$0]  %s4482_s6, 16, %s185_s2, [#allocation14]  }
  0x7d   :  { %s4361_s0 = smov [#allocation16]   ;;  %s4362_s18 = smov [#allocation2]  }
  0x7e   :  { %s208_s4 = sshll.u32 %s4361_s0, 4  ;;  %s96_s22 = sshll.u32 %s4362_s18, 4  ;;  %s209_s4 = int_to_ptr.vmem [resolvable:$true] %s208_s4  ;;  %s97_s22 = int_to_ptr.vmem [resolvable:$true] %s96_s22 }
  0x7f   :  { %s4134_s23 = scalar_lea.hbm %s4502_s8, 16 }
  0x80   :  { %p4135_p4 = scmp.ne.s32.totalorder %s4502_s8, %s4134_s23  ;;  %p4138_p5 = scmp.lt.u32.totalorder %s4134_s23, %s4502_s8 }
  0x82   :  { %p4140_p6 = pnand %p4138_p5, %p4135_p4 }
  0x84   :  { %4143 = shalt.err (!%p4140_p6)
}
  0x85   :  { %s4144_s26 = scalar_lea.vmem %s209_s4, 16  ;;  %s4148_s28 = scalar_lea.vmem %s209_s4, 32 }
  0x86   :  { %p4145_p7 = scmp.ne.s32.totalorder %s209_s4, %s4144_s26  ;;  %p4149_p8 = scmp.lt.s32.totalorder %s209_s4, %s209_s4 }
  0x87   :  { %p4150_p9 = scmp.lt.s32.totalorder %s4148_s28, %s4144_s26 }
  0x89   :  { %p4151_p10 = por %p4150_p9, %p4149_p8 }
  0x8b   :  { %p4152_p11 = pnand %p4151_p10, %p4145_p7 }
  0x8d   :  { %4155 = shalt.err (!%p4152_p11)
}
  0x8e   :  { %211 = dma.hbm_to_vmem [thread:$0]  %s4502_s8, 16, %s209_s4, [#allocation17]  }
  0x8f   :  { %s4156_s6 = scalar_lea.hbm %s4402_s25, 16 }
  0x90   :  { %p4157_p12 = scmp.ne.s32.totalorder %s4402_s25, %s4156_s6  ;;  %p4160_p13 = scmp.lt.u32.totalorder %s4156_s6, %s4402_s25 }
  0x92   :  { %p4162_p0 = pnand %p4160_p13, %p4157_p12 }
  0x94   :  { %4165 = shalt.err (!%p4162_p0)
}
  0x95   :  { %s4166_s3 = scalar_lea.vmem %s97_s22, 16  ;;  %s4170_s1 = scalar_lea.vmem %s97_s22, 32 }
  0x96   :  { %p4167_p1 = scmp.ne.s32.totalorder %s97_s22, %s4166_s3  ;;  %p4171_p2 = scmp.lt.s32.totalorder %s97_s22, %s97_s22 }
  0x97   :  { %p4172_p3 = scmp.lt.s32.totalorder %s4170_s1, %s4166_s3 }
  0x99   :  { %p4173_p4 = por %p4172_p3, %p4171_p2 }
  0x9b   :  { %p4174_p5 = pnand %p4173_p4, %p4167_p1 }
  0x9d   :  { %4177 = shalt.err (!%p4174_p5)
}
  0x9e   :  { %99 = dma.hbm_to_vmem [thread:$0]  %s4402_s25, 16, %s97_s22, [#allocation3]  }
  0x9f   :  { %s4363_s2 = smov [#allocation6]   ;;  %s4364_s7 = smov [#allocation9]  }
  0xa0   :  { %s120_s8 = sshll.u32 %s4363_s2, 4  ;;  %s146_s10 = sshll.u32 %s4364_s7, 4  ;;  %s121_s8 = int_to_ptr.vmem [resolvable:$true] %s120_s8  ;;  %s147_s10 = int_to_ptr.vmem [resolvable:$true] %s146_s10 }
  0xa1   :  { %s4178_s11 = scalar_lea.hbm %s4422_s14, 16 }
  0xa2   :  { %p4179_p6 = scmp.ne.s32.totalorder %s4422_s14, %s4178_s11  ;;  %p4182_p7 = scmp.lt.u32.totalorder %s4178_s11, %s4422_s14 }
  0xa4   :  { %p4184_p8 = pnand %p4182_p7, %p4179_p6 }
  0xa6   :  { %4187 = shalt.err (!%p4184_p8)
}
  0xa7   :  { %s4188_s24 = scalar_lea.vmem %s121_s8, 16  ;;  %s4192_s15 = scalar_lea.vmem %s121_s8, 32 }
  0xa8   :  { %p4189_p9 = scmp.ne.s32.totalorder %s121_s8, %s4188_s24  ;;  %p4193_p10 = scmp.lt.s32.totalorder %s121_s8, %s121_s8 }
  0xa9   :  { %p4194_p11 = scmp.lt.s32.totalorder %s4192_s15, %s4188_s24 }
  0xab   :  { %p4195_p12 = por %p4194_p11, %p4193_p10 }
  0xad   :  { %p4196_p13 = pnand %p4195_p12, %p4189_p9 }
  0xaf   :  { %4199 = shalt.err (!%p4196_p13)
}
  0xb0   :  { %123 = dma.hbm_to_vmem [thread:$0]  %s4422_s14, 16, %s121_s8, [#allocation5]  }
  0xb1   :  { %s4200_s25 = scalar_lea.hbm %s4447_s12, 16 }
  0xb2   :  { %p4201_p0 = scmp.ne.s32.totalorder %s4447_s12, %s4200_s25  ;;  %p4204_p1 = scmp.lt.u32.totalorder %s4200_s25, %s4447_s12 }
  0xb4   :  { %p4206_p2 = pnand %p4204_p1, %p4201_p0 }
  0xb6   :  { %4209 = shalt.err (!%p4206_p2)
}
  0xb7   :  { %s4210_s16 = scalar_lea.vmem %s147_s10, 16  ;;  %s4214_s0 = scalar_lea.vmem %s147_s10, 32 }
  0xb8   :  { %p4211_p3 = scmp.ne.s32.totalorder %s147_s10, %s4210_s16  ;;  %p4215_p4 = scmp.lt.s32.totalorder %s147_s10, %s147_s10 }
  0xb9   :  { %p4216_p5 = scmp.lt.s32.totalorder %s4214_s0, %s4210_s16 }
  0xbb   :  { %p4217_p6 = por %p4216_p5, %p4215_p4 }
  0xbd   :  { %p4218_p7 = pnand %p4217_p6, %p4211_p3 }
  0xbf   :  { %4221 = shalt.err (!%p4218_p7)
}
  0xc0   :  { %149 = dma.hbm_to_vmem [thread:$0]  %s4447_s12, 16, %s147_s10, [#allocation8]  }
  0xc1   :  { %s4365_s4 = smov [#allocation12]   ;;  %s4366_s18 = smov [#allocation15]  }
  0xc2   :  { %s172_s14 = sshll.u32 %s4365_s4, 4  ;;  %s196_s22 = sshll.u32 %s4366_s18, 4  ;;  %s173_s14 = int_to_ptr.vmem [resolvable:$true] %s172_s14  ;;  %s197_s22 = int_to_ptr.vmem [resolvable:$true] %s196_s22 }
  0xc3   :  { %s4222_s23 = scalar_lea.hbm %s4472_s20, 16 }
  0xc4   :  { %p4223_p8 = scmp.ne.s32.totalorder %s4472_s20, %s4222_s23  ;;  %p4226_p9 = scmp.lt.u32.totalorder %s4222_s23, %s4472_s20 }
  0xc6   :  { %p4228_p10 = pnand %p4226_p9, %p4223_p8 }
  0xc8   :  { %4231 = shalt.err (!%p4228_p10)
}
  0xc9   :  { %s4232_s26 = scalar_lea.vmem %s173_s14, 16  ;;  %s4236_s28 = scalar_lea.vmem %s173_s14, 32 }
  0xca   :  { %p4233_p11 = scmp.ne.s32.totalorder %s173_s14, %s4232_s26  ;;  %p4237_p12 = scmp.lt.s32.totalorder %s173_s14, %s173_s14 }
  0xcb   :  { %p4238_p13 = scmp.lt.s32.totalorder %s4236_s28, %s4232_s26 }
  0xcd   :  { %p4239_p0 = por %p4238_p13, %p4237_p12 }
  0xcf   :  { %p4240_p1 = pnand %p4239_p0, %p4233_p11 }
  0xd1   :  { %4243 = shalt.err (!%p4240_p1)
}
  0xd2   :  { %175 = dma.hbm_to_vmem [thread:$0]  %s4472_s20, 16, %s173_s14, [#allocation11]  }
  0xd3   :  { %s4244_s12 = scalar_lea.hbm %s4492_s19, 16 }
  0xd4   :  { %p4245_p2 = scmp.ne.s32.totalorder %s4492_s19, %s4244_s12  ;;  %p4248_p3 = scmp.lt.u32.totalorder %s4244_s12, %s4492_s19 }
  0xd6   :  { %p4250_p4 = pnand %p4248_p3, %p4245_p2 }
  0xd8   :  { %4253 = shalt.err (!%p4250_p4)
}
  0xd9   :  { %s4254_s6 = scalar_lea.vmem %s197_s22, 16  ;;  %s4258_s3 = scalar_lea.vmem %s197_s22, 32 }
  0xda   :  { %p4255_p5 = scmp.ne.s32.totalorder %s197_s22, %s4254_s6  ;;  %p4259_p6 = scmp.lt.s32.totalorder %s197_s22, %s197_s22 }
  0xdb   :  { %p4260_p7 = scmp.lt.s32.totalorder %s4258_s3, %s4254_s6 }
  0xdd   :  { %p4261_p8 = por %p4260_p7, %p4259_p6 }
  0xdf   :  { %p4262_p9 = pnand %p4261_p8, %p4255_p5 }
  0xe1   :  { %4265 = shalt.err (!%p4262_p9)
}
  0xe2   :  { %199 = dma.hbm_to_vmem [thread:$0]  %s4492_s19, 16, %s197_s22, [#allocation14]  }
  0xe3   :  { %s4367_s1 = smov [#allocation18]   ;;  %s4368_s2 = smov [#allocation19]  }
  0xe4   :  { %s222_s20 = sshll.u32 %s4367_s1, 4  ;;  %s236_s8 = sshll.u32 %s4368_s2, 4  ;;  %s223_s20 = int_to_ptr.vmem [resolvable:$true] %s222_s20  ;;  %s237_s8 = int_to_ptr.vmem [resolvable:$true] %s236_s8 }
  0xe5   :  { %s4266_s7 = scalar_lea.hbm %s4517_s27, 16 }
  0xe6   :  { %p4267_p10 = scmp.ne.s32.totalorder %s4517_s27, %s4266_s7  ;;  %p4270_p11 = scmp.lt.u32.totalorder %s4266_s7, %s4517_s27 }
  0xe8   :  { %p4272_p12 = pnand %p4270_p11, %p4267_p10 }
  0xea   :  { %4275 = shalt.err (!%p4272_p12)
}
  0xeb   :  { %s4276_s10 = scalar_lea.vmem %s223_s20, 16  ;;  %s4280_s11 = scalar_lea.vmem %s223_s20, 32 }
  0xec   :  { %p4277_p13 = scmp.ne.s32.totalorder %s223_s20, %s4276_s10  ;;  %p4281_p0 = scmp.lt.s32.totalorder %s223_s20, %s223_s20 }
  0xed   :  { %p4282_p1 = scmp.lt.s32.totalorder %s4280_s11, %s4276_s10 }
  0xef   :  { %p4283_p2 = por %p4282_p1, %p4281_p0 }
  0xf1   :  { %p4284_p3 = pnand %p4283_p2, %p4277_p13 }
  0xf3   :  { %4287 = shalt.err (!%p4284_p3)
}
  0xf4   :  { %225 = dma.hbm_to_vmem [thread:$0]  %s4517_s27, 16, %s223_s20, [#allocation17]  }
  0xf5   :  { %s4288_s19 = scalar_lea.hbm %s4532_s13, 16 }
  0xf6   :  { %p4289_p4 = scmp.ne.s32.totalorder %s4532_s13, %s4288_s19  ;;  %p4292_p5 = scmp.lt.u32.totalorder %s4288_s19, %s4532_s13 }
  0xf8   :  { %p4294_p6 = pnand %p4292_p5, %p4289_p4 }
  0xfa   :  { %4297 = shalt.err (!%p4294_p6)
}
  0xfb   :  { %s4298_s24 = scalar_lea.vmem %s237_s8, 16  ;;  %s4302_s15 = scalar_lea.vmem %s237_s8, 32 }
  0xfc   :  { %p4299_p7 = scmp.ne.s32.totalorder %s237_s8, %s4298_s24  ;;  %p4303_p8 = scmp.lt.s32.totalorder %s237_s8, %s237_s8 }
  0xfd   :  { %p4304_p9 = scmp.lt.s32.totalorder %s4302_s15, %s4298_s24 }
  0xff   :  { %p4305_p10 = por %p4304_p9, %p4303_p8 }
 0x101   :  { %p4306_p11 = pnand %p4305_p10, %p4299_p7 }
 0x103   :  { %4309 = shalt.err (!%p4306_p11)
}
 0x104   :  { %239 = dma.hbm_to_vmem [thread:$0]  %s4532_s13, 16, %s237_s8, [#allocation20]  }
 0x105   :  { %4310 = dma.done.wait [#allocation3], 16  }
 0x106   :  { %4311 = vsyncadd [#allocation3], 4294967280 }
 0x107   :  { %4312 = dma.done.wait [#allocation5], 32  }
 0x108   :  { %4313 = vsyncadd [#allocation5], 4294967264 }
 0x109   :  { %4314 = dma.done.wait [#allocation8], 32  }
 0x10a   :  { %4315 = vsyncadd [#allocation8], 4294967264 }
 0x10b   :  { %4316 = dma.done.wait [#allocation11], 32  }
 0x10c   :  { %4317 = vsyncadd [#allocation11], 4294967264 }
 0x10d   :  { %4318 = dma.done.wait [#allocation14], 32  }
 0x10e   :  { %4319 = vsyncadd [#allocation14], 4294967264 }
 0x10f   :  { %4320 = dma.done.wait [#allocation17], 32  }
 0x110   :  { %4321 = vsyncadd [#allocation17], 4294967264 }
 0x111   :  { %4322 = dma.done.wait [#allocation20], 16  }
 0x112   :  { %4323 = vsyncadd [#allocation20], 4294967280  ;;  %vm300_vm0 = vcmask 261120   ;;  %v296_v0 = vld [vmem:[%s4397_s21] sm:$0xff]  ;;  %v297_v1 = vld [vmem:[%s4397_s21 + $0x8] sm:$0xff]  ;;  %s5031_s13 = sld [smem:[#allocation28_spill]] }
 0x113   :  { %v298_v2 = vld [vmem:[%s4397_s21 + $0x10] sm:$0xff]  ;;  %v3768_v3 = vpack.c.bf16 %v297_v1, %v296_v0  ;;  %v299_v4 = vld [vmem:[%s4397_s21 + $0x18] sm:$0xff]  ;;  %v4597_v5 = vld [vmem:[%s4377_s5] sm:$0xff]  ;;  %s5032_s21 = sld [smem:[#allocation30_spill]]  ;;  %vm660_vm1 = vcmask 392192   ;;  %s5035_s27 = sld [smem:[#allocation32_spill]] }
 0x114   :  { %v3772_v6 = vpack.c.bf16 %v299_v4, %v298_v2  ;;  %3388 = vmatprep.mubr.msk.f32.mxu0 %vm300_vm0, %v4597_v5  ;;  %v536_v7 = vld [vmem:[%s4407_s29] sm:$0xff]  ;;  %v537_v8 = vld [vmem:[%s4407_s29 + $0x8] sm:$0xff]  ;;  %v538_v10 = vld [vmem:[%s4407_s29 + $0x10] sm:$0xff]  ;;  %s5036_s25 = sld [smem:[#allocation34_spill]]  ;;  %s5037_s16 = sld [smem:[#allocation33_spill]] }
 0x115   :  { %3769 = vmatprep.subr.bf16.mxu0 %v3768_v3  ;;  %v3784_v9 = vpack.c.bf16 %v537_v8, %v536_v7  ;;  %v539_v11 = vld [vmem:[%s4407_s29 + $0x18] sm:$0xff]  ;;  %v4606_v12 = vld [vmem:[%s4377_s5 + $0x8] sm:$0xff]  ;;  %v4609_v13 = vld [vmem:[%s4377_s5 + $0x10] sm:$0xff]  ;;  %s5033_s29 = sld [smem:[#allocation29_spill]]  ;;  %s5039_s4 = sld [smem:[#allocation36_spill]] }
 0x116   :  { %3771 = vmatpush3.bf16.msra.mxu0 %v3768_v3  ;;  %v3788_v14 = vpack.c.bf16 %v539_v11, %v538_v10  ;;  %v4616_v15 = vld [vmem:[%s4377_s5 + $0x18] sm:$0xff]  ;;  %s5034_s5 = sld [smem:[#allocation31_spill]]  ;;  %v3028_v56 = vld [vmem:[#allocation2] ss:$0 sm:$0xff]  ;;  %s5038_s0 = sld [smem:[#allocation37_spill]] }
 0x117   :  { %3773 = vmatprep.subr.bf16.mxu0 %v3772_v6  ;;  %s5040_s14 = sld [smem:[#allocation35_spill]]  ;;  %s5041_s18 = sld [smem:[#allocation39_spill]] }
 0x118   :  { %v4619_v16 = vld [vmem:[%s5031_s13] sm:$0xff]  ;;  %v4626_v17 = vld [vmem:[%s5031_s13 + $0x8] sm:$0xff]  ;;  %v4629_v18 = vld [vmem:[%s5031_s13 + $0x10] sm:$0xff]  ;;  %s5042_s22 = sld [smem:[#allocation42_spill]]  ;;  %s5043_s23 = sld [smem:[#allocation38_spill]] }
 0x119   :  { %v4636_v19 = vld [vmem:[%s5031_s13 + $0x18] sm:$0xff]  ;;  %v4639_v20 = vld [vmem:[%s5031_s13 + $0x20] sm:$0xff]  ;;  %v4646_v21 = vld [vmem:[%s5031_s13 + $0x28] sm:$0xff]  ;;  %s5044_s26 = sld [smem:[#allocation41_spill]]  ;;  %s5045_s28 = sld [smem:[#allocation40_spill]] }
 0x11a   :  { %3775 = vmatpush3.bf16.msra.mxu0 %v3772_v6  ;;  %v4651_v22 = vld [vmem:[%s5032_s21] sm:$0xff]  ;;  %v4661_v31 = vld [vmem:[%s5032_s21 + $0x8] sm:$0xff]  ;;  %v4664_v33 = vld [vmem:[%s5032_s21 + $0x10] sm:$0xff] }
 0x11b   :  { %3785 = vmatprep.subr.bf16.mxu0 %v3784_v9  ;;  %3402 = vmatprep.mubr.msk.f32.mxu1 %vm300_vm0, %v4651_v22  ;;  %v4656_v23 = vld [vmem:[%s5033_s29] sm:$0xff]  ;;  %v4671_v36 = vld [vmem:[%s5032_s21 + $0x18] sm:$0xff]  ;;  %v4681_v41 = vld [vmem:[%s5032_s21 + $0x28] sm:$0xff] }
 0x11c   :  { %v4674_v38 = vld [vmem:[%s5032_s21 + $0x20] sm:$0xff]  ;;  %v4686_v44 = vld [vmem:[%s5033_s29 + $0x8] sm:$0xff]  ;;  %v4691_v45 = vld [vmem:[%s5033_s29 + $0x10] sm:$0xff] }
 0x11d   :  { %3389 = vmatmul.mubr.msk.f32.vlgmr.msra.gmra.mrb[0].mxu0 %vm300_vm0, %v4606_v12  ;;  %v4698_v46 = vld [vmem:[%s5033_s29 + $0x18] sm:$0xff]  ;;  %v770_v47 = vld [vmem:[%s5034_s5] sm:$0xff]  ;;  %v771_v48 = vld [vmem:[%s5034_s5 + $0x8] sm:$0xff] }
 0x11e   :  { %3391 = vmatprep.mubr.msk.f32.mxu0 %vm300_vm0, %v4609_v13  ;;  %3787 = vmatpush3.bf16.msra.mxu0 %v3784_v9  ;;  %v3804_v49 = vpack.c.bf16 %v771_v48, %v770_v47  ;;  %v772_v50 = vld [vmem:[%s5034_s5 + $0x10] sm:$0xff]  ;;  %v773_v51 = vld [vmem:[%s5034_s5 + $0x18] sm:$0xff]  ;;  %v991_v53 = vld [vmem:[%s5035_s27] sm:$0xff] }
 0x11f   :  { %3789 = vmatprep.subr.bf16.mxu0 %v3788_v14  ;;  %v3808_v52 = vpack.c.bf16 %v773_v51, %v772_v50  ;;  %v992_v54 = vld [vmem:[%s5035_s27 + $0x8] sm:$0xff]  ;;  %v993_v62 = vld [vmem:[%s5035_s27 + $0x10] sm:$0xff]  ;;  %v994_v63 = vld [vmem:[%s5035_s27 + $0x18] sm:$0xff] }
 0x120   :  { %v3824_v55 = vpack.c.bf16 %v992_v54, %v991_v53  ;;  %v3828_v7 = vpack.c.bf16 %v994_v63, %v993_v62 }
 0x121   :  { %3392 = vmatmul.mubr.msk.f32.gmra.mrb[2].mxu0 %vm300_vm0, %v4616_v15 }
 0x122   :  { %3791 = vmatpush3.bf16.msra.mxu0 %v3788_v14  ;;  %3419 = vmatprep.mubr.msk.f32.mxu0 %vm300_vm0, %v4619_v16 }
 0x125   :  { %3420 = vmatmul.mubr.msk.f32.vlgmr.msra.gmra.mrb[4].mxu0 %vm300_vm0, %v4626_v17 }
 0x126   :  { %3422 = vmatprep.mubr.msk.f32.mxu0 %vm300_vm0, %v4629_v18 }
 0x129   :  { %3423 = vmatmul.mubr.msk.f32.gmra.mrb[6].mxu0 %vm300_vm0, %v4636_v19 }
 0x12a   :  { %3425 = vmatprep.mubr.msk.f32.mxu0 %vm300_vm0, %v4639_v20 }
 0x12d   :  { %3426 = vmatmul.mubr.msk.f32.gmra.mrb[8].mxu0 %vm300_vm0, %v4646_v21 }
 0x12e   :  { %3440 = vmatprep.mubr.msk.f32.mxu0 %vm660_vm1, %v4656_v23 }
 0x1f0   :  { %v3390_v24 = vpop.f32.mrb[0].mxu0 }
 0x1f1   :  { %v379_v25 = vpop.f32.mrb[1].mxu0 }
 0x1f2   :  { %v3776_v26 = vpack.c.bf16 %v3390_v24, %v379_v25 }
 0x1f4   :  { %v3393_v27 = vpop.f32.mrb[2].mxu0  ;;  %3777 = vmatprep.subr.bf16.mxu1 %v3776_v26 }
 0x1f5   :  { %v389_v28 = vpop.f32.mrb[3].mxu0  ;;  %3779 = vmatpush3.bf16.msra.mxu1 %v3776_v26 }
 0x1f6   :  { %v3780_v29 = vpack.c.bf16 %v3393_v27, %v389_v28  ;;  %v3041_v27 = vld [vmem:[#allocation4] ss:$0 sm:$0xff] }
 0x1f8   :  { %3781 = vmatprep.subr.bf16.mxu1 %v3780_v29  ;;  %v3421_v30 = vpop.f32.mrb[4].mxu0 }
 0x1f9   :  { %3783 = vmatpush3.bf16.msra.mxu1 %v3780_v29  ;;  %v624_v32 = vpop.f32.mrb[5].mxu0 }
 0x1fa   :  { %v3792_v34 = vpack.c.bf16 %v3421_v30, %v624_v32 }
 0x1fc   :  { %3403 = vmatmul.mubr.msk.f32.vlgmr.msra.gmra.mrb[0].mxu1 %vm300_vm0, %v4661_v31  ;;  %v3424_v35 = vpop.f32.mrb[6].mxu0  ;;  %3793 = vmatprep.subr.bf16.mxu0 %v3792_v34 }
 0x1fd   :  { %3405 = vmatprep.mubr.msk.f32.mxu1 %vm300_vm0, %v4664_v33  ;;  %v634_v37 = vpop.f32.mrb[7].mxu0  ;;  %3795 = vmatpush3.bf16.msra.mxu0 %v3792_v34 }
 0x1fe   :  { %v3796_v39 = vpack.c.bf16 %v3424_v35, %v634_v37 }
 0x200   :  { %3406 = vmatmul.mubr.msk.f32.gmra.mrb[2].mxu1 %vm300_vm0, %v4671_v36  ;;  %v3427_v40 = vpop.f32.mrb[8].mxu0  ;;  %3797 = vmatprep.subr.bf16.mxu0 %v3796_v39 }
 0x201   :  { %3408 = vmatprep.mubr.msk.f32.mxu1 %vm300_vm0, %v4674_v38  ;;  %v644_v42 = vpop.f32.mrb[9].mxu0  ;;  %3799 = vmatpush3.bf16.msra.mxu0 %v3796_v39 }
 0x202   :  { %v3800_v43 = vpack.c.bf16 %v3427_v40, %v644_v42 }
 0x204   :  { %3409 = vmatmul.mubr.msk.f32.gmra.mrb[4].mxu1 %vm300_vm0, %v4681_v41  ;;  %3801 = vmatprep.subr.bf16.mxu0 %v3800_v43 }
 0x205   :  { %3803 = vmatpush3.bf16.msra.mxu0 %v3800_v43  ;;  %3475 = vmatprep.mubr.msk.f32.mxu1 %vm660_vm1, %v4656_v23 }
 0x206   :  { %3805 = vmatprep.subr.bf16.mxu0 %v3804_v49 }
 0x208   :  { %3441 = vmatmul.mubr.msk.f32.vlgmr.msra.gmra.mrb[10].mxu0 %vm660_vm1, %v4686_v44 }
 0x209   :  { %3443 = vmatprep.mubr.msk.f32.mxu0 %vm660_vm1, %v4691_v45  ;;  %3807 = vmatpush3.bf16.msra.mxu0 %v3804_v49 }
 0x20a   :  { %3809 = vmatprep.subr.bf16.mxu0 %v3808_v52 }
 0x20c   :  { %3444 = vmatmul.mubr.msk.f32.gmra.mrb[12].mxu0 %vm660_vm1, %v4698_v46 }
 0x20d   :  { %3811 = vmatpush3.bf16.msra.mxu0 %v3808_v52 }
 0x20e   :  { %3825 = vmatprep.subr.bf16.mxu0 %v3824_v55 }
 0x2cf   :  { %v3404_v57 = vpop.f32.mrb[0].mxu1 }
 0x2d0   :  { %v495_v58 = vadd.f32 %v3404_v57, %v3028_v56  ;;  %v489_v59 = vpop.f32.mrb[1].mxu1  ;;  %v1216_v57 = vld [vmem:[%s5036_s25] sm:$0xff] }
 0x2d1   :  { %v490_v60 = vadd.f32 %v3028_v56, %v489_v59  ;;  %v1218_v59 = vld [vmem:[%s5036_s25 + $0x10] sm:$0xff] }
 0x2d2   :  { %v525_v61 = vmul.f32 0.1, %v495_v58  ;;  %vm519_vm2 = vcmp.gt.f32.partialorder %v495_v58, 0.0 }
 0x2d3   :  { %vm518_vm3 = vcmp.gt.f32.partialorder %v490_v60, 0.0  ;;  %v524_v0 = vmul.f32 0.1, %v490_v60  ;;  %v3407_v1 = vpop.f32.mrb[2].mxu1 }
 0x2d4   :  { %v505_v2 = vadd.f32 %v3407_v1, %v3028_v56  ;;  %v499_v3 = vpop.f32.mrb[3].mxu1  ;;  %v531_v8 = vsel %vm519_vm2, %v495_v58, %v525_v61  ;;  %v1217_v58 = vld [vmem:[%s5036_s25 + $0x8] sm:$0xff]  ;;  %v1219_v61 = vld [vmem:[%s5036_s25 + $0x18] sm:$0xff] }
 0x2d5   :  { %v500_v4 = vadd.f32 %v3028_v56, %v499_v3  ;;  %v530_v6 = vsel %vm518_vm3, %v490_v60, %v524_v0  ;;  %v3840_v60 = vpack.c.bf16 %v1217_v58, %v1216_v57  ;;  %v3844_v62 = vpack.c.bf16 %v1219_v61, %v1218_v59  ;;  %v3076_v58 = vld [vmem:[#allocation9] ss:$0 sm:$0xff] }
 0x2d6   :  { %v527_v9 = vmul.f32 0.1, %v505_v2  ;;  %3454 = vmatprep.mubr.msk.f32.mxu0 %vm300_vm0, %v530_v6  ;;  %vm521_vm4 = vcmp.gt.f32.partialorder %v505_v2, 0.0 }
 0x2d7   :  { %vm520_vm5 = vcmp.gt.f32.partialorder %v500_v4, 0.0  ;;  %v526_v10 = vmul.f32 0.1, %v500_v4  ;;  %v3410_v11 = vpop.f32.mrb[4].mxu1  ;;  %3455 = vmatmul.mubr.msk.f32.vlgmr.msra.gmra.mrb[14].mxu0 %vm300_vm0, %v531_v8 }
 0x2d8   :  { %v515_v14 = vadd.f32 %v3410_v11, %v3028_v56  ;;  %v509_v24 = vpop.f32.mrb[5].mxu1  ;;  %3827 = vmatpush3.bf16.msra.mxu0 %v3824_v55  ;;  %v533_v29 = vsel %vm521_vm4, %v505_v2, %v527_v9  ;;  %v1212_v11 = vld [vmem:[%s5037_s16] sm:$0xff] }
 0x2d9   :  { %v510_v25 = vadd.f32 %v3028_v56, %v509_v24  ;;  %v532_v26 = vsel %vm520_vm5, %v500_v4, %v526_v10  ;;  %3829 = vmatprep.subr.bf16.mxu0 %v3828_v7 }
 0x2da   :  { %v529_v28 = vmul.f32 0.1, %v515_v14  ;;  %3457 = vmatprep.mubr.msk.f32.mxu0 %vm300_vm0, %v532_v26  ;;  %vm523_vm6 = vcmp.gt.f32.partialorder %v515_v14, 0.0  ;;  %v1215_v26 = vld [vmem:[%s5037_s16 + $0x18] sm:$0xff] }
 0x2db   :  { %vm522_vm7 = vcmp.gt.f32.partialorder %v510_v25, 0.0  ;;  %v528_v30 = vmul.f32 0.1, %v510_v25  ;;  %3458 = vmatmul.mubr.msk.f32.gmra.mrb[16].mxu0 %vm300_vm0, %v533_v29  ;;  %v3442_v32 = vpop.f32.mrb[10].mxu0  ;;  %v1653_v29 = vld [vmem:[%s5038_s0 + $0x8] sm:$0xff] }
 0x2dc   :  { %v745_v34 = vadd.f32 %v3442_v32, %v3041_v27  ;;  %v739_v35 = vpop.f32.mrb[11].mxu0  ;;  %3831 = vmatpush3.bf16.msra.mxu0 %v3828_v7  ;;  %v535_v40 = vsel %vm523_vm6, %v515_v14, %v529_v28  ;;  %v1213_v14 = vld [vmem:[%s5037_s16 + $0x8] sm:$0xff]  ;;  %v1652_v28 = vld [vmem:[%s5038_s0] sm:$0xff] }
 0x2dd   :  { %v534_v37 = vsel %vm522_vm7, %v510_v25, %v528_v30  ;;  %v740_v39 = vadd.f32 %v3041_v27, %v739_v35  ;;  %3841 = vmatprep.subr.bf16.mxu0 %v3840_v60  ;;  %v3848_v24 = vpack.c.bf16 %v1213_v14, %v1212_v11  ;;  %v1214_v25 = vld [vmem:[%s5037_s16 + $0x10] sm:$0xff]  ;;  %v3872_v30 = vpack.c.bf16 %v1653_v29, %v1652_v28  ;;  %v3052_v32 = vld [vmem:[#allocation6] ss:$0 sm:$0xff] }
 0x2de   :  { %3460 = vmatprep.mubr.msk.f32.mxu0 %vm300_vm0, %v534_v37  ;;  %vm759_vm8 = vcmp.gt.f32.partialorder %v745_v34, 0.0  ;;  %v763_v42 = vmul.f32 0.1, %v745_v34  ;;  %v1417_v14 = vld [vmem:[%s5040_s14] sm:$0xff] }
 0x2df   :  { %3461 = vmatmul.mubr.msk.f32.gmra.mrb[18].mxu0 %vm300_vm0, %v535_v40  ;;  %vm758_vm9 = vcmp.gt.f32.partialorder %v740_v39, 0.0  ;;  %v762_v43 = vmul.f32 0.1, %v740_v39  ;;  %v3445_v47 = vpop.f32.mrb[12].mxu0 }
 0x2e0   :  { %v767_v48 = vsel %vm759_vm8, %v745_v34, %v763_v42  ;;  %v755_v49 = vadd.f32 %v3445_v47, %v3041_v27  ;;  %v749_v50 = vpop.f32.mrb[13].mxu0 }
 0x2e1   :  { %v750_v51 = vadd.f32 %v3041_v27, %v749_v50  ;;  %v766_v52 = vsel %vm758_vm9, %v740_v39, %v762_v43  ;;  %v3852_v27 = vpack.c.bf16 %v1215_v26, %v1214_v25 }
 0x2e2   :  { %vm761_vm10 = vcmp.gt.f32.partialorder %v755_v49, 0.0  ;;  %v765_v53 = vmul.f32 0.1, %v755_v49  ;;  %3489 = vmatprep.mubr.msk.f32.mxu0 %vm300_vm0, %v766_v52 }
 0x2e3   :  { %vm760_vm11 = vcmp.gt.f32.partialorder %v750_v51, 0.0  ;;  %v764_v54 = vmul.f32 0.1, %v750_v51  ;;  %3490 = vmatmul.mubr.msk.f32.vlgmr.msra.gmra.mrb[20].mxu0 %vm300_vm0, %v767_v48 }
 0x2e4   :  { %v769_v55 = vsel %vm761_vm10, %v755_v49, %v765_v53  ;;  %3843 = vmatpush3.bf16.msra.mxu0 %v3840_v60 }
 0x2e5   :  { %v768_v56 = vsel %vm760_vm11, %v750_v51, %v764_v54  ;;  %3845 = vmatprep.subr.bf16.mxu0 %v3844_v62 }
 0x2e6   :  { %3492 = vmatprep.mubr.msk.f32.mxu0 %vm300_vm0, %v768_v56  ;;  %v1655_v56 = vld [vmem:[%s5038_s0 + $0x18] sm:$0xff] }
 0x2e7   :  { %3493 = vmatmul.mubr.msk.f32.gmra.mrb[22].mxu0 %vm300_vm0, %v769_v55  ;;  %v1654_v55 = vld [vmem:[%s5038_s0 + $0x10] sm:$0xff] }
 0x2e8   :  { %3520 = vmatprep.mubr.msk.f32.mxu0 %vm300_vm0, %v4597_v5  ;;  %3847 = vmatpush3.bf16.msra.mxu0 %v3844_v62  ;;  %v3876_v57 = vpack.c.bf16 %v1655_v56, %v1654_v55 }
 0x2e9   :  { %3849 = vmatprep.subr.bf16.mxu0 %v3848_v24 }
 0x2eb   :  { %3521 = vmatmul.mubr.msk.f32.vlgmr.msra.gmra.mrb[24].mxu0 %vm300_vm0, %v4606_v12 }
 0x2ec   :  { %3523 = vmatprep.mubr.msk.f32.mxu0 %vm300_vm0, %v4609_v13  ;;  %3851 = vmatpush3.bf16.msra.mxu0 %v3848_v24  ;;  %v1418_v24 = vld [vmem:[%s5040_s14 + $0x8] sm:$0xff] }
 0x2ed   :  { %3853 = vmatprep.subr.bf16.mxu0 %v3852_v27  ;;  %v3864_v28 = vpack.c.bf16 %v1418_v24, %v1417_v14 }
 0x2ef   :  { %3524 = vmatmul.mubr.msk.f32.gmra.mrb[26].mxu0 %vm300_vm0, %v4616_v15 }
 0x2f0   :  { %3855 = vmatpush3.bf16.msra.mxu0 %v3852_v27  ;;  %v3061_v27 = vld [vmem:[#allocation7] ss:$0 sm:$0xff] }
 0x2f1   :  { %3873 = vmatprep.subr.bf16.mxu0 %v3872_v30 }
 0x3aa   :  { %v3456_v5 = vpop.f32.mrb[14].mxu0 }
 0x3ab   :  { %v858_v63 = vpop.f32.mrb[15].mxu0 }
 0x3ac   :  { %v3812_v0 = vpack.c.bf16 %v3456_v5, %v858_v63 }
 0x3ae   :  { %v3459_v1 = vpop.f32.mrb[16].mxu0  ;;  %3813 = vmatprep.subr.bf16.mxu1 %v3812_v0 }
 0x3af   :  { %v868_v2 = vpop.f32.mrb[17].mxu0  ;;  %3815 = vmatpush3.bf16.msra.mxu1 %v3812_v0 }
 0x3b0   :  { %v3816_v3 = vpack.c.bf16 %v3459_v1, %v868_v2 }
 0x3b2   :  { %v3462_v4 = vpop.f32.mrb[18].mxu0  ;;  %3817 = vmatprep.subr.bf16.mxu1 %v3816_v3 }
 0x3b3   :  { %v878_v6 = vpop.f32.mrb[19].mxu0  ;;  %3819 = vmatpush3.bf16.msra.mxu1 %v3816_v3 }
 0x3b4   :  { %v3820_v7 = vpack.c.bf16 %v3462_v4, %v878_v6 }
 0x3b6   :  { %3821 = vmatprep.subr.bf16.mxu1 %v3820_v7  ;;  %v3491_v12 = vpop.f32.mrb[20].mxu0 }
 0x3b7   :  { %3823 = vmatpush3.bf16.msra.mxu1 %v3820_v7  ;;  %v1073_v13 = vpop.f32.mrb[21].mxu0  ;;  %v1421_v7 = vld [vmem:[%s5039_s4] sm:$0xff] }
 0x3b8   :  { %v3832_v8 = vpack.c.bf16 %v3491_v12, %v1073_v13  ;;  %v1422_v12 = vld [vmem:[%s5039_s4 + $0x8] sm:$0xff]  ;;  %v1423_v13 = vld [vmem:[%s5039_s4 + $0x10] sm:$0xff] }
 0x3ba   :  { %3476 = vmatmul.mubr.msk.f32.vlgmr.msra.gmra.mrb[6].mxu1 %vm660_vm1, %v4686_v44  ;;  %v3494_v15 = vpop.f32.mrb[22].mxu0  ;;  %3833 = vmatprep.subr.bf16.mxu1 %v3832_v8 }
 0x3bb   :  { %3478 = vmatprep.mubr.msk.f32.mxu1 %vm660_vm1, %v4691_v45  ;;  %v1083_v9 = vpop.f32.mrb[23].mxu0  ;;  %3835 = vmatpush3.bf16.msra.mxu1 %v3832_v8 }
 0x3bc   :  { %v3836_v10 = vpack.c.bf16 %v3494_v15, %v1083_v9  ;;  %v3856_v15 = vpack.c.bf16 %v1422_v12, %v1421_v7  ;;  %v1424_v9 = vld [vmem:[%s5039_s4 + $0x18] sm:$0xff] }
 0x3bd   :  { %v3860_v11 = vpack.c.bf16 %v1424_v9, %v1423_v13  ;;  %v1961_v7 = vld [vmem:[%s5041_s18 + $0x18] sm:$0xff]  ;;  %v3094_v13 = vld [vmem:[#allocation12] ss:$0 sm:$0xff] }
 0x3be   :  { %3479 = vmatmul.mubr.msk.f32.gmra.mrb[8].mxu1 %vm660_vm1, %v4698_v46  ;;  %3837 = vmatprep.subr.bf16.mxu1 %v3836_v10 }
 0x3bf   :  { %3839 = vmatpush3.bf16.msra.mxu1 %v3836_v10  ;;  %3503 = vmatprep.mubr.msk.f32.mxu1 %vm300_vm0, %v4651_v22 }
 0x3c0   :  { %3857 = vmatprep.subr.bf16.mxu1 %v3856_v15 }
 0x3c2   :  { %3504 = vmatmul.mubr.msk.f32.vlgmr.msra.gmra.mrb[10].mxu1 %vm300_vm0, %v4661_v31 }
 0x3c3   :  { %3506 = vmatprep.mubr.msk.f32.mxu1 %vm300_vm0, %v4664_v33  ;;  %3859 = vmatpush3.bf16.msra.mxu1 %v3856_v15 }
 0x3c4   :  { %3861 = vmatprep.subr.bf16.mxu1 %v3860_v11 }
 0x3c6   :  { %3507 = vmatmul.mubr.msk.f32.gmra.mrb[12].mxu1 %vm300_vm0, %v4671_v36 }
 0x3c7   :  { %3509 = vmatprep.mubr.msk.f32.mxu1 %vm300_vm0, %v4674_v38  ;;  %3863 = vmatpush3.bf16.msra.mxu1 %v3860_v11 }
 0x3c8   :  { %3865 = vmatprep.subr.bf16.mxu1 %v3864_v28 }
 0x3ca   :  { %3510 = vmatmul.mubr.msk.f32.gmra.mrb[14].mxu1 %vm300_vm0, %v4681_v41 }
 0x3cb   :  { %3548 = vmatprep.mubr.msk.f32.mxu1 %vm300_vm0, %v4619_v16 }
 0x3ce   :  { %3549 = vmatmul.mubr.msk.f32.vlgmr.msra.gmra.mrb[16].mxu1 %vm300_vm0, %v4626_v17 }
 0x3cf   :  { %3551 = vmatprep.mubr.msk.f32.mxu1 %vm300_vm0, %v4629_v18  ;;  %3867 = vmatpush3.bf16.msra.mxu1 %v3864_v28 }
 0x3d2   :  { %3552 = vmatmul.mubr.msk.f32.gmra.mrb[18].mxu1 %vm300_vm0, %v4636_v19 }
 0x3d3   :  { %3554 = vmatprep.mubr.msk.f32.mxu1 %vm300_vm0, %v4639_v20 }
 0x3d6   :  { %3555 = vmatmul.mubr.msk.f32.gmra.mrb[20].mxu1 %vm300_vm0, %v4646_v21 }
 0x48d   :  { %v3477_v34 = vpop.f32.mrb[6].mxu1 }
 0x48e   :  { %v966_v35 = vadd.f32 %v3477_v34, %v3052_v32  ;;  %v960_v37 = vpop.f32.mrb[7].mxu1 }
 0x48f   :  { %v961_v39 = vadd.f32 %v3052_v32, %v960_v37 }
 0x490   :  { %v984_v16 = vmul.f32 0.1, %v966_v35  ;;  %vm980_vm12 = vcmp.gt.f32.partialorder %v966_v35, 0.0 }
 0x491   :  { %vm979_vm13 = vcmp.gt.f32.partialorder %v961_v39, 0.0  ;;  %v983_v40 = vmul.f32 0.1, %v961_v39  ;;  %v3480_v42 = vpop.f32.mrb[8].mxu1 }
 0x492   :  { %v976_v43 = vadd.f32 %v3480_v42, %v3052_v32  ;;  %v970_v47 = vpop.f32.mrb[9].mxu1  ;;  %v988_v50 = vsel %vm980_vm12, %v966_v35, %v984_v16 }
 0x493   :  { %v971_v48 = vadd.f32 %v3052_v32, %v970_v47  ;;  %v987_v49 = vsel %vm979_vm13, %v961_v39, %v983_v40  ;;  %v1420_v32 = vld [vmem:[%s5040_s14 + $0x18] sm:$0xff] }
 0x494   :  { %v986_v51 = vmul.f32 0.1, %v976_v43  ;;  %3534 = vmatprep.mubr.msk.f32.mxu0 %vm300_vm0, %v987_v49  ;;  %vm982_vm14 = vcmp.gt.f32.partialorder %v976_v43, 0.0 }
 0x495   :  { %vm981_vm15 = vcmp.gt.f32.partialorder %v971_v48, 0.0  ;;  %v985_v52 = vmul.f32 0.1, %v971_v48  ;;  %3535 = vmatmul.mubr.msk.f32.vlgmr.msra.gmra.mrb[24].mxu0 %vm300_vm0, %v988_v50  ;;  %v3505_v8 = vpop.f32.mrb[10].mxu1 }
 0x496   :  { %3875 = vmatpush3.bf16.msra.mxu0 %v3872_v30  ;;  %v990_v54 = vsel %vm982_vm14, %v976_v43, %v986_v51  ;;  %v1165_v10 = vpop.f32.mrb[11].mxu1  ;;  %v1419_v30 = vld [vmem:[%s5040_s14 + $0x10] sm:$0xff]  ;;  %v1171_v40 = vadd.f32 %v3505_v8, %v3061_v27 }
 0x497   :  { %v989_v53 = vsel %vm981_vm15, %v971_v48, %v985_v52  ;;  %3877 = vmatprep.subr.bf16.mxu0 %v3876_v57  ;;  %v1166_v39 = vadd.f32 %v3061_v27, %v1165_v10  ;;  %v3868_v16 = vpack.c.bf16 %v1420_v32, %v1419_v30 }
 0x498   :  { %3537 = vmatprep.mubr.msk.f32.mxu0 %vm300_vm0, %v989_v53  ;;  %v1201_v47 = vmul.f32 0.1, %v1171_v40  ;;  %vm1195_vm3 = vcmp.gt.f32.partialorder %v1171_v40, 0.0 }
 0x499   :  { %3538 = vmatmul.mubr.msk.f32.gmra.mrb[26].mxu0 %vm300_vm0, %v990_v54  ;;  %v3508_v25 = vpop.f32.mrb[12].mxu1  ;;  %v1200_v42 = vmul.f32 0.1, %v1166_v39  ;;  %3869 = vmatprep.subr.bf16.mxu1 %v3868_v16  ;;  %vm1194_vm2 = vcmp.gt.f32.partialorder %v1166_v39, 0.0 }
 0x49a   :  { %3879 = vmatpush3.bf16.msra.mxu0 %v3876_v57  ;;  %v1175_v26 = vpop.f32.mrb[13].mxu1  ;;  %v1181_v48 = vadd.f32 %v3508_v25, %v3061_v27  ;;  %3871 = vmatpush3.bf16.msra.mxu1 %v3868_v16  ;;  %v1207_v18 = vsel %vm1195_vm3, %v1171_v40, %v1201_v47 }
 0x49b   :  { %v1176_v43 = vadd.f32 %v3061_v27, %v1175_v26  ;;  %v1206_v49 = vsel %vm1194_vm2, %v1166_v39, %v1200_v42 }
 0x49c   :  { %v1203_v50 = vmul.f32 0.1, %v1181_v48  ;;  %3565 = vmatprep.mubr.msk.f32.mxu1 %vm300_vm0, %v1206_v49  ;;  %vm1197_vm5 = vcmp.gt.f32.partialorder %v1181_v48, 0.0  ;;  %v2083_v49 = vld [vmem:[%s5042_s22 + $0x8] sm:$0xff] }
 0x49d   :  { %v3511_v29 = vpop.f32.mrb[14].mxu1  ;;  %v1202_v17 = vmul.f32 0.1, %v1176_v43  ;;  %vm1196_vm4 = vcmp.gt.f32.partialorder %v1176_v43, 0.0  ;;  %3566 = vmatmul.mubr.msk.f32.vlgmr.msra.gmra.mrb[16].mxu1 %vm300_vm0, %v1207_v18 }
 0x49e   :  { %v1191_v34 = vadd.f32 %v3511_v29, %v3061_v27  ;;  %v1185_v35 = vpop.f32.mrb[15].mxu1  ;;  %v1209_v19 = vsel %vm1197_vm5, %v1181_v48, %v1203_v50 }
 0x49f   :  { %v1186_v37 = vadd.f32 %v3061_v27, %v1185_v35  ;;  %v1208_v51 = vsel %vm1196_vm4, %v1176_v43, %v1202_v17  ;;  %v2082_v17 = vld [vmem:[%s5042_s22] sm:$0xff] }
 0x4a0   :  { %3568 = vmatprep.mubr.msk.f32.mxu1 %vm300_vm0, %v1208_v51  ;;  %v1205_v57 = vmul.f32 0.1, %v1191_v34  ;;  %vm1199_vm7 = vcmp.gt.f32.partialorder %v1191_v34, 0.0 }
 0x4a1   :  { %3569 = vmatmul.mubr.msk.f32.gmra.mrb[18].mxu1 %vm300_vm0, %v1209_v19  ;;  %v1204_v56 = vmul.f32 0.1, %v1186_v37  ;;  %vm1198_vm6 = vcmp.gt.f32.partialorder %v1186_v37, 0.0  ;;  %v3908_v19 = vpack.c.bf16 %v2083_v49, %v2082_v17 }
 0x568   :  { %v3536_v59 = vpop.f32.mrb[24].mxu0 }
 0x569   :  { %v4764_v60 = vadd.f32 %v3536_v59, %v3076_v58  ;;  %v1383_v61 = vpop.f32.mrb[25].mxu0  ;;  %v1958_v59 = vld [vmem:[%s5041_s18] sm:$0xff] }
 0x56a   :  { %v4766_v62 = vadd.f32 %v3076_v58, %v1383_v61  ;;  %v1959_v61 = vld [vmem:[%s5041_s18 + $0x8] sm:$0xff] }
 0x56b   :  { %v1414_v0 = vmax.f32 %v4764_v60, 0.0 }
 0x56c   :  { %v1413_v5 = vmax.f32 %v4766_v62, 0.0  ;;  %v3539_v63 = vpop.f32.mrb[26].mxu0  ;;  %v2281_v62 = vld [vmem:[%s5043_s23 + $0x10] sm:$0xff] }
 0x56d   :  { %v4770_v1 = vadd.f32 %v3539_v63, %v3076_v58  ;;  %v1393_v2 = vpop.f32.mrb[27].mxu0  ;;  %v1960_v63 = vld [vmem:[%s5041_s18 + $0x10] sm:$0xff] }
 0x56e   :  { %v4772_v3 = vadd.f32 %v3076_v58, %v1393_v2  ;;  %3582 = vmatprep.mubr.msk.f32.mxu0 %vm300_vm0, %v1413_v5  ;;  %v3900_v2 = vpack.c.bf16 %v1959_v61, %v1958_v59  ;;  %v3904_v12 = vpack.c.bf16 %v1961_v7, %v1960_v63 }
 0x56f   :  { %3583 = vmatmul.mubr.msk.f32.vlgmr.msra.gmra.mrb[28].mxu0 %vm300_vm0, %v1414_v0  ;;  %v1416_v6 = vmax.f32 %v4770_v1, 0.0 }
 0x570   :  { %v1415_v4 = vmax.f32 %v4772_v3, 0.0 }
 0x572   :  { %3585 = vmatprep.mubr.msk.f32.mxu0 %vm300_vm0, %v1415_v4 }
 0x573   :  { %3586 = vmatmul.mubr.msk.f32.gmra.mrb[30].mxu0 %vm300_vm0, %v1416_v6 }
 0x574   :  { %3596 = vmatprep.mubr.msk.f32.mxu0 %vm300_vm0, %v4651_v22 }
 0x642   :  { %v3584_v20 = vpop.f32.mrb[28].mxu0 }
 0x643   :  { %v1734_v52 = vpop.f32.mrb[29].mxu0 }
 0x644   :  { %v3880_v53 = vpack.c.bf16 %v3584_v20, %v1734_v52  ;;  %v2084_v20 = vld [vmem:[%s5042_s22 + $0x10] sm:$0xff]  ;;  %v2085_v52 = vld [vmem:[%s5042_s22 + $0x18] sm:$0xff] }
 0x646   :  { %v3587_v54 = vpop.f32.mrb[30].mxu0  ;;  %3881 = vmatprep.subr.bf16.mxu0 %v3880_v53 }
 0x647   :  { %v1744_v55 = vpop.f32.mrb[31].mxu0  ;;  %3883 = vmatpush3.bf16.msra.mxu0 %v3880_v53  ;;  %v3912_v53 = vpack.c.bf16 %v2085_v52, %v2084_v20  ;;  %v2596_v20 = vld [vmem:[%s5045_s28 + $0x8] sm:$0xff]  ;;  %v2597_v52 = vld [vmem:[%s5045_s28 + $0x10] sm:$0xff] }
 0x648   :  { %v3884_v21 = vpack.c.bf16 %v3587_v54, %v1744_v55 }
 0x64a   :  { %3885 = vmatprep.subr.bf16.mxu0 %v3884_v21 }
 0x64b   :  { %3887 = vmatpush3.bf16.msra.mxu0 %v3884_v21  ;;  %v2279_v21 = vld [vmem:[%s5043_s23] sm:$0xff] }
 0x64c   :  { %3901 = vmatprep.subr.bf16.mxu0 %v3900_v2 }
 0x64e   :  { %3597 = vmatmul.mubr.msk.f32.vlgmr.msra.gmra.mrb[32].mxu0 %vm300_vm0, %v4661_v31  ;;  %v1210_v31 = vsel %vm1198_vm6, %v1186_v37, %v1204_v56  ;;  %v2280_v56 = vld [vmem:[%s5043_s23 + $0x8] sm:$0xff] }
 0x64f   :  { %3599 = vmatprep.mubr.msk.f32.mxu0 %vm300_vm0, %v4664_v33  ;;  %3571 = vmatprep.mubr.msk.f32.mxu1 %vm300_vm0, %v1210_v31  ;;  %v1211_v33 = vsel %vm1199_vm7, %v1191_v34, %v1205_v57  ;;  %v3924_v57 = vpack.c.bf16 %v2280_v56, %v2279_v21  ;;  %v3089_v31 = vld [vmem:[#allocation10] ss:$0 sm:$0xff] }
 0x650   :  { %3572 = vmatmul.mubr.msk.f32.gmra.mrb[20].mxu1 %vm300_vm0, %v1211_v33  ;;  %3903 = vmatpush3.bf16.msra.mxu0 %v3900_v2 }
 0x651   :  { %3617 = vmatprep.mubr.msk.f32.mxu1 %vm660_vm1, %v4656_v23  ;;  %3905 = vmatprep.subr.bf16.mxu0 %v3904_v12 }
 0x652   :  { %3600 = vmatmul.mubr.msk.f32.gmra.mrb[34].mxu0 %vm300_vm0, %v4671_v36  ;;  %v4826_v36 = vpop.f32.mrb[16].mxu1 }
 0x653   :  { %3602 = vmatprep.mubr.msk.f32.mxu0 %vm300_vm0, %v4674_v38  ;;  %v4828_v38 = vpop.f32.mrb[17].mxu1 }
 0x654   :  { %3907 = vmatpush3.bf16.msra.mxu0 %v3904_v12  ;;  %v4865_v3 = vadd.f32 %v3089_v31, %v4828_v38 }
 0x655   :  { %3925 = vmatprep.subr.bf16.mxu0 %v3924_v57 }
 0x656   :  { %3603 = vmatmul.mubr.msk.f32.gmra.mrb[36].mxu0 %vm300_vm0, %v4681_v41  ;;  %v4830_v41 = vpop.f32.mrb[18].mxu1  ;;  %v1646_v59 = vmax.f32 %v4865_v3, 0.0 }
 0x657   :  { %v4832_v58 = vpop.f32.mrb[19].mxu1  ;;  %v4883_v38 = vadd.f32 %v4830_v41, %v3089_v31 }
 0x658   :  { %v4874_v61 = vadd.f32 %v3089_v31, %v4832_v58 }
 0x659   :  { %v1649_v2 = vmax.f32 %v4883_v38, 0.0 }
 0x65a   :  { %v1648_v63 = vmax.f32 %v4874_v61, 0.0 }
 0x721   :  { %v3598_v8 = vpop.f32.mrb[32].mxu0 }
 0x722   :  { %v1832_v15 = vadd.f32 %v3598_v8, %v3094_v13  ;;  %v1826_v9 = vpop.f32.mrb[33].mxu0  ;;  %v2079_v8 = vld [vmem:[%s5044_s26 + $0x8] sm:$0xff] }
 0x723   :  { %v1827_v10 = vadd.f32 %v3094_v13, %v1826_v9  ;;  %v3573_v54 = vpop.f32.mrb[20].mxu1  ;;  %v2080_v9 = vld [vmem:[%s5044_s26 + $0x10] sm:$0xff] }
 0x724   :  { %vm1856_vm8 = vcmp.gt.f32.partialorder %v1832_v15, 0.0  ;;  %v1862_v11 = vmul.f32 0.1, %v1832_v15  ;;  %v1624_v55 = vpop.f32.mrb[21].mxu1  ;;  %v4895_v7 = vadd.f32 %v3573_v54, %v3089_v31  ;;  %v2598_v54 = vld [vmem:[%s5045_s28 + $0x18] sm:$0xff] }
 0x725   :  { %vm1855_vm9 = vcmp.gt.f32.partialorder %v1827_v10, 0.0  ;;  %v1861_v14 = vmul.f32 0.1, %v1827_v10  ;;  %v3601_v24 = vpop.f32.mrb[34].mxu0  ;;  %v4886_v58 = vadd.f32 %v3089_v31, %v1624_v55  ;;  %v3956_v55 = vpack.c.bf16 %v2598_v54, %v2597_v52 }
 0x726   :  { %v1842_v25 = vadd.f32 %v3601_v24, %v3094_v13  ;;  %v1836_v26 = vpop.f32.mrb[35].mxu0  ;;  %v1868_v27 = vsel %vm1856_vm8, %v1832_v15, %v1862_v11  ;;  %v1651_v12 = vmax.f32 %v4895_v7, 0.0 }
 0x727   :  { %v1837_v28 = vadd.f32 %v3094_v13, %v1836_v26  ;;  %v1867_v29 = vsel %vm1855_vm9, %v1827_v10, %v1861_v14  ;;  %v1650_v41 = vmax.f32 %v4886_v58, 0.0  ;;  %v2081_v10 = vld [vmem:[%s5044_s26 + $0x18] sm:$0xff]  ;;  %v3105_v14 = vld [vmem:[#allocation15] ss:$0 sm:$0xff] }
 0x728   :  { %vm1858_vm10 = vcmp.gt.f32.partialorder %v1842_v25, 0.0  ;;  %v1864_v30 = vmul.f32 0.1, %v1842_v25  ;;  %v3888_v32 = vpack.c.bf16 %v1868_v27, %v1867_v29  ;;  %v3920_v11 = vpack.c.bf16 %v2081_v10, %v2080_v9 }
 0x729   :  { %vm1857_vm11 = vcmp.gt.f32.partialorder %v1837_v28, 0.0  ;;  %v1863_v34 = vmul.f32 0.1, %v1837_v28  ;;  %v3604_v35 = vpop.f32.mrb[36].mxu0 }
 0x72a   :  { %v1852_v37 = vadd.f32 %v3604_v35, %v3094_v13  ;;  %v1846_v39 = vpop.f32.mrb[37].mxu0  ;;  %3889 = vmatprep.subr.bf16.mxu1 %v3888_v32  ;;  %v1870_v16 = vsel %vm1858_vm10, %v1842_v25, %v1864_v30 }
 0x72b   :  { %v1847_v40 = vadd.f32 %v3094_v13, %v1846_v39  ;;  %3891 = vmatpush3.bf16.msra.mxu1 %v3888_v32  ;;  %v1869_v42 = vsel %vm1857_vm11, %v1837_v28, %v1863_v34  ;;  %v2078_v13 = vld [vmem:[%s5044_s26] sm:$0xff] }
 0x72c   :  { %vm1860_vm12 = vcmp.gt.f32.partialorder %v1852_v37, 0.0  ;;  %v1866_v43 = vmul.f32 0.1, %v1852_v37  ;;  %v3892_v47 = vpack.c.bf16 %v1870_v16, %v1869_v42  ;;  %v3916_v15 = vpack.c.bf16 %v2079_v8, %v2078_v13 }
 0x72d   :  { %vm1859_vm13 = vcmp.gt.f32.partialorder %v1847_v40, 0.0  ;;  %v1865_v48 = vmul.f32 0.1, %v1847_v40 }
 0x72e   :  { %3893 = vmatprep.subr.bf16.mxu1 %v3892_v47  ;;  %v1872_v18 = vsel %vm1860_vm12, %v1852_v37, %v1866_v43 }
 0x72f   :  { %3895 = vmatpush3.bf16.msra.mxu1 %v3892_v47  ;;  %v1871_v50 = vsel %vm1859_vm13, %v1847_v40, %v1865_v48 }
 0x730   :  { %v3896_v51 = vpack.c.bf16 %v1872_v18, %v1871_v50 }
 0x732   :  { %3897 = vmatprep.subr.bf16.mxu1 %v3896_v51 }
 0x733   :  { %3899 = vmatpush3.bf16.msra.mxu1 %v3896_v51 }
 0x734   :  { %3909 = vmatprep.subr.bf16.mxu1 %v3908_v19 }
 0x736   :  { %3618 = vmatmul.mubr.msk.f32.vlgmr.msra.gmra.mrb[22].mxu1 %vm660_vm1, %v4686_v44 }
 0x737   :  { %3911 = vmatpush3.bf16.msra.mxu1 %v3908_v19  ;;  %3620 = vmatprep.mubr.msk.f32.mxu1 %vm660_vm1, %v4691_v45 }
 0x738   :  { %3913 = vmatprep.subr.bf16.mxu1 %v3912_v53 }
 0x73a   :  { %3621 = vmatmul.mubr.msk.f32.gmra.mrb[24].mxu1 %vm660_vm1, %v4698_v46 }
 0x73b   :  { %3915 = vmatpush3.bf16.msra.mxu1 %v3912_v53  ;;  %3645 = vmatprep.mubr.msk.f32.mxu1 %vm300_vm0, %v1413_v5  ;;  %v2282_v5 = vld [vmem:[%s5043_s23 + $0x18] sm:$0xff] }
 0x73c   :  { %3917 = vmatprep.subr.bf16.mxu1 %v3916_v15 }
 0x73e   :  { %3646 = vmatmul.mubr.msk.f32.vlgmr.msra.gmra.mrb[26].mxu1 %vm300_vm0, %v1414_v0  ;;  %v3928_v0 = vpack.c.bf16 %v2282_v5, %v2281_v62 }
 0x73f   :  { %3648 = vmatprep.mubr.msk.f32.mxu1 %vm300_vm0, %v1415_v4  ;;  %v4870_v4 = vadd.f32 %v4826_v36, %v3089_v31  ;;  %3919 = vmatpush3.bf16.msra.mxu1 %v3916_v15 }
 0x740   :  { %3921 = vmatprep.subr.bf16.mxu1 %v3920_v11 }
 0x741   :  { %v1647_v36 = vmax.f32 %v4870_v4, 0.0 }
 0x742   :  { %3649 = vmatmul.mubr.msk.f32.gmra.mrb[28].mxu1 %vm300_vm0, %v1416_v6 }
 0x743   :  { %3923 = vmatpush3.bf16.msra.mxu1 %v3920_v11 }
 0x809   :  { %v3619_v60 = vpop.f32.mrb[22].mxu1 }
 0x80a   :  { %v1939_v33 = vpop.f32.mrb[23].mxu1 }
 0x80b   :  { %3631 = vmatprep.mubr.msk.f32.mxu0 %vm300_vm0, %v1939_v33 }
 0x80c   :  { %3632 = vmatmul.mubr.msk.f32.vlgmr.msra.gmra.mrb[38].mxu0 %vm300_vm0, %v3619_v60  ;;  %v3125_v60 = vld [vmem:[#allocation13] ss:$0 sm:$0xff] }
 0x80d   :  { %v3622_v1 = vpop.f32.mrb[24].mxu1  ;;  %3927 = vmatpush3.bf16.msra.mxu0 %v3924_v57 }
 0x80e   :  { %v1949_v6 = vpop.f32.mrb[25].mxu1  ;;  %3929 = vmatprep.subr.bf16.mxu0 %v3928_v0 }
 0x80f   :  { %3634 = vmatprep.mubr.msk.f32.mxu0 %vm300_vm0, %v1949_v6 }
 0x810   :  { %3635 = vmatmul.mubr.msk.f32.gmra.mrb[40].mxu0 %vm300_vm0, %v3622_v1 }
 0x811   :  { %3931 = vmatpush3.bf16.msra.mxu0 %v3928_v0  ;;  %3673 = vmatprep.mubr.msk.f32.mxu0 %vm300_vm0, %v1646_v59 }
 0x814   :  { %3674 = vmatmul.mubr.msk.f32.vlgmr.msra.gmra.mrb[42].mxu0 %vm300_vm0, %v1647_v36 }
 0x815   :  { %3676 = vmatprep.mubr.msk.f32.mxu0 %vm300_vm0, %v1648_v63 }
 0x818   :  { %3677 = vmatmul.mubr.msk.f32.gmra.mrb[44].mxu0 %vm300_vm0, %v1649_v2 }
 0x819   :  { %3679 = vmatprep.mubr.msk.f32.mxu0 %vm300_vm0, %v1650_v41 }
 0x81c   :  { %3680 = vmatmul.mubr.msk.f32.gmra.mrb[46].mxu0 %vm300_vm0, %v1651_v12 }
 0x81d   :  { %3694 = vmatprep.mubr.msk.f32.mxu0 %vm660_vm1, %v4656_v23 }
 0x8df   :  { %v3633_v24 = vpop.f32.mrb[38].mxu0 }
 0x8e0   :  { %v2053_v25 = vadd.f32 %v3633_v24, %v3105_v14  ;;  %v2047_v26 = vpop.f32.mrb[39].mxu0 }
 0x8e1   :  { %v2048_v27 = vadd.f32 %v3105_v14, %v2047_v26 }
 0x8e2   :  { %v2071_v28 = vmul.f32 0.1, %v2053_v25  ;;  %vm2067_vm14 = vcmp.gt.f32.partialorder %v2053_v25, 0.0 }
 0x8e3   :  { %vm2066_vm15 = vcmp.gt.f32.partialorder %v2048_v27, 0.0  ;;  %v2070_v29 = vmul.f32 0.1, %v2048_v27  ;;  %v3636_v23 = vpop.f32.mrb[40].mxu0 }
 0x8e4   :  { %v2063_v30 = vadd.f32 %v3636_v23, %v3105_v14  ;;  %v2057_v32 = vpop.f32.mrb[41].mxu0  ;;  %v2075_v37 = vsel %vm2067_vm14, %v2053_v25, %v2071_v28  ;;  %v2741_v28 = vld [vmem:[%s4527_s30] sm:$0xff] }
 0x8e5   :  { %v2058_v34 = vadd.f32 %v3105_v14, %v2057_v32  ;;  %v2074_v35 = vsel %vm2066_vm15, %v2048_v27, %v2070_v29  ;;  %v2742_v29 = vld [vmem:[%s4527_s30 + $0x8] sm:$0xff] }
 0x8e6   :  { %v2073_v39 = vmul.f32 0.1, %v2063_v30  ;;  %3659 = vmatprep.mubr.msk.f32.mxu1 %vm300_vm0, %v2074_v35  ;;  %vm2069_vm2 = vcmp.gt.f32.partialorder %v2063_v30, 0.0  ;;  %v2743_v35 = vld [vmem:[%s4527_s30 + $0x10] sm:$0xff] }
 0x8e7   :  { %vm2068_vm3 = vcmp.gt.f32.partialorder %v2058_v34, 0.0  ;;  %v2072_v16 = vmul.f32 0.1, %v2058_v34  ;;  %3660 = vmatmul.mubr.msk.f32.vlgmr.msra.gmra.mrb[26].mxu1 %vm300_vm0, %v2075_v37  ;;  %v3675_v40 = vpop.f32.mrb[42].mxu0  ;;  %v2744_v37 = vld [vmem:[%s4527_s30 + $0x18] sm:$0xff] }
 0x8e8   :  { %v2367_v42 = vpop.f32.mrb[43].mxu0  ;;  %v2077_v48 = vsel %vm2069_vm2, %v2063_v30, %v2073_v39  ;;  %v3964_v39 = vpack.c.bf16 %v2744_v37, %v2743_v35 }
 0x8e9   :  { %v3932_v43 = vpack.c.bf16 %v3675_v40, %v2367_v42  ;;  %v2076_v47 = vsel %vm2068_vm3, %v2058_v34, %v2072_v16  ;;  %v3960_v34 = vpack.c.bf16 %v2742_v29, %v2741_v28  ;;  %v4041_v16 = vld [vmem:[%s5032_s21 + $0x8] sm:$0xff]  ;;  %v4042_v40 = vld [vmem:[%s5032_s21 + $0x10] sm:$0xff]  ;;  %v4043_v42 = vld [vmem:[%s5032_s21 + $0x18] sm:$0xff] }
 0x8ea   :  { %3662 = vmatprep.mubr.msk.f32.mxu1 %vm300_vm0, %v2076_v47  ;;  %v4045_v47 = vld [vmem:[%s5032_s21 + $0x28] sm:$0xff] }
 0x8eb   :  { %3663 = vmatmul.mubr.msk.f32.gmra.mrb[28].mxu1 %vm300_vm0, %v2077_v48  ;;  %v3678_v17 = vpop.f32.mrb[44].mxu0  ;;  %3933 = vmatprep.subr.bf16.mxu0 %v3932_v43  ;;  %v3136_v48 = vld [vmem:[#allocation16] ss:$0 sm:$0xff] }
 0x8ec   :  { %v2377_v49 = vpop.f32.mrb[45].mxu0  ;;  %3935 = vmatpush3.bf16.msra.mxu0 %v3932_v43  ;;  %3708 = vmatprep.mubr.msk.f32.mxu1 %vm300_vm0, %v4651_v22  ;;  %v2595_v22 = vld [vmem:[%s5045_s28] sm:$0xff] }
 0x8ed   :  { %v3936_v18 = vpack.c.bf16 %v3678_v17, %v2377_v49  ;;  %v3952_v53 = vpack.c.bf16 %v2596_v20, %v2595_v22  ;;  %v4044_v43 = vld [vmem:[%s5032_s21 + $0x20] sm:$0xff] }
 0x8ef   :  { %v3681_v50 = vpop.f32.mrb[46].mxu0  ;;  %3937 = vmatprep.subr.bf16.mxu0 %v3936_v18 }
 0x8f0   :  { %v2387_v51 = vpop.f32.mrb[47].mxu0  ;;  %3939 = vmatpush3.bf16.msra.mxu0 %v3936_v18 }
 0x8f1   :  { %v3940_v19 = vpack.c.bf16 %v3681_v50, %v2387_v51 }
 0x8f3   :  { %3941 = vmatprep.subr.bf16.mxu0 %v3940_v19 }
 0x8f4   :  { %3943 = vmatpush3.bf16.msra.mxu0 %v3940_v19 }
 0x8f5   :  { %3953 = vmatprep.subr.bf16.mxu0 %v3952_v53 }
 0x8f7   :  { %3695 = vmatmul.mubr.msk.f32.vlgmr.msra.gmra.mrb[48].mxu0 %vm660_vm1, %v4686_v44  ;;  %v3118_v44 = vld [vmem:[#allocation18] ss:$0 sm:$0xff] }
 0x8f8   :  { %3697 = vmatprep.mubr.msk.f32.mxu0 %vm660_vm1, %v4691_v45  ;;  %3955 = vmatpush3.bf16.msra.mxu0 %v3952_v53 }
 0x8f9   :  { %3957 = vmatprep.subr.bf16.mxu0 %v3956_v55 }
 0x8fb   :  { %3698 = vmatmul.mubr.msk.f32.gmra.mrb[50].mxu0 %vm660_vm1, %v4698_v46 }
 0x8fc   :  { %3959 = vmatpush3.bf16.msra.mxu0 %v3956_v55 }
 0x9ba   :  { %v3661_v21 = vpop.f32.mrb[26].mxu1 }
 0x9bb   :  { %v2276_v45 = vadd.f32 %v3661_v21, %v3118_v44  ;;  %v2249_v56 = vpop.f32.mrb[27].mxu1 }
 0x9bc   :  { %v2275_v57 = vadd.f32 %v3118_v44, %v2249_v56 }
 0x9bd   :  { %2967 = vst.msk [vmem:[%s4537_s9 + $0x8] sm:$0xff] %vm300_vm0, %v2276_v45 }
 0x9be   :  { %2966 = vst.msk [vmem:[%s4537_s9] sm:$0xff] %vm300_vm0, %v2275_v57  ;;  %v3664_v46 = vpop.f32.mrb[28].mxu1 }
 0x9bf   :  { %v2278_v62 = vadd.f32 %v3664_v46, %v3118_v44  ;;  %v2259_v5 = vpop.f32.mrb[29].mxu1 }
 0x9c0   :  { %v2277_v31 = vadd.f32 %v3118_v44, %v2259_v5 }
 0x9c1   :  { %2969 = vst.msk [vmem:[%s4537_s9 + $0x18] sm:$0xff] %vm300_vm0, %v2278_v62 }
 0x9c2   :  { %2968 = vst.msk [vmem:[%s4537_s9 + $0x10] sm:$0xff] %vm300_vm0, %v2277_v31  ;;  %s5046_s9 = sld [smem:[#allocation43_spill]] }
 0x9c8   :  { %v2737_v3 = vld [vmem:[%s5046_s9] sm:$0xff]  ;;  %v2738_v4 = vld [vmem:[%s5046_s9 + $0x8] sm:$0xff]  ;;  %v2739_v7 = vld [vmem:[%s5046_s9 + $0x10] sm:$0xff] }
 0x9ca   :  { %v3696_v33 = vpop.f32.mrb[48].mxu0 }
 0x9cb   :  { %v2475_v0 = vadd.f32 %v3696_v33, %v3125_v60  ;;  %v2469_v1 = vpop.f32.mrb[49].mxu0 }
 0x9cc   :  { %v2470_v6 = vadd.f32 %v3125_v60, %v2469_v1  ;;  %v3155_v1 = vld [vmem:[#allocation19] ss:$0 sm:$0xff] }
 0x9cd   :  { %vm2489_vm1 = vcmp.gt.f32.partialorder %v2475_v0, 0.0  ;;  %v2493_v13 = vmul.f32 0.1, %v2475_v0 }
 0x9ce   :  { %vm2488_vm4 = vcmp.gt.f32.partialorder %v2470_v6, 0.0  ;;  %v2492_v8 = vmul.f32 0.1, %v2470_v6  ;;  %v3699_v15 = vpop.f32.mrb[50].mxu0 }
 0x9cf   :  { %v2485_v9 = vadd.f32 %v3699_v15, %v3125_v60  ;;  %v2479_v10 = vpop.f32.mrb[51].mxu0  ;;  %v2497_v11 = vsel %vm2489_vm1, %v2475_v0, %v2493_v13 }
 0x9d0   :  { %v2480_v14 = vadd.f32 %v3125_v60, %v2479_v10  ;;  %v2496_v24 = vsel %vm2488_vm4, %v2470_v6, %v2492_v8 }
 0x9d1   :  { %vm2491_vm5 = vcmp.gt.f32.partialorder %v2485_v9, 0.0  ;;  %v2495_v25 = vmul.f32 0.1, %v2485_v9  ;;  %v3944_v26 = vpack.c.bf16 %v2497_v11, %v2496_v24 }
 0x9d2   :  { %vm2490_vm6 = vcmp.gt.f32.partialorder %v2480_v14, 0.0  ;;  %v2494_v27 = vmul.f32 0.1, %v2480_v14 }
 0x9d3   :  { %3945 = vmatprep.subr.bf16.mxu1 %v3944_v26  ;;  %v2499_v23 = vsel %vm2491_vm5, %v2485_v9, %v2495_v25 }
 0x9d4   :  { %3947 = vmatpush3.bf16.msra.mxu1 %v3944_v26  ;;  %v2498_v30 = vsel %vm2490_vm6, %v2480_v14, %v2494_v27 }
 0x9d5   :  { %v3948_v32 = vpack.c.bf16 %v2499_v23, %v2498_v30 }
 0x9d7   :  { %3949 = vmatprep.subr.bf16.mxu1 %v3948_v32 }
 0x9d8   :  { %3951 = vmatpush3.bf16.msra.mxu1 %v3948_v32 }
 0x9d9   :  { %3961 = vmatprep.subr.bf16.mxu1 %v3960_v34 }
 0x9db   :  { %3709 = vmatmul.mubr.msk.f32.vlgmr.msra.gmra.mrb[30].mxu1 %vm300_vm0, %v4041_v16 }
 0x9dc   :  { %3711 = vmatprep.mubr.msk.f32.mxu1 %vm300_vm0, %v4042_v40  ;;  %3963 = vmatpush3.bf16.msra.mxu1 %v3960_v34 }
 0x9dd   :  { %3965 = vmatprep.subr.bf16.mxu1 %v3964_v39 }
 0x9df   :  { %3712 = vmatmul.mubr.msk.f32.gmra.mrb[32].mxu1 %vm300_vm0, %v4043_v42 }
 0x9e0   :  { %3714 = vmatprep.mubr.msk.f32.mxu1 %vm300_vm0, %v4044_v43  ;;  %3967 = vmatpush3.bf16.msra.mxu1 %v3964_v39 }
 0x9e3   :  { %3715 = vmatmul.mubr.msk.f32.gmra.mrb[34].mxu1 %vm300_vm0, %v4045_v47 }
 0x9e4   :  { %3742 = vmatprep.mubr.msk.f32.mxu1 %vm300_vm0, %v1646_v59  ;;  %v3968_v59 = vpack.c.bf16 %v2738_v4, %v2737_v3 }
 0x9e6   :  { %3969 = vmatprep.subr.bf16.mxu1 %v3968_v59 }
 0x9e7   :  { %3743 = vmatmul.mubr.msk.f32.vlgmr.msra.gmra.mrb[36].mxu1 %vm300_vm0, %v1647_v36 }
 0x9e8   :  { %3745 = vmatprep.mubr.msk.f32.mxu1 %vm300_vm0, %v1648_v63  ;;  %3971 = vmatpush3.bf16.msra.mxu1 %v3968_v59 }
 0x9eb   :  { %3746 = vmatmul.mubr.msk.f32.gmra.mrb[38].mxu1 %vm300_vm0, %v1649_v2 }
 0x9ec   :  { %3748 = vmatprep.mubr.msk.f32.mxu1 %vm300_vm0, %v1650_v41  ;;  %v2740_v41 = vld [vmem:[%s5046_s9 + $0x18] sm:$0xff] }
 0x9ef   :  { %3749 = vmatmul.mubr.msk.f32.gmra.mrb[40].mxu1 %vm300_vm0, %v1651_v12  ;;  %v3972_v12 = vpack.c.bf16 %v2740_v41, %v2739_v7 }
 0x9f1   :  { %3973 = vmatprep.subr.bf16.mxu1 %v3972_v12 }
 0x9f2   :  { %3975 = vmatpush3.bf16.msra.mxu1 %v3972_v12 }
 0xaae   :  { %v3710_v61 = vpop.f32.mrb[30].mxu1 }
 0xaaf   :  { %v2566_v36 = vpop.f32.mrb[31].mxu1 }
 0xab0   :  { %3725 = vmatprep.mubr.msk.f32.mxu0 %vm300_vm0, %v2566_v36 }
 0xab1   :  { %3726 = vmatmul.mubr.msk.f32.vlgmr.msra.gmra.mrb[52].mxu0 %vm300_vm0, %v3710_v61 }
 0xab2   :  { %v3713_v38 = vpop.f32.mrb[32].mxu1 }
 0xab3   :  { %v2576_v63 = vpop.f32.mrb[33].mxu1 }
 0xab4   :  { %3728 = vmatprep.mubr.msk.f32.mxu0 %vm300_vm0, %v2576_v63 }
 0xab5   :  { %3729 = vmatmul.mubr.msk.f32.gmra.mrb[54].mxu0 %vm300_vm0, %v3713_v38 }
 0xab6   :  { %v3716_v58 = vpop.f32.mrb[34].mxu1 }
 0xab7   :  { %v2586_v2 = vpop.f32.mrb[35].mxu1 }
 0xab8   :  { %3731 = vmatprep.mubr.msk.f32.mxu0 %vm300_vm0, %v2586_v2 }
 0xab9   :  { %3732 = vmatmul.mubr.msk.f32.gmra.mrb[56].mxu0 %vm300_vm0, %v3716_v58 }
 0xb84   :  { %v3727_v17 = vpop.f32.mrb[52].mxu0 }
 0xb85   :  { %v2696_v49 = vadd.f32 %v3727_v17, %v3136_v48  ;;  %v2690_v18 = vpop.f32.mrb[53].mxu0 }
 0xb86   :  { %v2691_v50 = vadd.f32 %v3136_v48, %v2690_v18 }
 0xb87   :  { %v2726_v51 = vmul.f32 0.1, %v2696_v49  ;;  %vm2720_vm7 = vcmp.gt.f32.partialorder %v2696_v49, 0.0 }
 0xb88   :  { %vm2719_vm8 = vcmp.gt.f32.partialorder %v2691_v50, 0.0  ;;  %v2725_v19 = vmul.f32 0.1, %v2691_v50  ;;  %v3730_v22 = vpop.f32.mrb[54].mxu0 }
 0xb89   :  { %v2706_v20 = vadd.f32 %v3730_v22, %v3136_v48  ;;  %v2700_v52 = vpop.f32.mrb[55].mxu0  ;;  %v2732_v55 = vsel %vm2720_vm7, %v2696_v49, %v2726_v51 }
 0xb8a   :  { %v2701_v53 = vadd.f32 %v3136_v48, %v2700_v52  ;;  %v2731_v54 = vsel %vm2719_vm8, %v2691_v50, %v2725_v19 }
 0xb8b   :  { %v2728_v44 = vmul.f32 0.1, %v2706_v20  ;;  %3759 = vmatprep.mubr.msk.f32.mxu1 %vm300_vm0, %v2731_v54  ;;  %vm2722_vm9 = vcmp.gt.f32.partialorder %v2706_v20, 0.0 }
 0xb8c   :  { %vm2721_vm10 = vcmp.gt.f32.partialorder %v2701_v53, 0.0  ;;  %v2727_v21 = vmul.f32 0.1, %v2701_v53  ;;  %v3733_v45 = vpop.f32.mrb[56].mxu0  ;;  %3760 = vmatmul.mubr.msk.f32.vlgmr.msra.gmra.mrb[36].mxu1 %vm300_vm0, %v2732_v55 }
 0xb8d   :  { %v2716_v56 = vadd.f32 %v3733_v45, %v3136_v48  ;;  %v2710_v57 = vpop.f32.mrb[57].mxu0  ;;  %v2734_v31 = vsel %vm2722_vm9, %v2706_v20, %v2728_v44 }
 0xb8e   :  { %v2711_v46 = vadd.f32 %v3136_v48, %v2710_v57  ;;  %v2733_v62 = vsel %vm2721_vm10, %v2701_v53, %v2727_v21 }
 0xb8f   :  { %v2730_v5 = vmul.f32 0.1, %v2716_v56  ;;  %3762 = vmatprep.mubr.msk.f32.mxu1 %vm300_vm0, %v2733_v62  ;;  %vm2724_vm11 = vcmp.gt.f32.partialorder %v2716_v56, 0.0 }
 0xb90   :  { %vm2723_vm12 = vcmp.gt.f32.partialorder %v2711_v46, 0.0  ;;  %v2729_v60 = vmul.f32 0.1, %v2711_v46  ;;  %3763 = vmatmul.mubr.msk.f32.gmra.mrb[38].mxu1 %vm300_vm0, %v2734_v31 }
 0xb91   :  { %v2736_v0 = vsel %vm2724_vm11, %v2716_v56, %v2730_v5 }
 0xb92   :  { %v2735_v33 = vsel %vm2723_vm12, %v2711_v46, %v2729_v60 }
 0xb93   :  { %3765 = vmatprep.mubr.msk.f32.mxu1 %vm300_vm0, %v2735_v33 }
 0xb94   :  { %3766 = vmatmul.mubr.msk.f32.gmra.mrb[40].mxu1 %vm300_vm0, %v2736_v0 }
 0xc5f   :  { %v3761_v6 = vpop.f32.mrb[36].mxu1 }
 0xc60   :  { %v2961_v13 = vadd.f32 %v3761_v6, %v3155_v1  ;;  %v2924_v8 = vpop.f32.mrb[37].mxu1 }
 0xc61   :  { %v2960_v15 = vadd.f32 %v3155_v1, %v2924_v8 }
 0xc62   :  { %2971 = vst.msk [vmem:[%s4542_s17 + $0x8] sm:$0xff] %vm300_vm0, %v2961_v13 }
 0xc63   :  { %2970 = vst.msk [vmem:[%s4542_s17] sm:$0xff] %vm300_vm0, %v2960_v15  ;;  %v3764_v9 = vpop.f32.mrb[38].mxu1 }
 0xc64   :  { %v2963_v10 = vadd.f32 %v3764_v9, %v3155_v1  ;;  %v2934_v11 = vpop.f32.mrb[39].mxu1 }
 0xc65   :  { %v2962_v14 = vadd.f32 %v3155_v1, %v2934_v11 }
 0xc66   :  { %2973 = vst.msk [vmem:[%s4542_s17 + $0x18] sm:$0xff] %vm300_vm0, %v2963_v10 }
 0xc67   :  { %2972 = vst.msk [vmem:[%s4542_s17 + $0x10] sm:$0xff] %vm300_vm0, %v2962_v14  ;;  %v3767_v24 = vpop.f32.mrb[40].mxu1 }
 0xc68   :  { %v2965_v25 = vadd.f32 %v3767_v24, %v3155_v1  ;;  %v2944_v26 = vpop.f32.mrb[41].mxu1 }
 0xc69   :  { %v2964_v27 = vadd.f32 %v3155_v1, %v2944_v26 }
 0xc6a   :  { %2975 = vst.msk [vmem:[%s4542_s17 + $0x28] sm:$0xff] %vm300_vm0, %v2965_v25 }
 0xc6b   :  { %2974 = vst.msk [vmem:[%s4542_s17 + $0x20] sm:$0xff] %vm300_vm0, %v2964_v27 }
 0xc6c   :  { %2984 = vsyncpa [#allocation3], 1 }
 0xc6d   :  { %2985 = vsyncpa [#allocation5], 1 }
 0xc6e   :  { %2986 = vsyncpa [#allocation8], 1 }
 0xc6f   :  { %2987 = vsyncpa [#allocation11], 1 }
 0xc70   :  { %2988 = vsyncpa [#allocation14], 1 }
 0xc71   :  { %2989 = vsyncpa [#allocation17], 1 }
 0xc72   :  { %2990 = vsyncpa [#allocation20], 1 }

// kernel: disencdr_forward.8
= control target key start
LH: loop header
LB: loop body
LE: loop exit
PB: predicated region body
PF: predicated region fallthrough
CT: control target
= control target key end

     0   :  { %vm70_vm0 = vcmask 261120   ;;  %vm354_vm3 = vcmask 130048   ;;  %vm1160_vm12 = vcmask 523264   ;;  %s2042_s3 = inlined_call_operand.vmem [shape: f32[32,32], index: 3, kind: input, shape index: {}]   ;;  %s2043_s0 = inlined_call_operand.vmem [shape: f32[32,32], index: 0, kind: input, shape index: {}]   ;;  %s2044_s2 = inlined_call_operand.vmem [shape: f32[16,32], index: 2, kind: input, shape index: {}]   ;;  %s2045_s5 = inlined_call_operand.vmem [shape: f32[32,32], index: 5, kind: input, shape index: {}]   ;;  %s2046_s4 = inlined_call_operand.vmem [shape: f32[1,32], index: 4, kind: input, shape index: {}]   ;;  %s2047_s1 = inlined_call_operand.vmem [shape: f32[32,16], index: 1, kind: input, shape index: {}]   ;;  %s2048_s8 = inlined_call_operand.vmem [shape: f32[32,32], index: 8, kind: input, shape index: {}]   ;;  %s2049_s7 = inlined_call_operand.vmem [shape: f32[32,32], index: 7, kind: input, shape index: {}]   ;;  %s2050_s10 = inlined_call_operand.vmem [shape: f32[32,32], index: 10, kind: input, shape index: {}]   ;;  %s2051_s6 = inlined_call_operand.vmem [shape: f32[1,32], index: 6, kind: input, shape index: {}]   ;;  %s2052_s9 = inlined_call_operand.vmem [shape: f32[1,32], index: 9, kind: input, shape index: {}]   ;;  %s2053_s12 = inlined_call_operand.vmem [shape: f32[32,64], index: 12, kind: input, shape index: {}]   ;;  %s2054_s11 = inlined_call_operand.vmem [shape: f32[1,32], index: 11, kind: input, shape index: {}]   ;;  %s2055_s15 = inlined_call_operand.vmem [shape: f32[32,64], index: 15, kind: input, shape index: {}]   ;;  %s2056_s14 = inlined_call_operand.vmem [shape: f32[64,64], index: 14, kind: input, shape index: {}]   ;;  %s2057_s13 = inlined_call_operand.vmem [shape: f32[1,64], index: 13, kind: input, shape index: {}]   ;;  %s2058_s16 = inlined_call_operand.vmem [shape: f32[1,64], index: 16, kind: input, shape index: {}]   ;;  %s2059_s17 = inlined_call_operand.vmem [shape: f32[32,64], index: 17, kind: output, shape index: {}]  }
   0x1   :  { %2062 = sst [smem:[#allocation2_spill]] %s2042_s3  ;;  %v1811_v10 = vld [vmem:[%s2044_s2] sm:$0xff]  ;;  %v1818_v17 = vld [vmem:[%s2044_s2 + $0x8] sm:$0xff]  ;;  %v264_v21 = vld [vmem:[%s2045_s5 + $0x10] sm:$0xff] }
   0x2   :  { %2063 = sst [smem:[#allocation3_spill]] %s2043_s0  ;;  %s2064_s26 = sld [smem:[#allocation2_spill]]  ;;  %v262_v18 = vld [vmem:[%s2045_s5] sm:$0xff]  ;;  %v263_v19 = vld [vmem:[%s2045_s5 + $0x8] sm:$0xff]  ;;  %v265_v22 = vld [vmem:[%s2045_s5 + $0x18] sm:$0xff] }
   0x3   :  { %s2065_s20 = sld [smem:[#allocation3_spill]]  ;;  %v1590_v20 = vpack.c.bf16 %v263_v19, %v262_v18  ;;  %v1594_v23 = vpack.c.bf16 %v265_v22, %v264_v21  ;;  %v1281_v24 = vld [vmem:[%s2046_s4] ss:$0 sm:$0xff]  ;;  %v469_v35 = vld [vmem:[%s2048_s8 + $0x8] sm:$0xff]  ;;  %v470_v40 = vld [vmem:[%s2048_s8 + $0x10] sm:$0xff] }
   0x4   :  { %v1842_v33 = vld [vmem:[%s2047_s1] sm:$0xff]  ;;  %v471_v41 = vld [vmem:[%s2048_s8 + $0x18] sm:$0xff]  ;;  %v1861_v42 = vld [vmem:[%s2047_s1 + $0x8] sm:$0xff] }
   0x5   :  { %1591 = vmatprep.subr.bf16.mxu0 %v1590_v20  ;;  %v468_v34 = vld [vmem:[%s2048_s8] sm:$0xff]  ;;  %v1866_v43 = vld [vmem:[%s2047_s1 + $0x10] sm:$0xff]  ;;  %v1606_v44 = vpack.c.bf16 %v471_v41, %v470_v40  ;;  %v1875_v45 = vld [vmem:[%s2047_s1 + $0x18] sm:$0xff] }
   0x6   :  { %1593 = vmatpush3.bf16.msra.mxu0 %v1590_v20  ;;  %v1602_v39 = vpack.c.bf16 %v469_v35, %v468_v34  ;;  %v464_v46 = vld [vmem:[%s2049_s7] sm:$0xff]  ;;  %v465_v47 = vld [vmem:[%s2049_s7 + $0x8] sm:$0xff]  ;;  %v466_v49 = vld [vmem:[%s2049_s7 + $0x10] sm:$0xff] }
   0x7   :  { %1595 = vmatprep.subr.bf16.mxu0 %v1594_v23  ;;  %v1610_v48 = vpack.c.bf16 %v465_v47, %v464_v46  ;;  %v467_v50 = vld [vmem:[%s2049_s7 + $0x18] sm:$0xff]  ;;  %v669_v52 = vld [vmem:[%s2050_s10] sm:$0xff]  ;;  %v670_v53 = vld [vmem:[%s2050_s10 + $0x8] sm:$0xff] }
   0x8   :  { %v66_v0 = vld [vmem:[%s2064_s26] sm:$0xff]  ;;  %v67_v1 = vld [vmem:[%s2064_s26 + $0x8] sm:$0xff]  ;;  %v68_v2 = vld [vmem:[%s2064_s26 + $0x10] sm:$0xff]  ;;  %v1614_v51 = vpack.c.bf16 %v467_v50, %v466_v49  ;;  %v1618_v54 = vpack.c.bf16 %v670_v53, %v669_v52 }
   0x9   :  { %v1574_v3 = vpack.c.bf16 %v67_v1, %v66_v0  ;;  %v69_v4 = vld [vmem:[%s2064_s26 + $0x18] sm:$0xff]  ;;  %v1783_v5 = vld [vmem:[%s2065_s20] sm:$0xff]  ;;  %v1790_v7 = vld [vmem:[%s2065_s20 + $0x8] sm:$0xff] }
   0xa   :  { %v1578_v6 = vpack.c.bf16 %v69_v4, %v68_v2  ;;  %1423 = vmatprep.mubr.msk.f32.mxu1 %vm70_vm0, %v1783_v5  ;;  %v1795_v8 = vld [vmem:[%s2065_s20 + $0x10] sm:$0xff]  ;;  %v1804_v9 = vld [vmem:[%s2065_s20 + $0x18] sm:$0xff]  ;;  %1597 = vmatpush3.bf16.msra.mxu0 %v1594_v23  ;;  %v1286_v55 = vld [vmem:[%s2051_s6] ss:$0 sm:$0xff] }
   0xb   :  { %1575 = vmatprep.subr.bf16.mxu1 %v1574_v3  ;;  %1619 = vmatprep.subr.bf16.mxu0 %v1618_v54  ;;  %v945_v34 = vld [vmem:[%s2053_s12 + $0x10] sm:$0xff]  ;;  %v1071_v46 = vld [vmem:[%s2055_s15] sm:$0xff]  ;;  %v1072_v47 = vld [vmem:[%s2055_s15 + $0x8] sm:$0xff] }
   0xc   :  { %1577 = vmatpush3.bf16.msra.mxu1 %v1574_v3  ;;  %v1073_v52 = vld [vmem:[%s2055_s15 + $0x10] sm:$0xff]  ;;  %v1074_v53 = vld [vmem:[%s2055_s15 + $0x18] sm:$0xff] }
   0xd   :  { %1579 = vmatprep.subr.bf16.mxu1 %v1578_v6 }
  0x10   :  { %1581 = vmatpush3.bf16.msra.mxu1 %v1578_v6 }
  0x13   :  { %1424 = vmatmul.mubr.msk.f32.vlgmr.msra.gmra.mrb[0].mxu1 %vm70_vm0, %v1790_v7 }
  0x14   :  { %1426 = vmatprep.mubr.msk.f32.mxu1 %vm70_vm0, %v1795_v8 }
  0x17   :  { %1427 = vmatmul.mubr.msk.f32.gmra.mrb[2].mxu1 %vm70_vm0, %v1804_v9 }
  0x18   :  { %1437 = vmatprep.mubr.msk.f32.mxu1 %vm70_vm0, %v1811_v10 }
  0xe6   :  { %v1425_v11 = vpop.f32.mrb[0].mxu1 }
  0xe7   :  { %v149_v12 = vpop.f32.mrb[1].mxu1 }
  0xe8   :  { %v1582_v13 = vpack.c.bf16 %v1425_v11, %v149_v12  ;;  %v1299_v12 = vld [vmem:[%s2052_s9] ss:$0 sm:$0xff] }
  0xea   :  { %v1428_v14 = vpop.f32.mrb[2].mxu1  ;;  %1583 = vmatprep.subr.bf16.mxu1 %v1582_v13 }
  0xeb   :  { %v159_v15 = vpop.f32.mrb[3].mxu1  ;;  %1585 = vmatpush3.bf16.msra.mxu1 %v1582_v13 }
  0xec   :  { %v1586_v16 = vpack.c.bf16 %v1428_v14, %v159_v15 }
  0xee   :  { %1587 = vmatprep.subr.bf16.mxu1 %v1586_v16 }
  0xef   :  { %1589 = vmatpush3.bf16.msra.mxu1 %v1586_v16 }
  0xf2   :  { %1438 = vmatmul.mubr.msk.f32.vlgmr.msra.gmra.mrb[4].mxu1 %vm70_vm0, %v1818_v17 }
  0xf3   :  { %1455 = vmatprep.mubr.msk.f32.mxu1 %vm354_vm3, %v1842_v33 }
 0x1c5   :  { %v1439_v25 = vpop.f32.mrb[4].mxu1 }
 0x1c6   :  { %v253_v26 = vadd.f32 %v1439_v25, %v1281_v24  ;;  %v247_v27 = vpop.f32.mrb[5].mxu1 }
 0x1c7   :  { %v248_v28 = vadd.f32 %v1281_v24, %v247_v27 }
 0x1c8   :  { %v259_v29 = vmul.f32 0.1, %v253_v26  ;;  %vm257_vm1 = vcmp.gt.f32.partialorder %v253_v26, 0.0 }
 0x1c9   :  { %vm256_vm2 = vcmp.gt.f32.partialorder %v248_v28, 0.0  ;;  %v258_v30 = vmul.f32 0.1, %v248_v28 }
 0x1ca   :  { %v261_v32 = vsel %vm257_vm1, %v253_v26, %v259_v29 }
 0x1cb   :  { %v260_v31 = vsel %vm256_vm2, %v248_v28, %v258_v30 }
 0x1cc   :  { %1448 = vmatprep.mubr.msk.f32.mxu0 %vm70_vm0, %v260_v31 }
 0x1cd   :  { %1449 = vmatmul.mubr.msk.f32.vlgmr.msra.gmra.mrb[0].mxu0 %vm70_vm0, %v261_v32  ;;  %v944_v32 = vld [vmem:[%s2053_s12 + $0x8] sm:$0xff] }
 0x1ce   :  { %1621 = vmatpush3.bf16.msra.mxu0 %v1618_v54  ;;  %v1650_v54 = vpack.c.bf16 %v1074_v53, %v1073_v52 }
 0x2a0   :  { %v1450_v36 = vpop.f32.mrb[0].mxu0 }
 0x2a1   :  { %v338_v37 = vpop.f32.mrb[1].mxu0 }
 0x2a2   :  { %v1598_v38 = vpack.c.bf16 %v1450_v36, %v338_v37 }
 0x2a4   :  { %1599 = vmatprep.subr.bf16.mxu1 %v1598_v38 }
 0x2a5   :  { %1601 = vmatpush3.bf16.msra.mxu1 %v1598_v38 }
 0x2a6   :  { %1603 = vmatprep.subr.bf16.mxu1 %v1602_v39 }
 0x2a8   :  { %1456 = vmatmul.mubr.msk.f32.vlgmr.msra.gmra.mrb[6].mxu1 %vm354_vm3, %v1861_v42 }
 0x2a9   :  { %1458 = vmatprep.mubr.msk.f32.mxu1 %vm354_vm3, %v1866_v43  ;;  %1605 = vmatpush3.bf16.msra.mxu1 %v1602_v39 }
 0x2aa   :  { %1607 = vmatprep.subr.bf16.mxu1 %v1606_v44 }
 0x2ac   :  { %1459 = vmatmul.mubr.msk.f32.gmra.mrb[8].mxu1 %vm354_vm3, %v1875_v45 }
 0x2ad   :  { %1609 = vmatpush3.bf16.msra.mxu1 %v1606_v44  ;;  %1469 = vmatprep.mubr.msk.f32.mxu1 %vm70_vm0, %v1783_v5 }
 0x2ae   :  { %1611 = vmatprep.subr.bf16.mxu1 %v1610_v48 }
 0x2b0   :  { %1470 = vmatmul.mubr.msk.f32.vlgmr.msra.gmra.mrb[10].mxu1 %vm70_vm0, %v1790_v7 }
 0x2b1   :  { %1472 = vmatprep.mubr.msk.f32.mxu1 %vm70_vm0, %v1795_v8  ;;  %1613 = vmatpush3.bf16.msra.mxu1 %v1610_v48  ;;  %v671_v8 = vld [vmem:[%s2050_s10 + $0x10] sm:$0xff] }
 0x2b2   :  { %1615 = vmatprep.subr.bf16.mxu1 %v1614_v51 }
 0x2b4   :  { %1473 = vmatmul.mubr.msk.f32.gmra.mrb[12].mxu1 %vm70_vm0, %v1804_v9  ;;  %v672_v9 = vld [vmem:[%s2050_s10 + $0x18] sm:$0xff] }
 0x2b5   :  { %1617 = vmatpush3.bf16.msra.mxu1 %v1614_v51  ;;  %v1622_v11 = vpack.c.bf16 %v672_v9, %v671_v8  ;;  %v1646_v51 = vpack.c.bf16 %v1072_v47, %v1071_v46 }
 0x2b7   :  { %1623 = vmatprep.subr.bf16.mxu0 %v1622_v11 }
 0x2b8   :  { %1625 = vmatpush3.bf16.msra.mxu0 %v1622_v11 }
 0x37b   :  { %v1457_v56 = vpop.f32.mrb[6].mxu1 }
 0x37c   :  { %v439_v57 = vadd.f32 %v1457_v56, %v1286_v55  ;;  %v433_v58 = vpop.f32.mrb[7].mxu1  ;;  %v1066_v56 = vld [vmem:[%s2056_s14 + $0x18] sm:$0xff] }
 0x37d   :  { %v434_v59 = vadd.f32 %v1286_v55, %v433_v58 }
 0x37e   :  { %v457_v60 = vmul.f32 0.1, %v439_v57  ;;  %vm453_vm4 = vcmp.gt.f32.partialorder %v439_v57, 0.0 }
 0x37f   :  { %vm452_vm5 = vcmp.gt.f32.partialorder %v434_v59, 0.0  ;;  %v456_v61 = vmul.f32 0.1, %v434_v59  ;;  %v1460_v62 = vpop.f32.mrb[8].mxu1 }
 0x380   :  { %v449_v63 = vadd.f32 %v1460_v62, %v1286_v55  ;;  %v443_v0 = vpop.f32.mrb[9].mxu1  ;;  %v461_v3 = vsel %vm453_vm4, %v439_v57, %v457_v60  ;;  %v1067_v62 = vld [vmem:[%s2056_s14 + $0x20] sm:$0xff] }
 0x381   :  { %v444_v1 = vadd.f32 %v1286_v55, %v443_v0  ;;  %v460_v2 = vsel %vm452_vm5, %v434_v59, %v456_v61 }
 0x382   :  { %v459_v4 = vmul.f32 0.1, %v449_v63  ;;  %1483 = vmatprep.mubr.msk.f32.mxu1 %vm70_vm0, %v460_v2  ;;  %vm455_vm6 = vcmp.gt.f32.partialorder %v449_v63, 0.0  ;;  %v1070_v2 = vld [vmem:[%s2056_s14 + $0x38] sm:$0xff] }
 0x383   :  { %vm454_vm7 = vcmp.gt.f32.partialorder %v444_v1, 0.0  ;;  %v458_v5 = vmul.f32 0.1, %v444_v1  ;;  %1484 = vmatmul.mubr.msk.f32.vlgmr.msra.gmra.mrb[10].mxu1 %vm70_vm0, %v461_v3 }
 0x384   :  { %v463_v7 = vsel %vm455_vm6, %v449_v63, %v459_v4  ;;  %v1068_v63 = vld [vmem:[%s2056_s14 + $0x28] sm:$0xff]  ;;  %v1311_v4 = vld [vmem:[%s2057_s13] ss:$0 sm:$0xff] }
 0x385   :  { %v462_v6 = vsel %vm454_vm7, %v444_v1, %v458_v5  ;;  %v1662_v0 = vpack.c.bf16 %v1068_v63, %v1067_v62  ;;  %v1069_v1 = vld [vmem:[%s2056_s14 + $0x30] sm:$0xff] }
 0x386   :  { %1486 = vmatprep.mubr.msk.f32.mxu1 %vm70_vm0, %v462_v6  ;;  %v1666_v3 = vpack.c.bf16 %v1070_v2, %v1069_v1 }
 0x387   :  { %1487 = vmatmul.mubr.msk.f32.gmra.mrb[12].mxu1 %vm70_vm0, %v463_v7 }
 0x456   :  { %v1485_v13 = vpop.f32.mrb[10].mxu1 }
 0x457   :  { %v1921_v14 = vadd.f32 %v1485_v13, %v1299_v12  ;;  %v635_v15 = vpop.f32.mrb[11].mxu1 }
 0x458   :  { %v1923_v16 = vadd.f32 %v1299_v12, %v635_v15 }
 0x459   :  { %v666_v20 = vmax.f32 %v1921_v14, 0.0 }
 0x45a   :  { %v665_v18 = vmax.f32 %v1923_v16, 0.0  ;;  %v1488_v19 = vpop.f32.mrb[12].mxu1 }
 0x45b   :  { %v1927_v21 = vadd.f32 %v1488_v19, %v1299_v12  ;;  %v645_v22 = vpop.f32.mrb[13].mxu1 }
 0x45c   :  { %v1929_v23 = vadd.f32 %v1299_v12, %v645_v22  ;;  %1497 = vmatprep.mubr.msk.f32.mxu0 %vm70_vm0, %v665_v18 }
 0x45d   :  { %1498 = vmatmul.mubr.msk.f32.vlgmr.msra.gmra.mrb[2].mxu0 %vm70_vm0, %v666_v20  ;;  %v668_v25 = vmax.f32 %v1927_v21, 0.0 }
 0x45e   :  { %v667_v24 = vmax.f32 %v1929_v23, 0.0  ;;  %v1324_v23 = vld [vmem:[%s2058_s16] ss:$0 sm:$0xff] }
 0x460   :  { %1500 = vmatprep.mubr.msk.f32.mxu0 %vm70_vm0, %v667_v24 }
 0x461   :  { %1501 = vmatmul.mubr.msk.f32.gmra.mrb[4].mxu0 %vm70_vm0, %v668_v25 }
 0x462   :  { %1511 = vmatprep.mubr.msk.f32.mxu0 %vm70_vm0, %v1811_v10  ;;  %v943_v10 = vld [vmem:[%s2053_s12] sm:$0xff] }
 0x463   :  { %v1638_v35 = vpack.c.bf16 %v944_v32, %v943_v10 }
 0x465   :  { %1639 = vmatprep.subr.bf16.mxu1 %v1638_v35 }
 0x466   :  { %1641 = vmatpush3.bf16.msra.mxu1 %v1638_v35 }
 0x530   :  { %v1499_v26 = vpop.f32.mrb[2].mxu0 }
 0x531   :  { %v751_v27 = vpop.f32.mrb[3].mxu0 }
 0x532   :  { %v1626_v28 = vpack.c.bf16 %v1499_v26, %v751_v27 }
 0x534   :  { %v1502_v29 = vpop.f32.mrb[4].mxu0  ;;  %1627 = vmatprep.subr.bf16.mxu0 %v1626_v28 }
 0x535   :  { %v761_v30 = vpop.f32.mrb[5].mxu0  ;;  %1629 = vmatpush3.bf16.msra.mxu0 %v1626_v28 }
 0x536   :  { %v1630_v31 = vpack.c.bf16 %v1502_v29, %v761_v30 }
 0x538   :  { %1631 = vmatprep.subr.bf16.mxu0 %v1630_v31 }
 0x539   :  { %1633 = vmatpush3.bf16.msra.mxu0 %v1630_v31 }
 0x53c   :  { %1512 = vmatmul.mubr.msk.f32.vlgmr.msra.gmra.mrb[6].mxu0 %vm70_vm0, %v1818_v17  ;;  %v946_v17 = vld [vmem:[%s2053_s12 + $0x18] sm:$0xff] }
 0x53d   :  { %1518 = vmatprep.mubr.msk.f32.mxu0 %vm354_vm3, %v1842_v33  ;;  %v1642_v36 = vpack.c.bf16 %v946_v17, %v945_v34  ;;  %v1304_v33 = vld [vmem:[%s2054_s11] ss:$0 sm:$0xff] }
 0x53f   :  { %1643 = vmatprep.subr.bf16.mxu1 %v1642_v36 }
 0x540   :  { %1645 = vmatpush3.bf16.msra.mxu1 %v1642_v36 }
 0x60f   :  { %v1513_v37 = vpop.f32.mrb[6].mxu0 }
 0x610   :  { %v849_v38 = vadd.f32 %v1513_v37, %v1304_v33  ;;  %v843_v39 = vpop.f32.mrb[7].mxu0 }
 0x611   :  { %v844_v40 = vadd.f32 %v1304_v33, %v843_v39 }
 0x612   :  { %vm853_vm8 = vcmp.gt.f32.partialorder %v849_v38, 0.0  ;;  %v855_v41 = vmul.f32 0.1, %v849_v38 }
 0x613   :  { %vm852_vm9 = vcmp.gt.f32.partialorder %v844_v40, 0.0  ;;  %v854_v44 = vmul.f32 0.1, %v844_v40 }
 0x614   :  { %v857_v48 = vsel %vm853_vm8, %v849_v38, %v855_v41 }
 0x615   :  { %v856_v49 = vsel %vm852_vm9, %v844_v40, %v854_v44 }
 0x616   :  { %v1634_v50 = vpack.c.bf16 %v857_v48, %v856_v49 }
 0x618   :  { %1635 = vmatprep.subr.bf16.mxu0 %v1634_v50 }
 0x619   :  { %1637 = vmatpush3.bf16.msra.mxu0 %v1634_v50 }
 0x61a   :  { %1647 = vmatprep.subr.bf16.mxu0 %v1646_v51 }
 0x61c   :  { %1519 = vmatmul.mubr.msk.f32.vlgmr.msra.gmra.mrb[8].mxu0 %vm354_vm3, %v1861_v42  ;;  %v1063_v42 = vld [vmem:[%s2056_s14] sm:$0xff] }
 0x61d   :  { %1649 = vmatpush3.bf16.msra.mxu0 %v1646_v51  ;;  %1521 = vmatprep.mubr.msk.f32.mxu0 %vm354_vm3, %v1866_v43  ;;  %v1064_v43 = vld [vmem:[%s2056_s14 + $0x8] sm:$0xff] }
 0x61e   :  { %1651 = vmatprep.subr.bf16.mxu0 %v1650_v54  ;;  %v1654_v55 = vpack.c.bf16 %v1064_v43, %v1063_v42 }
 0x620   :  { %1522 = vmatmul.mubr.msk.f32.gmra.mrb[10].mxu0 %vm354_vm3, %v1875_v45  ;;  %v1065_v45 = vld [vmem:[%s2056_s14 + $0x10] sm:$0xff] }
 0x621   :  { %1653 = vmatpush3.bf16.msra.mxu0 %v1650_v54  ;;  %1546 = vmatprep.mubr.msk.f32.mxu0 %vm70_vm0, %v665_v18  ;;  %v1658_v57 = vpack.c.bf16 %v1066_v56, %v1065_v45 }
 0x622   :  { %1655 = vmatprep.subr.bf16.mxu0 %v1654_v55 }
 0x624   :  { %1547 = vmatmul.mubr.msk.f32.vlgmr.msra.gmra.mrb[12].mxu0 %vm70_vm0, %v666_v20 }
 0x625   :  { %1549 = vmatprep.mubr.msk.f32.mxu0 %vm70_vm0, %v667_v24  ;;  %1657 = vmatpush3.bf16.msra.mxu0 %v1654_v55 }
 0x626   :  { %1659 = vmatprep.subr.bf16.mxu0 %v1658_v57 }
 0x628   :  { %1550 = vmatmul.mubr.msk.f32.gmra.mrb[14].mxu0 %vm70_vm0, %v668_v25 }
 0x629   :  { %1661 = vmatpush3.bf16.msra.mxu0 %v1658_v57 }
 0x62a   :  { %1663 = vmatprep.subr.bf16.mxu0 %v1662_v0 }
 0x62d   :  { %1665 = vmatpush3.bf16.msra.mxu0 %v1662_v0 }
 0x62e   :  { %1667 = vmatprep.subr.bf16.mxu0 %v1666_v3 }
 0x631   :  { %1669 = vmatpush3.bf16.msra.mxu0 %v1666_v3 }
 0x6ef   :  { %v1520_v58 = vpop.f32.mrb[8].mxu0 }
 0x6f0   :  { %v924_v59 = vpop.f32.mrb[9].mxu0 }
 0x6f1   :  { %1532 = vmatprep.mubr.msk.f32.mxu1 %vm70_vm0, %v924_v59 }
 0x6f2   :  { %1533 = vmatmul.mubr.msk.f32.vlgmr.msra.gmra.mrb[14].mxu1 %vm70_vm0, %v1520_v58 }
 0x6f3   :  { %v1523_v60 = vpop.f32.mrb[10].mxu0 }
 0x6f4   :  { %v934_v61 = vpop.f32.mrb[11].mxu0 }
 0x6f5   :  { %1535 = vmatprep.mubr.msk.f32.mxu1 %vm70_vm0, %v934_v61 }
 0x6f6   :  { %1536 = vmatmul.mubr.msk.f32.gmra.mrb[16].mxu1 %vm70_vm0, %v1523_v60 }
 0x7c5   :  { %v1534_v5 = vpop.f32.mrb[14].mxu1 }
 0x7c6   :  { %v1038_v6 = vadd.f32 %v1534_v5, %v1311_v4  ;;  %v1032_v7 = vpop.f32.mrb[15].mxu1 }
 0x7c7   :  { %v1033_v8 = vadd.f32 %v1311_v4, %v1032_v7 }
 0x7c8   :  { %v1056_v9 = vmul.f32 0.1, %v1038_v6  ;;  %vm1052_vm10 = vcmp.gt.f32.partialorder %v1038_v6, 0.0 }
 0x7c9   :  { %vm1051_vm11 = vcmp.gt.f32.partialorder %v1033_v8, 0.0  ;;  %v1055_v11 = vmul.f32 0.1, %v1033_v8  ;;  %v1537_v12 = vpop.f32.mrb[16].mxu1 }
 0x7ca   :  { %v1048_v13 = vadd.f32 %v1537_v12, %v1311_v4  ;;  %v1042_v14 = vpop.f32.mrb[17].mxu1  ;;  %v1060_v18 = vsel %vm1052_vm10, %v1038_v6, %v1056_v9 }
 0x7cb   :  { %v1043_v15 = vadd.f32 %v1311_v4, %v1042_v14  ;;  %v1059_v16 = vsel %vm1051_vm11, %v1033_v8, %v1055_v11 }
 0x7cc   :  { %v1058_v19 = vmul.f32 0.1, %v1048_v13  ;;  %1568 = vmatprep.mubr.msk.f32.mxu0 %vm1160_vm12, %v1059_v16  ;;  %vm1054_vm13 = vcmp.gt.f32.partialorder %v1048_v13, 0.0 }
 0x7cd   :  { %vm1053_vm14 = vcmp.gt.f32.partialorder %v1043_v15, 0.0  ;;  %v1057_v20 = vmul.f32 0.1, %v1043_v15  ;;  %1569 = vmatmul.mubr.msk.f32.vlgmr.msra.gmra.mrb[12].mxu0 %vm1160_vm12, %v1060_v18 }
 0x7ce   :  { %v1062_v22 = vsel %vm1054_vm13, %v1048_v13, %v1058_v19 }
 0x7cf   :  { %v1061_v21 = vsel %vm1053_vm14, %v1043_v15, %v1057_v20 }
 0x7d0   :  { %1571 = vmatprep.mubr.msk.f32.mxu0 %vm1160_vm12, %v1061_v21 }
 0x7d1   :  { %1572 = vmatmul.mubr.msk.f32.gmra.mrb[14].mxu0 %vm1160_vm12, %v1062_v22 }
 0x8a0   :  { %v1570_v24 = vpop.f32.mrb[12].mxu0 }
 0x8a1   :  { %v1266_v25 = vadd.f32 %v1570_v24, %v1324_v23  ;;  %v1239_v26 = vpop.f32.mrb[13].mxu0 }
 0x8a2   :  { %v1265_v27 = vadd.f32 %v1324_v23, %v1239_v26 }
 0x8a3   :  { %1270 = vst.msk [vmem:[%s2059_s17 + $0x8] sm:$0xff] %vm1160_vm12, %v1266_v25 }
 0x8a4   :  { %1269 = vst.msk [vmem:[%s2059_s17] sm:$0xff] %vm1160_vm12, %v1265_v27  ;;  %v1573_v28 = vpop.f32.mrb[14].mxu0 }
 0x8a5   :  { %v1268_v29 = vadd.f32 %v1573_v28, %v1324_v23  ;;  %v1249_v30 = vpop.f32.mrb[15].mxu0 }
 0x8a6   :  { %v1267_v31 = vadd.f32 %v1324_v23, %v1249_v30 }
 0x8a7   :  { %1272 = vst.msk [vmem:[%s2059_s17 + $0x18] sm:$0xff] %vm1160_vm12, %v1268_v29 }
 0x8a8   :  { %1271 = vst.msk [vmem:[%s2059_s17 + $0x10] sm:$0xff] %vm1160_vm12, %v1267_v31 }

// kernel: disencdr_forward.6
= control target key start
LH: loop header
LB: loop body
LE: loop exit
PB: predicated region body
PF: predicated region fallthrough
CT: control target
= control target key end

     0   :  { %s3743_s6 = smov 1   ;;  %s3744_s10 = smov 2   ;;  %s4287_s0 = inlined_call_operand.smem [shape: u32[34], index: -1, kind: input, shape index: {}] }
   0x1   :  { %s3800_s5 = sld [smem:[%s4287_s0]]   ;;  %s3745_s14 = smov 3  }
   0x2   :  { %s3805_s9 = sld [smem:[%s4287_s0 + %s3743_s6]]   ;;  %s3746_s18 = smov 4  }
   0x3   :  { %s3810_s13 = sld [smem:[%s4287_s0 + %s3744_s10]]   ;;  %s3747_s22 = smov 5  }
   0x4   :  { %s3815_s17 = sld [smem:[%s4287_s0 + %s3745_s14]]   ;;  %s3748_s26 = smov 6  }
   0x5   :  { %s3820_s21 = sld [smem:[%s4287_s0 + %s3746_s18]]   ;;  %s3749_s30 = smov 7  }
   0x6   :  { %s3825_s25 = sld [smem:[%s4287_s0 + %s3747_s22]]   ;;  %s3750_s4 = smov 8  }
   0x7   :  { %s3830_s29 = sld [smem:[%s4287_s0 + %s3748_s26]]   ;;  %s3751_s10 = smov 9  }
   0x8   :  { %s3835_s3 = sld [smem:[%s4287_s0 + %s3749_s30]]   ;;  %s3752_s15 = smov 10  }
   0x9   :  { %4304 = sst [smem:[#allocation32_spill]] %s3810_s13  ;;  %s3753_s20 = smov 11  }
   0xa   :  { %4305 = sst [smem:[#allocation33_spill]] %s3815_s17  ;;  %s3754_s26 = smov 12  }
   0xb   :  { %s3840_s8 = sld [smem:[%s4287_s0 + %s3750_s4]]   ;;  %s3755_s1 = smov 13  }
   0xc   :  { %s3845_s14 = sld [smem:[%s4287_s0 + %s3751_s10]]   ;;  %s3756_s7 = smov 14  }
   0xd   :  { %4306 = sst [smem:[#allocation34_spill]] %s3830_s29  ;;  %s3758_s22 = smov 16  }
   0xe   :  { %s3850_s19 = sld [smem:[%s4287_s0 + %s3752_s15]]   ;;  %s3757_s15 = smov 15  }
   0xf   :  { %s3855_s24 = sld [smem:[%s4287_s0 + %s3753_s20]]   ;;  %s3759_s28 = smov 17  }
  0x10   :  { %s3860_s30 = sld [smem:[%s4287_s0 + %s3754_s26]]  }
  0x11   :  { %4307 = sst [smem:[#allocation35_spill]] %s3840_s8 }
  0x12   :  { %s3865_s6 = sld [smem:[%s4287_s0 + %s3755_s1]]  }
  0x13   :  { %s3870_s12 = sld [smem:[%s4287_s0 + %s3756_s7]]   ;;  %s3760_s7 = smov 18  }
  0x14   :  { %4308 = sst [smem:[#allocation36_spill]] %s3850_s19 }
  0x15   :  { %s3875_s20 = sld [smem:[%s4287_s0 + %s3757_s15]]   ;;  %s3761_s15 = smov 19  }
  0x16   :  { %4309 = sst [smem:[#allocation37_spill]] %s3860_s30 }
  0x17   :  { %s3880_s27 = sld [smem:[%s4287_s0 + %s3758_s22]]   ;;  %s3762_s22 = smov 20  }
  0x18   :  { %4310 = sst [smem:[#allocation38_spill]] %s3865_s6 }
  0x19   :  { %s3885_s4 = sld [smem:[%s4287_s0 + %s3759_s28]]   ;;  %s3763_s28 = smov 21  }
  0x1a   :  { %s3890_s30 = sld [smem:[%s4287_s0 + %s3760_s7]]   ;;  %s3764_s7 = smov 22  }
  0x1b   :  { %4311 = sst [smem:[#allocation39_spill]] %s3875_s20 }
  0x1c   :  { %s3895_s20 = sld [smem:[%s4287_s0 + %s3761_s15]]   ;;  %s3765_s15 = smov 23  }
  0x1d   :  { %4312 = sst [smem:[#allocation40_spill]] %s3880_s27 }
  0x1e   :  { %s3900_s27 = sld [smem:[%s4287_s0 + %s3762_s22]]   ;;  %s3766_s22 = smov 24  }
  0x1f   :  { %s3905_s6 = sld [smem:[%s4287_s0 + %s3763_s28]]   ;;  %s3767_s28 = smov 25  }
  0x20   :  { %4313 = sst [smem:[#allocation41_spill]] %s3890_s30 }
  0x21   :  { %s3910_s30 = sld [smem:[%s4287_s0 + %s3764_s7]]   ;;  %s3768_s7 = smov 26  }
  0x22   :  { %s3915_s19 = sld [smem:[%s4287_s0 + %s3765_s15]]   ;;  %s3769_s15 = smov 27  }
  0x23   :  { %s3925_s8 = sld [smem:[%s4287_s0 + %s3767_s28]]   ;;  %s3771_s28 = smov 29  }
  0x24   :  { %4314 = sst [smem:[#allocation42_spill]] %s3900_s27 }
  0x25   :  { %s3920_s27 = sld [smem:[%s4287_s0 + %s3766_s22]]   ;;  %s3770_s22 = smov 28  }
  0x26   :  { %s3935_s13 = sld [smem:[%s4287_s0 + %s3769_s15]]   ;;  %s3773_s15 = smov 31  }
  0x27   :  { %4315 = sst [smem:[#allocation43_spill]] %s3910_s30 }
  0x28   :  { %s3930_s30 = sld [smem:[%s4287_s0 + %s3768_s7]]   ;;  %s3772_s7 = smov 30  }
  0x29   :  { %s3945_s17 = sld [smem:[%s4287_s0 + %s3771_s28]]   ;;  %s3775_s28 = smov 33  }
  0x2b   :  { %4316 = sst [smem:[#allocation44_spill]] %s3920_s27 }
  0x2c   :  { %4318 = sst [smem:[#allocation46_spill]] %s3935_s13 }
  0x2d   :  { %s3940_s27 = sld [smem:[%s4287_s0 + %s3770_s22]]   ;;  %s3774_s22 = smov 32  }
  0x2e   :  { %4317 = sst [smem:[#allocation45_spill]] %s3930_s30 }
  0x2f   :  { %4319 = sst [smem:[#allocation47_spill]] %s3945_s17 }
  0x30   :  { %s3950_s30 = sld [smem:[%s4287_s0 + %s3772_s7]]  }
  0x31   :  { %s3955_s13 = sld [smem:[%s4287_s0 + %s3773_s15]]  }
  0x32   :  { %s3960_s29 = sld [smem:[%s4287_s0 + %s3774_s22]]  }
  0x33   :  { %s3965_s17 = sld [smem:[%s4287_s0 + %s3775_s28]]  }
  0x34   :  { %73 = vsyncpa [#allocation3], 0 }
  0x35   :  { %74 = vsyncpa [#allocation6], 0 }
  0x36   :  { %75 = vsyncpa [#allocation9], 0 }
  0x37   :  { %76 = vsyncpa [#allocation12], 0 }
  0x38   :  { %77 = vsyncpa [#allocation15], 0 }
  0x39   :  { %78 = vsyncpa [#allocation18], 0 }
  0x3a   :  { %79 = vsyncpa [#allocation21], 0 }
  0x3b   :  { %80 = vsyncpa [#allocation4], 0  ;;  %s3776_s7 = smov [#allocation5]   ;;  %s3777_s11 = smov [#allocation8]  }
  0x3c   :  { %s107_s10 = sshll.u32 %s3776_s7, 4  ;;  %s131_s15 = sshll.u32 %s3777_s11, 4  ;;  %s108_s10 = int_to_ptr.vmem [resolvable:$true] %s107_s10  ;;  %s132_s15 = int_to_ptr.vmem [resolvable:$true] %s131_s15 }
  0x3d   :  { %s3419_s16 = scalar_lea.hbm %s3825_s25, 16 }
  0x3e   :  { %p3420_p0 = scmp.ne.s32.totalorder %s3825_s25, %s3419_s16  ;;  %p3423_p1 = scmp.lt.u32.totalorder %s3419_s16, %s3825_s25 }
  0x40   :  { %p3425_p2 = pnand %p3423_p1, %p3420_p0 }
  0x42   :  { %3428 = shalt.err (!%p3425_p2)
}
  0x43   :  { %s3429_s0 = scalar_lea.vmem %s108_s10, 16  ;;  %s3433_s18 = scalar_lea.vmem %s108_s10, 32 }
  0x44   :  { %p3430_p3 = scmp.ne.s32.totalorder %s108_s10, %s3429_s0  ;;  %p3434_p4 = scmp.lt.s32.totalorder %s108_s10, %s108_s10 }
  0x45   :  { %p3435_p5 = scmp.lt.s32.totalorder %s3433_s18, %s3429_s0 }
  0x47   :  { %p3436_p6 = por %p3435_p5, %p3434_p4 }
  0x49   :  { %p3437_p7 = pnand %p3436_p6, %p3430_p3 }
  0x4b   :  { %3440 = shalt.err (!%p3437_p7)
}
  0x4c   :  { %110 = dma.hbm_to_vmem [thread:$0]  %s3825_s25, 16, %s108_s10, [#allocation6]  }
  0x4d   :  { %s3441_s22 = scalar_lea.hbm %s3845_s14, 16 }
  0x4e   :  { %p3442_p8 = scmp.ne.s32.totalorder %s3845_s14, %s3441_s22  ;;  %p3445_p9 = scmp.lt.u32.totalorder %s3441_s22, %s3845_s14 }
  0x50   :  { %p3447_p10 = pnand %p3445_p9, %p3442_p8 }
  0x52   :  { %3450 = shalt.err (!%p3447_p10)
}
  0x53   :  { %s3451_s23 = scalar_lea.vmem %s132_s15, 16  ;;  %s3455_s26 = scalar_lea.vmem %s132_s15, 32 }
  0x54   :  { %p3452_p11 = scmp.ne.s32.totalorder %s132_s15, %s3451_s23  ;;  %p3456_p12 = scmp.lt.s32.totalorder %s132_s15, %s132_s15 }
  0x55   :  { %p3457_p13 = scmp.lt.s32.totalorder %s3455_s26, %s3451_s23 }
  0x57   :  { %p3458_p0 = por %p3457_p13, %p3456_p12 }
  0x59   :  { %p3459_p1 = pnand %p3458_p0, %p3452_p11 }
  0x5b   :  { %3462 = shalt.err (!%p3459_p1)
}
  0x5c   :  { %134 = dma.hbm_to_vmem [thread:$0]  %s3845_s14, 16, %s132_s15, [#allocation9]  }
  0x5d   :  { %s3778_s28 = smov [#allocation11]   ;;  %s3779_s1 = smov [#allocation14]  }
  0x5e   :  { %s157_s25 = sshll.u32 %s3778_s28, 4  ;;  %s183_s2 = sshll.u32 %s3779_s1, 4  ;;  %s158_s25 = int_to_ptr.vmem [resolvable:$true] %s157_s25  ;;  %s184_s2 = int_to_ptr.vmem [resolvable:$true] %s183_s2 }
  0x5f   :  { %s3463_s7 = scalar_lea.hbm %s3870_s12, 16 }
  0x60   :  { %p3464_p2 = scmp.ne.s32.totalorder %s3870_s12, %s3463_s7  ;;  %p3467_p3 = scmp.lt.u32.totalorder %s3463_s7, %s3870_s12 }
  0x62   :  { %p3469_p4 = pnand %p3467_p3, %p3464_p2 }
  0x64   :  { %3472 = shalt.err (!%p3469_p4)
}
  0x65   :  { %s3473_s10 = scalar_lea.vmem %s158_s25, 16  ;;  %s3477_s11 = scalar_lea.vmem %s158_s25, 32 }
  0x66   :  { %p3474_p5 = scmp.ne.s32.totalorder %s158_s25, %s3473_s10  ;;  %p3478_p6 = scmp.lt.s32.totalorder %s158_s25, %s158_s25 }
  0x67   :  { %p3479_p7 = scmp.lt.s32.totalorder %s3477_s11, %s3473_s10 }
  0x69   :  { %p3480_p8 = por %p3479_p7, %p3478_p6 }
  0x6b   :  { %p3481_p9 = pnand %p3480_p8, %p3474_p5 }
  0x6d   :  { %3484 = shalt.err (!%p3481_p9)
}
  0x6e   :  { %160 = dma.hbm_to_vmem [thread:$0]  %s3870_s12, 16, %s158_s25, [#allocation12]  }
  0x6f   :  { %s3485_s14 = scalar_lea.hbm %s3895_s20, 16 }
  0x70   :  { %p3486_p10 = scmp.ne.s32.totalorder %s3895_s20, %s3485_s14  ;;  %p3489_p11 = scmp.lt.u32.totalorder %s3485_s14, %s3895_s20 }
  0x72   :  { %p3491_p12 = pnand %p3489_p11, %p3486_p10 }
  0x74   :  { %3494 = shalt.err (!%p3491_p12)
}
  0x75   :  { %s3495_s15 = scalar_lea.vmem %s184_s2, 16  ;;  %s3499_s16 = scalar_lea.vmem %s184_s2, 32 }
  0x76   :  { %p3496_p13 = scmp.ne.s32.totalorder %s184_s2, %s3495_s15  ;;  %p3500_p0 = scmp.lt.s32.totalorder %s184_s2, %s184_s2 }
  0x77   :  { %p3501_p1 = scmp.lt.s32.totalorder %s3499_s16, %s3495_s15 }
  0x79   :  { %p3502_p2 = por %p3501_p1, %p3500_p0 }
  0x7b   :  { %p3503_p3 = pnand %p3502_p2, %p3496_p13 }
  0x7d   :  { %3506 = shalt.err (!%p3503_p3)
}
  0x7e   :  { %186 = dma.hbm_to_vmem [thread:$0]  %s3895_s20, 16, %s184_s2, [#allocation15]  }
  0x7f   :  { %s3780_s0 = smov [#allocation17]   ;;  %s3781_s18 = smov [#allocation20]  }
  0x80   :  { %s207_s12 = sshll.u32 %s3780_s0, 4  ;;  %s233_s22 = sshll.u32 %s3781_s18, 4  ;;  %s208_s12 = int_to_ptr.vmem [resolvable:$true] %s207_s12  ;;  %s234_s22 = int_to_ptr.vmem [resolvable:$true] %s233_s22 }
  0x81   :  { %s3507_s23 = scalar_lea.hbm %s3915_s19, 16 }
  0x82   :  { %p3508_p4 = scmp.ne.s32.totalorder %s3915_s19, %s3507_s23  ;;  %p3511_p5 = scmp.lt.u32.totalorder %s3507_s23, %s3915_s19 }
  0x84   :  { %p3513_p6 = pnand %p3511_p5, %p3508_p4 }
  0x86   :  { %3516 = shalt.err (!%p3513_p6)
}
  0x87   :  { %s3517_s26 = scalar_lea.vmem %s208_s12, 16  ;;  %s3521_s28 = scalar_lea.vmem %s208_s12, 32 }
  0x88   :  { %p3518_p7 = scmp.ne.s32.totalorder %s208_s12, %s3517_s26  ;;  %p3522_p8 = scmp.lt.s32.totalorder %s208_s12, %s208_s12 }
  0x89   :  { %p3523_p9 = scmp.lt.s32.totalorder %s3521_s28, %s3517_s26 }
  0x8b   :  { %p3524_p10 = por %p3523_p9, %p3522_p8 }
  0x8d   :  { %p3525_p11 = pnand %p3524_p10, %p3518_p7 }
  0x8f   :  { %3528 = shalt.err (!%p3525_p11)
}
  0x90   :  { %210 = dma.hbm_to_vmem [thread:$0]  %s3915_s19, 16, %s208_s12, [#allocation18]  }
  0x91   :  { %s3529_s20 = scalar_lea.hbm %s3940_s27, 16 }
  0x92   :  { %p3530_p12 = scmp.ne.s32.totalorder %s3940_s27, %s3529_s20  ;;  %p3533_p13 = scmp.lt.u32.totalorder %s3529_s20, %s3940_s27 }
  0x94   :  { %p3535_p0 = pnand %p3533_p13, %p3530_p12 }
  0x96   :  { %3538 = shalt.err (!%p3535_p0)
}
  0x97   :  { %s3539_s25 = scalar_lea.vmem %s234_s22, 16  ;;  %s3543_s1 = scalar_lea.vmem %s234_s22, 32 }
  0x98   :  { %p3540_p1 = scmp.ne.s32.totalorder %s234_s22, %s3539_s25  ;;  %p3544_p2 = scmp.lt.s32.totalorder %s234_s22, %s234_s22 }
  0x99   :  { %p3545_p3 = scmp.lt.s32.totalorder %s3543_s1, %s3539_s25 }
  0x9b   :  { %p3546_p4 = por %p3545_p3, %p3544_p2 }
  0x9d   :  { %p3547_p5 = pnand %p3546_p4, %p3540_p1 }
  0x9f   :  { %3550 = shalt.err (!%p3547_p5)
}
  0xa0   :  { %236 = dma.hbm_to_vmem [thread:$0]  %s3940_s27, 16, %s234_s22, [#allocation21]  }
  0xa1   :  { %s3782_s2 = smov [#allocation2]   ;;  %s3551_s7 = scalar_lea.hbm %s3805_s9, 256 }
  0xa2   :  { %s88_s19 = sshll.u32 %s3782_s2, 4  ;;  %p3552_p6 = scmp.ne.s32.totalorder %s3805_s9, %s3551_s7  ;;  %s89_s19 = int_to_ptr.vmem [resolvable:$true] %s88_s19 }
  0xa3   :  { %p3555_p7 = scmp.lt.u32.totalorder %s3551_s7, %s3805_s9 }
  0xa5   :  { %p3557_p8 = pnand %p3555_p7, %p3552_p6 }
  0xa7   :  { %3560 = shalt.err (!%p3557_p8)
}
  0xa8   :  { %s3561_s10 = scalar_lea.vmem %s89_s19, 256  ;;  %p3566_p10 = scmp.lt.s32.totalorder %s89_s19, %s89_s19 }
  0xa9   :  { %p3562_p9 = scmp.ne.s32.totalorder %s89_s19, %s3561_s10  ;;  %p3567_p11 = scmp.lt.s32.totalorder %s3561_s10, %s3561_s10 }
  0xab   :  { %p3568_p12 = por %p3567_p11, %p3566_p10 }
  0xad   :  { %p3569_p13 = pnand %p3568_p12, %p3562_p9 }
  0xaf   :  { %3572 = shalt.err (!%p3569_p13)
}
  0xb0   :  { %s3783_s11 = smov 128   ;;  %s3784_s27 = smov 8  }
  0xb1   :  { %94 = dma.hbm_to_vmem [thread:$0]  %s3805_s9, 256, %s89_s19, [#allocation3], %s3783_s11, %s3783_s11, %s3784_s27  }
  0xb2   :  { %s3785_s14 = smov [#allocation7]   ;;  %s3786_s16 = smov [#allocation10]  }
  0xb3   :  { %s119_s15 = sshll.u32 %s3785_s14, 4  ;;  %s143_s0 = sshll.u32 %s3786_s16, 4  ;;  %s120_s15 = int_to_ptr.vmem [resolvable:$true] %s119_s15  ;;  %s144_s0 = int_to_ptr.vmem [resolvable:$true] %s143_s0 }
  0xb4   :  { %s3573_s12 = scalar_lea.hbm %s3835_s3, 16 }
  0xb5   :  { %p3574_p0 = scmp.ne.s32.totalorder %s3835_s3, %s3573_s12  ;;  %p3577_p1 = scmp.lt.u32.totalorder %s3573_s12, %s3835_s3 }
  0xb7   :  { %p3579_p2 = pnand %p3577_p1, %p3574_p0 }
  0xb9   :  { %3582 = shalt.err (!%p3579_p2)
}
  0xba   :  { %s3583_s18 = scalar_lea.vmem %s120_s15, 16  ;;  %s3587_s22 = scalar_lea.vmem %s120_s15, 32 }
  0xbb   :  { %p3584_p3 = scmp.ne.s32.totalorder %s120_s15, %s3583_s18  ;;  %p3588_p4 = scmp.lt.s32.totalorder %s120_s15, %s120_s15 }
  0xbc   :  { %p3589_p5 = scmp.lt.s32.totalorder %s3587_s22, %s3583_s18 }
  0xbe   :  { %p3590_p6 = por %p3589_p5, %p3588_p4 }
  0xc0   :  { %p3591_p7 = pnand %p3590_p6, %p3584_p3 }
  0xc2   :  { %3594 = shalt.err (!%p3591_p7)
}
  0xc3   :  { %122 = dma.hbm_to_vmem [thread:$0]  %s3835_s3, 16, %s120_s15, [#allocation6]  }
  0xc4   :  { %s3595_s9 = scalar_lea.hbm %s3855_s24, 16 }
  0xc5   :  { %p3596_p8 = scmp.ne.s32.totalorder %s3855_s24, %s3595_s9  ;;  %p3599_p9 = scmp.lt.u32.totalorder %s3595_s9, %s3855_s24 }
  0xc7   :  { %p3601_p10 = pnand %p3599_p9, %p3596_p8 }
  0xc9   :  { %3604 = shalt.err (!%p3601_p10)
}
  0xca   :  { %s3605_s23 = scalar_lea.vmem %s144_s0, 16  ;;  %s3609_s26 = scalar_lea.vmem %s144_s0, 32 }
  0xcb   :  { %p3606_p11 = scmp.ne.s32.totalorder %s144_s0, %s3605_s23  ;;  %p3610_p12 = scmp.lt.s32.totalorder %s144_s0, %s144_s0 }
  0xcc   :  { %p3611_p13 = scmp.lt.s32.totalorder %s3609_s26, %s3605_s23 }
  0xce   :  { %p3612_p0 = por %p3611_p13, %p3610_p12 }
  0xd0   :  { %p3613_p1 = pnand %p3612_p0, %p3606_p11 }
  0xd2   :  { %3616 = shalt.err (!%p3613_p1)
}
  0xd3   :  { %146 = dma.hbm_to_vmem [thread:$0]  %s3855_s24, 16, %s144_s0, [#allocation9]  }
  0xd4   :  { %s3787_s3 = smov [#allocation13]   ;;  %s3788_s20 = smov [#allocation16]  }
  0xd5   :  { %s171_s28 = sshll.u32 %s3787_s3, 4  ;;  %s195_s25 = sshll.u32 %s3788_s20, 4  ;;  %s172_s28 = int_to_ptr.vmem [resolvable:$true] %s171_s28  ;;  %s196_s25 = int_to_ptr.vmem [resolvable:$true] %s195_s25 }
  0xd6   :  { %s3617_s1 = scalar_lea.hbm %s3885_s4, 16 }
  0xd7   :  { %p3618_p2 = scmp.ne.s32.totalorder %s3885_s4, %s3617_s1  ;;  %p3621_p3 = scmp.lt.u32.totalorder %s3617_s1, %s3885_s4 }
  0xd9   :  { %p3623_p4 = pnand %p3621_p3, %p3618_p2 }
  0xdb   :  { %3626 = shalt.err (!%p3623_p4)
}
  0xdc   :  { %s3627_s2 = scalar_lea.vmem %s172_s28, 16  ;;  %s3631_s19 = scalar_lea.vmem %s172_s28, 32 }
  0xdd   :  { %p3628_p5 = scmp.ne.s32.totalorder %s172_s28, %s3627_s2  ;;  %p3632_p6 = scmp.lt.s32.totalorder %s172_s28, %s172_s28 }
  0xde   :  { %p3633_p7 = scmp.lt.s32.totalorder %s3631_s19, %s3627_s2 }
  0xe0   :  { %p3634_p8 = por %p3633_p7, %p3632_p6 }
  0xe2   :  { %p3635_p9 = pnand %p3634_p8, %p3628_p5 }
  0xe4   :  { %3638 = shalt.err (!%p3635_p9)
}
  0xe5   :  { %174 = dma.hbm_to_vmem [thread:$0]  %s3885_s4, 16, %s172_s28, [#allocation12]  }
  0xe6   :  { %s3639_s24 = scalar_lea.hbm %s3905_s6, 16 }
  0xe7   :  { %p3640_p10 = scmp.ne.s32.totalorder %s3905_s6, %s3639_s24  ;;  %p3643_p11 = scmp.lt.u32.totalorder %s3639_s24, %s3905_s6 }
  0xe9   :  { %p3645_p12 = pnand %p3643_p11, %p3640_p10 }
  0xeb   :  { %3648 = shalt.err (!%p3645_p12)
}
  0xec   :  { %s3649_s7 = scalar_lea.vmem %s196_s25, 16  ;;  %s3653_s10 = scalar_lea.vmem %s196_s25, 32 }
  0xed   :  { %p3650_p13 = scmp.ne.s32.totalorder %s196_s25, %s3649_s7  ;;  %p3654_p0 = scmp.lt.s32.totalorder %s196_s25, %s196_s25 }
  0xee   :  { %p3655_p1 = scmp.lt.s32.totalorder %s3653_s10, %s3649_s7 }
  0xf0   :  { %p3656_p2 = por %p3655_p1, %p3654_p0 }
  0xf2   :  { %p3657_p3 = pnand %p3656_p2, %p3650_p13 }
  0xf4   :  { %3660 = shalt.err (!%p3657_p3)
}
  0xf5   :  { %198 = dma.hbm_to_vmem [thread:$0]  %s3905_s6, 16, %s196_s25, [#allocation15]  }
  0xf6   :  { %s3789_s4 = smov [#allocation19]   ;;  %s3790_s15 = smov [#allocation22]  }
  0xf7   :  { %s219_s14 = sshll.u32 %s3789_s4, 4  ;;  %s247_s16 = sshll.u32 %s3790_s15, 4  ;;  %s220_s14 = int_to_ptr.vmem [resolvable:$true] %s219_s14  ;;  %s248_s16 = int_to_ptr.vmem [resolvable:$true] %s247_s16 }
  0xf8   :  { %s3661_s0 = scalar_lea.hbm %s3925_s8, 16 }
  0xf9   :  { %p3662_p4 = scmp.ne.s32.totalorder %s3925_s8, %s3661_s0  ;;  %p3665_p5 = scmp.lt.u32.totalorder %s3661_s0, %s3925_s8 }
  0xfb   :  { %p3667_p6 = pnand %p3665_p5, %p3662_p4 }
  0xfd   :  { %3670 = shalt.err (!%p3667_p6)
}
  0xfe   :  { %s3671_s12 = scalar_lea.vmem %s220_s14, 16  ;;  %s3675_s18 = scalar_lea.vmem %s220_s14, 32 }
  0xff   :  { %p3672_p7 = scmp.ne.s32.totalorder %s220_s14, %s3671_s12  ;;  %p3676_p8 = scmp.lt.s32.totalorder %s220_s14, %s220_s14 }
 0x100   :  { %p3677_p9 = scmp.lt.s32.totalorder %s3675_s18, %s3671_s12 }
 0x102   :  { %p3678_p10 = por %p3677_p9, %p3676_p8 }
 0x104   :  { %p3679_p11 = pnand %p3678_p10, %p3672_p7 }
 0x106   :  { %3682 = shalt.err (!%p3679_p11)
}
 0x107   :  { %222 = dma.hbm_to_vmem [thread:$0]  %s3925_s8, 16, %s220_s14, [#allocation18]  }
 0x108   :  { %s3683_s6 = scalar_lea.hbm %s3955_s13, 16 }
 0x109   :  { %p3684_p12 = scmp.ne.s32.totalorder %s3955_s13, %s3683_s6  ;;  %p3687_p13 = scmp.lt.u32.totalorder %s3683_s6, %s3955_s13 }
 0x10b   :  { %p3689_p0 = pnand %p3687_p13, %p3684_p12 }
 0x10d   :  { %3692 = shalt.err (!%p3689_p0)
}
 0x10e   :  { %s3693_s22 = scalar_lea.vmem %s248_s16, 16  ;;  %s3697_s9 = scalar_lea.vmem %s248_s16, 32 }
 0x10f   :  { %p3694_p1 = scmp.ne.s32.totalorder %s248_s16, %s3693_s22  ;;  %p3698_p2 = scmp.lt.s32.totalorder %s248_s16, %s248_s16 }
 0x110   :  { %p3699_p3 = scmp.lt.s32.totalorder %s3697_s9, %s3693_s22 }
 0x112   :  { %p3700_p4 = por %p3699_p3, %p3698_p2 }
 0x114   :  { %p3701_p5 = pnand %p3700_p4, %p3694_p1 }
 0x116   :  { %3704 = shalt.err (!%p3701_p5)
}
 0x117   :  { %250 = dma.hbm_to_vmem [thread:$0]  %s3955_s13, 16, %s248_s16, [#allocation21]  }
 0x118   :  { %3727 = dma.done.wait [#allocation3], 256  }
 0x119   :  { %3728 = vsyncadd [#allocation3], 4294967040 }
 0x11a   :  { %3729 = dma.done.wait [#allocation6], 32  }
 0x11b   :  { %3730 = vsyncadd [#allocation6], 4294967264 }
 0x11c   :  { %3731 = dma.done.wait [#allocation9], 32  }
 0x11d   :  { %3732 = vsyncadd [#allocation9], 4294967264 }
 0x11e   :  { %3733 = dma.done.wait [#allocation12], 32  }
 0x11f   :  { %3734 = vsyncadd [#allocation12], 4294967264 }
 0x120   :  { %3735 = dma.done.wait [#allocation15], 32  }
 0x121   :  { %3736 = vsyncadd [#allocation15], 4294967264 }
 0x122   :  { %3737 = dma.done.wait [#allocation18], 32  }
 0x123   :  { %3738 = vsyncadd [#allocation18], 4294967264 }
 0x124   :  { %3739 = dma.done.wait [#allocation21], 32  }
 0x125   :  { %3740 = vsyncadd [#allocation21], 4294967264  ;;  %s4320_s13 = sld [smem:[#allocation34_spill]]  ;;  %vm306_vm0 = vcmask 261120   ;;  %v302_v0 = vld [vmem:[%s3820_s21] sm:$0xff]  ;;  %v303_v1 = vld [vmem:[%s3820_s21 + $0x8] sm:$0xff] }
 0x126   :  { %v304_v2 = vld [vmem:[%s3820_s21 + $0x10] sm:$0xff]  ;;  %v3182_v3 = vpack.c.bf16 %v303_v1, %v302_v0  ;;  %v305_v4 = vld [vmem:[%s3820_s21 + $0x18] sm:$0xff]  ;;  %v4027_v5 = vld [vmem:[%s3800_s5] sm:$0xff]  ;;  %s4321_s8 = sld [smem:[#allocation33_spill]]  ;;  %s4322_s21 = sld [smem:[#allocation32_spill]]  ;;  %vm590_vm1 = vcmask 130048  }
 0x127   :  { %v3186_v6 = vpack.c.bf16 %v305_v4, %v304_v2  ;;  %2906 = vmatprep.mubr.msk.f32.mxu1 %vm306_vm0, %v4027_v5  ;;  %v4036_v13 = vld [vmem:[%s3800_s5 + $0x8] sm:$0xff]  ;;  %v4039_v14 = vld [vmem:[%s3800_s5 + $0x10] sm:$0xff]  ;;  %v4046_v15 = vld [vmem:[%s3800_s5 + $0x18] sm:$0xff]  ;;  %s4323_s5 = sld [smem:[#allocation35_spill]]  ;;  %s4324_s23 = sld [smem:[#allocation36_spill]] }
 0x128   :  { %3183 = vmatprep.subr.bf16.mxu1 %v3182_v3  ;;  %v4050_v16 = vld [vmem:[#allocation2] sm:$0xff]  ;;  %v4054_v17 = vld [vmem:[#allocation2 + $0x8] sm:$0xff]  ;;  %v2658_v39 = vld [vmem:[#allocation5] ss:$0 sm:$0xff]  ;;  %s4325_s26 = sld [smem:[#allocation38_spill]]  ;;  %s4326_s3 = sld [smem:[#allocation37_spill]] }
 0x129   :  { %3185 = vmatpush3.bf16.msra.mxu1 %v3182_v3  ;;  %2931 = vmatprep.mubr.msk.f32.mxu0 %vm306_vm0, %v4050_v16  ;;  %v2663_v55 = vld [vmem:[#allocation7] ss:$0 sm:$0xff]  ;;  %s4327_s28 = sld [smem:[#allocation41_spill]]  ;;  %s4328_s20 = sld [smem:[#allocation40_spill]] }
 0x12a   :  { %3187 = vmatprep.subr.bf16.mxu1 %v3186_v6  ;;  %s4329_s25 = sld [smem:[#allocation39_spill]]  ;;  %s4330_s1 = sld [smem:[#allocation43_spill]] }
 0x12b   :  { %v498_v7 = vld [vmem:[%s4320_s13] sm:$0xff]  ;;  %v499_v8 = vld [vmem:[%s4320_s13 + $0x8] sm:$0xff]  ;;  %v500_v9 = vld [vmem:[%s4320_s13 + $0x10] sm:$0xff]  ;;  %s4331_s2 = sld [smem:[#allocation46_spill]]  ;;  %s4332_s19 = sld [smem:[#allocation42_spill]] }
 0x12c   :  { %v501_v10 = vld [vmem:[%s4320_s13 + $0x18] sm:$0xff]  ;;  %v3198_v11 = vpack.c.bf16 %v499_v8, %v498_v7  ;;  %v4059_v18 = vld [vmem:[%s4321_s8] sm:$0xff]  ;;  %v4069_v26 = vld [vmem:[%s4321_s8 + $0x8] sm:$0xff]  ;;  %s4333_s24 = sld [smem:[#allocation45_spill]]  ;;  %s4334_s7 = sld [smem:[#allocation44_spill]] }
 0x12d   :  { %v3202_v12 = vpack.c.bf16 %v501_v10, %v500_v9  ;;  %3189 = vmatpush3.bf16.msra.mxu1 %v3186_v6  ;;  %v4064_v19 = vld [vmem:[%s4322_s21] sm:$0xff]  ;;  %v4076_v30 = vld [vmem:[%s4322_s21 + $0x8] sm:$0xff]  ;;  %v4083_v34 = vld [vmem:[%s4322_s21 + $0x10] sm:$0xff] }
 0x12e   :  { %3199 = vmatprep.subr.bf16.mxu0 %v3198_v11  ;;  %v700_v31 = vld [vmem:[%s4323_s5] sm:$0xff]  ;;  %v701_v32 = vld [vmem:[%s4323_s5 + $0x8] sm:$0xff]  ;;  %v4088_v35 = vld [vmem:[%s4322_s21 + $0x18] sm:$0xff] }
 0x12f   :  { %3201 = vmatpush3.bf16.msra.mxu0 %v3198_v11  ;;  %v3210_v33 = vpack.c.bf16 %v701_v32, %v700_v31  ;;  %v702_v36 = vld [vmem:[%s4323_s5 + $0x10] sm:$0xff]  ;;  %v703_v37 = vld [vmem:[%s4323_s5 + $0x18] sm:$0xff]  ;;  %v889_v52 = vld [vmem:[%s4324_s23] sm:$0xff] }
 0x130   :  { %3203 = vmatprep.subr.bf16.mxu0 %v3202_v12  ;;  %2907 = vmatmul.mubr.msk.f32.vlgmr.msra.gmra.mrb[0].mxu1 %vm306_vm0, %v4036_v13  ;;  %v3214_v38 = vpack.c.bf16 %v703_v37, %v702_v36  ;;  %v890_v53 = vld [vmem:[%s4324_s23 + $0x8] sm:$0xff]  ;;  %v891_v59 = vld [vmem:[%s4324_s23 + $0x10] sm:$0xff]  ;;  %v892_v60 = vld [vmem:[%s4324_s23 + $0x18] sm:$0xff] }
 0x131   :  { %2909 = vmatprep.mubr.msk.f32.mxu1 %vm306_vm0, %v4039_v14  ;;  %v3222_v58 = vpack.c.bf16 %v890_v53, %v889_v52  ;;  %v3226_v62 = vpack.c.bf16 %v892_v60, %v891_v59  ;;  %v1082_v0 = vld [vmem:[%s4325_s26] sm:$0xff]  ;;  %v1083_v1 = vld [vmem:[%s4325_s26 + $0x8] sm:$0xff]  ;;  %v1084_v8 = vld [vmem:[%s4325_s26 + $0x10] sm:$0xff] }
 0x132   :  { %v3238_v4 = vpack.c.bf16 %v1083_v1, %v1082_v0  ;;  %v1085_v9 = vld [vmem:[%s4325_s26 + $0x18] sm:$0xff]  ;;  %v1459_v32 = vld [vmem:[%s4327_s28 + $0x8] sm:$0xff]  ;;  %v1287_v59 = vld [vmem:[%s4328_s20] sm:$0xff] }
 0x133   :  { %3205 = vmatpush3.bf16.msra.mxu0 %v3202_v12  ;;  %v3242_v12 = vpack.c.bf16 %v1085_v9, %v1084_v8  ;;  %v1288_v60 = vld [vmem:[%s4328_s20 + $0x8] sm:$0xff]  ;;  %v1283_v1 = vld [vmem:[%s4329_s25] sm:$0xff] }
 0x134   :  { %2910 = vmatmul.mubr.msk.f32.gmra.mrb[2].mxu1 %vm306_vm0, %v4046_v15 }
 0x135   :  { %2920 = vmatprep.mubr.msk.f32.mxu1 %vm306_vm0, %v4059_v18 }
 0x136   :  { %2932 = vmatmul.mubr.msk.f32.vlgmr.msra.gmra.mrb[0].mxu0 %vm306_vm0, %v4054_v17 }
 0x137   :  { %2959 = vmatprep.mubr.msk.f32.mxu0 %vm590_vm1, %v4064_v19 }
 0x203   :  { %v2908_v20 = vpop.f32.mrb[0].mxu1 }
 0x204   :  { %v385_v21 = vpop.f32.mrb[1].mxu1 }
 0x205   :  { %v3190_v22 = vpack.c.bf16 %v2908_v20, %v385_v21 }
 0x207   :  { %v2911_v23 = vpop.f32.mrb[2].mxu1  ;;  %3191 = vmatprep.subr.bf16.mxu1 %v3190_v22 }
 0x208   :  { %v395_v24 = vpop.f32.mrb[3].mxu1  ;;  %3193 = vmatpush3.bf16.msra.mxu1 %v3190_v22 }
 0x209   :  { %v3194_v25 = vpack.c.bf16 %v2911_v23, %v395_v24  ;;  %v2933_v27 = vpop.f32.mrb[0].mxu0  ;;  %v1078_v24 = vld [vmem:[%s4326_s3] sm:$0xff] }
 0x20a   :  { %v574_v28 = vpop.f32.mrb[1].mxu0 }
 0x20b   :  { %3195 = vmatprep.subr.bf16.mxu1 %v3194_v25  ;;  %v3206_v29 = vpack.c.bf16 %v2933_v27, %v574_v28  ;;  %v1080_v28 = vld [vmem:[%s4326_s3 + $0x10] sm:$0xff] }
 0x20c   :  { %3197 = vmatpush3.bf16.msra.mxu1 %v3194_v25  ;;  %v1079_v25 = vld [vmem:[%s4326_s3 + $0x8] sm:$0xff] }
 0x20d   :  { %3207 = vmatprep.subr.bf16.mxu1 %v3206_v29  ;;  %v3246_v27 = vpack.c.bf16 %v1079_v25, %v1078_v24 }
 0x20f   :  { %2921 = vmatmul.mubr.msk.f32.vlgmr.msra.gmra.mrb[4].mxu1 %vm306_vm0, %v4069_v26 }
 0x210   :  { %2938 = vmatprep.mubr.msk.f32.mxu1 %vm590_vm1, %v4064_v19  ;;  %3209 = vmatpush3.bf16.msra.mxu1 %v3206_v29  ;;  %v1081_v29 = vld [vmem:[%s4326_s3 + $0x18] sm:$0xff] }
 0x211   :  { %3211 = vmatprep.subr.bf16.mxu1 %v3210_v33  ;;  %v3250_v31 = vpack.c.bf16 %v1081_v29, %v1080_v28 }
 0x213   :  { %2939 = vmatmul.mubr.msk.f32.vlgmr.msra.gmra.mrb[6].mxu1 %vm590_vm1, %v4076_v30 }
 0x214   :  { %2941 = vmatprep.mubr.msk.f32.mxu1 %vm590_vm1, %v4083_v34  ;;  %3213 = vmatpush3.bf16.msra.mxu1 %v3210_v33 }
 0x215   :  { %3215 = vmatprep.subr.bf16.mxu1 %v3214_v38 }
 0x217   :  { %2942 = vmatmul.mubr.msk.f32.gmra.mrb[8].mxu1 %vm590_vm1, %v4088_v35 }
 0x218   :  { %3217 = vmatpush3.bf16.msra.mxu1 %v3214_v38 }
 0x2e2   :  { %v2922_v40 = vpop.f32.mrb[4].mxu1 }
 0x2e3   :  { %v489_v41 = vadd.f32 %v2922_v40, %v2658_v39  ;;  %v483_v42 = vpop.f32.mrb[5].mxu1 }
 0x2e4   :  { %v484_v43 = vadd.f32 %v2658_v39, %v483_v42 }
 0x2e5   :  { %v495_v44 = vmul.f32 0.1, %v489_v41  ;;  %vm493_vm2 = vcmp.gt.f32.partialorder %v489_v41, 0.0 }
 0x2e6   :  { %vm492_vm3 = vcmp.gt.f32.partialorder %v484_v43, 0.0  ;;  %v494_v45 = vmul.f32 0.1, %v484_v43  ;;  %v2940_v48 = vpop.f32.mrb[6].mxu1 }
 0x2e7   :  { %v497_v47 = vsel %vm493_vm2, %v489_v41, %v495_v44  ;;  %v669_v49 = vpop.f32.mrb[7].mxu1  ;;  %v675_v63 = vadd.f32 %v2940_v48, %v2663_v55 }
 0x2e8   :  { %v496_v46 = vsel %vm492_vm3, %v484_v43, %v494_v45  ;;  %v670_v61 = vadd.f32 %v2663_v55, %v669_v49 }
 0x2e9   :  { %2952 = vmatprep.mubr.msk.f32.mxu1 %vm306_vm0, %v496_v46  ;;  %v693_v6 = vmul.f32 0.1, %v675_v63  ;;  %vm689_vm5 = vcmp.gt.f32.partialorder %v675_v63, 0.0 }
 0x2ea   :  { %2953 = vmatmul.mubr.msk.f32.vlgmr.msra.gmra.mrb[10].mxu1 %vm306_vm0, %v497_v47  ;;  %v2943_v50 = vpop.f32.mrb[8].mxu1  ;;  %v692_v2 = vmul.f32 0.1, %v670_v61  ;;  %vm688_vm4 = vcmp.gt.f32.partialorder %v670_v61, 0.0 }
 0x2eb   :  { %2987 = vmatprep.mubr.msk.f32.mxu1 %vm306_vm0, %v4059_v18  ;;  %v679_v51 = vpop.f32.mrb[9].mxu1  ;;  %v685_v7 = vadd.f32 %v2943_v50, %v2663_v55  ;;  %v697_v20 = vsel %vm689_vm5, %v675_v63, %v693_v6  ;;  %v1290_v63 = vld [vmem:[%s4328_s20 + $0x18] sm:$0xff] }
 0x2ec   :  { %v680_v3 = vadd.f32 %v2663_v55, %v679_v51  ;;  %v696_v11 = vsel %vm688_vm4, %v670_v61, %v692_v2  ;;  %v1289_v61 = vld [vmem:[%s4328_s20 + $0x10] sm:$0xff]  ;;  %v1284_v2 = vld [vmem:[%s4329_s25 + $0x8] sm:$0xff] }
 0x2ed   :  { %v695_v21 = vmul.f32 0.1, %v685_v7  ;;  %vm691_vm7 = vcmp.gt.f32.partialorder %v685_v7, 0.0  ;;  %v3258_v0 = vpack.c.bf16 %v1290_v63, %v1289_v61  ;;  %v1859_v63 = vld [vmem:[%s4331_s2 + $0x18] sm:$0xff] }
 0x2ee   :  { %v694_v10 = vmul.f32 0.1, %v680_v3  ;;  %vm690_vm6 = vcmp.gt.f32.partialorder %v680_v3, 0.0 }
 0x2ef   :  { %v699_v23 = vsel %vm691_vm7, %v685_v7, %v695_v21  ;;  %v2690_v7 = vld [vmem:[#allocation11] ss:$0 sm:$0xff] }
 0x2f0   :  { %v698_v22 = vsel %vm690_vm6, %v680_v3, %v694_v10  ;;  %v3262_v3 = vpack.c.bf16 %v1284_v2, %v1283_v1  ;;  %v2053_v1 = vld [vmem:[%s4332_s19] sm:$0xff]  ;;  %v2054_v2 = vld [vmem:[%s4332_s19 + $0x8] sm:$0xff] }
 0x3bd   :  { %v2954_v54 = vpop.f32.mrb[10].mxu1 }
 0x3be   :  { %v776_v56 = vpop.f32.mrb[11].mxu1 }
 0x3bf   :  { %v3218_v57 = vpack.c.bf16 %v2954_v54, %v776_v56  ;;  %v1460_v56 = vld [vmem:[%s4327_s28 + $0x10] sm:$0xff] }
 0x3c1   :  { %3219 = vmatprep.subr.bf16.mxu0 %v3218_v57 }
 0x3c2   :  { %3221 = vmatpush3.bf16.msra.mxu0 %v3218_v57  ;;  %v1461_v57 = vld [vmem:[%s4327_s28 + $0x18] sm:$0xff] }
 0x3c3   :  { %3223 = vmatprep.subr.bf16.mxu0 %v3222_v58 }
 0x3c5   :  { %2960 = vmatmul.mubr.msk.f32.vlgmr.msra.gmra.mrb[2].mxu0 %vm590_vm1, %v4076_v30 }
 0x3c6   :  { %3225 = vmatpush3.bf16.msra.mxu0 %v3222_v58  ;;  %2962 = vmatprep.mubr.msk.f32.mxu0 %vm590_vm1, %v4083_v34  ;;  %v3274_v58 = vpack.c.bf16 %v1461_v57, %v1460_v56  ;;  %v1856_v56 = vld [vmem:[%s4331_s2] sm:$0xff]  ;;  %v1857_v57 = vld [vmem:[%s4331_s2 + $0x8] sm:$0xff] }
 0x3c7   :  { %3227 = vmatprep.subr.bf16.mxu0 %v3226_v62  ;;  %v3298_v61 = vpack.c.bf16 %v1857_v57, %v1856_v56 }
 0x3c9   :  { %2963 = vmatmul.mubr.msk.f32.gmra.mrb[4].mxu0 %vm590_vm1, %v4088_v35 }
 0x3ca   :  { %3229 = vmatpush3.bf16.msra.mxu0 %v3226_v62  ;;  %2973 = vmatprep.mubr.msk.f32.mxu0 %vm306_vm0, %v696_v11  ;;  %v3254_v62 = vpack.c.bf16 %v1288_v60, %v1287_v59 }
 0x3cb   :  { %3239 = vmatprep.subr.bf16.mxu0 %v3238_v4 }
 0x3cd   :  { %2974 = vmatmul.mubr.msk.f32.vlgmr.msra.gmra.mrb[6].mxu0 %vm306_vm0, %v697_v20 }
 0x3ce   :  { %2976 = vmatprep.mubr.msk.f32.mxu0 %vm306_vm0, %v698_v22  ;;  %3241 = vmatpush3.bf16.msra.mxu0 %v3238_v4  ;;  %v1286_v4 = vld [vmem:[%s4329_s25 + $0x18] sm:$0xff] }
 0x3cf   :  { %3243 = vmatprep.subr.bf16.mxu0 %v3242_v12 }
 0x3d1   :  { %2977 = vmatmul.mubr.msk.f32.gmra.mrb[8].mxu0 %vm306_vm0, %v699_v23 }
 0x3d2   :  { %3245 = vmatpush3.bf16.msra.mxu0 %v3242_v12  ;;  %2998 = vmatprep.mubr.msk.f32.mxu0 %vm306_vm0, %v4027_v5  ;;  %v1458_v5 = vld [vmem:[%s4327_s28] sm:$0xff] }
 0x3d3   :  { %3247 = vmatprep.subr.bf16.mxu0 %v3246_v27  ;;  %v3270_v33 = vpack.c.bf16 %v1459_v32, %v1458_v5 }
 0x3d5   :  { %2999 = vmatmul.mubr.msk.f32.vlgmr.msra.gmra.mrb[10].mxu0 %vm306_vm0, %v4036_v13  ;;  %v2670_v13 = vld [vmem:[#allocation8] ss:$0 sm:$0xff] }
 0x3d6   :  { %3001 = vmatprep.mubr.msk.f32.mxu0 %vm306_vm0, %v4039_v14  ;;  %3249 = vmatpush3.bf16.msra.mxu0 %v3246_v27  ;;  %v2679_v27 = vld [vmem:[#allocation10] ss:$0 sm:$0xff] }
 0x3d7   :  { %3251 = vmatprep.subr.bf16.mxu0 %v3250_v31 }
 0x3d9   :  { %3002 = vmatmul.mubr.msk.f32.gmra.mrb[12].mxu0 %vm306_vm0, %v4046_v15 }
 0x3da   :  { %3253 = vmatpush3.bf16.msra.mxu0 %v3250_v31 }
 0x3db   :  { %3271 = vmatprep.subr.bf16.mxu0 %v3270_v33 }
 0x498   :  { %v2961_v36 = vpop.f32.mrb[2].mxu0 }
 0x499   :  { %v864_v14 = vadd.f32 %v2961_v36, %v2670_v13  ;;  %v858_v37 = vpop.f32.mrb[3].mxu0 }
 0x49a   :  { %v859_v38 = vadd.f32 %v2670_v13, %v858_v37 }
 0x49b   :  { %v882_v15 = vmul.f32 0.1, %v864_v14  ;;  %vm878_vm8 = vcmp.gt.f32.partialorder %v864_v14, 0.0 }
 0x49c   :  { %vm877_vm9 = vcmp.gt.f32.partialorder %v859_v38, 0.0  ;;  %v881_v39 = vmul.f32 0.1, %v859_v38  ;;  %v2964_v40 = vpop.f32.mrb[4].mxu0 }
 0x49d   :  { %v874_v41 = vadd.f32 %v2964_v40, %v2670_v13  ;;  %v868_v42 = vpop.f32.mrb[5].mxu0  ;;  %v886_v45 = vsel %vm878_vm8, %v864_v14, %v882_v15 }
 0x49e   :  { %v869_v43 = vadd.f32 %v2670_v13, %v868_v42  ;;  %v885_v44 = vsel %vm877_vm9, %v859_v38, %v881_v39 }
 0x49f   :  { %v884_v46 = vmul.f32 0.1, %v874_v41  ;;  %3012 = vmatprep.mubr.msk.f32.mxu0 %vm306_vm0, %v885_v44  ;;  %vm880_vm10 = vcmp.gt.f32.partialorder %v874_v41, 0.0  ;;  %v1733_v44 = vld [vmem:[%s4330_s1 + $0x8] sm:$0xff] }
 0x4a0   :  { %vm879_vm11 = vcmp.gt.f32.partialorder %v869_v43, 0.0  ;;  %v883_v47 = vmul.f32 0.1, %v869_v43  ;;  %v2975_v48 = vpop.f32.mrb[6].mxu0  ;;  %3013 = vmatmul.mubr.msk.f32.vlgmr.msra.gmra.mrb[10].mxu0 %vm306_vm0, %v886_v45  ;;  %v1734_v45 = vld [vmem:[%s4330_s1 + $0x10] sm:$0xff] }
 0x4a1   :  { %v971_v49 = vpop.f32.mrb[7].mxu0  ;;  %3273 = vmatpush3.bf16.msra.mxu0 %v3270_v33  ;;  %v888_v52 = vsel %vm880_vm10, %v874_v41, %v884_v46 }
 0x4a2   :  { %v3230_v50 = vpack.c.bf16 %v2975_v48, %v971_v49  ;;  %v887_v51 = vsel %vm879_vm11, %v869_v43, %v883_v47  ;;  %3275 = vmatprep.subr.bf16.mxu0 %v3274_v58  ;;  %v1732_v43 = vld [vmem:[%s4330_s1] sm:$0xff]  ;;  %v1735_v47 = vld [vmem:[%s4330_s1 + $0x18] sm:$0xff] }
 0x4a3   :  { %3015 = vmatprep.mubr.msk.f32.mxu0 %vm306_vm0, %v887_v51  ;;  %v3290_v46 = vpack.c.bf16 %v1733_v44, %v1732_v43  ;;  %v3294_v48 = vpack.c.bf16 %v1735_v47, %v1734_v45  ;;  %v2700_v49 = vld [vmem:[#allocation14] ss:$0 sm:$0xff]  ;;  %v2317_v47 = vld [vmem:[%s4334_s7] sm:$0xff] }
 0x4a4   :  { %v2978_v53 = vpop.f32.mrb[8].mxu0  ;;  %3231 = vmatprep.subr.bf16.mxu1 %v3230_v50  ;;  %3016 = vmatmul.mubr.msk.f32.gmra.mrb[12].mxu0 %vm306_vm0, %v888_v52 }
 0x4a5   :  { %v981_v54 = vpop.f32.mrb[9].mxu0  ;;  %3233 = vmatpush3.bf16.msra.mxu1 %v3230_v50  ;;  %3277 = vmatpush3.bf16.msra.mxu0 %v3274_v58 }
 0x4a6   :  { %v3234_v55 = vpack.c.bf16 %v2978_v53, %v981_v54  ;;  %3291 = vmatprep.subr.bf16.mxu0 %v3290_v46 }
 0x4a8   :  { %3235 = vmatprep.subr.bf16.mxu1 %v3234_v55 }
 0x4a9   :  { %3237 = vmatpush3.bf16.msra.mxu1 %v3234_v55 }
 0x4aa   :  { %3255 = vmatprep.subr.bf16.mxu1 %v3254_v62 }
 0x4ac   :  { %2988 = vmatmul.mubr.msk.f32.vlgmr.msra.gmra.mrb[12].mxu1 %vm306_vm0, %v4069_v26 }
 0x4ad   :  { %3026 = vmatprep.mubr.msk.f32.mxu1 %vm306_vm0, %v4050_v16  ;;  %3257 = vmatpush3.bf16.msra.mxu1 %v3254_v62  ;;  %v1285_v16 = vld [vmem:[%s4329_s25 + $0x10] sm:$0xff] }
 0x4ae   :  { %3259 = vmatprep.subr.bf16.mxu1 %v3258_v0  ;;  %v3266_v6 = vpack.c.bf16 %v1286_v4, %v1285_v16  ;;  %v1858_v62 = vld [vmem:[%s4331_s2 + $0x10] sm:$0xff]  ;;  %v3314_v16 = vpack.c.bf16 %v2054_v2, %v2053_v1  ;;  %v2056_v4 = vld [vmem:[%s4332_s19 + $0x18] sm:$0xff] }
 0x4b1   :  { %3261 = vmatpush3.bf16.msra.mxu1 %v3258_v0  ;;  %v3302_v0 = vpack.c.bf16 %v1859_v63, %v1858_v62 }
 0x4b2   :  { %3263 = vmatprep.subr.bf16.mxu1 %v3262_v3 }
 0x4b4   :  { %3027 = vmatmul.mubr.msk.f32.vlgmr.msra.gmra.mrb[14].mxu1 %vm306_vm0, %v4054_v17 }
 0x4b5   :  { %3265 = vmatpush3.bf16.msra.mxu1 %v3262_v3  ;;  %v2055_v3 = vld [vmem:[%s4332_s19 + $0x10] sm:$0xff] }
 0x4b6   :  { %3267 = vmatprep.subr.bf16.mxu1 %v3266_v6 }
 0x4b9   :  { %3269 = vmatpush3.bf16.msra.mxu1 %v3266_v6  ;;  %v2695_v6 = vld [vmem:[#allocation13] ss:$0 sm:$0xff] }
 0x573   :  { %v3014_v8 = vpop.f32.mrb[10].mxu0 }
 0x574   :  { %v4150_v9 = vadd.f32 %v3014_v8, %v2690_v7  ;;  %v1249_v10 = vpop.f32.mrb[11].mxu0 }
 0x575   :  { %v4152_v11 = vadd.f32 %v2690_v7, %v1249_v10 }
 0x576   :  { %v1280_v21 = vmax.f32 %v4150_v9, 0.0  ;;  %v3318_v9 = vpack.c.bf16 %v2056_v4, %v2055_v3 }
 0x577   :  { %v1279_v12 = vmax.f32 %v4152_v11, 0.0  ;;  %v3017_v20 = vpop.f32.mrb[12].mxu0 }
 0x578   :  { %v4156_v22 = vadd.f32 %v3017_v20, %v2690_v7  ;;  %v1259_v23 = vpop.f32.mrb[13].mxu0 }
 0x579   :  { %v4158_v24 = vadd.f32 %v2690_v7, %v1259_v23  ;;  %3048 = vmatprep.mubr.msk.f32.mxu0 %vm306_vm0, %v1279_v12  ;;  %v1852_v23 = vld [vmem:[%s4333_s24] sm:$0xff] }
 0x57a   :  { %3049 = vmatmul.mubr.msk.f32.vlgmr.msra.gmra.mrb[14].mxu0 %vm306_vm0, %v1280_v21  ;;  %v1282_v25 = vmax.f32 %v4156_v22, 0.0 }
 0x57b   :  { %v1281_v17 = vmax.f32 %v4158_v24, 0.0  ;;  %3293 = vmatpush3.bf16.msra.mxu0 %v3290_v46  ;;  %v1853_v24 = vld [vmem:[%s4333_s24 + $0x8] sm:$0xff] }
 0x57c   :  { %3295 = vmatprep.subr.bf16.mxu0 %v3294_v48 }
 0x57d   :  { %3051 = vmatprep.mubr.msk.f32.mxu0 %vm306_vm0, %v1281_v17 }
 0x57e   :  { %3052 = vmatmul.mubr.msk.f32.gmra.mrb[16].mxu0 %vm306_vm0, %v1282_v25 }
 0x57f   :  { %v2989_v28 = vpop.f32.mrb[12].mxu1  ;;  %3297 = vmatpush3.bf16.msra.mxu0 %v3294_v48  ;;  %v2318_v48 = vld [vmem:[%s4334_s7 + $0x8] sm:$0xff] }
 0x580   :  { %v1069_v29 = vadd.f32 %v2989_v28, %v2679_v27  ;;  %v1063_v31 = vpop.f32.mrb[13].mxu1  ;;  %3315 = vmatprep.subr.bf16.mxu0 %v3314_v16 }
 0x581   :  { %v1064_v5 = vadd.f32 %v2679_v27, %v1063_v31  ;;  %v1855_v27 = vld [vmem:[%s4333_s24 + $0x18] sm:$0xff] }
 0x582   :  { %vm1073_vm12 = vcmp.gt.f32.partialorder %v1069_v29, 0.0  ;;  %v1075_v32 = vmul.f32 0.1, %v1069_v29 }
 0x583   :  { %vm1072_vm13 = vcmp.gt.f32.partialorder %v1064_v5, 0.0  ;;  %v1074_v33 = vmul.f32 0.1, %v1064_v5 }
 0x584   :  { %v1077_v13 = vsel %vm1073_vm12, %v1069_v29, %v1075_v32  ;;  %v2707_v29 = vld [vmem:[#allocation17] ss:$0 sm:$0xff] }
 0x585   :  { %v1076_v36 = vsel %vm1072_vm13, %v1064_v5, %v1074_v33 }
 0x586   :  { %3037 = vmatprep.mubr.msk.f32.mxu1 %vm306_vm0, %v1076_v36 }
 0x587   :  { %3038 = vmatmul.mubr.msk.f32.vlgmr.msra.gmra.mrb[14].mxu1 %vm306_vm0, %v1077_v13 }
 0x588   :  { %3062 = vmatprep.mubr.msk.f32.mxu1 %vm306_vm0, %v4059_v18 }
 0x64d   :  { %v3050_v14 = vpop.f32.mrb[14].mxu0 }
 0x64e   :  { %v1540_v37 = vpop.f32.mrb[15].mxu0 }
 0x64f   :  { %v3278_v38 = vpack.c.bf16 %v3050_v14, %v1540_v37 }
 0x651   :  { %v3053_v15 = vpop.f32.mrb[16].mxu0  ;;  %3279 = vmatprep.subr.bf16.mxu1 %v3278_v38 }
 0x652   :  { %v1550_v39 = vpop.f32.mrb[17].mxu0  ;;  %3281 = vmatpush3.bf16.msra.mxu1 %v3278_v38 }
 0x653   :  { %v3282_v40 = vpack.c.bf16 %v3053_v15, %v1550_v39 }
 0x655   :  { %3283 = vmatprep.subr.bf16.mxu1 %v3282_v40 }
 0x656   :  { %3285 = vmatpush3.bf16.msra.mxu1 %v3282_v40 }
 0x659   :  { %3063 = vmatmul.mubr.msk.f32.vlgmr.msra.gmra.mrb[16].mxu1 %vm306_vm0, %v4069_v26 }
 0x65a   :  { %v3039_v41 = vpop.f32.mrb[14].mxu1  ;;  %3069 = vmatprep.mubr.msk.f32.mxu1 %vm590_vm1, %v4064_v19 }
 0x65b   :  { %v1438_v42 = vpop.f32.mrb[15].mxu1 }
 0x65c   :  { %v4212_v10 = vadd.f32 %v2695_v6, %v1438_v42 }
 0x72c   :  { %v3064_v50 = vpop.f32.mrb[16].mxu1 }
 0x72d   :  { %v1638_v51 = vadd.f32 %v3064_v50, %v2700_v49  ;;  %v1632_v52 = vpop.f32.mrb[17].mxu1  ;;  %v3334_v50 = vpack.c.bf16 %v2318_v48, %v2317_v47 }
 0x72e   :  { %v1633_v53 = vadd.f32 %v2700_v49, %v1632_v52  ;;  %v2319_v49 = vld [vmem:[%s4334_s7 + $0x10] sm:$0xff] }
 0x72f   :  { %vm1642_vm14 = vcmp.gt.f32.partialorder %v1638_v51, 0.0  ;;  %v1644_v54 = vmul.f32 0.1, %v1638_v51 }
 0x730   :  { %vm1641_vm15 = vcmp.gt.f32.partialorder %v1633_v53, 0.0  ;;  %v1643_v55 = vmul.f32 0.1, %v1633_v53 }
 0x731   :  { %v1646_v58 = vsel %vm1642_vm14, %v1638_v51, %v1644_v54  ;;  %v2320_v51 = vld [vmem:[%s4334_s7 + $0x18] sm:$0xff] }
 0x732   :  { %v1645_v59 = vsel %vm1641_vm15, %v1633_v53, %v1643_v55  ;;  %v3338_v52 = vpack.c.bf16 %v2320_v51, %v2319_v49 }
 0x733   :  { %v3286_v60 = vpack.c.bf16 %v1646_v58, %v1645_v59  ;;  %v2723_v58 = vld [vmem:[#allocation16] ss:$0 sm:$0xff] }
 0x735   :  { %3287 = vmatprep.subr.bf16.mxu1 %v3286_v60 }
 0x736   :  { %3289 = vmatpush3.bf16.msra.mxu1 %v3286_v60 }
 0x737   :  { %3299 = vmatprep.subr.bf16.mxu1 %v3298_v61 }
 0x739   :  { %3070 = vmatmul.mubr.msk.f32.vlgmr.msra.gmra.mrb[18].mxu1 %vm590_vm1, %v4076_v30 }
 0x73a   :  { %3301 = vmatpush3.bf16.msra.mxu1 %v3298_v61  ;;  %3072 = vmatprep.mubr.msk.f32.mxu1 %vm590_vm1, %v4083_v34 }
 0x73b   :  { %3303 = vmatprep.subr.bf16.mxu1 %v3302_v0 }
 0x73d   :  { %3073 = vmatmul.mubr.msk.f32.gmra.mrb[20].mxu1 %vm590_vm1, %v4088_v35 }
 0x73e   :  { %3305 = vmatpush3.bf16.msra.mxu1 %v3302_v0  ;;  %3097 = vmatprep.mubr.msk.f32.mxu1 %vm306_vm0, %v1279_v12  ;;  %v4216_v12 = vadd.f32 %v3039_v41, %v2695_v6 }
 0x740   :  { %v1457_v22 = vmax.f32 %v4216_v12, 0.0 }
 0x741   :  { %3098 = vmatmul.mubr.msk.f32.vlgmr.msra.gmra.mrb[22].mxu1 %vm306_vm0, %v1280_v21  ;;  %v1456_v21 = vmax.f32 %v4212_v10, 0.0 }
 0x742   :  { %3100 = vmatprep.mubr.msk.f32.mxu1 %vm306_vm0, %v1281_v17  ;;  %v3306_v17 = vpack.c.bf16 %v1853_v24, %v1852_v23 }
 0x744   :  { %3307 = vmatprep.subr.bf16.mxu1 %v3306_v17 }
 0x745   :  { %3101 = vmatmul.mubr.msk.f32.gmra.mrb[24].mxu1 %vm306_vm0, %v1282_v25  ;;  %v1854_v25 = vld [vmem:[%s4333_s24 + $0x10] sm:$0xff] }
 0x746   :  { %3309 = vmatpush3.bf16.msra.mxu1 %v3306_v17  ;;  %v3310_v28 = vpack.c.bf16 %v1855_v27, %v1854_v25  ;;  %v2421_v27 = vld [vmem:[%s3950_s30 + $0x10] sm:$0xff] }
 0x748   :  { %3311 = vmatprep.subr.bf16.mxu1 %v3310_v28 }
 0x74a   :  { %3313 = vmatpush3.bf16.msra.mxu1 %v3310_v28  ;;  %v2422_v28 = vld [vmem:[%s3950_s30 + $0x18] sm:$0xff] }
 0x74b   :  { %3335 = vmatprep.subr.bf16.mxu1 %v3334_v50 }
 0x80c   :  { %v3071_v7 = vpop.f32.mrb[18].mxu1 }
 0x80d   :  { %v1713_v8 = vpop.f32.mrb[19].mxu1 }
 0x80e   :  { %3083 = vmatprep.mubr.msk.f32.mxu0 %vm306_vm0, %v1713_v8 }
 0x80f   :  { %3084 = vmatmul.mubr.msk.f32.vlgmr.msra.gmra.mrb[18].mxu0 %vm306_vm0, %v3071_v7 }
 0x810   :  { %v3074_v11 = vpop.f32.mrb[20].mxu1  ;;  %3317 = vmatpush3.bf16.msra.mxu0 %v3314_v16 }
 0x811   :  { %v1723_v20 = vpop.f32.mrb[21].mxu1  ;;  %3319 = vmatprep.subr.bf16.mxu0 %v3318_v9 }
 0x812   :  { %3086 = vmatprep.mubr.msk.f32.mxu0 %vm306_vm0, %v1723_v20  ;;  %v2420_v20 = vld [vmem:[%s3950_s30 + $0x8] sm:$0xff] }
 0x813   :  { %3087 = vmatmul.mubr.msk.f32.gmra.mrb[20].mxu0 %vm306_vm0, %v3074_v11  ;;  %v2419_v11 = vld [vmem:[%s3950_s30] sm:$0xff]  ;;  %s3791_s30 = smov [#allocation23]  }
 0x814   :  { %3321 = vmatpush3.bf16.msra.mxu0 %v3318_v9  ;;  %3125 = vmatprep.mubr.msk.f32.mxu0 %vm306_vm0, %v1456_v21  ;;  %v3342_v25 = vpack.c.bf16 %v2420_v20, %v2419_v11  ;;  %s2601_s10 = sshll.u32 %s3791_s30, 4  ;;  %s2602_s10 = int_to_ptr.vmem [resolvable:$true] %s2601_s10 }
 0x815   :  { %s3705_s4 = scalar_lea.vmem %s2602_s10, 256  ;;  %p3710_p7 = scmp.lt.s32.totalorder %s2602_s10, %s2602_s10 }
 0x816   :  { %p3706_p6 = scmp.ne.s32.totalorder %s2602_s10, %s3705_s4  ;;  %p3711_p8 = scmp.lt.s32.totalorder %s3705_s4, %s3705_s4 }
 0x817   :  { %3126 = vmatmul.mubr.msk.f32.vlgmr.msra.gmra.mrb[22].mxu0 %vm306_vm0, %v1457_v22 }
 0x818   :  { %3132 = vmatprep.mubr.msk.f32.mxu0 %vm590_vm1, %v4064_v19  ;;  %p3712_p9 = por %p3711_p8, %p3710_p7 }
 0x81a   :  { %p3713_p10 = pnand %p3712_p9, %p3706_p6 }
 0x8e2   :  { %v3085_v31 = vpop.f32.mrb[18].mxu0 }
 0x8e3   :  { %v1827_v5 = vadd.f32 %v3085_v31, %v2707_v29  ;;  %v1821_v32 = vpop.f32.mrb[19].mxu0 }
 0x8e4   :  { %v1822_v33 = vadd.f32 %v2707_v29, %v1821_v32 }
 0x8e5   :  { %v1845_v13 = vmul.f32 0.1, %v1827_v5  ;;  %vm1841_vm2 = vcmp.gt.f32.partialorder %v1827_v5, 0.0 }
 0x8e6   :  { %vm1840_vm3 = vcmp.gt.f32.partialorder %v1822_v33, 0.0  ;;  %v1844_v36 = vmul.f32 0.1, %v1822_v33  ;;  %v3088_v19 = vpop.f32.mrb[20].mxu0 }
 0x8e7   :  { %v1837_v14 = vadd.f32 %v3088_v19, %v2707_v29  ;;  %v1831_v37 = vpop.f32.mrb[21].mxu0  ;;  %v1849_v39 = vsel %vm1841_vm2, %v1827_v5, %v1845_v13 }
 0x8e8   :  { %v1832_v38 = vadd.f32 %v2707_v29, %v1831_v37  ;;  %v1848_v15 = vsel %vm1840_vm3, %v1822_v33, %v1844_v36  ;;  %v3346_v29 = vpack.c.bf16 %v2422_v28, %v2421_v27  ;;  %v2730_v36 = vld [vmem:[#allocation19] ss:$0 sm:$0xff] }
 0x8e9   :  { %v1847_v40 = vmul.f32 0.1, %v1837_v14  ;;  %3111 = vmatprep.mubr.msk.f32.mxu1 %vm306_vm0, %v1848_v15  ;;  %vm1843_vm4 = vcmp.gt.f32.partialorder %v1837_v14, 0.0 }
 0x8ea   :  { %vm1842_vm5 = vcmp.gt.f32.partialorder %v1832_v38, 0.0  ;;  %v1846_v41 = vmul.f32 0.1, %v1832_v38  ;;  %3112 = vmatmul.mubr.msk.f32.vlgmr.msra.gmra.mrb[22].mxu1 %vm306_vm0, %v1849_v39  ;;  %v3127_v42 = vpop.f32.mrb[22].mxu0 }
 0x8eb   :  { %v2129_v43 = vpop.f32.mrb[23].mxu0  ;;  %v1851_v46 = vsel %vm1843_vm4, %v1837_v14, %v1847_v40  ;;  %3337 = vmatpush3.bf16.msra.mxu1 %v3334_v50  ;;  %v2737_v40 = vld [vmem:[#allocation22] ss:$0 sm:$0xff] }
 0x8ec   :  { %v3322_v44 = vpack.c.bf16 %v3127_v42, %v2129_v43  ;;  %v1850_v45 = vsel %vm1842_vm5, %v1832_v38, %v1846_v41  ;;  %3339 = vmatprep.subr.bf16.mxu1 %v3338_v52 }
 0x8ed   :  { %3114 = vmatprep.mubr.msk.f32.mxu1 %vm306_vm0, %v1850_v45 }
 0x8ee   :  { %3115 = vmatmul.mubr.msk.f32.gmra.mrb[24].mxu1 %vm306_vm0, %v1851_v46  ;;  %3323 = vmatprep.subr.bf16.mxu0 %v3322_v44 }
 0x8ef   :  { %3325 = vmatpush3.bf16.msra.mxu0 %v3322_v44  ;;  %3341 = vmatpush3.bf16.msra.mxu1 %v3338_v52 }
 0x8f2   :  { %3133 = vmatmul.mubr.msk.f32.vlgmr.msra.gmra.mrb[24].mxu0 %vm590_vm1, %v4076_v30  ;;  %v2720_v30 = vld [vmem:[#allocation20] ss:$0 sm:$0xff] }
 0x8f3   :  { %3135 = vmatprep.mubr.msk.f32.mxu0 %vm590_vm1, %v4083_v34 }
 0x8f6   :  { %3136 = vmatmul.mubr.msk.f32.gmra.mrb[26].mxu0 %vm590_vm1, %v4088_v35 }
 0x8f7   :  { %3146 = vmatprep.mubr.msk.f32.mxu0 %vm306_vm0, %v4059_v18 }
 0x9bd   :  { %v3113_v34 = vpop.f32.mrb[22].mxu1 }
 0x9be   :  { %v2050_v35 = vadd.f32 %v3113_v34, %v2720_v30  ;;  %v2023_v53 = vpop.f32.mrb[23].mxu1 }
 0x9bf   :  { %v2049_v54 = vadd.f32 %v2720_v30, %v2023_v53 }
 0x9c0   :  { %2589 = vst.msk [vmem:[%s3960_s29 + $0x8] sm:$0xff] %vm306_vm0, %v2050_v35 }
 0x9c1   :  { %2588 = vst.msk [vmem:[%s3960_s29] sm:$0xff] %vm306_vm0, %v2049_v54  ;;  %v3116_v18 = vpop.f32.mrb[24].mxu1 }
 0x9c2   :  { %v2052_v55 = vadd.f32 %v3116_v18, %v2720_v30  ;;  %v2033_v56 = vpop.f32.mrb[25].mxu1 }
 0x9c3   :  { %v2051_v57 = vadd.f32 %v2720_v30, %v2033_v56 }
 0x9c4   :  { %2591 = vst.msk [vmem:[%s3960_s29 + $0x18] sm:$0xff] %vm306_vm0, %v2052_v55 }
 0x9c5   :  { %2590 = vst.msk [vmem:[%s3960_s29 + $0x10] sm:$0xff] %vm306_vm0, %v2051_v57  ;;  %v3134_v59 = vpop.f32.mrb[24].mxu0  ;;  %s4335_s29 = sld [smem:[#allocation47_spill]] }
 0x9c6   :  { %v2217_v60 = vadd.f32 %v3134_v59, %v2723_v58  ;;  %v2211_v61 = vpop.f32.mrb[25].mxu0 }
 0x9c7   :  { %v2212_v62 = vadd.f32 %v2723_v58, %v2211_v61 }
 0x9c8   :  { %vm2231_vm1 = vcmp.gt.f32.partialorder %v2217_v60, 0.0  ;;  %v2235_v63 = vmul.f32 0.1, %v2217_v60 }
 0x9c9   :  { %vm2230_vm6 = vcmp.gt.f32.partialorder %v2212_v62, 0.0  ;;  %v2234_v0 = vmul.f32 0.1, %v2212_v62  ;;  %v3137_v1 = vpop.f32.mrb[26].mxu0 }
 0x9ca   :  { %v2227_v2 = vadd.f32 %v3137_v1, %v2723_v58  ;;  %v2221_v16 = vpop.f32.mrb[27].mxu0  ;;  %v2239_v3 = vsel %vm2231_vm1, %v2217_v60, %v2235_v63 }
 0x9cb   :  { %v2222_v4 = vadd.f32 %v2723_v58, %v2221_v16  ;;  %v2238_v6 = vsel %vm2230_vm6, %v2212_v62, %v2234_v0  ;;  %v2415_v32 = vld [vmem:[%s4335_s29] sm:$0xff]  ;;  %v2417_v10 = vld [vmem:[%s4335_s29 + $0x10] sm:$0xff]  ;;  %v2418_v13 = vld [vmem:[%s4335_s29 + $0x18] sm:$0xff] }
 0x9cc   :  { %vm2233_vm7 = vcmp.gt.f32.partialorder %v2227_v2, 0.0  ;;  %v2237_v7 = vmul.f32 0.1, %v2227_v2  ;;  %v3326_v8 = vpack.c.bf16 %v2239_v3, %v2238_v6 }
 0x9cd   :  { %vm2232_vm8 = vcmp.gt.f32.partialorder %v2222_v4, 0.0  ;;  %v2236_v9 = vmul.f32 0.1, %v2222_v4 }
 0x9ce   :  { %3327 = vmatprep.subr.bf16.mxu0 %v3326_v8  ;;  %v2241_v23 = vsel %vm2233_vm7, %v2227_v2, %v2237_v7 }
 0x9cf   :  { %3329 = vmatpush3.bf16.msra.mxu0 %v3326_v8  ;;  %v2240_v24 = vsel %vm2232_vm8, %v2222_v4, %v2236_v9 }
 0x9d0   :  { %v3330_v17 = vpack.c.bf16 %v2241_v23, %v2240_v24 }
 0x9d2   :  { %3331 = vmatprep.subr.bf16.mxu0 %v3330_v17 }
 0x9d3   :  { %3333 = vmatpush3.bf16.msra.mxu0 %v3330_v17 }
 0x9d4   :  { %3343 = vmatprep.subr.bf16.mxu0 %v3342_v25 }
 0x9d6   :  { %3147 = vmatmul.mubr.msk.f32.vlgmr.msra.gmra.mrb[28].mxu0 %vm306_vm0, %v4069_v26  ;;  %v2416_v26 = vld [vmem:[%s4335_s29 + $0x8] sm:$0xff] }
 0x9d7   :  { %3345 = vmatpush3.bf16.msra.mxu0 %v3342_v25  ;;  %3168 = vmatprep.mubr.msk.f32.mxu0 %vm306_vm0, %v1456_v21  ;;  %v3350_v33 = vpack.c.bf16 %v2416_v26, %v2415_v32  ;;  %v3354_v21 = vpack.c.bf16 %v2418_v13, %v2417_v10 }
 0x9d8   :  { %3347 = vmatprep.subr.bf16.mxu0 %v3346_v29 }
 0x9db   :  { %3349 = vmatpush3.bf16.msra.mxu0 %v3346_v29 }
 0x9dc   :  { %3351 = vmatprep.subr.bf16.mxu0 %v3350_v33 }
 0x9de   :  { %3169 = vmatmul.mubr.msk.f32.vlgmr.msra.gmra.mrb[30].mxu0 %vm306_vm0, %v1457_v22 }
 0x9df   :  { %3353 = vmatpush3.bf16.msra.mxu0 %v3350_v33 }
 0x9e0   :  { %3355 = vmatprep.subr.bf16.mxu0 %v3354_v21 }
 0x9e3   :  { %3357 = vmatpush3.bf16.msra.mxu0 %v3354_v21 }
 0xaa9   :  { %v3148_v31 = vpop.f32.mrb[28].mxu0 }
 0xaaa   :  { %v2308_v5 = vpop.f32.mrb[29].mxu0 }
 0xaab   :  { %3157 = vmatprep.mubr.msk.f32.mxu1 %vm306_vm0, %v2308_v5 }
 0xaac   :  { %3158 = vmatmul.mubr.msk.f32.vlgmr.msra.gmra.mrb[26].mxu1 %vm306_vm0, %v3148_v31 }
 0xb7f   :  { %v3159_v12 = vpop.f32.mrb[26].mxu1 }
 0xb80   :  { %v2406_v19 = vadd.f32 %v3159_v12, %v2730_v36  ;;  %v2400_v22 = vpop.f32.mrb[27].mxu1 }
 0xb81   :  { %v2401_v14 = vadd.f32 %v2730_v36, %v2400_v22 }
 0xb82   :  { %v2412_v37 = vmul.f32 0.1, %v2406_v19  ;;  %vm2410_vm9 = vcmp.gt.f32.partialorder %v2406_v19, 0.0 }
 0xb83   :  { %vm2409_vm10 = vcmp.gt.f32.partialorder %v2401_v14, 0.0  ;;  %v2411_v38 = vmul.f32 0.1, %v2401_v14 }
 0xb84   :  { %v2414_v39 = vsel %vm2410_vm9, %v2406_v19, %v2412_v37 }
 0xb85   :  { %v2413_v15 = vsel %vm2409_vm10, %v2401_v14, %v2411_v38 }
 0xb86   :  { %3179 = vmatprep.mubr.msk.f32.mxu0 %vm306_vm0, %v2413_v15 }
 0xb87   :  { %3180 = vmatmul.mubr.msk.f32.vlgmr.msra.gmra.mrb[30].mxu0 %vm306_vm0, %v2414_v39 }
 0xc5a   :  { %v3181_v41 = vpop.f32.mrb[30].mxu0 }
 0xc5b   :  { %v2587_v42 = vadd.f32 %v3181_v41, %v2737_v40  ;;  %v2570_v43 = vpop.f32.mrb[31].mxu0 }
 0xc5c   :  { %v2586_v44 = vadd.f32 %v2737_v40, %v2570_v43 }
 0xc5d   :  { %2593 = vst.msk [vmem:[#allocation23 + $0x8] sm:$0xff] %vm306_vm0, %v2587_v42 }
 0xc5e   :  { %2592 = vst.msk [vmem:[#allocation23] sm:$0xff] %vm306_vm0, %v2586_v44 }
 0xc5f   :  { %3716 = shalt.err (!%p3713_p10)
}
 0xc60   :  { %s3717_s14 = scalar_lea.hbm %s3965_s17, 256 }
 0xc61   :  { %p3718_p11 = scmp.ne.s32.totalorder %s3965_s17, %s3717_s14  ;;  %p3721_p12 = scmp.lt.u32.totalorder %s3717_s14, %s3965_s17 }
 0xc63   :  { %p3723_p13 = pnand %p3721_p12, %p3718_p11 }
 0xc65   :  { %3726 = shalt.err (!%p3723_p13)
}
 0xc66   :  { %2607 = dma.vmem_to_hbm [thread:$0]  %s2602_s10, 256, %s3965_s17, [#allocation4], %s3783_s11, %s3783_s11, %s3784_s27  }
 0xc67   :  { %3741 = dma.done.wait [#allocation4], 256  }
 0xc68   :  { %3742 = vsyncadd [#allocation4], 4294967040 }
 0xc69   :  { %2613 = vsyncpa [#allocation3], 1 }
 0xc6a   :  { %2614 = vsyncpa [#allocation6], 1 }
 0xc6b   :  { %2615 = vsyncpa [#allocation9], 1 }
 0xc6c   :  { %2616 = vsyncpa [#allocation12], 1 }
 0xc6d   :  { %2617 = vsyncpa [#allocation15], 1 }
 0xc6e   :  { %2618 = vsyncpa [#allocation18], 1 }
 0xc6f   :  { %2619 = vsyncpa [#allocation21], 1 }
 0xc70   :  { %2620 = vsyncpa [#allocation4], 1 }

// kernel: disencdr_forward.11
= control target key start
LH: loop header
LB: loop body
LE: loop exit
PB: predicated region body
PF: predicated region fallthrough
CT: control target
= control target key end

     0   :  { %13 = vsyncpa [#allocation3], 0  ;;  %s725_s9 = smov 32   ;;  %s1236_s0 = inlined_call_operand.vmem [shape: f32[32,64], index: 0, kind: input, shape index: {}]   ;;  %s1237_s1 = inlined_call_operand.vmem [shape: f32[32,64], index: 1, kind: input, shape index: {}]   ;;  %s1238_s2 = inlined_call_operand.vmem [shape: f32[32,64], index: 2, kind: input, shape index: {}]   ;;  %s1239_s3 = inlined_call_operand.vmem [shape: f32[32,32], index: 3, kind: input, shape index: {}]   ;;  %s1240_s4 = inlined_call_operand.vmem [shape: f32[32,32], index: 4, kind: input, shape index: {}]   ;;  %s1241_s5 = inlined_call_operand.hbm [shape: f32[1,1], index: 5, kind: output, shape index: {0}]   ;;  %s1242_s6 = inlined_call_operand.hbm [shape: f32[32,32], index: 6, kind: output, shape index: {1}]   ;;  %s1243_s7 = inlined_call_operand.hbm [shape: f32[32,32], index: 7, kind: output, shape index: {2}]  }
   0x1   :  { %v775_v0 = vld [vmem:[%s1236_s0] sm:$0xff]  ;;  %v785_v2 = vld [vmem:[%s1236_s0 + $0x8] sm:$0xff]  ;;  %v804_v8 = vld [vmem:[%s1236_s0 + $0x10] sm:$0xff] }
   0x2   :  { %v780_v1 = vld [vmem:[%s1237_s1] sm:$0xff]  ;;  %v133_v3 = vmul.f32 %v775_v0, %v775_v0  ;;  %v792_v4 = vld [vmem:[%s1237_s1 + $0x8] sm:$0xff]  ;;  %v134_v6 = vmul.f32 %v785_v2, %v785_v2  ;;  %v809_v9 = vld [vmem:[%s1237_s1 + $0x10] sm:$0xff]  ;;  %v135_v14 = vmul.f32 %v804_v8, %v804_v8 }
   0x3   :  { %v253_v5 = vsub.f32 %v775_v0, %v780_v1  ;;  %v254_v7 = vsub.f32 %v785_v2, %v792_v4  ;;  %v814_v11 = vld [vmem:[%s1238_s2] sm:$0xff]  ;;  %v255_v13 = vsub.f32 %v804_v8, %v809_v9  ;;  %v827_v16 = vld [vmem:[%s1238_s2 + $0x8] sm:$0xff] }
   0x4   :  { %141 = vrot.lane.b32.xlu0 %v133_v3, %s725_s9  ;;  %v393_v15 = vsub.f32 %v775_v0, %v814_v11 }
   0x5   :  { %v257_v10 = vmul.f32 %v253_v5, %v253_v5  ;;  %v258_v12 = vmul.f32 %v254_v7, %v254_v7 }
   0x7   :  { %265 = vrot.lane.b32.xlu1 %v257_v10, %s725_s9 }
   0x8   :  { %143 = vrot.lane.b32.xlu0 %v134_v6, %s725_s9 }
   0x9   :  { %14 = vsyncpa [#allocation5], 0  ;;  %v259_v17 = vmul.f32 %v255_v13, %v255_v13  ;;  %v394_v18 = vsub.f32 %v785_v2, %v827_v16  ;;  %v397_v19 = vmul.f32 %v393_v15, %v393_v15  ;;  %v836_v20 = vld [vmem:[%s1236_s0 + $0x18] sm:$0xff]  ;;  %v846_v22 = vld [vmem:[%s1238_s2 + $0x10] sm:$0xff]  ;;  %v49_v32 = vand.u32 2147483647, %v775_v0 }
   0xa   :  { %v841_v21 = vld [vmem:[%s1237_s1 + $0x18] sm:$0xff]  ;;  %v136_v25 = vmul.f32 %v836_v20, %v836_v20  ;;  %v395_v26 = vsub.f32 %v804_v8, %v846_v22  ;;  %v181_v33 = vand.u32 2147483647, %v780_v1  ;;  %v50_v36 = vand.u32 2147483647, %v785_v2  ;;  %s727_s13 = smov [#allocation4]  }
   0xb   :  { %267 = vrot.lane.b32.xlu1 %v258_v12, %s725_s9  ;;  %v398_v23 = vmul.f32 %v394_v18, %v394_v18  ;;  %v256_v24 = vsub.f32 %v836_v20, %v841_v21  ;;  %v859_v27 = vld [vmem:[%s1238_s2 + $0x18] sm:$0xff]  ;;  %v53_v34 = vsub.f32 0.0, %v49_v32  ;;  %v182_v40 = vand.u32 2147483647, %v792_v4  ;;  %s726_s2 = smov 96   ;;  %s534_s14 = sshll.u32 %s727_s13, 4  ;;  %s535_s14 = int_to_ptr.vmem [resolvable:$true] %s534_s14 }
   0xc   :  { %145 = vrot.lane.b32.xlu0 %v135_v14, %s725_s9  ;;  %v396_v29 = vsub.f32 %v836_v20, %v859_v27  ;;  %v399_v30 = vmul.f32 %v395_v26, %v395_v26  ;;  %v185_v35 = vsub.f32 0.0, %v181_v33  ;;  %v54_v39 = vsub.f32 0.0, %v50_v36  ;;  %p660_p1 = scmp.lt.s32.totalorder %s535_s14, %s535_s14 }
   0xd   :  { %v260_v28 = vmul.f32 %v256_v24, %v256_v24  ;;  %v57_v37 = vmul.f32 1.442695, %v53_v34  ;;  %v51_v42 = vand.u32 2147483647, %v804_v8  ;;  %v186_v43 = vsub.f32 0.0, %v182_v40 }
   0xe   :  { %v400_v31 = vmul.f32 %v396_v29, %v396_v29  ;;  %v189_v38 = vmul.f32 1.442695, %v185_v35  ;;  %v59_v41 = vmul.f32 1.442695, %v54_v39  ;;  %v183_v44 = vand.u32 2147483647, %v809_v9 }
   0xf   :  { %269 = vrot.lane.b32.xlu1 %v259_v17, %s725_s9  ;;  %583 = vpow2.f32 %v57_v37  ;;  %v321_v45 = vand.u32 2147483647, %v814_v11  ;;  %v55_v46 = vsub.f32 0.0, %v51_v42  ;;  %v191_v47 = vmul.f32 1.442695, %v186_v43 }
  0x10   :  { %405 = vrot.lane.b32.xlu0 %v397_v19, %s725_s9  ;;  %585 = vpow2.f32 %v189_v38  ;;  %v187_v48 = vsub.f32 0.0, %v183_v44  ;;  %v322_v50 = vand.u32 2147483647, %v827_v16  ;;  %v52_v56 = vand.u32 2147483647, %v836_v20 }
  0x11   :  { %587 = vpow2.f32 %v59_v41  ;;  %v325_v49 = vsub.f32 0.0, %v321_v45  ;;  %v61_v52 = vmul.f32 1.442695, %v55_v46  ;;  %v184_v58 = vand.u32 2147483647, %v841_v21 }
  0x12   :  { %589 = vpow2.f32 %v191_v47  ;;  %v193_v54 = vmul.f32 1.442695, %v187_v48  ;;  %v326_v57 = vsub.f32 0.0, %v322_v50  ;;  %v323_v60 = vand.u32 2147483647, %v846_v22 }
  0x13   :  { %407 = vrot.lane.b32.xlu1 %v398_v23, %s725_s9  ;;  %v329_v55 = vmul.f32 1.442695, %v325_v49  ;;  %591 = vpow2.f32 %v61_v52  ;;  %v324_v63 = vand.u32 2147483647, %v859_v27  ;;  %v56_v3 = vsub.f32 0.0, %v52_v56 }
  0x14   :  { %147 = vrot.lane.b32.xlu0 %v136_v25, %s725_s9  ;;  %593 = vpow2.f32 %v193_v54  ;;  %v331_v5 = vmul.f32 1.442695, %v326_v57  ;;  %v188_v6 = vsub.f32 0.0, %v184_v58  ;;  %v327_v7 = vsub.f32 0.0, %v323_v60 }
  0x15   :  { %595 = vpow2.f32 %v329_v55  ;;  %v328_v12 = vsub.f32 0.0, %v324_v63  ;;  %v63_v13 = vmul.f32 1.442695, %v56_v3  ;;  %v169_v37 = vmax.f32 %v780_v1, 0.0 }
  0x16   :  { %v195_v15 = vmul.f32 1.442695, %v188_v6  ;;  %v333_v17 = vmul.f32 1.442695, %v327_v7  ;;  %v37_v38 = vmax.f32 %v775_v0, 0.0  ;;  %vm41_vm0 = vcmp.ne.f32.partialorder %v775_v0, %v775_v0 }
  0x17   :  { %271 = vrot.lane.b32.xlu1 %v260_v28, %s725_s9  ;;  %v335_v19 = vmul.f32 1.442695, %v328_v12  ;;  %vm173_vm2 = vcmp.ne.f32.partialorder %v780_v1, %v780_v1  ;;  %v38_v52 = vmax.f32 %v785_v2, 0.0  ;;  %vm42_vm4 = vcmp.ne.f32.partialorder %v785_v2, %v785_v2 }
  0x18   :  { %409 = vrot.lane.b32.xlu0 %v399_v30, %s725_s9  ;;  %v170_v6 = vmax.f32 %v792_v4, 0.0  ;;  %vm174_vm8 = vcmp.ne.f32.partialorder %v792_v4, %v792_v4  ;;  %vm43_vm11 = vcmp.ne.f32.partialorder %v804_v8, %v804_v8  ;;  %vm175_vm12 = vcmp.ne.f32.partialorder %v809_v9, %v809_v9 }
  0x19   :  { %v584_v51 = vpop.eup %583  ;;  %vm313_vm13 = vcmp.ne.f32.partialorder %v814_v11, %v814_v11  ;;  %vm314_vm15 = vcmp.ne.f32.partialorder %v827_v16, %v827_v16 }
  0x1a   :  { %v876_v53 = vpop.eup %585  ;;  %v65_v59 = vadd.f32 1.0, %v584_v51  ;;  %v68_v18 = vmul.f32 -0.5, %v584_v51  ;;  %v71_v32 = vand.u32 2147483647, %v584_v51 }
  0x1b   :  { %411 = vrot.lane.b32.xlu1 %v400_v31, %s725_s9  ;;  %v197_v61 = vadd.f32 1.0, %v876_v53  ;;  %v882_v62 = vpop.eup %587  ;;  %v200_v23 = vmul.f32 -0.5, %v876_v53  ;;  %v203_v35 = vand.u32 2147483647, %v876_v53 }
  0x1c   :  { %597 = vlog2.f32 %v65_v59  ;;  %v74_v10 = vadd.f32 1.0, %v882_v62  ;;  %v886_v14 = vpop.eup %589  ;;  %v69_v29 = vadd.f32 1.0, %v68_v18  ;;  %v77_v30 = vmul.f32 -0.5, %v882_v62 }
  0x1d   :  { %599 = vlog2.f32 %v197_v61  ;;  %v889_v24 = vpop.eup %591  ;;  %v206_v25 = vadd.f32 1.0, %v886_v14  ;;  %v201_v33 = vadd.f32 1.0, %v200_v23  ;;  %v209_v39 = vmul.f32 -0.5, %v886_v14 }
  0x1e   :  { %601 = vpow2.f32 %v331_v5  ;;  %v892_v26 = vpop.eup %593  ;;  %v83_v36 = vadd.f32 1.0, %v889_v24  ;;  %v70_v42 = vmul.f32 %v584_v51, %v69_v29  ;;  %v78_v43 = vadd.f32 1.0, %v77_v30 }
  0x1f   :  { %603 = vlog2.f32 %v74_v10  ;;  %v894_v28 = vpop.eup %595  ;;  %v215_v40 = vadd.f32 1.0, %v892_v26  ;;  %vm908_vm1 = vcmp.lt.f32.partialorder %v71_v32, 0.0004427343  ;;  %v202_v48 = vmul.f32 %v876_v53, %v201_v33 }
  0x20   :  { %605 = vpow2.f32 %v63_v13  ;;  %v337_v44 = vadd.f32 1.0, %v894_v28  ;;  %vm915_vm3 = vcmp.lt.f32.partialorder %v203_v35, 0.0004427343  ;;  %v80_v51 = vand.u32 2147483647, %v882_v62 }
  0x21   :  { %607 = vpow2.f32 %v195_v15  ;;  %v210_v54 = vadd.f32 1.0, %v209_v39  ;;  %v212_v55 = vand.u32 2147483647, %v886_v14  ;;  %v79_v57 = vmul.f32 %v882_v62, %v78_v43 }
  0x22   :  { %609 = vpow2.f32 %v333_v17  ;;  %v86_v58 = vmul.f32 -0.5, %v889_v24  ;;  %v89_v63 = vand.u32 2147483647, %v889_v24  ;;  %vm938_vm5 = vcmp.lt.f32.partialorder %v80_v51, 0.0004427343 }
  0x23   :  { %611 = vpow2.f32 %v335_v19  ;;  %v218_v7 = vmul.f32 -0.5, %v892_v26  ;;  %vm946_vm6 = vcmp.lt.f32.partialorder %v212_v55, 0.0004427343  ;;  %v39_v15 = vmax.f32 %v804_v8, 0.0 }
  0x24   :  { %613 = vlog2.f32 %v206_v25  ;;  %v211_v23 = vmul.f32 %v886_v14, %v210_v54  ;;  %v87_v25 = vadd.f32 1.0, %v86_v58  ;;  %vm956_vm7 = vcmp.lt.f32.partialorder %v89_v63, 0.0004427343 }
  0x25   :  { %615 = vlog2.f32 %v83_v36  ;;  %v340_v32 = vmul.f32 -0.5, %v894_v28  ;;  %v219_v35 = vadd.f32 1.0, %v218_v7  ;;  %v221_v14 = vand.u32 2147483647, %v892_v26 }
  0x26   :  { %v598_v31 = vpop.eup %597  ;;  %617 = vlog2.f32 %v215_v40  ;;  %v343_v36 = vand.u32 2147483647, %v894_v28  ;;  %v309_v43 = vmax.f32 %v814_v11, 0.0  ;;  %v88_v46 = vmul.f32 %v889_v24, %v87_v25 }
  0x27   :  { %v600_v34 = vpop.eup %599  ;;  %v67_v41 = vmul.f32 0.6931472, %v598_v31  ;;  %619 = vlog2.f32 %v337_v44  ;;  %v220_v51 = vmul.f32 %v892_v26, %v219_v35  ;;  %vm980_vm9 = vcmp.lt.f32.partialorder %v221_v14, 0.0004427343 }
  0x28   :  { %v904_v45 = vpop.eup %601  ;;  %v199_v47 = vmul.f32 0.6931472, %v600_v34  ;;  %v171_v34 = vmax.f32 %v809_v9, 0.0  ;;  %vm984_vm10 = vcmp.lt.f32.partialorder %v343_v36, 0.0004427343  ;;  %v310_v7 = vmax.f32 %v827_v16, 0.0 }
  0x29   :  { %v604_v49 = vpop.eup %603  ;;  %v73_v53 = vsel %vm908_vm1, %v70_v42, %v67_v41  ;;  %v346_v3 = vadd.f32 1.0, %v904_v45  ;;  %v352_v55 = vand.u32 2147483647, %v904_v45 }
  0x2a   :  { %v922_v56 = vpop.eup %605  ;;  %v205_v60 = vsel %vm915_vm3, %v202_v48, %v199_v47  ;;  %v76_v61 = vmul.f32 0.6931472, %v604_v49  ;;  %v101_v12 = vadd.f32 %v73_v53, %v37_v38  ;;  %v341_v47 = vadd.f32 1.0, %v340_v32 }
  0x2b   :  { %v928_v59 = vpop.eup %607  ;;  %v92_v17 = vadd.f32 1.0, %v922_v56  ;;  %v233_v19 = vadd.f32 %v205_v60, %v169_v37  ;;  %621 = vlog2.f32 %v346_v3  ;;  %v349_v48 = vmul.f32 -0.5, %v904_v45 }
  0x2c   :  { %v934_v5 = vpop.eup %609  ;;  %v224_v29 = vadd.f32 1.0, %v928_v59  ;;  %v82_v30 = vsel %vm938_vm5, %v79_v57, %v76_v61  ;;  %v105_v37 = vsel %vm41_vm0, %v775_v0, %v101_v12  ;;  %v95_v58 = vmul.f32 -0.5, %v922_v56 }
  0x2d   :  { %v944_v10 = vpop.eup %611  ;;  %v355_v33 = vadd.f32 1.0, %v934_v5  ;;  %623 = vlog2.f32 %v92_v17  ;;  %v237_v41 = vsel %vm173_vm2, %v780_v1, %v233_v19  ;;  %v102_v42 = vadd.f32 %v82_v30, %v38_v52 }
  0x2e   :  { %v614_v18 = vpop.eup %613  ;;  %v364_v39 = vadd.f32 1.0, %v944_v10  ;;  %625 = vlog2.f32 %v224_v29  ;;  %v109_v50 = vmul.f32 0.9, %v105_v37  ;;  %v241_v54 = vmul.f32 0.9, %v237_v41 }
  0x2f   :  { %v208_v38 = vmul.f32 0.6931472, %v614_v18  ;;  %v616_v40 = vpop.eup %615  ;;  %627 = vlog2.f32 %v355_v33  ;;  %v106_v26 = vsel %vm42_vm4, %v785_v2, %v102_v42  ;;  %v342_v61 = vmul.f32 %v894_v28, %v341_v47 }
  0x30   :  { %v618_v44 = vpop.eup %617  ;;  %629 = vlog2.f32 %v364_v39  ;;  %v85_v53 = vmul.f32 0.6931472, %v616_v40  ;;  %v350_v63 = vadd.f32 1.0, %v349_v48  ;;  %v227_v3 = vmul.f32 -0.5, %v928_v59 }
  0x31   :  { %v620_v49 = vpop.eup %619  ;;  %v214_v24 = vsel %vm946_vm6, %v211_v23, %v208_v38  ;;  %v217_v57 = vmul.f32 0.6931472, %v618_v44  ;;  %v1002_v62 = vadd.f32 0.1, %v109_v50  ;;  %v40_v12 = vmax.f32 %v836_v20, 0.0 }
  0x32   :  { %v339_v60 = vmul.f32 0.6931472, %v620_v49  ;;  %v358_v13 = vmul.f32 -0.5, %v934_v5  ;;  %v1007_v18 = vadd.f32 0.1, %v241_v54  ;;  %v234_v23 = vadd.f32 %v214_v24, %v170_v6 }
  0x33   :  { %v110_v19 = vmul.f32 0.9, %v106_v26  ;;  %vm1011_vm14 = vcmp.lt.f32.partialorder %v352_v55, 0.0004427343  ;;  %v91_v25 = vsel %vm956_vm7, %v88_v46, %v85_v53  ;;  %v223_v29 = vsel %vm980_vm9, %v220_v51, %v217_v57 }
  0x34   :  { %v96_v30 = vadd.f32 1.0, %v95_v58  ;;  %v367_v32 = vmul.f32 -0.5, %v944_v10  ;;  %v345_v6 = vsel %vm984_vm10, %v342_v61, %v339_v60  ;;  %v351_v35 = vmul.f32 %v904_v45, %v350_v63 }
  0x35   :  { %v622_v17 = vpop.eup %621  ;;  %v98_v14 = vand.u32 2147483647, %v922_v56  ;;  %v228_v36 = vadd.f32 1.0, %v227_v3  ;;  %v117_v38 = vmul.f32 2.0, %v1002_v62  ;;  %v230_v39 = vand.u32 2147483647, %v928_v59 }
  0x36   :  { %v348_v31 = vmul.f32 0.6931472, %v622_v17  ;;  %v359_v40 = vadd.f32 1.0, %v358_v13  ;;  %v238_v42 = vsel %vm174_vm8, %v792_v4, %v234_v23  ;;  %v103_v45 = vadd.f32 %v91_v25, %v39_v15 }
  0x37   :  { %v624_v33 = vpop.eup %623  ;;  %v235_v44 = vadd.f32 %v223_v29, %v171_v34  ;;  %v361_v46 = vand.u32 2147483647, %v934_v5  ;;  %v373_v47 = vadd.f32 %v345_v6, %v309_v43  ;;  %v97_v49 = vmul.f32 %v922_v56, %v96_v30 }
  0x38   :  { %v626_v37 = vpop.eup %625  ;;  %v94_v48 = vmul.f32 0.6931472, %v624_v33  ;;  %v368_v50 = vadd.f32 1.0, %v367_v32  ;;  %vm1038_vm0 = vcmp.lt.f32.partialorder %v98_v14, 0.0004427343  ;;  %v229_v4 = vmul.f32 %v928_v59, %v228_v36 }
  0x39   :  { %v628_v41 = vpop.eup %627  ;;  %v226_v52 = vmul.f32 0.6931472, %v626_v37  ;;  %v370_v15 = vand.u32 2147483647, %v944_v10  ;;  %v354_v34 = vsel %vm1011_vm14, %v351_v35, %v348_v31  ;;  %vm1046_vm1 = vcmp.lt.f32.partialorder %v230_v39, 0.0004427343 }
  0x3a   :  { %v630_v51 = vpop.eup %629  ;;  %v357_v43 = vmul.f32 0.6931472, %v628_v41  ;;  %v360_v56 = vmul.f32 %v934_v5, %v359_v40  ;;  %v242_v24 = vmul.f32 0.9, %v238_v42  ;;  %v107_v55 = vsel %vm43_vm11, %v804_v8, %v103_v45 }
  0x3b   :  { %v239_v59 = vsel %vm175_vm12, %v809_v9, %v235_v44  ;;  %vm1059_vm2 = vcmp.lt.f32.partialorder %v361_v46, 0.0004427343  ;;  %v100_v53 = vsel %vm1038_vm0, %v97_v49, %v94_v48  ;;  %v172_v5 = vmax.f32 %v841_v21, 0.0 }
  0x3c   :  { %v366_v57 = vmul.f32 0.6931472, %v630_v51  ;;  %v369_v58 = vmul.f32 %v944_v10, %v368_v50  ;;  %v374_v60 = vadd.f32 %v354_v34, %v310_v7  ;;  %v232_v61 = vsel %vm1046_vm1, %v229_v4, %v226_v52 }
  0x3d   :  { %v311_v63 = vmax.f32 %v846_v22, 0.0  ;;  %vm1070_vm3 = vcmp.lt.f32.partialorder %v370_v15, 0.0004427343  ;;  %v281_v3 = vmul.f32 -2.0, %v1007_v18  ;;  %v1075_v13 = vadd.f32 0.1, %v110_v19 }
  0x3e   :  { %v377_v17 = vsel %vm313_vm13, %v814_v11, %v373_v47  ;;  %v363_v10 = vsel %vm1059_vm2, %v360_v56, %v357_v43  ;;  %v1083_v7 = vadd.f32 0.1, %v242_v24  ;;  %v111_v23 = vmul.f32 0.9, %v107_v55 }
  0x3f   :  { %v104_v28 = vadd.f32 %v100_v53, %v40_v12  ;;  %v312_v25 = vmax.f32 %v859_v27, 0.0  ;;  %v243_v29 = vmul.f32 0.9, %v239_v59  ;;  %vm44_vm4 = vcmp.ne.f32.partialorder %v836_v20, %v836_v20 }
  0x40   :  { %v236_v19 = vadd.f32 %v232_v61, %v172_v5  ;;  %v372_v30 = vsel %vm1070_vm3, %v369_v58, %v366_v57  ;;  %v381_v32 = vmul.f32 0.9, %v377_v17  ;;  %v378_v11 = vsel %vm314_vm15, %v827_v16, %v374_v60 }
  0x41   :  { %vm176_vm5 = vcmp.ne.f32.partialorder %v841_v21, %v841_v21  ;;  %v375_v12 = vadd.f32 %v363_v10, %v311_v63  ;;  %v285_v33 = vmul.f32 1.442695, %v281_v3  ;;  %v118_v6 = vmul.f32 2.0, %v1075_v13 }
  0x42   :  { %vm315_vm6 = vcmp.ne.f32.partialorder %v846_v22, %v846_v22  ;;  %v282_v35 = vmul.f32 -2.0, %v1083_v7  ;;  %v1100_v14 = vadd.f32 0.1, %v111_v23  ;;  %v108_v36 = vsel %vm44_vm4, %v836_v20, %v104_v28 }
  0x43   :  { %v376_v37 = vadd.f32 %v372_v30, %v312_v25  ;;  %v1103_v31 = vadd.f32 0.1, %v243_v29  ;;  %v382_v16 = vmul.f32 0.9, %v378_v11  ;;  %v240_v39 = vsel %vm176_vm5, %v841_v21, %v236_v19 }
  0x44   :  { %vm316_vm7 = vcmp.ne.f32.partialorder %v859_v27, %v859_v27  ;;  %v121_v40 = vmul.f32 1.442695, %v117_v38  ;;  %v1108_v41 = vadd.f32 0.1, %v381_v32  ;;  %v379_v42 = vsel %vm315_vm6, %v846_v22, %v375_v12 }
  0x45   :  { %v123_v45 = vmul.f32 1.442695, %v118_v6  ;;  %v112_v44 = vmul.f32 0.9, %v108_v36  ;;  %v287_v46 = vmul.f32 1.442695, %v282_v35  ;;  %v380_v49 = vsel %vm316_vm7, %v859_v27, %v376_v37 }
  0x46   :  { %v119_v47 = vmul.f32 2.0, %v1100_v14  ;;  %v244_v48 = vmul.f32 0.9, %v240_v39  ;;  %631 = vpow2.f32 %v285_v33  ;;  %v283_v50 = vmul.f32 -2.0, %v1103_v31 }
  0x47   :  { %v1114_v21 = vadd.f32 0.1, %v382_v16  ;;  %v383_v51 = vmul.f32 0.9, %v379_v42  ;;  %633 = vpow2.f32 %v121_v40  ;;  %v421_v38 = vmul.f32 -2.0, %v1108_v41 }
  0x48   :  { %v1117_v1 = vadd.f32 0.1, %v112_v44  ;;  %v384_v22 = vmul.f32 0.9, %v380_v49  ;;  %635 = vpow2.f32 %v123_v45  ;;  %v125_v52 = vmul.f32 1.442695, %v119_v47 }
  0x49   :  { %v1119_v4 = vadd.f32 0.1, %v244_v48  ;;  %637 = vpow2.f32 %v287_v46  ;;  %v289_v15 = vmul.f32 1.442695, %v283_v50  ;;  %v422_v27 = vmul.f32 -2.0, %v1114_v21 }
  0x4a   :  { %v1122_v34 = vadd.f32 0.1, %v383_v51  ;;  %v425_v54 = vmul.f32 1.442695, %v421_v38  ;;  %v120_v43 = vmul.f32 2.0, %v1117_v1  ;;  %639 = vpow2.f32 %v125_v52 }
  0x4b   :  { %v1125_v56 = vadd.f32 0.1, %v384_v22  ;;  %v284_v24 = vmul.f32 -2.0, %v1119_v4  ;;  %641 = vpow2.f32 %v289_v15  ;;  %v427_v55 = vmul.f32 1.442695, %v422_v27 }
  0x4c   :  { %v423_v59 = vmul.f32 -2.0, %v1122_v34  ;;  %643 = vpow2.f32 %v425_v54  ;;  %v127_v53 = vmul.f32 1.442695, %v120_v43  ;;  %v249_v29 = vsub.f32 %v1007_v18, %v1002_v62 }
  0x4d   :  { %v424_v5 = vmul.f32 -2.0, %v1125_v56  ;;  %v291_v60 = vmul.f32 1.442695, %v284_v24  ;;  %645 = vpow2.f32 %v427_v55  ;;  %v129_v33 = vsub.f32 1.2819356, %v1002_v62 }
  0x4e   :  { %v429_v61 = vmul.f32 1.442695, %v423_v59  ;;  %647 = vpow2.f32 %v127_v53  ;;  %v250_v37 = vsub.f32 %v1083_v7, %v1075_v13  ;;  %v130_v18 = vsub.f32 1.2819356, %v1075_v13 }
  0x4f   :  { %v431_v23 = vmul.f32 1.442695, %v424_v5  ;;  %649 = vpow2.f32 %v291_v60  ;;  %v131_v38 = vsub.f32 1.2819356, %v1100_v14  ;;  %v251_v27 = vsub.f32 %v1103_v31, %v1100_v14 }
  0x50   :  { %v632_v26 = vpop.eup %631  ;;  %651 = vpow2.f32 %v429_v61  ;;  %v389_v54 = vsub.f32 %v1108_v41, %v1002_v62  ;;  %v252_v62 = vsub.f32 %v1119_v4, %v1117_v1  ;;  %v391_v41 = vsub.f32 %v1122_v34, %v1100_v14 }
  0x51   :  { %v634_v57 = vpop.eup %633  ;;  %v293_v9 = vmul.f32 0.5, %v632_v26  ;;  %653 = vpow2.f32 %v431_v23  ;;  %v390_v26 = vsub.f32 %v1114_v21, %v1075_v13  ;;  %vm469_vm8 = vcmask 523520  }
  0x52   :  { %v636_v63 = vpop.eup %635  ;;  %vm487_vm9 = vcmask 261120  }
  0x53   :  { %v638_v3 = vpop.eup %637 }
  0x54   :  { %v1132_v19 = vpop.eup %639  ;;  %v294_v11 = vmul.f32 0.5, %v638_v3  ;;  %v132_v3 = vsub.f32 1.2819356, %v1117_v1 }
  0x55   :  { %v642_v12 = vpop.eup %641 }
  0x56   :  { %v644_v36 = vpop.eup %643  ;;  %v295_v44 = vmul.f32 0.5, %v642_v12 }
  0x57   :  { %v646_v46 = vpop.eup %645  ;;  %v433_v50 = vmul.f32 0.5, %v644_v36 }
  0x58   :  { %v648_v52 = vpop.eup %647  ;;  %v434_v53 = vmul.f32 0.5, %v646_v46 }
  0x59   :  { %v650_v24 = vpop.eup %649 }
  0x5a   :  { %v652_v5 = vpop.eup %651 }
  0x76   :  { %v142_v58 = vpop.permute.xlu0 %141 }
  0x77   :  { %v153_v17 = vadd.f32 %v634_v57, %v142_v58 }
  0x79   :  { %v266_v10 = vpop.permute.xlu1 %265  ;;  %v157_v6 = vmul.f32 0.038503036, %v153_v17 }
  0x7a   :  { %v277_v28 = vadd.f32 %v634_v57, %v266_v10  ;;  %v144_v25 = vpop.permute.xlu0 %143 }
  0x7b   :  { %v154_v32 = vadd.f32 %v636_v63, %v144_v25  ;;  %v161_v47 = vadd.f32 %v157_v6, %v129_v33 }
  0x7c   :  { %v297_v30 = vmul.f32 %v293_v9, %v277_v28 }
  0x7d   :  { %v268_v35 = vpop.permute.xlu1 %267  ;;  %v158_v42 = vmul.f32 0.038503036, %v154_v32  ;;  %v564_v58 = vadd.f32 -0.5, %v161_v47  ;;  %v435_v32 = vmul.f32 0.5, %v652_v5 }
  0x7e   :  { %v278_v16 = vadd.f32 %v636_v63, %v268_v35  ;;  %v146_v39 = vpop.permute.xlu0 %145  ;;  %v301_v40 = vadd.f32 %v297_v30, %v249_v29  ;;  %v296_v30 = vmul.f32 0.5, %v650_v24 }
  0x7f   :  { %v155_v48 = vadd.f32 %v1132_v19, %v146_v39  ;;  %v162_v55 = vadd.f32 %v158_v42, %v130_v18 }
  0x80   :  { %v298_v45 = vmul.f32 %v294_v11, %v278_v16  ;;  %v568_v15 = vadd.f32 -0.5, %v301_v40  ;;  %v449_v11 = vmul.f32 0.1, %v564_v58 }
  0x81   :  { %v270_v49 = vpop.permute.xlu1 %269  ;;  %v159_v60 = vmul.f32 0.038503036, %v155_v48  ;;  %v565_v25 = vadd.f32 -0.5, %v162_v55 }
  0x82   :  { %v302_v51 = vadd.f32 %v298_v45, %v250_v37  ;;  %v279_v22 = vadd.f32 %v1132_v19, %v270_v49  ;;  %v406_v7 = vpop.permute.xlu0 %405  ;;  %v453_v23 = vmul.f32 0.9, %v568_v15  ;;  %v392_v49 = vsub.f32 %v1125_v56, %v1117_v1 }
  0x83   :  { %v417_v43 = vadd.f32 %v634_v57, %v406_v7  ;;  %v654_v57 = vpop.eup %653  ;;  %v163_v12 = vadd.f32 %v159_v60, %v131_v38  ;;  %v450_v18 = vmul.f32 0.1, %v565_v25 }
  0x84   :  { %v299_v59 = vmul.f32 %v295_v44, %v279_v22  ;;  %v569_v17 = vadd.f32 -0.5, %v302_v51  ;;  %v436_v16 = vmul.f32 0.5, %v654_v57  ;;  %v457_v14 = vadd.f32 %v453_v23, %v449_v11  ;;  %v495_v11 = vld [vmem:[%s1239_s3] sm:$0xff] }
  0x85   :  { %v437_v61 = vmul.f32 %v433_v50, %v417_v43  ;;  %v408_v9 = vpop.permute.xlu1 %407  ;;  %v566_v46 = vadd.f32 -0.5, %v163_v12  ;;  %v496_v12 = vld [vmem:[%s1239_s3 + $0x8] sm:$0xff] }
  0x86   :  { %v418_v31 = vadd.f32 %v636_v63, %v408_v9  ;;  %v148_v10 = vpop.permute.xlu0 %147  ;;  %v303_v13 = vadd.f32 %v299_v59, %v251_v27  ;;  %v454_v35 = vmul.f32 0.9, %v569_v17 }
  0x87   :  { %v441_v21 = vadd.f32 %v437_v61, %v389_v54  ;;  %v156_v28 = vadd.f32 %v648_v52, %v148_v10  ;;  %v451_v55 = vmul.f32 0.1, %v566_v46 }
  0x88   :  { %v438_v29 = vmul.f32 %v434_v53, %v418_v31  ;;  %v570_v34 = vadd.f32 -0.5, %v303_v13  ;;  %v458_v51 = vadd.f32 %v454_v35, %v450_v18  ;;  %v500_v35 = vadd.f32 %v496_v12, %v785_v2 }
  0x89   :  { %v572_v33 = vadd.f32 -0.5, %v441_v21  ;;  %v160_v63 = vmul.f32 0.038503036, %v156_v28  ;;  %v272_v6 = vpop.permute.xlu1 %271 }
  0x8a   :  { %v442_v36 = vadd.f32 %v438_v29, %v390_v26  ;;  %v280_v4 = vadd.f32 %v648_v52, %v272_v6  ;;  %v410_v37 = vpop.permute.xlu0 %409  ;;  %v455_v15 = vmul.f32 0.9, %v570_v34  ;;  %v499_v6 = vadd.f32 %v495_v11, %v775_v0  ;;  %v510_v34 = vld [vmem:[%s1240_s4 + $0x18] sm:$0xff]  ;;  %504 = vst.msk [vmem:[#allocation4 + $0x8] sm:$0xff] %vm487_vm9, %v500_v35 }
  0x8b   :  { %v461_v39 = vmul.f32 0.9, %v572_v33  ;;  %v419_v40 = vadd.f32 %v1132_v19, %v410_v37  ;;  %v164_v45 = vadd.f32 %v160_v63, %v132_v3  ;;  %v497_v33 = vld [vmem:[%s1239_s3 + $0x10] sm:$0xff]  ;;  %v498_v63 = vld [vmem:[%s1239_s3 + $0x18] sm:$0xff]  ;;  %v508_v37 = vld [vmem:[%s1240_s4 + $0x8] sm:$0xff] }
  0x8c   :  { %v573_v42 = vadd.f32 -0.5, %v442_v36  ;;  %v300_v44 = vmul.f32 %v296_v30, %v280_v4  ;;  %v459_v56 = vadd.f32 %v455_v15, %v451_v55  ;;  %v501_v36 = vadd.f32 %v497_v33, %v804_v8  ;;  %v507_v4 = vld [vmem:[%s1240_s4] sm:$0xff]  ;;  %503 = vst.msk [vmem:[#allocation4] sm:$0xff] %vm487_vm9, %v499_v6 }
  0x8d   :  { %v465_v47 = vadd.f32 %v461_v39, %v457_v14  ;;  %v439_v48 = vmul.f32 %v435_v32, %v419_v40  ;;  %v412_v50 = vpop.permute.xlu1 %411  ;;  %v567_v19 = vadd.f32 -0.5, %v164_v45  ;;  %v509_v14 = vld [vmem:[%s1240_s4 + $0x10] sm:$0xff]  ;;  %v511_v39 = vadd.f32 %v507_v4, %v775_v0  ;;  %s655_s4 = scalar_lea.vmem %s535_s14, 512 }
  0x8e   :  { %v462_v38 = vmul.f32 0.9, %v573_v42  ;;  %v304_v22 = vadd.f32 %v300_v44, %v252_v62  ;;  %v420_v7 = vadd.f32 %v648_v52, %v412_v50  ;;  %v512_v40 = vadd.f32 %v508_v37, %v785_v2  ;;  %505 = vst.msk [vmem:[#allocation4 + $0x10] sm:$0xff] %vm487_vm9, %v501_v36  ;;  %p656_p0 = scmp.ne.s32.totalorder %s535_s14, %s655_s4  ;;  %p661_p2 = scmp.lt.s32.totalorder %s655_s4, %s655_s4 }
  0x8f   :  { %v443_v27 = vadd.f32 %v439_v48, %v391_v41  ;;  %v470_v26 = vsel %vm469_vm8, %v465_v47, 0.0  ;;  %v452_v61 = vmul.f32 0.1, %v567_v19  ;;  %v513_v18 = vadd.f32 %v509_v14, %v804_v8  ;;  %515 = vst.msk [vmem:[#allocation6] sm:$0xff] %vm487_vm9, %v511_v39 }
  0x90   :  { %v466_v54 = vadd.f32 %v462_v38, %v458_v51  ;;  %v571_v43 = vadd.f32 -0.5, %v304_v22  ;;  %v440_v24 = vmul.f32 %v436_v16, %v420_v7  ;;  %v502_v16 = vadd.f32 %v498_v63, %v836_v20  ;;  %516 = vst.msk [vmem:[#allocation6 + $0x8] sm:$0xff] %vm487_vm9, %v512_v40  ;;  %p662_p3 = por %p661_p2, %p660_p1 }
  0x91   :  { %v574_v59 = vadd.f32 -0.5, %v443_v27  ;;  %v514_v42 = vadd.f32 %v510_v34, %v836_v20 }
  0x92   :  { %v471_v53 = vsel %vm469_vm8, %v466_v54, 0.0  ;;  %v456_v5 = vmul.f32 0.9, %v571_v43  ;;  %v444_v1 = vadd.f32 %v440_v24, %v392_v49  ;;  %506 = vst.msk [vmem:[#allocation4 + $0x18] sm:$0xff] %vm487_vm9, %v502_v16  ;;  %p663_p4 = pnand %p662_p3, %p656_p0 }
  0x93   :  { %v472_v58 = vadd.f32 %v471_v53, %v470_v26  ;;  %v463_v60 = vmul.f32 0.9, %v574_v59 }
  0x94   :  { %v575_v52 = vadd.f32 -0.5, %v444_v1  ;;  %v460_v3 = vadd.f32 %v456_v5, %v452_v61 }
  0x95   :  { %v467_v9 = vadd.f32 %v463_v60, %v459_v56 }
  0x96   :  { %v464_v17 = vmul.f32 0.9, %v575_v52 }
  0x97   :  { %v473_v31 = vsel %vm469_vm8, %v467_v9, 0.0 }
  0x98   :  { %v474_v10 = vadd.f32 %v473_v31, %v472_v58  ;;  %v468_v62 = vadd.f32 %v464_v17, %v460_v3 }
  0x9a   :  { %v475_v41 = vsel %vm469_vm8, %v468_v62, 0.0 }
  0x9b   :  { %v476_v57 = vadd.f32 %v475_v41, %v474_v10 }
  0x9d   :  { %v477_v23 = vrot.slane %v476_v57, 4 }
  0x9f   :  { %v478_v13 = vadd.f32 %v477_v23, %v476_v57 }
  0xa1   :  { %v479_v21 = vrot.slane %v478_v13, 2 }
  0xa3   :  { %v480_v28 = vadd.f32 %v479_v21, %v478_v13 }
  0xa5   :  { %v481_v25 = vrot.slane %v480_v28, 1 }
  0xa7   :  { %v482_v29 = vadd.f32 %v481_v25, %v480_v28 }
  0xa9   :  { %484 = vrot.lane.b32.xlu0 %v482_v29, %s726_s2 }
 0x11b   :  { %v485_v30 = vpop.permute.xlu0 %484 }
 0x11c   :  { %v488_v32 = vsel %vm487_vm9, %v485_v30, 0.0 }
 0x11d   :  { %489 = vadd.xlane.f32.xlu1 %v488_v32 }
 0x11e   :  { %666 = shalt.err (!%p663_p4)
}
 0x11f   :  { %s667_s20 = scalar_lea.hbm %s1242_s6, 512 }
 0x120   :  { %p668_p5 = scmp.ne.s32.totalorder %s1242_s6, %s667_s20  ;;  %p671_p6 = scmp.lt.u32.totalorder %s667_s20, %s1242_s6 }
 0x122   :  { %p673_p7 = pnand %p671_p6, %p668_p5 }
 0x124   :  { %676 = shalt.err (!%p673_p7)
}
 0x125   :  { %s728_s1 = smov 128   ;;  %s729_s2 = smov 8   ;;  %517 = vst.msk [vmem:[#allocation6 + $0x10] sm:$0xff] %vm487_vm9, %v513_v18  ;;  %518 = vst.msk [vmem:[#allocation6 + $0x18] sm:$0xff] %vm487_vm9, %v514_v42 }
 0x126   :  { %540 = dma.vmem_to_hbm [thread:$0]  %s535_s14, 512, %s1242_s6, [#allocation5], %s728_s1, %s728_s1, %s729_s2  }
 0x127   :  { %s730_s26 = smov [#allocation6]  }
 0x128   :  { %s546_s27 = sshll.u32 %s730_s26, 4  ;;  %s547_s27 = int_to_ptr.vmem [resolvable:$true] %s546_s27 }
 0x129   :  { %s677_s28 = scalar_lea.vmem %s547_s27, 512  ;;  %p682_p9 = scmp.lt.s32.totalorder %s547_s27, %s547_s27 }
 0x12a   :  { %p678_p8 = scmp.ne.s32.totalorder %s547_s27, %s677_s28  ;;  %p683_p10 = scmp.lt.s32.totalorder %s677_s28, %s677_s28 }
 0x12c   :  { %p684_p11 = por %p683_p10, %p682_p9 }
 0x12e   :  { %p685_p12 = pnand %p684_p11, %p678_p8 }
 0x130   :  { %688 = shalt.err (!%p685_p12)
}
 0x131   :  { %s689_s8 = scalar_lea.hbm %s1243_s7, 512 }
 0x132   :  { %p690_p13 = scmp.ne.s32.totalorder %s1243_s7, %s689_s8  ;;  %p693_p0 = scmp.lt.u32.totalorder %s689_s8, %s1243_s7 }
 0x134   :  { %p695_p1 = pnand %p693_p0, %p690_p13 }
 0x136   :  { %698 = shalt.err (!%p695_p1)
}
 0x137   :  { %552 = dma.vmem_to_hbm [thread:$0]  %s547_s27, 512, %s1243_s7, [#allocation5], %s728_s1, %s728_s1, %s729_s2   ;;  %vm493_vm10 = vcmask 0  }
 0x138   :  { %s731_s14 = smov [#allocation2]  }
 0x139   :  { %s525_s15 = sshll.u32 %s731_s14, 4  ;;  %s526_s15 = int_to_ptr.vmem [resolvable:$true] %s525_s15 }
 0x13a   :  { %s699_s3 = scalar_lea.vmem %s526_s15, 16  ;;  %s703_s16 = scalar_lea.vmem %s526_s15, 32 }
 0x13b   :  { %p700_p2 = scmp.ne.s32.totalorder %s526_s15, %s699_s3  ;;  %p704_p3 = scmp.lt.s32.totalorder %s526_s15, %s526_s15 }
 0x13c   :  { %p705_p4 = scmp.lt.s32.totalorder %s703_s16, %s699_s3 }
 0x13e   :  { %p706_p5 = por %p705_p4, %p704_p3 }
 0x140   :  { %p707_p6 = pnand %p706_p5, %p700_p2 }
 0x1aa   :  { %v490_v0 = vpop.xlane.xlu1 %489 }
 0x1ab   :  { %v492_v2 = vmul.f32 0.03125, %v490_v0 }
 0x1ad   :  { %494 = vst.msk [vmem:[#allocation2] sm:$0x1] %vm493_vm10, %v492_v2 }
 0x1ae   :  { %710 = shalt.err (!%p707_p6)
}
 0x1af   :  { %s711_s18 = scalar_lea.hbm %s1241_s5, 16 }
 0x1b0   :  { %p712_p7 = scmp.ne.s32.totalorder %s1241_s5, %s711_s18  ;;  %p715_p8 = scmp.lt.u32.totalorder %s711_s18, %s1241_s5 }
 0x1b2   :  { %p717_p9 = pnand %p715_p8, %p712_p7 }
 0x1b4   :  { %720 = shalt.err (!%p717_p9)
}
 0x1b5   :  { %528 = dma.vmem_to_hbm [thread:$0]  %s526_s15, 16, %s1241_s5, [#allocation3]  }
 0x1b6   :  { %721 = dma.done.wait [#allocation3], 16  }
 0x1b7   :  { %722 = vsyncadd [#allocation3], 4294967280 }
 0x1b8   :  { %723 = dma.done.wait [#allocation5], 1024  }
 0x1b9   :  { %724 = vsyncadd [#allocation5], 4294966272 }
 0x1ba   :  { %562 = vsyncpa [#allocation3], 1 }
 0x1bb   :  { %563 = vsyncpa [#allocation5], 1 }

</bundles_post_ra>
